<compile_context>
chip_gen: v5e
topology: v5e:2x2
jax: 0.10.0
libtpu: 0.0.40
codegen_flags: <defaults>
</compile_context>

<pallas_src>
import functools
import math

import numpy as np
import jax
import jax.numpy as jnp
from jax import lax
from jax.experimental import pallas as pl
from jax.experimental.pallas import tpu as pltpu

IN_F = 11
OUT_F = 3
HIDDEN = 128  # matches the module default h=HIDDEN

_DYN_COLS = (3, 4, 5, 8, 9, 10)  # columns rewritten autoregressively


def autoreg_u_kernel(x_ref, t_ref, wxs_ref, wbig_ref, whh_ref, wxd_ref,
                     bcat_ref, bhxu_ref, bhead_ref, pre0_ref,
                     out_ref,
                     pre_scr, h_scr, hzr_scr, uctr_scr, u_scr, v_scr, t_scr,
                     *, n, hidden, out_f, t_chunk):
    c = pl.program_id(0)
    h2 = 2 * hidden
    h5 = 5 * hidden

    @pl.when(c == 0)
    def _init():
        # GConvGRU starts from H = 0, so hzr = H @ Whzr must start at 0 too.
        h_scr[...] = jnp.zeros_like(h_scr)
        hzr_scr[...] = jnp.zeros_like(hzr_scr)
        uctr_scr[...] = jnp.zeros_like(uctr_scr)   # discarded at g == 0
        u_scr[...] = jnp.zeros_like(u_scr)         # discarded at g == 0
        t_scr[...] = jnp.zeros_like(t_scr)         # discarded at g == 0
        # X[0][:, 3:6] is never rewritten; seed the "previous d36" carry with
        # it so the per-step update never lane-slices x again.
        v_scr[...] = x_ref[0:n, 3:6]

    # Hoisted, time-invariant input contribution for the whole chunk: rows
    # {3:6, 8:11} of wxs are zeroed, so this single [T_CHUNK*N, F] @ [F, 3H]
    # matmul (+ fused gate biases) covers the static columns of every step at
    # good MXU occupancy.
    pre_scr[...] = (
        jnp.dot(x_ref[...], wxs_ref[...], preferred_element_type=jnp.float32)
        + bcat_ref[...])

    # Hoist loop-invariant VMEM reads out of the recurrence.
    wxd0 = wxd_ref[0:1, :]
    wxd1 = wxd_ref[1:2, :]
    wxd2 = wxd_ref[2:3, :]
    pre0 = pre0_ref[...]
    bhxu = bhxu_ref[...]
    bhead = bhead_ref[...]

    def step(i, carry):
        # Carries entering step g (= c*t_chunk + i), all produced at step g-1:
        #   h      = h_{g-1}
        #   hzr    = h_{g-1} @ [Whz | Whr]          (from the fused matmul)
        #   uctr   = u_{g-1} @ Wx[3:6]              (from the fused matmul)
        #   u_prev = u_{g-1}
        #   v      = X[g-1][:, 3:6] after rewrite
        #   t_prev = time_{g-1}
        h, hzr, uctr, u_prev, v, t_prev = carry
        g = c * t_chunk + i
        rw = g > 0
        row0 = pl.multiple_of(i * n, n)

        t_now = t_ref[pl.ds(row0, n), :]                            # [N, 1]
        dt = t_now - t_prev
        dt = jnp.where(jnp.abs(dt) < 1e-12, jnp.ones_like(dt), dt)  # dt==0 guard
        diff = (u_prev - v) * pl.reciprocal(dt, approx=True)        # d811, g > 0

        # X[g][:, 8:11] contribution to the gate pre-activations.  K=3, so do
        # it as three VPU broadcast-FMAs (overlaps the MXU) instead of an MXU
        # matmul at <3% utilisation.
        d811con = (diff[:, 0:1] * wxd0 + diff[:, 1:2] * wxd1
                   + diff[:, 2:3] * wxd2)                           # [N, 3H]
        # X[g][:, 3:6] contribution (= u_{g-1} @ Wx[3:6]) arrives pre-fused
        # from the previous step's h-matmul; at g == 0 use the precomputed
        # original-X[0] dynamic-column contribution instead.
        dyn = jnp.where(rw, uctr + d811con, pre0)                   # [N, 3H]

        pre = pre_scr[pl.ds(row0, n), :] + dyn                      # [N, 3H]
        zr = jax.nn.sigmoid(pre[:, :h2] + hzr)                      # one EUP pass
        z = zr[:, :hidden]
        r = zr[:, hidden:]
        h_tilde = jnp.tanh(pre[:, h2:]
                           + jnp.dot(h * r, whh_ref[...],
                                     preferred_element_type=jnp.float32))
        h_new = z * h + (1.0 - z) * h_tilde

        # Single fused matmul against [Whzr | Whead@Wx[3:6] | Whead]: yields
        # next step's hzr and u-side pre contribution plus this step's head
        # output in one MXU dispatch, so no standalone head matmul and no K=3
        # d36 matmul sit on the serial h-chain.
        fused = jnp.dot(h_new, wbig_ref[...],
                        preferred_element_type=jnp.float32)         # [N, 5H+pad]
        u = fused[:, h5:h5 + out_f] + bhead                         # [N, OUT_F]
        out_ref[pl.ds(row0, n), :] = u

        v_new = jnp.where(rw, u_prev, v)                            # X[g][:, 3:6]
        return (h_new, fused[:, :h2], fused[:, h2:h5] + bhxu, u, v_new, t_now)

    carry0 = (h_scr[...], hzr_scr[...], uctr_scr[...],
              u_scr[...], v_scr[...], t_scr[...])
    h_f, hzr_f, uctr_f, u_f, v_f, t_f = lax.fori_loop(
        0, t_chunk, step, carry0, unroll=min(t_chunk, 8))

    # Spill carries for the next chunk.
    h_scr[...] = h_f
    hzr_scr[...] = hzr_f
    uctr_scr[...] = uctr_f
    u_scr[...] = u_f
    v_scr[...] = v_f
    t_scr[...] = t_f


def _fuse_params(params):
    """Fuse gate weights/biases, precompose the head into the h-matmul."""
    wx = jnp.concatenate([params["wxz"], params["wxr"], params["wxh"]],
                         axis=1)                                   # [F, 3H]
    whzr = jnp.concatenate([params["whz"], params["whr"]], axis=1)  # [H, 2H]
    bcat = jnp.concatenate([params["bxz"] + params["bhz"],
                            params["bxr"] + params["bhr"],
                            params["bxh"] + params["bhh"]], axis=1)  # [1, 3H]
    f = wx.shape[0]
    dyn = np.zeros((f, 1), np.float32)
    dyn[list(_DYN_COLS)] = 1.0
    wxs = wx * (1.0 - jnp.asarray(dyn))   # rows {3:6, 8:11} zeroed
    wxu = wx[3:6, :]                      # rows fed by u_{t-1}
    wxd = wx[8:11, :]                     # rows fed by (u_{t-1} - prev) / dt
    whead = params["whead"]
    bhead = params["bhead"]
    out_f = whead.shape[1]
    pad = (-out_f) % 128                  # keep the fused matmul lane-aligned
    whead_p = jnp.pad(whead, ((0, 0), (0, pad)))
    # One h-matmul per step produces hzr, u @ Wx[3:6] and u itself.
    wbig = jnp.concatenate([whzr, whead @ wxu, whead_p], axis=1)   # [H, 5H+pad]
    bhxu = bhead @ wxu                                             # [1, 3H]
    return wxs, wbig, params["whh"], wxd, bcat, bhxu, bhead, wxu


def _vmem_budgets():
    """(chunk budget, vmem_limit_bytes) derived from the actual generation."""
    try:
        cap = int(pltpu.get_tpu_info().vmem_capacity_bytes)
    except Exception:
        cap = 64 << 20                    # conservative (v7x per-TensorCore)
    cap = min(max(cap, 32 << 20), 128 << 20)
    return (cap * 3) // 8, (cap * 3) // 4  # v5e/v6e: 48/96 MiB, v7x: 24/48 MiB


def _choose_t_chunk(T, n, f, hidden, out_f, budget_bytes):
    """Largest chunk whose resident footprint fits the per-generation budget."""
    # Only the x/time/out blocks are double-buffered by the BlockSpec pipeline;
    # pre_scr (the dominant 3*hidden term) is single-buffered scratch.
    per_step = n * 4 * (3 * hidden + 2 * (f + 1 + out_f))
    m0 = 8 // math.gcd(n, 8)              # keep (t_chunk * n) % 8 == 0
    t_chunk = max(m0, (budget_bytes // per_step) // m0 * m0)
    t_max = m0 * (-(-T // m0))            # no point padding past T
    return max(m0, min(t_chunk, t_max))


def autoreg_u_forward(x_seq, edge_index, params):
    """x_seq: [T, N, IN_F] float32. Returns [T, N, OUT_F]."""
    del edge_index  # unused: K=1 ChebConv gates ignore the graph structure
    T, N, F = x_seq.shape
    H = params["whz"].shape[0]
    out_f = params["whead"].shape[1]

    wxs, wbig, whh, wxd, bcat, bhxu, bhead, wxu = _fuse_params(params)
    # Dynamic-column contribution of the (never rewritten) first timestep.
    pre0 = x_seq[0, :, 3:6] @ wxu + x_seq[0, :, 8:11] @ wxd        # [N, 3H]

    chunk_budget, vmem_limit = _vmem_budgets()
    t_chunk = _choose_t_chunk(T, N, F, H, out_f, chunk_budget)
    n_chunks = -(-T // t_chunk)
    t_pad = n_chunks * t_chunk
    if t_pad != T:
        # Ragged tail: pad by repeating the last frame (dt == 0 is guarded in
        # the kernel); padded outputs are sliced off below.
        x_seq_p = jnp.concatenate(
            [x_seq, jnp.broadcast_to(x_seq[-1:], (t_pad - T, N, F))], axis=0)
    else:
        x_seq_p = x_seq

    x2d = x_seq_p.reshape(t_pad * N, F)              # lane-friendly 2-D layout
    t2d = x_seq_p[:, :, 6:7].reshape(t_pad * N, 1)   # pre-split time column

    weights = (wxs, wbig, whh, wxd, bcat, bhxu, bhead, pre0)

    def full(w):
        return pl.BlockSpec(w.shape, lambda c: (0, 0))

    grid_spec = pltpu.PrefetchScalarGridSpec(
        num_scalar_prefetch=0,
        grid=(n_chunks,),
        in_specs=[pl.BlockSpec((t_chunk * N, F), lambda c: (c, 0)),
                  pl.BlockSpec((t_chunk * N, 1), lambda c: (c, 0))]
                 + [full(w) for w in weights],
        out_specs=pl.BlockSpec((t_chunk * N, out_f), lambda c: (c, 0)),
        scratch_shapes=[
            pltpu.VMEM((t_chunk * N, 3 * H), jnp.float32),  # hoisted x-side pre-acts
            pltpu.VMEM((N, H), jnp.float32),                # h carry (chunk border)
            pltpu.VMEM((N, 2 * H), jnp.float32),            # h @ Whzr carry
            pltpu.VMEM((N, 3 * H), jnp.float32),            # u @ Wx[3:6] carry
            pltpu.VMEM((N, out_f), jnp.float32),            # u_{t-1}
            pltpu.VMEM((N, out_f), jnp.float32),            # X[t-1][:, 3:6]
            pltpu.VMEM((N, 1), jnp.float32),                # time_{t-1}
        ],
    )

    kernel = functools.partial(autoreg_u_kernel, n=N, hidden=H, out_f=out_f,
                               t_chunk=t_chunk)

    out2d = pl.pallas_call(
        kernel,
        out_shape=jax.ShapeDtypeStruct((t_pad * N, out_f), jnp.float32),
        grid_spec=grid_spec,
        compiler_params=pltpu.CompilerParams(
            dimension_semantics=("arbitrary",),   # sequential time recurrence
            vmem_limit_bytes=int(vmem_limit)),
    )(x2d, t2d, *weights)

    return out2d[:T * N].reshape(T, N, out_f)


def init_params(key, in_f=IN_F, h=HIDDEN, out_f=OUT_F, scale=0.1):
    shapes = {
        "wxz": (in_f, h), "bxz": (1, h), "whz": (h, h), "bhz": (1, h),
        "wxr": (in_f, h), "bxr": (1, h), "whr": (h, h), "bhr": (1, h),
        "wxh": (in_f, h), "bxh": (1, h), "whh": (h, h), "bhh": (1, h),
        "whead": (h, out_f), "bhead": (1, out_f),
    }
    keys = jax.random.split(key, len(shapes))
    return {name: (scale * jax.random.normal(k, shp)).astype(jnp.float32)
            for (name, shp), k in zip(shapes.items(), keys)}


def reference_forward(x_seq, p):
    """Plain NumPy re-implementation of AutoregU.forward (p_tf=0)."""
    x_seq = np.asarray(x_seq, dtype=np.float32)
    T, N, _ = x_seq.shape
    H = p["whz"].shape[0]
    X = [x.copy() for x in x_seq]
    h = np.zeros((N, H), np.float32)

    def sig(v):
        return 1.0 / (1.0 + np.exp(-v))

    outs = []
    for t in range(T):
        x = X[t]
        z = sig(x @ p["wxz"] + p["bxz"] + h @ p["whz"] + p["bhz"])
        r = sig(x @ p["wxr"] + p["bxr"] + h @ p["whr"] + p["bhr"])
        h_t = np.tanh(x @ p["wxh"] + p["bxh"] + (h * r) @ p["whh"] + p["bhh"])
        h = z * h + (1.0 - z) * h_t
        u = h @ p["whead"] + p["bhead"]
        outs.append(u)
        if t < T - 1:
            dt = x_seq[t + 1][:, 6] - x_seq[t][:, 6]
            X[t + 1][:, 3:6] = u
            X[t + 1][:, 8:11] = (u - X[t][:, 3:6]) / dt[:, None]
    return np.stack(outs)


if __name__ == "__main__":
    T, N = 8, 16
    key = jax.random.PRNGKey(0)
    k_x, k_t, k_p = jax.random.split(key, 3)

    x_seq = (0.5 * jax.random.normal(k_x, (T, N, IN_F))).astype(jnp.float32)
    # Column 6 is "time": strictly increasing so dt = time_{t+1} - time_t > 0.
    times = (jnp.arange(T, dtype=jnp.float32)[:, None] + 1.0
             + 0.05 * jax.random.uniform(k_t, (T, N)))
    x_seq = x_seq.at[:, :, 6].set(times)

    params = init_params(k_p)
    edge_index = jnp.zeros((2, 4), jnp.int32)  # API parity, unused (K=1)

    out = autoreg_u_forward(x_seq, edge_index, params)
    out = jax.block_until_ready(out)

    ref = reference_forward(x_seq, {k: np.asarray(v) for k, v in params.items()})
    np.testing.assert_allclose(np.asarray(out), ref, rtol=2e-2, atol=2e-2)
    print("KERNEL_OK")
</pallas_src>

<mosaic_0001>
module attributes {stable_mosaic.version = 11 : i64} {
  func.func @autoreg_u_kernel(%arg0: i32, %arg1: memref<128x11xf32, #tpu.memory_space<vmem>>, %arg2: memref<128x1xf32, #tpu.memory_space<vmem>>, %arg3: memref<11x384xf32, #tpu.memory_space<vmem>>, %arg4: memref<128x768xf32, #tpu.memory_space<vmem>>, %arg5: memref<128x128xf32, #tpu.memory_space<vmem>>, %arg6: memref<3x384xf32, #tpu.memory_space<vmem>>, %arg7: memref<1x384xf32, #tpu.memory_space<vmem>>, %arg8: memref<1x384xf32, #tpu.memory_space<vmem>>, %arg9: memref<1x3xf32, #tpu.memory_space<vmem>>, %arg10: memref<16x384xf32, #tpu.memory_space<vmem>>, %arg11: memref<128x3xf32, #tpu.memory_space<vmem>>, %arg12: memref<128x384xf32, #tpu.memory_space<vmem>>, %arg13: memref<16x128xf32, #tpu.memory_space<vmem>>, %arg14: memref<16x256xf32, #tpu.memory_space<vmem>>, %arg15: memref<16x384xf32, #tpu.memory_space<vmem>>, %arg16: memref<16x3xf32, #tpu.memory_space<vmem>>, %arg17: memref<16x3xf32, #tpu.memory_space<vmem>>, %arg18: memref<16x1xf32, #tpu.memory_space<vmem>>) attributes {dimension_semantics = [#tpu.dimension_semantics<arbitrary>], iteration_bounds = array<i64: 1>, scalar_prefetch = 0 : i64, scratch_operands = 7 : i64, tpu.core_type = #tpu.core_type<tc>, window_params = [{transform_indices = @transform_0, window_bounds = array<i64: 128, 11>}, {transform_indices = @transform_1, window_bounds = array<i64: 128, 1>}, {pipeline_mode = #tpu.pipeline_mode<synchronous>, transform_indices = @transform_2, window_bounds = array<i64: 11, 384>}, {pipeline_mode = #tpu.pipeline_mode<synchronous>, transform_indices = @transform_3, window_bounds = array<i64: 128, 768>}, {pipeline_mode = #tpu.pipeline_mode<synchronous>, transform_indices = @transform_4, window_bounds = array<i64: 128, 128>}, {pipeline_mode = #tpu.pipeline_mode<synchronous>, transform_indices = @transform_5, window_bounds = array<i64: 3, 384>}, {pipeline_mode = #tpu.pipeline_mode<synchronous>, transform_indices = @transform_6, window_bounds = array<i64: 1, 384>}, {pipeline_mode = #tpu.pipeline_mode<synchronous>, transform_indices = @transform_7, window_bounds = array<i64: 1, 384>}, {pipeline_mode = #tpu.pipeline_mode<synchronous>, transform_indices = @transform_8, window_bounds = array<i64: 1, 3>}, {pipeline_mode = #tpu.pipeline_mode<synchronous>, transform_indices = @transform_9, window_bounds = array<i64: 16, 384>}, {transform_indices = @transform_10, window_bounds = array<i64: 128, 3>}]} {
    %c0_i32 = arith.constant 0 : i32
    %0 = arith.cmpi eq, %arg0, %c0_i32 : i32
    %1 = arith.extui %0 : i1 to i32
    %c0_i32_0 = arith.constant 0 : i32
    %2 = arith.cmpi ne, %1, %c0_i32_0 : i32
    scf.if %2 {
      %cst_170 = arith.constant 0.000000e+00 : f32
      %572 = vector.broadcast %cst_170 : f32 to vector<16x128xf32>
      %c0_171 = arith.constant 0 : index
      %c0_172 = arith.constant 0 : index
      %573 = vector.load %arg13[%c0_171, %c0_172] : memref<16x128xf32, #tpu.memory_space<vmem>>, vector<16x128xf32>
      tpu.vector_store %arg13[%c0_171, %c0_172], %572 {strides = array<i32>} : memref<16x128xf32, #tpu.memory_space<vmem>>, vector<16x128xf32>,
      %cst_173 = arith.constant 0.000000e+00 : f32
      %574 = vector.broadcast %cst_173 : f32 to vector<16x256xf32>
      %c0_174 = arith.constant 0 : index
      %c0_175 = arith.constant 0 : index
      %575 = vector.load %arg14[%c0_174, %c0_175] : memref<16x256xf32, #tpu.memory_space<vmem>>, vector<16x256xf32>
      tpu.vector_store %arg14[%c0_174, %c0_175], %574 {strides = array<i32>} : memref<16x256xf32, #tpu.memory_space<vmem>>, vector<16x256xf32>,
      %cst_176 = arith.constant 0.000000e+00 : f32
      %576 = vector.broadcast %cst_176 : f32 to vector<16x384xf32>
      %c0_177 = arith.constant 0 : index
      %c0_178 = arith.constant 0 : index
      %577 = vector.load %arg15[%c0_177, %c0_178] : memref<16x384xf32, #tpu.memory_space<vmem>>, vector<16x384xf32>
      tpu.vector_store %arg15[%c0_177, %c0_178], %576 {strides = array<i32>} : memref<16x384xf32, #tpu.memory_space<vmem>>, vector<16x384xf32>,
      %cst_179 = arith.constant 0.000000e+00 : f32
      %578 = vector.broadcast %cst_179 : f32 to vector<16x3xf32>
      %c0_180 = arith.constant 0 : index
      %c0_181 = arith.constant 0 : index
      %579 = vector.load %arg16[%c0_180, %c0_181] : memref<16x3xf32, #tpu.memory_space<vmem>>, vector<16x3xf32>
      tpu.vector_store %arg16[%c0_180, %c0_181], %578 {strides = array<i32>} : memref<16x3xf32, #tpu.memory_space<vmem>>, vector<16x3xf32>,
      %cst_182 = arith.constant 0.000000e+00 : f32
      %580 = vector.broadcast %cst_182 : f32 to vector<16x1xf32>
      %c0_183 = arith.constant 0 : index
      %c0_184 = arith.constant 0 : index
      %581 = vector.load %arg18[%c0_183, %c0_184] : memref<16x1xf32, #tpu.memory_space<vmem>>, vector<16x1xf32>
      tpu.vector_store %arg18[%c0_183, %c0_184], %580 {strides = array<i32>} : memref<16x1xf32, #tpu.memory_space<vmem>>, vector<16x1xf32>,
      %c0_185 = arith.constant 0 : index
      %c3 = arith.constant 3 : index
      %582 = vector.load %arg1[%c0_185, %c3] : memref<128x11xf32, #tpu.memory_space<vmem>>, vector<16x3xf32>
      %c0_186 = arith.constant 0 : index
      %c0_187 = arith.constant 0 : index
      %583 = vector.load %arg17[%c0_186, %c0_187] : memref<16x3xf32, #tpu.memory_space<vmem>>, vector<16x3xf32>
      tpu.vector_store %arg17[%c0_186, %c0_187], %582 {strides = array<i32>} : memref<16x3xf32, #tpu.memory_space<vmem>>, vector<16x3xf32>,
    } else {
    }
    %c0 = arith.constant 0 : index
    %c0_1 = arith.constant 0 : index
    %3 = vector.load %arg1[%c0, %c0_1] : memref<128x11xf32, #tpu.memory_space<vmem>>, vector<128x11xf32>
    %c0_2 = arith.constant 0 : index
    %c0_3 = arith.constant 0 : index
    %4 = vector.load %arg3[%c0_2, %c0_3] : memref<11x384xf32, #tpu.memory_space<vmem>>, vector<11x384xf32>
    %cst = arith.constant dense<0.000000e+00> : vector<128x384xf32>
    %5 = tpu.matmul %3, %4, %cst {dimension_numbers = #tpu.dot_dimension_numbers<[1], [0], [0], [1], [0, 0, 1, 1], [], []>} : vector<128x11xf32>, vector<11x384xf32>, vector<128x384xf32> -> vector<128x384xf32>
    %c0_4 = arith.constant 0 : index
    %c0_5 = arith.constant 0 : index
    %6 = vector.load %arg7[%c0_4, %c0_5] : memref<1x384xf32, #tpu.memory_space<vmem>>, vector<1x384xf32>
    %7 = vector.broadcast %6 : vector<1x384xf32> to vector<128x384xf32>
    %8 = arith.addf %5, %7 : vector<128x384xf32>
    %c0_6 = arith.constant 0 : index
    %c0_7 = arith.constant 0 : index
    %9 = vector.load %arg12[%c0_6, %c0_7] : memref<128x384xf32, #tpu.memory_space<vmem>>, vector<128x384xf32>
    tpu.vector_store %arg12[%c0_6, %c0_7], %8 {strides = array<i32>} : memref<128x384xf32, #tpu.memory_space<vmem>>, vector<128x384xf32>,
    %c0_8 = arith.constant 0 : index
    %c0_9 = arith.constant 0 : index
    %10 = vector.load %arg6[%c0_8, %c0_9] : memref<3x384xf32, #tpu.memory_space<vmem>>, vector<1x384xf32>
    %c1 = arith.constant 1 : index
    %c0_10 = arith.constant 0 : index
    %11 = vector.load %arg6[%c1, %c0_10] : memref<3x384xf32, #tpu.memory_space<vmem>>, vector<1x384xf32>
    %c2 = arith.constant 2 : index
    %c0_11 = arith.constant 0 : index
    %12 = vector.load %arg6[%c2, %c0_11] : memref<3x384xf32, #tpu.memory_space<vmem>>, vector<1x384xf32>
    %c0_12 = arith.constant 0 : index
    %c0_13 = arith.constant 0 : index
    %13 = vector.load %arg10[%c0_12, %c0_13] : memref<16x384xf32, #tpu.memory_space<vmem>>, vector<16x384xf32>
    %c0_14 = arith.constant 0 : index
    %c0_15 = arith.constant 0 : index
    %14 = vector.load %arg8[%c0_14, %c0_15] : memref<1x384xf32, #tpu.memory_space<vmem>>, vector<1x384xf32>
    %c0_16 = arith.constant 0 : index
    %c0_17 = arith.constant 0 : index
    %15 = vector.load %arg9[%c0_16, %c0_17] : memref<1x3xf32, #tpu.memory_space<vmem>>, vector<1x3xf32>
    %c0_18 = arith.constant 0 : index
    %c0_19 = arith.constant 0 : index
    %16 = vector.load %arg13[%c0_18, %c0_19] : memref<16x128xf32, #tpu.memory_space<vmem>>, vector<16x128xf32>
    %c0_20 = arith.constant 0 : index
    %c0_21 = arith.constant 0 : index
    %17 = vector.load %arg14[%c0_20, %c0_21] : memref<16x256xf32, #tpu.memory_space<vmem>>, vector<16x256xf32>
    %c0_22 = arith.constant 0 : index
    %c0_23 = arith.constant 0 : index
    %18 = vector.load %arg15[%c0_22, %c0_23] : memref<16x384xf32, #tpu.memory_space<vmem>>, vector<16x384xf32>
    %c0_24 = arith.constant 0 : index
    %c0_25 = arith.constant 0 : index
    %19 = vector.load %arg16[%c0_24, %c0_25] : memref<16x3xf32, #tpu.memory_space<vmem>>, vector<16x3xf32>
    %c0_26 = arith.constant 0 : index
    %c0_27 = arith.constant 0 : index
    %20 = vector.load %arg17[%c0_26, %c0_27] : memref<16x3xf32, #tpu.memory_space<vmem>>, vector<16x3xf32>
    %c0_28 = arith.constant 0 : index
    %c0_29 = arith.constant 0 : index
    %21 = vector.load %arg18[%c0_28, %c0_29] : memref<16x1xf32, #tpu.memory_space<vmem>>, vector<16x1xf32>
    %c0_i32_30 = arith.constant 0 : i32
    %c8_i32 = arith.constant 8 : i32
    %22 = arith.muli %arg0, %c8_i32 : i32
    %23 = arith.addi %22, %c0_i32_30 : i32
    %c0_i32_31 = arith.constant 0 : i32
    %24 = arith.cmpi sgt, %23, %c0_i32_31 : i32
    %c16_i32 = arith.constant 16 : i32
    %25 = arith.muli %c0_i32_30, %c16_i32 : i32
    %26 = tpu.assume_multiple %25, 16 : i32
    %27 = arith.index_cast %26 : i32 to index
    %c0_32 = arith.constant 0 : index
    %28 = vector.load %arg2[%27, %c0_32] : memref<128x1xf32, #tpu.memory_space<vmem>>, vector<16x1xf32>
    %29 = arith.subf %28, %21 : vector<16x1xf32>
    %30 = math.absf %29 : vector<16x1xf32>
    %cst_33 = arith.constant 9.99999996E-13 : f32
    %31 = vector.broadcast %cst_33 : f32 to vector<16x1xf32>
    %32 = arith.cmpf olt, %30, %31 : vector<16x1xf32>
    %cst_34 = arith.constant 1.000000e+00 : f32
    %33 = vector.broadcast %cst_34 : f32 to vector<16x1xf32>
    %34 = arith.select %32, %33, %29 : vector<16x1xi1>, vector<16x1xf32>
    %35 = arith.subf %19, %20 : vector<16x3xf32>
    %36 = tpu.reciprocal %34 {approx = true} : vector<16x1xf32> -> vector<16x1xf32>
    %37 = vector.broadcast %36 : vector<16x1xf32> to vector<16x3xf32>
    %38 = arith.mulf %35, %37 : vector<16x3xf32>
    %39 = vector.extract_strided_slice %38 {offsets = [0, 0], sizes = [16, 1], strides = [1, 1]} : vector<16x3xf32> to vector<16x1xf32>
    %40 = vector.broadcast %39 : vector<16x1xf32> to vector<16x384xf32>
    %41 = vector.broadcast %10 : vector<1x384xf32> to vector<16x384xf32>
    %42 = arith.mulf %40, %41 : vector<16x384xf32>
    %43 = vector.extract_strided_slice %38 {offsets = [0, 1], sizes = [16, 1], strides = [1, 1]} : vector<16x3xf32> to vector<16x1xf32>
    %44 = vector.broadcast %43 : vector<16x1xf32> to vector<16x384xf32>
    %45 = vector.broadcast %11 : vector<1x384xf32> to vector<16x384xf32>
    %46 = arith.mulf %44, %45 : vector<16x384xf32>
    %47 = arith.addf %42, %46 : vector<16x384xf32>
    %48 = vector.extract_strided_slice %38 {offsets = [0, 2], sizes = [16, 1], strides = [1, 1]} : vector<16x3xf32> to vector<16x1xf32>
    %49 = vector.broadcast %48 : vector<16x1xf32> to vector<16x384xf32>
    %50 = vector.broadcast %12 : vector<1x384xf32> to vector<16x384xf32>
    %51 = arith.mulf %49, %50 : vector<16x384xf32>
    %52 = arith.addf %47, %51 : vector<16x384xf32>
    %53 = arith.addf %18, %52 : vector<16x384xf32>
    %54 = arith.select %24, %53, %13 : vector<16x384xf32>
    %55 = arith.index_cast %26 : i32 to index
    %c0_35 = arith.constant 0 : index
    %56 = vector.load %arg12[%55, %c0_35] : memref<128x384xf32, #tpu.memory_space<vmem>>, vector<16x384xf32>
    %57 = arith.addf %56, %54 : vector<16x384xf32>
    %58 = vector.extract_strided_slice %57 {offsets = [0, 0], sizes = [16, 256], strides = [1, 1]} : vector<16x384xf32> to vector<16x256xf32>
    %59 = arith.addf %58, %17 : vector<16x256xf32>
    %60 = arith.negf %59 : vector<16x256xf32>
    %61 = math.exp %60 : vector<16x256xf32>
    %cst_36 = arith.constant 1.000000e+00 : f32
    %62 = vector.broadcast %cst_36 : f32 to vector<16x256xf32>
    %63 = arith.addf %62, %61 : vector<16x256xf32>
    %64 = arith.divf %62, %63 : vector<16x256xf32>
    %65 = vector.extract_strided_slice %64 {offsets = [0, 0], sizes = [16, 128], strides = [1, 1]} : vector<16x256xf32> to vector<16x128xf32>
    %66 = vector.extract_strided_slice %64 {offsets = [0, 128], sizes = [16, 128], strides = [1, 1]} : vector<16x256xf32> to vector<16x128xf32>
    %67 = vector.extract_strided_slice %57 {offsets = [0, 256], sizes = [16, 128], strides = [1, 1]} : vector<16x384xf32> to vector<16x128xf32>
    %68 = arith.mulf %16, %66 : vector<16x128xf32>
    %c0_37 = arith.constant 0 : index
    %c0_38 = arith.constant 0 : index
    %69 = vector.load %arg5[%c0_37, %c0_38] : memref<128x128xf32, #tpu.memory_space<vmem>>, vector<128x128xf32>
    %cst_39 = arith.constant dense<0.000000e+00> : vector<16x128xf32>
    %70 = tpu.matmul %68, %69, %cst_39 {dimension_numbers = #tpu.dot_dimension_numbers<[1], [0], [0], [1], [0, 0, 1, 1], [], []>} : vector<16x128xf32>, vector<128x128xf32>, vector<16x128xf32> -> vector<16x128xf32>
    %71 = arith.addf %67, %70 : vector<16x128xf32>
    %72 = math.tanh %71 : vector<16x128xf32>
    %73 = arith.mulf %65, %16 : vector<16x128xf32>
    %cst_40 = arith.constant 1.000000e+00 : f32
    %74 = vector.broadcast %cst_40 : f32 to vector<16x128xf32>
    %75 = arith.subf %74, %65 : vector<16x128xf32>
    %76 = arith.mulf %75, %72 : vector<16x128xf32>
    %77 = arith.addf %73, %76 : vector<16x128xf32>
    %c0_41 = arith.constant 0 : index
    %c0_42 = arith.constant 0 : index
    %78 = vector.load %arg4[%c0_41, %c0_42] : memref<128x768xf32, #tpu.memory_space<vmem>>, vector<128x768xf32>
    %cst_43 = arith.constant dense<0.000000e+00> : vector<16x768xf32>
    %79 = tpu.matmul %77, %78, %cst_43 {dimension_numbers = #tpu.dot_dimension_numbers<[1], [0], [0], [1], [0, 0, 1, 1], [], []>} : vector<16x128xf32>, vector<128x768xf32>, vector<16x768xf32> -> vector<16x768xf32>
    %80 = vector.extract_strided_slice %79 {offsets = [0, 640], sizes = [16, 3], strides = [1, 1]} : vector<16x768xf32> to vector<16x3xf32>
    %81 = vector.broadcast %15 : vector<1x3xf32> to vector<16x3xf32>
    %82 = arith.addf %80, %81 : vector<16x3xf32>
    %83 = arith.index_cast %26 : i32 to index
    %c0_44 = arith.constant 0 : index
    %84 = vector.load %arg11[%83, %c0_44] : memref<128x3xf32, #tpu.memory_space<vmem>>, vector<16x3xf32>
    tpu.vector_store %arg11[%83, %c0_44], %82 {strides = array<i32>} : memref<128x3xf32, #tpu.memory_space<vmem>>, vector<16x3xf32>,
    %85 = arith.select %24, %19, %20 : vector<16x3xf32>
    %86 = vector.extract_strided_slice %79 {offsets = [0, 0], sizes = [16, 256], strides = [1, 1]} : vector<16x768xf32> to vector<16x256xf32>
    %87 = vector.extract_strided_slice %79 {offsets = [0, 256], sizes = [16, 384], strides = [1, 1]} : vector<16x768xf32> to vector<16x384xf32>
    %88 = vector.broadcast %14 : vector<1x384xf32> to vector<16x384xf32>
    %89 = arith.addf %87, %88 : vector<16x384xf32>
    %c1_i32 = arith.constant 1 : i32
    %c8_i32_45 = arith.constant 8 : i32
    %90 = arith.muli %arg0, %c8_i32_45 : i32
    %91 = arith.addi %90, %c1_i32 : i32
    %c0_i32_46 = arith.constant 0 : i32
    %92 = arith.cmpi sgt, %91, %c0_i32_46 : i32
    %c16_i32_47 = arith.constant 16 : i32
    %93 = arith.muli %c1_i32, %c16_i32_47 : i32
    %94 = tpu.assume_multiple %93, 16 : i32
    %95 = arith.index_cast %94 : i32 to index
    %c0_48 = arith.constant 0 : index
    %96 = vector.load %arg2[%95, %c0_48] : memref<128x1xf32, #tpu.memory_space<vmem>>, vector<16x1xf32>
    %97 = arith.subf %96, %28 : vector<16x1xf32>
    %98 = math.absf %97 : vector<16x1xf32>
    %cst_49 = arith.constant 9.99999996E-13 : f32
    %99 = vector.broadcast %cst_49 : f32 to vector<16x1xf32>
    %100 = arith.cmpf olt, %98, %99 : vector<16x1xf32>
    %cst_50 = arith.constant 1.000000e+00 : f32
    %101 = vector.broadcast %cst_50 : f32 to vector<16x1xf32>
    %102 = arith.select %100, %101, %97 : vector<16x1xi1>, vector<16x1xf32>
    %103 = arith.subf %82, %85 : vector<16x3xf32>
    %104 = tpu.reciprocal %102 {approx = true} : vector<16x1xf32> -> vector<16x1xf32>
    %105 = vector.broadcast %104 : vector<16x1xf32> to vector<16x3xf32>
    %106 = arith.mulf %103, %105 : vector<16x3xf32>
    %107 = vector.extract_strided_slice %106 {offsets = [0, 0], sizes = [16, 1], strides = [1, 1]} : vector<16x3xf32> to vector<16x1xf32>
    %108 = vector.broadcast %107 : vector<16x1xf32> to vector<16x384xf32>
    %109 = vector.broadcast %10 : vector<1x384xf32> to vector<16x384xf32>
    %110 = arith.mulf %108, %109 : vector<16x384xf32>
    %111 = vector.extract_strided_slice %106 {offsets = [0, 1], sizes = [16, 1], strides = [1, 1]} : vector<16x3xf32> to vector<16x1xf32>
    %112 = vector.broadcast %111 : vector<16x1xf32> to vector<16x384xf32>
    %113 = vector.broadcast %11 : vector<1x384xf32> to vector<16x384xf32>
    %114 = arith.mulf %112, %113 : vector<16x384xf32>
    %115 = arith.addf %110, %114 : vector<16x384xf32>
    %116 = vector.extract_strided_slice %106 {offsets = [0, 2], sizes = [16, 1], strides = [1, 1]} : vector<16x3xf32> to vector<16x1xf32>
    %117 = vector.broadcast %116 : vector<16x1xf32> to vector<16x384xf32>
    %118 = vector.broadcast %12 : vector<1x384xf32> to vector<16x384xf32>
    %119 = arith.mulf %117, %118 : vector<16x384xf32>
    %120 = arith.addf %115, %119 : vector<16x384xf32>
    %121 = arith.addf %89, %120 : vector<16x384xf32>
    %122 = arith.select %92, %121, %13 : vector<16x384xf32>
    %123 = arith.index_cast %94 : i32 to index
    %c0_51 = arith.constant 0 : index
    %124 = vector.load %arg12[%123, %c0_51] : memref<128x384xf32, #tpu.memory_space<vmem>>, vector<16x384xf32>
    %125 = arith.addf %124, %122 : vector<16x384xf32>
    %126 = vector.extract_strided_slice %125 {offsets = [0, 0], sizes = [16, 256], strides = [1, 1]} : vector<16x384xf32> to vector<16x256xf32>
    %127 = arith.addf %126, %86 : vector<16x256xf32>
    %128 = arith.negf %127 : vector<16x256xf32>
    %129 = math.exp %128 : vector<16x256xf32>
    %cst_52 = arith.constant 1.000000e+00 : f32
    %130 = vector.broadcast %cst_52 : f32 to vector<16x256xf32>
    %131 = arith.addf %130, %129 : vector<16x256xf32>
    %132 = arith.divf %130, %131 : vector<16x256xf32>
    %133 = vector.extract_strided_slice %132 {offsets = [0, 0], sizes = [16, 128], strides = [1, 1]} : vector<16x256xf32> to vector<16x128xf32>
    %134 = vector.extract_strided_slice %132 {offsets = [0, 128], sizes = [16, 128], strides = [1, 1]} : vector<16x256xf32> to vector<16x128xf32>
    %135 = vector.extract_strided_slice %125 {offsets = [0, 256], sizes = [16, 128], strides = [1, 1]} : vector<16x384xf32> to vector<16x128xf32>
    %136 = arith.mulf %77, %134 : vector<16x128xf32>
    %c0_53 = arith.constant 0 : index
    %c0_54 = arith.constant 0 : index
    %137 = vector.load %arg5[%c0_53, %c0_54] : memref<128x128xf32, #tpu.memory_space<vmem>>, vector<128x128xf32>
    %cst_55 = arith.constant dense<0.000000e+00> : vector<16x128xf32>
    %138 = tpu.matmul %136, %137, %cst_55 {dimension_numbers = #tpu.dot_dimension_numbers<[1], [0], [0], [1], [0, 0, 1, 1], [], []>} : vector<16x128xf32>, vector<128x128xf32>, vector<16x128xf32> -> vector<16x128xf32>
    %139 = arith.addf %135, %138 : vector<16x128xf32>
    %140 = math.tanh %139 : vector<16x128xf32>
    %141 = arith.mulf %133, %77 : vector<16x128xf32>
    %cst_56 = arith.constant 1.000000e+00 : f32
    %142 = vector.broadcast %cst_56 : f32 to vector<16x128xf32>
    %143 = arith.subf %142, %133 : vector<16x128xf32>
    %144 = arith.mulf %143, %140 : vector<16x128xf32>
    %145 = arith.addf %141, %144 : vector<16x128xf32>
    %c0_57 = arith.constant 0 : index
    %c0_58 = arith.constant 0 : index
    %146 = vector.load %arg4[%c0_57, %c0_58] : memref<128x768xf32, #tpu.memory_space<vmem>>, vector<128x768xf32>
    %cst_59 = arith.constant dense<0.000000e+00> : vector<16x768xf32>
    %147 = tpu.matmul %145, %146, %cst_59 {dimension_numbers = #tpu.dot_dimension_numbers<[1], [0], [0], [1], [0, 0, 1, 1], [], []>} : vector<16x128xf32>, vector<128x768xf32>, vector<16x768xf32> -> vector<16x768xf32>
    %148 = vector.extract_strided_slice %147 {offsets = [0, 640], sizes = [16, 3], strides = [1, 1]} : vector<16x768xf32> to vector<16x3xf32>
    %149 = vector.broadcast %15 : vector<1x3xf32> to vector<16x3xf32>
    %150 = arith.addf %148, %149 : vector<16x3xf32>
    %151 = arith.index_cast %94 : i32 to index
    %c0_60 = arith.constant 0 : index
    %152 = vector.load %arg11[%151, %c0_60] : memref<128x3xf32, #tpu.memory_space<vmem>>, vector<16x3xf32>
    tpu.vector_store %arg11[%151, %c0_60], %150 {strides = array<i32>} : memref<128x3xf32, #tpu.memory_space<vmem>>, vector<16x3xf32>,
    %153 = arith.select %92, %82, %85 : vector<16x3xf32>
    %154 = vector.extract_strided_slice %147 {offsets = [0, 0], sizes = [16, 256], strides = [1, 1]} : vector<16x768xf32> to vector<16x256xf32>
    %155 = vector.extract_strided_slice %147 {offsets = [0, 256], sizes = [16, 384], strides = [1, 1]} : vector<16x768xf32> to vector<16x384xf32>
    %156 = vector.broadcast %14 : vector<1x384xf32> to vector<16x384xf32>
    %157 = arith.addf %155, %156 : vector<16x384xf32>
    %c2_i32 = arith.constant 2 : i32
    %c8_i32_61 = arith.constant 8 : i32
    %158 = arith.muli %arg0, %c8_i32_61 : i32
    %159 = arith.addi %158, %c2_i32 : i32
    %c0_i32_62 = arith.constant 0 : i32
    %160 = arith.cmpi sgt, %159, %c0_i32_62 : i32
    %c16_i32_63 = arith.constant 16 : i32
    %161 = arith.muli %c2_i32, %c16_i32_63 : i32
    %162 = tpu.assume_multiple %161, 16 : i32
    %163 = arith.index_cast %162 : i32 to index
    %c0_64 = arith.constant 0 : index
    %164 = vector.load %arg2[%163, %c0_64] : memref<128x1xf32, #tpu.memory_space<vmem>>, vector<16x1xf32>
    %165 = arith.subf %164, %96 : vector<16x1xf32>
    %166 = math.absf %165 : vector<16x1xf32>
    %cst_65 = arith.constant 9.99999996E-13 : f32
    %167 = vector.broadcast %cst_65 : f32 to vector<16x1xf32>
    %168 = arith.cmpf olt, %166, %167 : vector<16x1xf32>
    %cst_66 = arith.constant 1.000000e+00 : f32
    %169 = vector.broadcast %cst_66 : f32 to vector<16x1xf32>
    %170 = arith.select %168, %169, %165 : vector<16x1xi1>, vector<16x1xf32>
    %171 = arith.subf %150, %153 : vector<16x3xf32>
    %172 = tpu.reciprocal %170 {approx = true} : vector<16x1xf32> -> vector<16x1xf32>
    %173 = vector.broadcast %172 : vector<16x1xf32> to vector<16x3xf32>
    %174 = arith.mulf %171, %173 : vector<16x3xf32>
    %175 = vector.extract_strided_slice %174 {offsets = [0, 0], sizes = [16, 1], strides = [1, 1]} : vector<16x3xf32> to vector<16x1xf32>
    %176 = vector.broadcast %175 : vector<16x1xf32> to vector<16x384xf32>
    %177 = vector.broadcast %10 : vector<1x384xf32> to vector<16x384xf32>
    %178 = arith.mulf %176, %177 : vector<16x384xf32>
    %179 = vector.extract_strided_slice %174 {offsets = [0, 1], sizes = [16, 1], strides = [1, 1]} : vector<16x3xf32> to vector<16x1xf32>
    %180 = vector.broadcast %179 : vector<16x1xf32> to vector<16x384xf32>
    %181 = vector.broadcast %11 : vector<1x384xf32> to vector<16x384xf32>
    %182 = arith.mulf %180, %181 : vector<16x384xf32>
    %183 = arith.addf %178, %182 : vector<16x384xf32>
    %184 = vector.extract_strided_slice %174 {offsets = [0, 2], sizes = [16, 1], strides = [1, 1]} : vector<16x3xf32> to vector<16x1xf32>
    %185 = vector.broadcast %184 : vector<16x1xf32> to vector<16x384xf32>
    %186 = vector.broadcast %12 : vector<1x384xf32> to vector<16x384xf32>
    %187 = arith.mulf %185, %186 : vector<16x384xf32>
    %188 = arith.addf %183, %187 : vector<16x384xf32>
    %189 = arith.addf %157, %188 : vector<16x384xf32>
    %190 = arith.select %160, %189, %13 : vector<16x384xf32>
    %191 = arith.index_cast %162 : i32 to index
    %c0_67 = arith.constant 0 : index
    %192 = vector.load %arg12[%191, %c0_67] : memref<128x384xf32, #tpu.memory_space<vmem>>, vector<16x384xf32>
    %193 = arith.addf %192, %190 : vector<16x384xf32>
    %194 = vector.extract_strided_slice %193 {offsets = [0, 0], sizes = [16, 256], strides = [1, 1]} : vector<16x384xf32> to vector<16x256xf32>
    %195 = arith.addf %194, %154 : vector<16x256xf32>
    %196 = arith.negf %195 : vector<16x256xf32>
    %197 = math.exp %196 : vector<16x256xf32>
    %cst_68 = arith.constant 1.000000e+00 : f32
    %198 = vector.broadcast %cst_68 : f32 to vector<16x256xf32>
    %199 = arith.addf %198, %197 : vector<16x256xf32>
    %200 = arith.divf %198, %199 : vector<16x256xf32>
    %201 = vector.extract_strided_slice %200 {offsets = [0, 0], sizes = [16, 128], strides = [1, 1]} : vector<16x256xf32> to vector<16x128xf32>
    %202 = vector.extract_strided_slice %200 {offsets = [0, 128], sizes = [16, 128], strides = [1, 1]} : vector<16x256xf32> to vector<16x128xf32>
    %203 = vector.extract_strided_slice %193 {offsets = [0, 256], sizes = [16, 128], strides = [1, 1]} : vector<16x384xf32> to vector<16x128xf32>
    %204 = arith.mulf %145, %202 : vector<16x128xf32>
    %c0_69 = arith.constant 0 : index
    %c0_70 = arith.constant 0 : index
    %205 = vector.load %arg5[%c0_69, %c0_70] : memref<128x128xf32, #tpu.memory_space<vmem>>, vector<128x128xf32>
    %cst_71 = arith.constant dense<0.000000e+00> : vector<16x128xf32>
    %206 = tpu.matmul %204, %205, %cst_71 {dimension_numbers = #tpu.dot_dimension_numbers<[1], [0], [0], [1], [0, 0, 1, 1], [], []>} : vector<16x128xf32>, vector<128x128xf32>, vector<16x128xf32> -> vector<16x128xf32>
    %207 = arith.addf %203, %206 : vector<16x128xf32>
    %208 = math.tanh %207 : vector<16x128xf32>
    %209 = arith.mulf %201, %145 : vector<16x128xf32>
    %cst_72 = arith.constant 1.000000e+00 : f32
    %210 = vector.broadcast %cst_72 : f32 to vector<16x128xf32>
    %211 = arith.subf %210, %201 : vector<16x128xf32>
    %212 = arith.mulf %211, %208 : vector<16x128xf32>
    %213 = arith.addf %209, %212 : vector<16x128xf32>
    %c0_73 = arith.constant 0 : index
    %c0_74 = arith.constant 0 : index
    %214 = vector.load %arg4[%c0_73, %c0_74] : memref<128x768xf32, #tpu.memory_space<vmem>>, vector<128x768xf32>
    %cst_75 = arith.constant dense<0.000000e+00> : vector<16x768xf32>
    %215 = tpu.matmul %213, %214, %cst_75 {dimension_numbers = #tpu.dot_dimension_numbers<[1], [0], [0], [1], [0, 0, 1, 1], [], []>} : vector<16x128xf32>, vector<128x768xf32>, vector<16x768xf32> -> vector<16x768xf32>
    %216 = vector.extract_strided_slice %215 {offsets = [0, 640], sizes = [16, 3], strides = [1, 1]} : vector<16x768xf32> to vector<16x3xf32>
    %217 = vector.broadcast %15 : vector<1x3xf32> to vector<16x3xf32>
    %218 = arith.addf %216, %217 : vector<16x3xf32>
    %219 = arith.index_cast %162 : i32 to index
    %c0_76 = arith.constant 0 : index
    %220 = vector.load %arg11[%219, %c0_76] : memref<128x3xf32, #tpu.memory_space<vmem>>, vector<16x3xf32>
    tpu.vector_store %arg11[%219, %c0_76], %218 {strides = array<i32>} : memref<128x3xf32, #tpu.memory_space<vmem>>, vector<16x3xf32>,
    %221 = arith.select %160, %150, %153 : vector<16x3xf32>
    %222 = vector.extract_strided_slice %215 {offsets = [0, 0], sizes = [16, 256], strides = [1, 1]} : vector<16x768xf32> to vector<16x256xf32>
    %223 = vector.extract_strided_slice %215 {offsets = [0, 256], sizes = [16, 384], strides = [1, 1]} : vector<16x768xf32> to vector<16x384xf32>
    %224 = vector.broadcast %14 : vector<1x384xf32> to vector<16x384xf32>
    %225 = arith.addf %223, %224 : vector<16x384xf32>
    %c3_i32 = arith.constant 3 : i32
    %c8_i32_77 = arith.constant 8 : i32
    %226 = arith.muli %arg0, %c8_i32_77 : i32
    %227 = arith.addi %226, %c3_i32 : i32
    %c0_i32_78 = arith.constant 0 : i32
    %228 = arith.cmpi sgt, %227, %c0_i32_78 : i32
    %c16_i32_79 = arith.constant 16 : i32
    %229 = arith.muli %c3_i32, %c16_i32_79 : i32
    %230 = tpu.assume_multiple %229, 16 : i32
    %231 = arith.index_cast %230 : i32 to index
    %c0_80 = arith.constant 0 : index
    %232 = vector.load %arg2[%231, %c0_80] : memref<128x1xf32, #tpu.memory_space<vmem>>, vector<16x1xf32>
    %233 = arith.subf %232, %164 : vector<16x1xf32>
    %234 = math.absf %233 : vector<16x1xf32>
    %cst_81 = arith.constant 9.99999996E-13 : f32
    %235 = vector.broadcast %cst_81 : f32 to vector<16x1xf32>
    %236 = arith.cmpf olt, %234, %235 : vector<16x1xf32>
    %cst_82 = arith.constant 1.000000e+00 : f32
    %237 = vector.broadcast %cst_82 : f32 to vector<16x1xf32>
    %238 = arith.select %236, %237, %233 : vector<16x1xi1>, vector<16x1xf32>
    %239 = arith.subf %218, %221 : vector<16x3xf32>
    %240 = tpu.reciprocal %238 {approx = true} : vector<16x1xf32> -> vector<16x1xf32>
    %241 = vector.broadcast %240 : vector<16x1xf32> to vector<16x3xf32>
    %242 = arith.mulf %239, %241 : vector<16x3xf32>
    %243 = vector.extract_strided_slice %242 {offsets = [0, 0], sizes = [16, 1], strides = [1, 1]} : vector<16x3xf32> to vector<16x1xf32>
    %244 = vector.broadcast %243 : vector<16x1xf32> to vector<16x384xf32>
    %245 = vector.broadcast %10 : vector<1x384xf32> to vector<16x384xf32>
    %246 = arith.mulf %244, %245 : vector<16x384xf32>
    %247 = vector.extract_strided_slice %242 {offsets = [0, 1], sizes = [16, 1], strides = [1, 1]} : vector<16x3xf32> to vector<16x1xf32>
    %248 = vector.broadcast %247 : vector<16x1xf32> to vector<16x384xf32>
    %249 = vector.broadcast %11 : vector<1x384xf32> to vector<16x384xf32>
    %250 = arith.mulf %248, %249 : vector<16x384xf32>
    %251 = arith.addf %246, %250 : vector<16x384xf32>
    %252 = vector.extract_strided_slice %242 {offsets = [0, 2], sizes = [16, 1], strides = [1, 1]} : vector<16x3xf32> to vector<16x1xf32>
    %253 = vector.broadcast %252 : vector<16x1xf32> to vector<16x384xf32>
    %254 = vector.broadcast %12 : vector<1x384xf32> to vector<16x384xf32>
    %255 = arith.mulf %253, %254 : vector<16x384xf32>
    %256 = arith.addf %251, %255 : vector<16x384xf32>
    %257 = arith.addf %225, %256 : vector<16x384xf32>
    %258 = arith.select %228, %257, %13 : vector<16x384xf32>
    %259 = arith.index_cast %230 : i32 to index
    %c0_83 = arith.constant 0 : index
    %260 = vector.load %arg12[%259, %c0_83] : memref<128x384xf32, #tpu.memory_space<vmem>>, vector<16x384xf32>
    %261 = arith.addf %260, %258 : vector<16x384xf32>
    %262 = vector.extract_strided_slice %261 {offsets = [0, 0], sizes = [16, 256], strides = [1, 1]} : vector<16x384xf32> to vector<16x256xf32>
    %263 = arith.addf %262, %222 : vector<16x256xf32>
    %264 = arith.negf %263 : vector<16x256xf32>
    %265 = math.exp %264 : vector<16x256xf32>
    %cst_84 = arith.constant 1.000000e+00 : f32
    %266 = vector.broadcast %cst_84 : f32 to vector<16x256xf32>
    %267 = arith.addf %266, %265 : vector<16x256xf32>
    %268 = arith.divf %266, %267 : vector<16x256xf32>
    %269 = vector.extract_strided_slice %268 {offsets = [0, 0], sizes = [16, 128], strides = [1, 1]} : vector<16x256xf32> to vector<16x128xf32>
    %270 = vector.extract_strided_slice %268 {offsets = [0, 128], sizes = [16, 128], strides = [1, 1]} : vector<16x256xf32> to vector<16x128xf32>
    %271 = vector.extract_strided_slice %261 {offsets = [0, 256], sizes = [16, 128], strides = [1, 1]} : vector<16x384xf32> to vector<16x128xf32>
    %272 = arith.mulf %213, %270 : vector<16x128xf32>
    %c0_85 = arith.constant 0 : index
    %c0_86 = arith.constant 0 : index
    %273 = vector.load %arg5[%c0_85, %c0_86] : memref<128x128xf32, #tpu.memory_space<vmem>>, vector<128x128xf32>
    %cst_87 = arith.constant dense<0.000000e+00> : vector<16x128xf32>
    %274 = tpu.matmul %272, %273, %cst_87 {dimension_numbers = #tpu.dot_dimension_numbers<[1], [0], [0], [1], [0, 0, 1, 1], [], []>} : vector<16x128xf32>, vector<128x128xf32>, vector<16x128xf32> -> vector<16x128xf32>
    %275 = arith.addf %271, %274 : vector<16x128xf32>
    %276 = math.tanh %275 : vector<16x128xf32>
    %277 = arith.mulf %269, %213 : vector<16x128xf32>
    %cst_88 = arith.constant 1.000000e+00 : f32
    %278 = vector.broadcast %cst_88 : f32 to vector<16x128xf32>
    %279 = arith.subf %278, %269 : vector<16x128xf32>
    %280 = arith.mulf %279, %276 : vector<16x128xf32>
    %281 = arith.addf %277, %280 : vector<16x128xf32>
    %c0_89 = arith.constant 0 : index
    %c0_90 = arith.constant 0 : index
    %282 = vector.load %arg4[%c0_89, %c0_90] : memref<128x768xf32, #tpu.memory_space<vmem>>, vector<128x768xf32>
    %cst_91 = arith.constant dense<0.000000e+00> : vector<16x768xf32>
    %283 = tpu.matmul %281, %282, %cst_91 {dimension_numbers = #tpu.dot_dimension_numbers<[1], [0], [0], [1], [0, 0, 1, 1], [], []>} : vector<16x128xf32>, vector<128x768xf32>, vector<16x768xf32> -> vector<16x768xf32>
    %284 = vector.extract_strided_slice %283 {offsets = [0, 640], sizes = [16, 3], strides = [1, 1]} : vector<16x768xf32> to vector<16x3xf32>
    %285 = vector.broadcast %15 : vector<1x3xf32> to vector<16x3xf32>
    %286 = arith.addf %284, %285 : vector<16x3xf32>
    %287 = arith.index_cast %230 : i32 to index
    %c0_92 = arith.constant 0 : index
    %288 = vector.load %arg11[%287, %c0_92] : memref<128x3xf32, #tpu.memory_space<vmem>>, vector<16x3xf32>
    tpu.vector_store %arg11[%287, %c0_92], %286 {strides = array<i32>} : memref<128x3xf32, #tpu.memory_space<vmem>>, vector<16x3xf32>,
    %289 = arith.select %228, %218, %221 : vector<16x3xf32>
    %290 = vector.extract_strided_slice %283 {offsets = [0, 0], sizes = [16, 256], strides = [1, 1]} : vector<16x768xf32> to vector<16x256xf32>
    %291 = vector.extract_strided_slice %283 {offsets = [0, 256], sizes = [16, 384], strides = [1, 1]} : vector<16x768xf32> to vector<16x384xf32>
    %292 = vector.broadcast %14 : vector<1x384xf32> to vector<16x384xf32>
    %293 = arith.addf %291, %292 : vector<16x384xf32>
    %c4_i32 = arith.constant 4 : i32
    %c8_i32_93 = arith.constant 8 : i32
    %294 = arith.muli %arg0, %c8_i32_93 : i32
    %295 = arith.addi %294, %c4_i32 : i32
    %c0_i32_94 = arith.constant 0 : i32
    %296 = arith.cmpi sgt, %295, %c0_i32_94 : i32
    %c16_i32_95 = arith.constant 16 : i32
    %297 = arith.muli %c4_i32, %c16_i32_95 : i32
    %298 = tpu.assume_multiple %297, 16 : i32
    %299 = arith.index_cast %298 : i32 to index
    %c0_96 = arith.constant 0 : index
    %300 = vector.load %arg2[%299, %c0_96] : memref<128x1xf32, #tpu.memory_space<vmem>>, vector<16x1xf32>
    %301 = arith.subf %300, %232 : vector<16x1xf32>
    %302 = math.absf %301 : vector<16x1xf32>
    %cst_97 = arith.constant 9.99999996E-13 : f32
    %303 = vector.broadcast %cst_97 : f32 to vector<16x1xf32>
    %304 = arith.cmpf olt, %302, %303 : vector<16x1xf32>
    %cst_98 = arith.constant 1.000000e+00 : f32
    %305 = vector.broadcast %cst_98 : f32 to vector<16x1xf32>
    %306 = arith.select %304, %305, %301 : vector<16x1xi1>, vector<16x1xf32>
    %307 = arith.subf %286, %289 : vector<16x3xf32>
    %308 = tpu.reciprocal %306 {approx = true} : vector<16x1xf32> -> vector<16x1xf32>
    %309 = vector.broadcast %308 : vector<16x1xf32> to vector<16x3xf32>
    %310 = arith.mulf %307, %309 : vector<16x3xf32>
    %311 = vector.extract_strided_slice %310 {offsets = [0, 0], sizes = [16, 1], strides = [1, 1]} : vector<16x3xf32> to vector<16x1xf32>
    %312 = vector.broadcast %311 : vector<16x1xf32> to vector<16x384xf32>
    %313 = vector.broadcast %10 : vector<1x384xf32> to vector<16x384xf32>
    %314 = arith.mulf %312, %313 : vector<16x384xf32>
    %315 = vector.extract_strided_slice %310 {offsets = [0, 1], sizes = [16, 1], strides = [1, 1]} : vector<16x3xf32> to vector<16x1xf32>
    %316 = vector.broadcast %315 : vector<16x1xf32> to vector<16x384xf32>
    %317 = vector.broadcast %11 : vector<1x384xf32> to vector<16x384xf32>
    %318 = arith.mulf %316, %317 : vector<16x384xf32>
    %319 = arith.addf %314, %318 : vector<16x384xf32>
    %320 = vector.extract_strided_slice %310 {offsets = [0, 2], sizes = [16, 1], strides = [1, 1]} : vector<16x3xf32> to vector<16x1xf32>
    %321 = vector.broadcast %320 : vector<16x1xf32> to vector<16x384xf32>
    %322 = vector.broadcast %12 : vector<1x384xf32> to vector<16x384xf32>
    %323 = arith.mulf %321, %322 : vector<16x384xf32>
    %324 = arith.addf %319, %323 : vector<16x384xf32>
    %325 = arith.addf %293, %324 : vector<16x384xf32>
    %326 = arith.select %296, %325, %13 : vector<16x384xf32>
    %327 = arith.index_cast %298 : i32 to index
    %c0_99 = arith.constant 0 : index
    %328 = vector.load %arg12[%327, %c0_99] : memref<128x384xf32, #tpu.memory_space<vmem>>, vector<16x384xf32>
    %329 = arith.addf %328, %326 : vector<16x384xf32>
    %330 = vector.extract_strided_slice %329 {offsets = [0, 0], sizes = [16, 256], strides = [1, 1]} : vector<16x384xf32> to vector<16x256xf32>
    %331 = arith.addf %330, %290 : vector<16x256xf32>
    %332 = arith.negf %331 : vector<16x256xf32>
    %333 = math.exp %332 : vector<16x256xf32>
    %cst_100 = arith.constant 1.000000e+00 : f32
    %334 = vector.broadcast %cst_100 : f32 to vector<16x256xf32>
    %335 = arith.addf %334, %333 : vector<16x256xf32>
    %336 = arith.divf %334, %335 : vector<16x256xf32>
    %337 = vector.extract_strided_slice %336 {offsets = [0, 0], sizes = [16, 128], strides = [1, 1]} : vector<16x256xf32> to vector<16x128xf32>
    %338 = vector.extract_strided_slice %336 {offsets = [0, 128], sizes = [16, 128], strides = [1, 1]} : vector<16x256xf32> to vector<16x128xf32>
    %339 = vector.extract_strided_slice %329 {offsets = [0, 256], sizes = [16, 128], strides = [1, 1]} : vector<16x384xf32> to vector<16x128xf32>
    %340 = arith.mulf %281, %338 : vector<16x128xf32>
    %c0_101 = arith.constant 0 : index
    %c0_102 = arith.constant 0 : index
    %341 = vector.load %arg5[%c0_101, %c0_102] : memref<128x128xf32, #tpu.memory_space<vmem>>, vector<128x128xf32>
    %cst_103 = arith.constant dense<0.000000e+00> : vector<16x128xf32>
    %342 = tpu.matmul %340, %341, %cst_103 {dimension_numbers = #tpu.dot_dimension_numbers<[1], [0], [0], [1], [0, 0, 1, 1], [], []>} : vector<16x128xf32>, vector<128x128xf32>, vector<16x128xf32> -> vector<16x128xf32>
    %343 = arith.addf %339, %342 : vector<16x128xf32>
    %344 = math.tanh %343 : vector<16x128xf32>
    %345 = arith.mulf %337, %281 : vector<16x128xf32>
    %cst_104 = arith.constant 1.000000e+00 : f32
    %346 = vector.broadcast %cst_104 : f32 to vector<16x128xf32>
    %347 = arith.subf %346, %337 : vector<16x128xf32>
    %348 = arith.mulf %347, %344 : vector<16x128xf32>
    %349 = arith.addf %345, %348 : vector<16x128xf32>
    %c0_105 = arith.constant 0 : index
    %c0_106 = arith.constant 0 : index
    %350 = vector.load %arg4[%c0_105, %c0_106] : memref<128x768xf32, #tpu.memory_space<vmem>>, vector<128x768xf32>
    %cst_107 = arith.constant dense<0.000000e+00> : vector<16x768xf32>
    %351 = tpu.matmul %349, %350, %cst_107 {dimension_numbers = #tpu.dot_dimension_numbers<[1], [0], [0], [1], [0, 0, 1, 1], [], []>} : vector<16x128xf32>, vector<128x768xf32>, vector<16x768xf32> -> vector<16x768xf32>
    %352 = vector.extract_strided_slice %351 {offsets = [0, 640], sizes = [16, 3], strides = [1, 1]} : vector<16x768xf32> to vector<16x3xf32>
    %353 = vector.broadcast %15 : vector<1x3xf32> to vector<16x3xf32>
    %354 = arith.addf %352, %353 : vector<16x3xf32>
    %355 = arith.index_cast %298 : i32 to index
    %c0_108 = arith.constant 0 : index
    %356 = vector.load %arg11[%355, %c0_108] : memref<128x3xf32, #tpu.memory_space<vmem>>, vector<16x3xf32>
    tpu.vector_store %arg11[%355, %c0_108], %354 {strides = array<i32>} : memref<128x3xf32, #tpu.memory_space<vmem>>, vector<16x3xf32>,
    %357 = arith.select %296, %286, %289 : vector<16x3xf32>
    %358 = vector.extract_strided_slice %351 {offsets = [0, 0], sizes = [16, 256], strides = [1, 1]} : vector<16x768xf32> to vector<16x256xf32>
    %359 = vector.extract_strided_slice %351 {offsets = [0, 256], sizes = [16, 384], strides = [1, 1]} : vector<16x768xf32> to vector<16x384xf32>
    %360 = vector.broadcast %14 : vector<1x384xf32> to vector<16x384xf32>
    %361 = arith.addf %359, %360 : vector<16x384xf32>
    %c5_i32 = arith.constant 5 : i32
    %c8_i32_109 = arith.constant 8 : i32
    %362 = arith.muli %arg0, %c8_i32_109 : i32
    %363 = arith.addi %362, %c5_i32 : i32
    %c0_i32_110 = arith.constant 0 : i32
    %364 = arith.cmpi sgt, %363, %c0_i32_110 : i32
    %c16_i32_111 = arith.constant 16 : i32
    %365 = arith.muli %c5_i32, %c16_i32_111 : i32
    %366 = tpu.assume_multiple %365, 16 : i32
    %367 = arith.index_cast %366 : i32 to index
    %c0_112 = arith.constant 0 : index
    %368 = vector.load %arg2[%367, %c0_112] : memref<128x1xf32, #tpu.memory_space<vmem>>, vector<16x1xf32>
    %369 = arith.subf %368, %300 : vector<16x1xf32>
    %370 = math.absf %369 : vector<16x1xf32>
    %cst_113 = arith.constant 9.99999996E-13 : f32
    %371 = vector.broadcast %cst_113 : f32 to vector<16x1xf32>
    %372 = arith.cmpf olt, %370, %371 : vector<16x1xf32>
    %cst_114 = arith.constant 1.000000e+00 : f32
    %373 = vector.broadcast %cst_114 : f32 to vector<16x1xf32>
    %374 = arith.select %372, %373, %369 : vector<16x1xi1>, vector<16x1xf32>
    %375 = arith.subf %354, %357 : vector<16x3xf32>
    %376 = tpu.reciprocal %374 {approx = true} : vector<16x1xf32> -> vector<16x1xf32>
    %377 = vector.broadcast %376 : vector<16x1xf32> to vector<16x3xf32>
    %378 = arith.mulf %375, %377 : vector<16x3xf32>
    %379 = vector.extract_strided_slice %378 {offsets = [0, 0], sizes = [16, 1], strides = [1, 1]} : vector<16x3xf32> to vector<16x1xf32>
    %380 = vector.broadcast %379 : vector<16x1xf32> to vector<16x384xf32>
    %381 = vector.broadcast %10 : vector<1x384xf32> to vector<16x384xf32>
    %382 = arith.mulf %380, %381 : vector<16x384xf32>
    %383 = vector.extract_strided_slice %378 {offsets = [0, 1], sizes = [16, 1], strides = [1, 1]} : vector<16x3xf32> to vector<16x1xf32>
    %384 = vector.broadcast %383 : vector<16x1xf32> to vector<16x384xf32>
    %385 = vector.broadcast %11 : vector<1x384xf32> to vector<16x384xf32>
    %386 = arith.mulf %384, %385 : vector<16x384xf32>
    %387 = arith.addf %382, %386 : vector<16x384xf32>
    %388 = vector.extract_strided_slice %378 {offsets = [0, 2], sizes = [16, 1], strides = [1, 1]} : vector<16x3xf32> to vector<16x1xf32>
    %389 = vector.broadcast %388 : vector<16x1xf32> to vector<16x384xf32>
    %390 = vector.broadcast %12 : vector<1x384xf32> to vector<16x384xf32>
    %391 = arith.mulf %389, %390 : vector<16x384xf32>
    %392 = arith.addf %387, %391 : vector<16x384xf32>
    %393 = arith.addf %361, %392 : vector<16x384xf32>
    %394 = arith.select %364, %393, %13 : vector<16x384xf32>
    %395 = arith.index_cast %366 : i32 to index
    %c0_115 = arith.constant 0 : index
    %396 = vector.load %arg12[%395, %c0_115] : memref<128x384xf32, #tpu.memory_space<vmem>>, vector<16x384xf32>
    %397 = arith.addf %396, %394 : vector<16x384xf32>
    %398 = vector.extract_strided_slice %397 {offsets = [0, 0], sizes = [16, 256], strides = [1, 1]} : vector<16x384xf32> to vector<16x256xf32>
    %399 = arith.addf %398, %358 : vector<16x256xf32>
    %400 = arith.negf %399 : vector<16x256xf32>
    %401 = math.exp %400 : vector<16x256xf32>
    %cst_116 = arith.constant 1.000000e+00 : f32
    %402 = vector.broadcast %cst_116 : f32 to vector<16x256xf32>
    %403 = arith.addf %402, %401 : vector<16x256xf32>
    %404 = arith.divf %402, %403 : vector<16x256xf32>
    %405 = vector.extract_strided_slice %404 {offsets = [0, 0], sizes = [16, 128], strides = [1, 1]} : vector<16x256xf32> to vector<16x128xf32>
    %406 = vector.extract_strided_slice %404 {offsets = [0, 128], sizes = [16, 128], strides = [1, 1]} : vector<16x256xf32> to vector<16x128xf32>
    %407 = vector.extract_strided_slice %397 {offsets = [0, 256], sizes = [16, 128], strides = [1, 1]} : vector<16x384xf32> to vector<16x128xf32>
    %408 = arith.mulf %349, %406 : vector<16x128xf32>
    %c0_117 = arith.constant 0 : index
    %c0_118 = arith.constant 0 : index
    %409 = vector.load %arg5[%c0_117, %c0_118] : memref<128x128xf32, #tpu.memory_space<vmem>>, vector<128x128xf32>
    %cst_119 = arith.constant dense<0.000000e+00> : vector<16x128xf32>
    %410 = tpu.matmul %408, %409, %cst_119 {dimension_numbers = #tpu.dot_dimension_numbers<[1], [0], [0], [1], [0, 0, 1, 1], [], []>} : vector<16x128xf32>, vector<128x128xf32>, vector<16x128xf32> -> vector<16x128xf32>
    %411 = arith.addf %407, %410 : vector<16x128xf32>
    %412 = math.tanh %411 : vector<16x128xf32>
    %413 = arith.mulf %405, %349 : vector<16x128xf32>
    %cst_120 = arith.constant 1.000000e+00 : f32
    %414 = vector.broadcast %cst_120 : f32 to vector<16x128xf32>
    %415 = arith.subf %414, %405 : vector<16x128xf32>
    %416 = arith.mulf %415, %412 : vector<16x128xf32>
    %417 = arith.addf %413, %416 : vector<16x128xf32>
    %c0_121 = arith.constant 0 : index
    %c0_122 = arith.constant 0 : index
    %418 = vector.load %arg4[%c0_121, %c0_122] : memref<128x768xf32, #tpu.memory_space<vmem>>, vector<128x768xf32>
    %cst_123 = arith.constant dense<0.000000e+00> : vector<16x768xf32>
    %419 = tpu.matmul %417, %418, %cst_123 {dimension_numbers = #tpu.dot_dimension_numbers<[1], [0], [0], [1], [0, 0, 1, 1], [], []>} : vector<16x128xf32>, vector<128x768xf32>, vector<16x768xf32> -> vector<16x768xf32>
    %420 = vector.extract_strided_slice %419 {offsets = [0, 640], sizes = [16, 3], strides = [1, 1]} : vector<16x768xf32> to vector<16x3xf32>
    %421 = vector.broadcast %15 : vector<1x3xf32> to vector<16x3xf32>
    %422 = arith.addf %420, %421 : vector<16x3xf32>
    %423 = arith.index_cast %366 : i32 to index
    %c0_124 = arith.constant 0 : index
    %424 = vector.load %arg11[%423, %c0_124] : memref<128x3xf32, #tpu.memory_space<vmem>>, vector<16x3xf32>
    tpu.vector_store %arg11[%423, %c0_124], %422 {strides = array<i32>} : memref<128x3xf32, #tpu.memory_space<vmem>>, vector<16x3xf32>,
    %425 = arith.select %364, %354, %357 : vector<16x3xf32>
    %426 = vector.extract_strided_slice %419 {offsets = [0, 0], sizes = [16, 256], strides = [1, 1]} : vector<16x768xf32> to vector<16x256xf32>
    %427 = vector.extract_strided_slice %419 {offsets = [0, 256], sizes = [16, 384], strides = [1, 1]} : vector<16x768xf32> to vector<16x384xf32>
    %428 = vector.broadcast %14 : vector<1x384xf32> to vector<16x384xf32>
    %429 = arith.addf %427, %428 : vector<16x384xf32>
    %c6_i32 = arith.constant 6 : i32
    %c8_i32_125 = arith.constant 8 : i32
    %430 = arith.muli %arg0, %c8_i32_125 : i32
    %431 = arith.addi %430, %c6_i32 : i32
    %c0_i32_126 = arith.constant 0 : i32
    %432 = arith.cmpi sgt, %431, %c0_i32_126 : i32
    %c16_i32_127 = arith.constant 16 : i32
    %433 = arith.muli %c6_i32, %c16_i32_127 : i32
    %434 = tpu.assume_multiple %433, 16 : i32
    %435 = arith.index_cast %434 : i32 to index
    %c0_128 = arith.constant 0 : index
    %436 = vector.load %arg2[%435, %c0_128] : memref<128x1xf32, #tpu.memory_space<vmem>>, vector<16x1xf32>
    %437 = arith.subf %436, %368 : vector<16x1xf32>
    %438 = math.absf %437 : vector<16x1xf32>
    %cst_129 = arith.constant 9.99999996E-13 : f32
    %439 = vector.broadcast %cst_129 : f32 to vector<16x1xf32>
    %440 = arith.cmpf olt, %438, %439 : vector<16x1xf32>
    %cst_130 = arith.constant 1.000000e+00 : f32
    %441 = vector.broadcast %cst_130 : f32 to vector<16x1xf32>
    %442 = arith.select %440, %441, %437 : vector<16x1xi1>, vector<16x1xf32>
    %443 = arith.subf %422, %425 : vector<16x3xf32>
    %444 = tpu.reciprocal %442 {approx = true} : vector<16x1xf32> -> vector<16x1xf32>
    %445 = vector.broadcast %444 : vector<16x1xf32> to vector<16x3xf32>
    %446 = arith.mulf %443, %445 : vector<16x3xf32>
    %447 = vector.extract_strided_slice %446 {offsets = [0, 0], sizes = [16, 1], strides = [1, 1]} : vector<16x3xf32> to vector<16x1xf32>
    %448 = vector.broadcast %447 : vector<16x1xf32> to vector<16x384xf32>
    %449 = vector.broadcast %10 : vector<1x384xf32> to vector<16x384xf32>
    %450 = arith.mulf %448, %449 : vector<16x384xf32>
    %451 = vector.extract_strided_slice %446 {offsets = [0, 1], sizes = [16, 1], strides = [1, 1]} : vector<16x3xf32> to vector<16x1xf32>
    %452 = vector.broadcast %451 : vector<16x1xf32> to vector<16x384xf32>
    %453 = vector.broadcast %11 : vector<1x384xf32> to vector<16x384xf32>
    %454 = arith.mulf %452, %453 : vector<16x384xf32>
    %455 = arith.addf %450, %454 : vector<16x384xf32>
    %456 = vector.extract_strided_slice %446 {offsets = [0, 2], sizes = [16, 1], strides = [1, 1]} : vector<16x3xf32> to vector<16x1xf32>
    %457 = vector.broadcast %456 : vector<16x1xf32> to vector<16x384xf32>
    %458 = vector.broadcast %12 : vector<1x384xf32> to vector<16x384xf32>
    %459 = arith.mulf %457, %458 : vector<16x384xf32>
    %460 = arith.addf %455, %459 : vector<16x384xf32>
    %461 = arith.addf %429, %460 : vector<16x384xf32>
    %462 = arith.select %432, %461, %13 : vector<16x384xf32>
    %463 = arith.index_cast %434 : i32 to index
    %c0_131 = arith.constant 0 : index
    %464 = vector.load %arg12[%463, %c0_131] : memref<128x384xf32, #tpu.memory_space<vmem>>, vector<16x384xf32>
    %465 = arith.addf %464, %462 : vector<16x384xf32>
    %466 = vector.extract_strided_slice %465 {offsets = [0, 0], sizes = [16, 256], strides = [1, 1]} : vector<16x384xf32> to vector<16x256xf32>
    %467 = arith.addf %466, %426 : vector<16x256xf32>
    %468 = arith.negf %467 : vector<16x256xf32>
    %469 = math.exp %468 : vector<16x256xf32>
    %cst_132 = arith.constant 1.000000e+00 : f32
    %470 = vector.broadcast %cst_132 : f32 to vector<16x256xf32>
    %471 = arith.addf %470, %469 : vector<16x256xf32>
    %472 = arith.divf %470, %471 : vector<16x256xf32>
    %473 = vector.extract_strided_slice %472 {offsets = [0, 0], sizes = [16, 128], strides = [1, 1]} : vector<16x256xf32> to vector<16x128xf32>
    %474 = vector.extract_strided_slice %472 {offsets = [0, 128], sizes = [16, 128], strides = [1, 1]} : vector<16x256xf32> to vector<16x128xf32>
    %475 = vector.extract_strided_slice %465 {offsets = [0, 256], sizes = [16, 128], strides = [1, 1]} : vector<16x384xf32> to vector<16x128xf32>
    %476 = arith.mulf %417, %474 : vector<16x128xf32>
    %c0_133 = arith.constant 0 : index
    %c0_134 = arith.constant 0 : index
    %477 = vector.load %arg5[%c0_133, %c0_134] : memref<128x128xf32, #tpu.memory_space<vmem>>, vector<128x128xf32>
    %cst_135 = arith.constant dense<0.000000e+00> : vector<16x128xf32>
    %478 = tpu.matmul %476, %477, %cst_135 {dimension_numbers = #tpu.dot_dimension_numbers<[1], [0], [0], [1], [0, 0, 1, 1], [], []>} : vector<16x128xf32>, vector<128x128xf32>, vector<16x128xf32> -> vector<16x128xf32>
    %479 = arith.addf %475, %478 : vector<16x128xf32>
    %480 = math.tanh %479 : vector<16x128xf32>
    %481 = arith.mulf %473, %417 : vector<16x128xf32>
    %cst_136 = arith.constant 1.000000e+00 : f32
    %482 = vector.broadcast %cst_136 : f32 to vector<16x128xf32>
    %483 = arith.subf %482, %473 : vector<16x128xf32>
    %484 = arith.mulf %483, %480 : vector<16x128xf32>
    %485 = arith.addf %481, %484 : vector<16x128xf32>
    %c0_137 = arith.constant 0 : index
    %c0_138 = arith.constant 0 : index
    %486 = vector.load %arg4[%c0_137, %c0_138] : memref<128x768xf32, #tpu.memory_space<vmem>>, vector<128x768xf32>
    %cst_139 = arith.constant dense<0.000000e+00> : vector<16x768xf32>
    %487 = tpu.matmul %485, %486, %cst_139 {dimension_numbers = #tpu.dot_dimension_numbers<[1], [0], [0], [1], [0, 0, 1, 1], [], []>} : vector<16x128xf32>, vector<128x768xf32>, vector<16x768xf32> -> vector<16x768xf32>
    %488 = vector.extract_strided_slice %487 {offsets = [0, 640], sizes = [16, 3], strides = [1, 1]} : vector<16x768xf32> to vector<16x3xf32>
    %489 = vector.broadcast %15 : vector<1x3xf32> to vector<16x3xf32>
    %490 = arith.addf %488, %489 : vector<16x3xf32>
    %491 = arith.index_cast %434 : i32 to index
    %c0_140 = arith.constant 0 : index
    %492 = vector.load %arg11[%491, %c0_140] : memref<128x3xf32, #tpu.memory_space<vmem>>, vector<16x3xf32>
    tpu.vector_store %arg11[%491, %c0_140], %490 {strides = array<i32>} : memref<128x3xf32, #tpu.memory_space<vmem>>, vector<16x3xf32>,
    %493 = arith.select %432, %422, %425 : vector<16x3xf32>
    %494 = vector.extract_strided_slice %487 {offsets = [0, 0], sizes = [16, 256], strides = [1, 1]} : vector<16x768xf32> to vector<16x256xf32>
    %495 = vector.extract_strided_slice %487 {offsets = [0, 256], sizes = [16, 384], strides = [1, 1]} : vector<16x768xf32> to vector<16x384xf32>
    %496 = vector.broadcast %14 : vector<1x384xf32> to vector<16x384xf32>
    %497 = arith.addf %495, %496 : vector<16x384xf32>
    %c7_i32 = arith.constant 7 : i32
    %c8_i32_141 = arith.constant 8 : i32
    %498 = arith.muli %arg0, %c8_i32_141 : i32
    %499 = arith.addi %498, %c7_i32 : i32
    %c0_i32_142 = arith.constant 0 : i32
    %500 = arith.cmpi sgt, %499, %c0_i32_142 : i32
    %c16_i32_143 = arith.constant 16 : i32
    %501 = arith.muli %c7_i32, %c16_i32_143 : i32
    %502 = tpu.assume_multiple %501, 16 : i32
    %503 = arith.index_cast %502 : i32 to index
    %c0_144 = arith.constant 0 : index
    %504 = vector.load %arg2[%503, %c0_144] : memref<128x1xf32, #tpu.memory_space<vmem>>, vector<16x1xf32>
    %505 = arith.subf %504, %436 : vector<16x1xf32>
    %506 = math.absf %505 : vector<16x1xf32>
    %cst_145 = arith.constant 9.99999996E-13 : f32
    %507 = vector.broadcast %cst_145 : f32 to vector<16x1xf32>
    %508 = arith.cmpf olt, %506, %507 : vector<16x1xf32>
    %cst_146 = arith.constant 1.000000e+00 : f32
    %509 = vector.broadcast %cst_146 : f32 to vector<16x1xf32>
    %510 = arith.select %508, %509, %505 : vector<16x1xi1>, vector<16x1xf32>
    %511 = arith.subf %490, %493 : vector<16x3xf32>
    %512 = tpu.reciprocal %510 {approx = true} : vector<16x1xf32> -> vector<16x1xf32>
    %513 = vector.broadcast %512 : vector<16x1xf32> to vector<16x3xf32>
    %514 = arith.mulf %511, %513 : vector<16x3xf32>
    %515 = vector.extract_strided_slice %514 {offsets = [0, 0], sizes = [16, 1], strides = [1, 1]} : vector<16x3xf32> to vector<16x1xf32>
    %516 = vector.broadcast %515 : vector<16x1xf32> to vector<16x384xf32>
    %517 = vector.broadcast %10 : vector<1x384xf32> to vector<16x384xf32>
    %518 = arith.mulf %516, %517 : vector<16x384xf32>
    %519 = vector.extract_strided_slice %514 {offsets = [0, 1], sizes = [16, 1], strides = [1, 1]} : vector<16x3xf32> to vector<16x1xf32>
    %520 = vector.broadcast %519 : vector<16x1xf32> to vector<16x384xf32>
    %521 = vector.broadcast %11 : vector<1x384xf32> to vector<16x384xf32>
    %522 = arith.mulf %520, %521 : vector<16x384xf32>
    %523 = arith.addf %518, %522 : vector<16x384xf32>
    %524 = vector.extract_strided_slice %514 {offsets = [0, 2], sizes = [16, 1], strides = [1, 1]} : vector<16x3xf32> to vector<16x1xf32>
    %525 = vector.broadcast %524 : vector<16x1xf32> to vector<16x384xf32>
    %526 = vector.broadcast %12 : vector<1x384xf32> to vector<16x384xf32>
    %527 = arith.mulf %525, %526 : vector<16x384xf32>
    %528 = arith.addf %523, %527 : vector<16x384xf32>
    %529 = arith.addf %497, %528 : vector<16x384xf32>
    %530 = arith.select %500, %529, %13 : vector<16x384xf32>
    %531 = arith.index_cast %502 : i32 to index
    %c0_147 = arith.constant 0 : index
    %532 = vector.load %arg12[%531, %c0_147] : memref<128x384xf32, #tpu.memory_space<vmem>>, vector<16x384xf32>
    %533 = arith.addf %532, %530 : vector<16x384xf32>
    %534 = vector.extract_strided_slice %533 {offsets = [0, 0], sizes = [16, 256], strides = [1, 1]} : vector<16x384xf32> to vector<16x256xf32>
    %535 = arith.addf %534, %494 : vector<16x256xf32>
    %536 = arith.negf %535 : vector<16x256xf32>
    %537 = math.exp %536 : vector<16x256xf32>
    %cst_148 = arith.constant 1.000000e+00 : f32
    %538 = vector.broadcast %cst_148 : f32 to vector<16x256xf32>
    %539 = arith.addf %538, %537 : vector<16x256xf32>
    %540 = arith.divf %538, %539 : vector<16x256xf32>
    %541 = vector.extract_strided_slice %540 {offsets = [0, 0], sizes = [16, 128], strides = [1, 1]} : vector<16x256xf32> to vector<16x128xf32>
    %542 = vector.extract_strided_slice %540 {offsets = [0, 128], sizes = [16, 128], strides = [1, 1]} : vector<16x256xf32> to vector<16x128xf32>
    %543 = vector.extract_strided_slice %533 {offsets = [0, 256], sizes = [16, 128], strides = [1, 1]} : vector<16x384xf32> to vector<16x128xf32>
    %544 = arith.mulf %485, %542 : vector<16x128xf32>
    %c0_149 = arith.constant 0 : index
    %c0_150 = arith.constant 0 : index
    %545 = vector.load %arg5[%c0_149, %c0_150] : memref<128x128xf32, #tpu.memory_space<vmem>>, vector<128x128xf32>
    %cst_151 = arith.constant dense<0.000000e+00> : vector<16x128xf32>
    %546 = tpu.matmul %544, %545, %cst_151 {dimension_numbers = #tpu.dot_dimension_numbers<[1], [0], [0], [1], [0, 0, 1, 1], [], []>} : vector<16x128xf32>, vector<128x128xf32>, vector<16x128xf32> -> vector<16x128xf32>
    %547 = arith.addf %543, %546 : vector<16x128xf32>
    %548 = math.tanh %547 : vector<16x128xf32>
    %549 = arith.mulf %541, %485 : vector<16x128xf32>
    %cst_152 = arith.constant 1.000000e+00 : f32
    %550 = vector.broadcast %cst_152 : f32 to vector<16x128xf32>
    %551 = arith.subf %550, %541 : vector<16x128xf32>
    %552 = arith.mulf %551, %548 : vector<16x128xf32>
    %553 = arith.addf %549, %552 : vector<16x128xf32>
    %c0_153 = arith.constant 0 : index
    %c0_154 = arith.constant 0 : index
    %554 = vector.load %arg4[%c0_153, %c0_154] : memref<128x768xf32, #tpu.memory_space<vmem>>, vector<128x768xf32>
    %cst_155 = arith.constant dense<0.000000e+00> : vector<16x768xf32>
    %555 = tpu.matmul %553, %554, %cst_155 {dimension_numbers = #tpu.dot_dimension_numbers<[1], [0], [0], [1], [0, 0, 1, 1], [], []>} : vector<16x128xf32>, vector<128x768xf32>, vector<16x768xf32> -> vector<16x768xf32>
    %556 = vector.extract_strided_slice %555 {offsets = [0, 640], sizes = [16, 3], strides = [1, 1]} : vector<16x768xf32> to vector<16x3xf32>
    %557 = vector.broadcast %15 : vector<1x3xf32> to vector<16x3xf32>
    %558 = arith.addf %556, %557 : vector<16x3xf32>
    %559 = arith.index_cast %502 : i32 to index
    %c0_156 = arith.constant 0 : index
    %560 = vector.load %arg11[%559, %c0_156] : memref<128x3xf32, #tpu.memory_space<vmem>>, vector<16x3xf32>
    tpu.vector_store %arg11[%559, %c0_156], %558 {strides = array<i32>} : memref<128x3xf32, #tpu.memory_space<vmem>>, vector<16x3xf32>,
    %561 = arith.select %500, %490, %493 : vector<16x3xf32>
    %562 = vector.extract_strided_slice %555 {offsets = [0, 0], sizes = [16, 256], strides = [1, 1]} : vector<16x768xf32> to vector<16x256xf32>
    %563 = vector.extract_strided_slice %555 {offsets = [0, 256], sizes = [16, 384], strides = [1, 1]} : vector<16x768xf32> to vector<16x384xf32>
    %564 = vector.broadcast %14 : vector<1x384xf32> to vector<16x384xf32>
    %565 = arith.addf %563, %564 : vector<16x384xf32>
    %c8_i32_157 = arith.constant 8 : i32
    %c0_158 = arith.constant 0 : index
    %c0_159 = arith.constant 0 : index
    %566 = vector.load %arg13[%c0_158, %c0_159] : memref<16x128xf32, #tpu.memory_space<vmem>>, vector<16x128xf32>
    tpu.vector_store %arg13[%c0_158, %c0_159], %553 {strides = array<i32>} : memref<16x128xf32, #tpu.memory_space<vmem>>, vector<16x128xf32>,
    %c0_160 = arith.constant 0 : index
    %c0_161 = arith.constant 0 : index
    %567 = vector.load %arg14[%c0_160, %c0_161] : memref<16x256xf32, #tpu.memory_space<vmem>>, vector<16x256xf32>
    tpu.vector_store %arg14[%c0_160, %c0_161], %562 {strides = array<i32>} : memref<16x256xf32, #tpu.memory_space<vmem>>, vector<16x256xf32>,
    %c0_162 = arith.constant 0 : index
    %c0_163 = arith.constant 0 : index
    %568 = vector.load %arg15[%c0_162, %c0_163] : memref<16x384xf32, #tpu.memory_space<vmem>>, vector<16x384xf32>
    tpu.vector_store %arg15[%c0_162, %c0_163], %565 {strides = array<i32>} : memref<16x384xf32, #tpu.memory_space<vmem>>, vector<16x384xf32>,
    %c0_164 = arith.constant 0 : index
    %c0_165 = arith.constant 0 : index
    %569 = vector.load %arg16[%c0_164, %c0_165] : memref<16x3xf32, #tpu.memory_space<vmem>>, vector<16x3xf32>
    tpu.vector_store %arg16[%c0_164, %c0_165], %558 {strides = array<i32>} : memref<16x3xf32, #tpu.memory_space<vmem>>, vector<16x3xf32>,
    %c0_166 = arith.constant 0 : index
    %c0_167 = arith.constant 0 : index
    %570 = vector.load %arg17[%c0_166, %c0_167] : memref<16x3xf32, #tpu.memory_space<vmem>>, vector<16x3xf32>
    tpu.vector_store %arg17[%c0_166, %c0_167], %561 {strides = array<i32>} : memref<16x3xf32, #tpu.memory_space<vmem>>, vector<16x3xf32>,
    %c0_168 = arith.constant 0 : index
    %c0_169 = arith.constant 0 : index
    %571 = vector.load %arg18[%c0_168, %c0_169] : memref<16x1xf32, #tpu.memory_space<vmem>>, vector<16x1xf32>
    tpu.vector_store %arg18[%c0_168, %c0_169], %504 {strides = array<i32>} : memref<16x1xf32, #tpu.memory_space<vmem>>, vector<16x1xf32>,
    return
  }
  func.func @transform_0(%arg0: i32) -> (i32, i32) {
    %c0_i32 = arith.constant 0 : i32
    %c0_i32_0 = arith.constant 0 : i32
    return %arg0, %c0_i32 : i32, i32
  }
  func.func @transform_1(%arg0: i32) -> (i32, i32) {
    %c0_i32 = arith.constant 0 : i32
    %c0_i32_0 = arith.constant 0 : i32
    return %arg0, %c0_i32 : i32, i32
  }
  func.func @transform_2(%arg0: i32) -> (i32, i32) {
    %c0_i32 = arith.constant 0 : i32
    %c0_i32_0 = arith.constant 0 : i32
    %c0_i32_1 = arith.constant 0 : i32
    return %c0_i32, %c0_i32_0 : i32, i32
  }
  func.func @transform_3(%arg0: i32) -> (i32, i32) {
    %c0_i32 = arith.constant 0 : i32
    %c0_i32_0 = arith.constant 0 : i32
    %c0_i32_1 = arith.constant 0 : i32
    return %c0_i32, %c0_i32_0 : i32, i32
  }
  func.func @transform_4(%arg0: i32) -> (i32, i32) {
    %c0_i32 = arith.constant 0 : i32
    %c0_i32_0 = arith.constant 0 : i32
    %c0_i32_1 = arith.constant 0 : i32
    return %c0_i32, %c0_i32_0 : i32, i32
  }
  func.func @transform_5(%arg0: i32) -> (i32, i32) {
    %c0_i32 = arith.constant 0 : i32
    %c0_i32_0 = arith.constant 0 : i32
    %c0_i32_1 = arith.constant 0 : i32
    return %c0_i32, %c0_i32_0 : i32, i32
  }
  func.func @transform_6(%arg0: i32) -> (i32, i32) {
    %c0_i32 = arith.constant 0 : i32
    %c0_i32_0 = arith.constant 0 : i32
    %c0_i32_1 = arith.constant 0 : i32
    return %c0_i32, %c0_i32_0 : i32, i32
  }
  func.func @transform_7(%arg0: i32) -> (i32, i32) {
    %c0_i32 = arith.constant 0 : i32
    %c0_i32_0 = arith.constant 0 : i32
    %c0_i32_1 = arith.constant 0 : i32
    return %c0_i32, %c0_i32_0 : i32, i32
  }
  func.func @transform_8(%arg0: i32) -> (i32, i32) {
    %c0_i32 = arith.constant 0 : i32
    %c0_i32_0 = arith.constant 0 : i32
    %c0_i32_1 = arith.constant 0 : i32
    return %c0_i32, %c0_i32_0 : i32, i32
  }
  func.func @transform_9(%arg0: i32) -> (i32, i32) {
    %c0_i32 = arith.constant 0 : i32
    %c0_i32_0 = arith.constant 0 : i32
    %c0_i32_1 = arith.constant 0 : i32
    return %c0_i32, %c0_i32_0 : i32, i32
  }
  func.func @transform_10(%arg0: i32) -> (i32, i32) {
    %c0_i32 = arith.constant 0 : i32
    %c0_i32_0 = arith.constant 0 : i32
    return %arg0, %c0_i32 : i32, i32
  }
}

</mosaic_0001>

<bundles_post_ra>
// kernel: tpu_custom_call.1
= control target key start
LH: loop header
LB: loop body
LE: loop exit
PB: predicated region body
PF: predicated region fallthrough
CT: control target
= control target key end

     0   :  { %15 = vsyncpa [#allocation10], 0  ;;  %s4859_s16 = smov [#allocation9]   ;;  %s4860_s18 = smov 768   ;;  %s7773_s0 = inlined_call_operand.vmem [shape: f32[128,11], index: 0, kind: input, shape index: {}]   ;;  %s7774_s1 = inlined_call_operand.vmem [shape: f32[128,1], index: 1, kind: input, shape index: {}]   ;;  %s7775_s2 = inlined_call_operand.vmem [shape: f32[11,384], index: 2, kind: input, shape index: {}]   ;;  %s7776_s3 = inlined_call_operand.hbm [shape: f32[128,768], index: 3, kind: input, shape index: {}]   ;;  %s7777_s4 = inlined_call_operand.vmem [shape: f32[128,128], index: 4, kind: input, shape index: {}]   ;;  %s7778_s5 = inlined_call_operand.vmem [shape: f32[3,384], index: 5, kind: input, shape index: {}]   ;;  %s7779_s6 = inlined_call_operand.vmem [shape: f32[1,384], index: 6, kind: input, shape index: {}]   ;;  %s7780_s7 = inlined_call_operand.vmem [shape: f32[1,384], index: 7, kind: input, shape index: {}]   ;;  %s7781_s8 = inlined_call_operand.vmem [shape: f32[1,3], index: 8, kind: input, shape index: {}]   ;;  %s7782_s9 = inlined_call_operand.vmem [shape: f32[16,384], index: 9, kind: input, shape index: {}]   ;;  %s7783_s10 = inlined_call_operand.vmem [shape: f32[128,3], index: 10, kind: output, shape index: {}]  }
   0x1   :  { %s26_s15 = sshll.u32 %s7776_s3, 4  ;;  %s28_s17 = sshll.u32 %s4859_s16, 4  ;;  %s27_s15 = int_to_ptr.hbm [resolvable:$true] %s26_s15  ;;  %s29_s17 = int_to_ptr.vmem [resolvable:$true] %s28_s17 }
   0x2   :  { %s4861_s19 = smov 48  }
   0x3   :  { %34 = dma.hbm_to_vmem [thread:$0]  %s27_s15, 12288, %s29_s17, [#allocation10], %s4860_s18, %s4860_s18, %s4861_s19  }
   0x4   :  { %4857 = dma.done.wait [#allocation10], 12288  }
   0x5   :  { %4858 = vsyncadd [#allocation10], 4294955008  ;;  %vm164_vm0 = vcmask 1042432   ;;  %v104_v0 = vld [vmem:[%s7775_s2 + $0x18] sm:$0x7]  ;;  %v101_v1 = vld [vmem:[%s7775_s2] sm:$0xff] }
   0x6   :  { %4582 = vmatpush.msk.msra.mxu1 %vm164_vm0, %v104_v0  ;;  %v4934_v2 = vld [vmem:[%s7773_s0 + $0x78] sm:$0xff]  ;;  %vm115_vm1 = vcmask 89088   ;;  %4469 = vmatpush.msk.msra.mxu0 %vm164_vm0, %v104_v0  ;;  %v105_v3 = vld [vmem:[%s7775_s2 + $0x20] sm:$0x7]  ;;  %v102_v5 = vld [vmem:[%s7775_s2 + $0x8] sm:$0xff] }
   0x7   :  { %v4943_v4 = vld [vmem:[%s7773_s0] sm:$0xff]  ;;  %v4956_v6 = vld [vmem:[%s7773_s0 + $0x8] sm:$0xff]  ;;  %v680_v7 = vld [vmem:[%s7777_s4 + $0x78] sm:$0xff] }
   0x8   :  { %4583 = vmatpush.msra.mxu1 %v101_v1  ;;  %189 = vmatpush.msra.mxu0 %v101_v1  ;;  %v679_v8 = vld [vmem:[%s7777_s4 + $0x70] sm:$0xff]  ;;  %v678_v9 = vld [vmem:[%s7777_s4 + $0x68] sm:$0xff]  ;;  %v677_v10 = vld [vmem:[%s7777_s4 + $0x60] sm:$0xff] }
   0x9   :  { %4485 = vmatmul.msk.f32.vlgmr.msra.gmra.mxu1 %vm115_vm1, %v4934_v2  ;;  %4470 = vmatmul.msk.f32.vlgmr.msra.gmra.mxu0 %vm115_vm1, %v4943_v4  ;;  %v676_v11 = vld [vmem:[%s7777_s4 + $0x58] sm:$0xff]  ;;  %v675_v12 = vld [vmem:[%s7777_s4 + $0x50] sm:$0xff]  ;;  %v674_v13 = vld [vmem:[%s7777_s4 + $0x48] sm:$0xff] }
   0xa   :  { %4486 = vmatpush.msk.msrb.mxu1 %vm164_vm0, %v105_v3  ;;  %681 = vmatpush.msra.mxu3 %v680_v7  ;;  %v673_v14 = vld [vmem:[%s7777_s4 + $0x40] sm:$0xff]  ;;  %v672_v15 = vld [vmem:[%s7777_s4 + $0x38] sm:$0xff]  ;;  %v671_v16 = vld [vmem:[%s7777_s4 + $0x30] sm:$0xff] }
   0xb   :  { %v670_v17 = vld [vmem:[%s7777_s4 + $0x28] sm:$0xff]  ;;  %v669_v19 = vld [vmem:[%s7777_s4 + $0x20] sm:$0xff]  ;;  %v668_v21 = vld [vmem:[%s7777_s4 + $0x18] sm:$0xff] }
   0xc   :  { %254 = vmatpush.msrb.mxu1 %v102_v5  ;;  %682 = vmatpush.msra.mxu3 %v679_v8  ;;  %v106_v20 = vld [vmem:[%s7775_s2 + $0x28] sm:$0x7]  ;;  %v103_v22 = vld [vmem:[%s7775_s2 + $0x10] sm:$0xff]  ;;  %v5018_v24 = vld [vmem:[%s7779_s6] sm:$0x7]  ;;  %s4862_s2 = smov 125  }
   0xd   :  { %4503 = vmatpush.msk.msra.mxu2 %vm164_vm0, %v106_v20  ;;  %v667_v23 = vld [vmem:[%s7777_s4 + $0x10] sm:$0xff]  ;;  %v5023_v25 = vperm.slane %v5018_v24, 1  ;;  %v666_v26 = vld [vmem:[%s7777_s4 + $0x8] sm:$0xff]  ;;  %v665_v27 = vld [vmem:[%s7777_s4] sm:$0xff]  ;;  %77 = vrot.lane.b32.xlu0 %v4943_v4, %s4862_s2 }
   0xe   :  { %683 = vmatpush.msra.mxu3 %v678_v9  ;;  %v423_v29 = vld [vmem:[%s7782_s9 + $0x8] sm:$0xff]  ;;  %v426_v34 = vld [vmem:[%s7782_s9 + $0x20] sm:$0xff]  ;;  %v805_v38 = vld [vmem:[#allocation9 + $0x2c8] sm:$0xff] }
   0xf   :  { %319 = vmatpush.msra.mxu2 %v103_v22  ;;  %7954 = vst [vmem:[#allocation13_spill] sm:$0xff] %v5023_v25  ;;  %v811_v37 = vld [vmem:[#allocation9 + $0x2f8] sm:$0xff]  ;;  %v87_v39 = vld [vmem:[%s7773_s0 + $0x10] sm:$0xff]  ;;  %v793_v44 = vld [vmem:[#allocation9 + $0x268] sm:$0xff] }
  0x10   :  { %684 = vmatpush.msra.mxu3 %v677_v10  ;;  %4504 = vmatmul.msk.f32.vlgmr.msra.gmra.mxu2 %vm115_vm1, %v4943_v4  ;;  %v799_v42 = vld [vmem:[#allocation9 + $0x298] sm:$0xff]  ;;  %v88_v45 = vld [vmem:[%s7773_s0 + $0x18] sm:$0xff]  ;;  %v89_v55 = vld [vmem:[%s7773_s0 + $0x20] sm:$0xff] }
  0x11   :  { %4487 = vmatmul.msk.f32.vlgmr.msrb.gmra.mxu1 %vm115_vm1, %v4943_v4  ;;  %4471 = vmatmul.msk.f32.gmra.mxu0 %vm115_vm1, %v4956_v6  ;;  %v787_v46 = vld [vmem:[#allocation9 + $0x238] sm:$0xff]  ;;  %v781_v47 = vld [vmem:[#allocation9 + $0x208] sm:$0xff]  ;;  %v806_v61 = vld [vmem:[#allocation9 + $0x2d0] sm:$0xff] }
  0x12   :  { %685 = vmatpush.msra.mxu3 %v676_v11  ;;  %927 = vmatpush.msrb.mxu2 %v811_v37  ;;  %v775_v49 = vld [vmem:[#allocation9 + $0x1d8] sm:$0xff]  ;;  %v769_v53 = vld [vmem:[#allocation9 + $0x1a8] sm:$0xff]  ;;  %v800_v62 = vld [vmem:[#allocation9 + $0x2a0] sm:$0xff] }
  0x13   :  { %v763_v60 = vld [vmem:[#allocation9 + $0x178] sm:$0xff]  ;;  %v794_v5 = vld [vmem:[#allocation9 + $0x270] sm:$0xff]  ;;  %v728_v37 = vld [vmem:[#allocation9 + $0x60] sm:$0xff] }
  0x14   :  { %686 = vmatpush.msra.mxu3 %v675_v12  ;;  %928 = vmatpush.msrb.mxu2 %v805_v38  ;;  %v90_v10 = vld [vmem:[%s7773_s0 + $0x28] sm:$0xff]  ;;  %v93_v38 = vld [vmem:[%s7773_s0 + $0x40] sm:$0xff] }
  0x15   :  { %v5099_v4 = vld [vmem:[#allocation9 + $0x218] sm:$0xff]  ;;  %79 = vrot.lane.b32.xlu0 %v4956_v6, %s4862_s2 }
  0x16   :  { %687 = vmatpush.msra.mxu3 %v674_v13  ;;  %929 = vmatpush.msrb.mxu2 %v799_v42  ;;  %v809_v42 = vld [vmem:[#allocation9 + $0x2e8] sm:$0xff] }
  0x17   :  { %881 = vmatpush.msrb.mxu0 %v809_v42  ;;  %v732_v42 = vld [vmem:[#allocation9 + $0x80] sm:$0xff] }
  0x18   :  { %688 = vmatpush.msra.mxu3 %v673_v14  ;;  %4505 = vmatmul.msk.f32.gmra.mxu2 %vm115_vm1, %v4956_v6 }
  0x19   :  { %4488 = vmatmul.msk.f32.gmra.mxu1 %vm115_vm1, %v4956_v6  ;;  %4472 = vmatmul.msk.f32.gmra.mxu0 %vm115_vm1, %v87_v39  ;;  %v97_v6 = vld [vmem:[%s7773_s0 + $0x60] sm:$0xff] }
  0x1a   :  { %689 = vmatpush.msra.mxu3 %v672_v15  ;;  %930 = vmatpush.msrb.mxu2 %v793_v44  ;;  %v757_v15 = vld [vmem:[#allocation9 + $0x148] sm:$0xff]  ;;  %v807_v44 = vld [vmem:[#allocation9 + $0x2d8] sm:$0xff] }
  0x1c   :  { %690 = vmatpush.msra.mxu3 %v671_v16  ;;  %931 = vmatpush.msrb.mxu2 %v787_v46  ;;  %v788_v16 = vld [vmem:[#allocation9 + $0x240] sm:$0xff] }
  0x1d   :  { %v804_v46 = vld [vmem:[#allocation9 + $0x2c0] sm:$0xff] }
  0x1e   :  { %691 = vmatpush.msra.mxu3 %v670_v17  ;;  %932 = vmatpush.msrb.mxu2 %v781_v47  ;;  %v782_v17 = vld [vmem:[#allocation9 + $0x210] sm:$0xff]  ;;  %v5083_v47 = vld [vmem:[#allocation9 + $0x2a8] sm:$0xff] }
  0x20   :  { %692 = vmatpush.msra.mxu3 %v669_v19  ;;  %4506 = vmatmul.msk.f32.gmra.mxu2 %vm115_vm1, %v87_v39 }
  0x21   :  { %4489 = vmatmul.msk.f32.gmra.mxu1 %vm115_vm1, %v87_v39  ;;  %4473 = vmatmul.msk.f32.gmra.mxu0 %vm115_vm1, %v88_v45  ;;  %v722_v39 = vld [vmem:[#allocation9 + $0x30] sm:$0xff] }
  0x22   :  { %693 = vmatpush.msra.mxu3 %v668_v21  ;;  %933 = vmatpush.msrb.mxu2 %v775_v49  ;;  %v776_v21 = vld [vmem:[#allocation9 + $0x1e0] sm:$0xff]  ;;  %v798_v49 = vld [vmem:[#allocation9 + $0x290] sm:$0xff] }
  0x24   :  { %694 = vmatpush.msra.mxu3 %v667_v23  ;;  %934 = vmatpush.msrb.mxu2 %v769_v53  ;;  %v792_v53 = vld [vmem:[#allocation9 + $0x260] sm:$0xff] }
  0x26   :  { %695 = vmatpush.msra.mxu3 %v666_v26  ;;  %935 = vmatpush.msrb.mxu2 %v763_v60  ;;  %v91_v26 = vld [vmem:[%s7773_s0 + $0x30] sm:$0xff]  ;;  %v5102_v60 = vld [vmem:[#allocation9 + $0x1e8] sm:$0xff] }
  0x28   :  { %696 = vmatpush.msra.mxu3 %v665_v27  ;;  %4507 = vmatmul.msk.f32.gmra.mxu2 %vm115_vm1, %v88_v45  ;;  %v770_v27 = vld [vmem:[#allocation9 + $0x1b0] sm:$0xff] }
  0x29   :  { %4490 = vmatmul.msk.f32.gmra.mxu1 %vm115_vm1, %v88_v45  ;;  %4474 = vmatmul.msk.f32.gmra.mxu0 %vm115_vm1, %v89_v55  ;;  %v803_v45 = vld [vmem:[#allocation9 + $0x2b8] sm:$0xff] }
  0x2a   :  { %812 = vmatpush.msrb.mxu3 %v806_v61  ;;  %936 = vmatpush.msrb.mxu2 %v757_v15  ;;  %v95_v61 = vld [vmem:[%s7773_s0 + $0x50] sm:$0xff] }
  0x2b   :  { %882 = vmatpush.msrb.mxu0 %v803_v45  ;;  %v725_v45 = vld [vmem:[#allocation9 + $0x48] sm:$0xff] }
  0x2c   :  { %813 = vmatpush.msrb.mxu3 %v800_v62  ;;  %v773_v62 = vld [vmem:[#allocation9 + $0x1c8] sm:$0xff] }
  0x2e   :  { %814 = vmatpush.msrb.mxu3 %v794_v5  ;;  %v768_v5 = vld [vmem:[#allocation9 + $0x1a0] sm:$0xff] }
  0x30   :  { %4508 = vmatmul.msk.f32.gmra.mxu2 %vm115_vm1, %v89_v55  ;;  %815 = vmatpush.msrb.mxu3 %v788_v16  ;;  %v422_v16 = vld [vmem:[%s7782_s9] sm:$0xff] }
  0x31   :  { %4491 = vmatmul.msk.f32.gmra.mxu1 %vm115_vm1, %v89_v55  ;;  %4475 = vmatmul.msk.f32.gmra.mxu0 %vm115_vm1, %v90_v10  ;;  %v733_v55 = vld [vmem:[#allocation9 + $0x88] sm:$0xff] }
  0x32   :  { %816 = vmatpush.msrb.mxu3 %v782_v17 }
  0x34   :  { %817 = vmatpush.msrb.mxu3 %v776_v21 }
  0x36   :  { %818 = vmatpush.msrb.mxu3 %v770_v27  ;;  %v755_v27 = vld [vmem:[#allocation9 + $0x138] sm:$0xff] }
  0x38   :  { %4509 = vmatmul.msk.f32.gmra.mxu2 %vm115_vm1, %v90_v10 }
  0x39   :  { %4492 = vmatmul.msk.f32.gmra.mxu1 %vm115_vm1, %v90_v10  ;;  %4476 = vmatmul.msk.f32.gmra.mxu0 %vm115_vm1, %v91_v26  ;;  %v761_v10 = vld [vmem:[#allocation9 + $0x168] sm:$0xff] }
  0x40   :  { %4510 = vmatmul.msk.f32.gmra.mxu2 %vm115_vm1, %v91_v26 }
  0x41   :  { %4493 = vmatmul.msk.f32.gmra.mxu1 %vm115_vm1, %v91_v26  ;;  %v5159_v26 = vld [vmem:[#allocation9 + $0x158] sm:$0xff] }
  0x86   :  { %v4997_v18 = vpop.f32.mrf.mxu1 }
  0x87   :  { %7953 = vst [vmem:[#allocation12_spill] sm:$0xff] %v4997_v18 }
  0x8e   :  { %v256_v28 = vpop.f32.mrf.mxu1 }
  0x8f   :  { %v257_v30 = vadd.f32 %v256_v28, %v5023_v25  ;;  %v751_v28 = vld [vmem:[#allocation9 + $0x118] sm:$0xff] }
  0x90   :  { %937 = vmatpush.msrb.mxu2 %v751_v28  ;;  %v756_v28 = vld [vmem:[#allocation9 + $0x140] sm:$0xff] }
  0x91   :  { %v578_v31 = vadd.f32 %v423_v29, %v257_v30  ;;  %v764_v29 = vld [vmem:[#allocation9 + $0x180] sm:$0xff]  ;;  %v758_v30 = vld [vmem:[#allocation9 + $0x150] sm:$0xff] }
  0x92   :  { %819 = vmatpush.msrb.mxu3 %v764_v29  ;;  %v5162_v29 = vld [vmem:[#allocation9 + $0x128] sm:$0xff] }
  0x93   :  { %v4523_v32 = vmul.f32 -1.442695, %v578_v31  ;;  %v752_v31 = vld [vmem:[#allocation9 + $0x120] sm:$0xff] }
  0x94   :  { %820 = vmatpush.msrb.mxu3 %v758_v30 }
  0x95   :  { %4640 = vpow2.f32 %v4523_v32  ;;  %v92_v32 = vld [vmem:[%s7773_s0 + $0x38] sm:$0xff] }
  0x96   :  { %v259_v33 = vpop.f32.mrf.mxu1  ;;  %821 = vmatpush.msrb.mxu3 %v752_v31  ;;  %4494 = vmatmul.msk.f32.gmra.mxu1 %vm115_vm1, %v92_v32  ;;  %v749_v31 = vld [vmem:[#allocation9 + $0x108] sm:$0xff] }
  0x97   :  { %v260_v35 = vadd.f32 %v259_v33, %v5023_v25  ;;  %v746_v33 = vld [vmem:[#allocation9 + $0xf0] sm:$0xff]  ;;  %4511 = vmatmul.msk.f32.gmra.mxu2 %vm115_vm1, %v92_v32  ;;  %4477 = vmatmul.msk.f32.gmra.mxu0 %vm115_vm1, %v92_v32 }
  0x98   :  { %822 = vmatpush.msrb.mxu3 %v746_v33  ;;  %v750_v32 = vld [vmem:[#allocation9 + $0x110] sm:$0xff]  ;;  %v5165_v33 = vld [vmem:[#allocation9 + $0xf8] sm:$0xff] }
  0x99   :  { %v581_v36 = vadd.f32 %v426_v34, %v260_v35  ;;  %v745_v34 = vld [vmem:[#allocation9 + $0xe8] sm:$0xff]  ;;  %v740_v35 = vld [vmem:[#allocation9 + $0xc0] sm:$0xff] }
  0x9a   :  { %938 = vmatpush.msrb.mxu2 %v745_v34  ;;  %823 = vmatpush.msrb.mxu3 %v740_v35  ;;  %v743_v34 = vld [vmem:[#allocation9 + $0xd8] sm:$0xff]  ;;  %v744_v35 = vld [vmem:[#allocation9 + $0xe0] sm:$0xff] }
  0x9b   :  { %v4641_v40 = vpop.eup %4640  ;;  %v4525_v41 = vmul.f32 -1.442695, %v581_v36  ;;  %v734_v36 = vld [vmem:[#allocation9 + $0x90] sm:$0xff] }
  0x9c   :  { %v600_v43 = vadd.f32 1.0, %v4641_v40  ;;  %824 = vmatpush.msrb.mxu3 %v734_v36  ;;  %v739_v40 = vld [vmem:[#allocation9 + $0xb8] sm:$0xff] }
  0x9d   :  { %4642 = vpow2.f32 %v4525_v41  ;;  %v716_v41 = vld [vmem:[#allocation9] sm:$0xff]  ;;  %939 = vmatpush.msrb.mxu2 %v739_v40  ;;  %v5173_v40 = vld [vmem:[#allocation9 + $0x98] sm:$0xff] }
  0x9e   :  { %4644 = vrcp.f32 %v600_v43  ;;  %v629_v56 = vand.u32 2147483648, %v600_v43  ;;  %v627_v58 = vand.u32 2147483647, %v600_v43  ;;  %vm623_vm3 = vweird.f32 %v600_v43  ;;  %825 = vmatpush.msrb.mxu3 %v728_v37  ;;  %4495 = vmatmul.msk.f32.gmra.mxu1 %vm115_vm1, %v93_v38  ;;  %v5170_v37 = vld [vmem:[#allocation9 + $0xc8] sm:$0xff] }
  0x9f   :  { %4512 = vmatmul.msk.f32.gmra.mxu2 %vm115_vm1, %v93_v38  ;;  %4478 = vmatmul.msk.f32.gmra.mxu0 %vm115_vm1, %v93_v38  ;;  %v737_v38 = vld [vmem:[#allocation9 + $0xa8] sm:$0xff] }
  0xa0   :  { %v630_v0 = vor.u32 1.1754944e-38, %v629_v56  ;;  %vm628_vm5 = vcmp.eq.f32.partialorder %v627_v58, 8.507059e+37  ;;  %826 = vmatpush.msrb.mxu3 %v722_v39  ;;  %v785_v56 = vld [vmem:[#allocation9 + $0x228] sm:$0xff]  ;;  %940 = vmatpush.msrb.mxu2 %v733_v55  ;;  %v779_v58 = vld [vmem:[#allocation9 + $0x1f8] sm:$0xff]  ;;  %v738_v39 = vld [vmem:[#allocation9 + $0xb0] sm:$0xff] }
  0xa1   :  { %v5185_v55 = vld [vmem:[#allocation9 + $0x8] sm:$0xff] }
  0xa2   :  { %827 = vmatpush.msrb.mxu3 %v716_v41  ;;  %v731_v41 = vld [vmem:[#allocation9 + $0x78] sm:$0xff] }
  0xa3   :  { %v4643_v48 = vpop.eup %4642 }
  0xa4   :  { %v4645_v50 = vpop.eup %4644  ;;  %v602_v51 = vadd.f32 1.0, %v4643_v48  ;;  %v797_v48 = vld [vmem:[#allocation9 + $0x288] sm:$0xff] }
  0xa5   :  { %v619_v52 = vmul.f32 %v4645_v50, %v600_v43  ;;  %vm624_vm2 = vweird.f32 %v4645_v50  ;;  %v810_v43 = vld [vmem:[#allocation9 + $0x2f0] sm:$0xff]  ;;  %883 = vmatpush.msrb.mxu0 %v797_v48  ;;  %v5180_v48 = vld [vmem:[#allocation9 + $0x38] sm:$0xff] }
  0xa6   :  { %4646 = vrcp.f32 %v602_v51  ;;  %vm625_vm4 = vmor %vm623_vm3, %vm624_vm2  ;;  %v659_v11 = vand.u32 2147483648, %v602_v51  ;;  %v657_v13 = vand.u32 2147483647, %v602_v51  ;;  %vm653_vm7 = vweird.f32 %v602_v51  ;;  %904 = vmatpush.msra.mxu1 %v810_v43  ;;  %v5177_v43 = vld [vmem:[#allocation9 + $0x68] sm:$0xff] }
  0xa7   :  { %v620_v54 = vsub.f32 1.0, %v619_v52  ;;  %v791_v52 = vld [vmem:[#allocation9 + $0x258] sm:$0xff] }
  0xa8   :  { %v660_v19 = vor.u32 1.1754944e-38, %v659_v11  ;;  %vm658_vm9 = vcmp.eq.f32.partialorder %v657_v13, 8.507059e+37  ;;  %905 = vmatpush.msra.mxu1 %v804_v46  ;;  %884 = vmatpush.msrb.mxu0 %v791_v52  ;;  %v762_v11 = vld [vmem:[#allocation9 + $0x170] sm:$0xff]  ;;  %v191_v13 = vpop.f32.mrf.mxu0  ;;  %v720_v52 = vld [vmem:[#allocation9 + $0x20] sm:$0xff] }
  0xa9   :  { %v621_v57 = vmul.f32 %v4645_v50, %v620_v54  ;;  %v5097_v54 = vld [vmem:[#allocation9 + $0x248] sm:$0xff]  ;;  %v726_v46 = vld [vmem:[#allocation9 + $0x50] sm:$0xff] }
  0xaa   :  { %906 = vmatpush.msra.mxu1 %v798_v49  ;;  %885 = vmatpush.msrb.mxu0 %v785_v56  ;;  %v721_v49 = vld [vmem:[#allocation9 + $0x28] sm:$0xff] }
  0xab   :  { %v622_v59 = vadd.f32 %v4645_v50, %v621_v57  ;;  %v786_v57 = vld [vmem:[#allocation9 + $0x230] sm:$0xff] }
  0xac   :  { %v4647_v63 = vpop.eup %4646  ;;  %907 = vmatpush.msra.mxu1 %v792_v53  ;;  %886 = vmatpush.msrb.mxu0 %v779_v58  ;;  %v450_v58 = vld [vmem:[%s7774_s1] sm:$0xff] }
  0xad   :  { %v626_v1 = vsel %vm625_vm4, %v4645_v50, %v622_v59  ;;  %v649_v3 = vmul.f32 %v4647_v63, %v602_v51  ;;  %vm654_vm6 = vweird.f32 %v4647_v63  ;;  %v94_v50 = vld [vmem:[%s7773_s0 + $0x48] sm:$0xff]  ;;  %v780_v59 = vld [vmem:[#allocation9 + $0x200] sm:$0xff]  ;;  %vm67_vm4 = vcmask 23552  }
  0xae   :  { %v631_v7 = vsel %vm628_vm5, %v630_v0, %v626_v1  ;;  %vm655_vm8 = vmor %vm653_vm7, %vm654_vm6  ;;  %v5088_v51 = vld [vmem:[#allocation9 + $0x278] sm:$0xff]  ;;  %4496 = vmatmul.msk.f32.gmra.mxu1 %vm115_vm1, %v94_v50  ;;  %4513 = vmatmul.msk.f32.gmra.mxu2 %vm115_vm1, %v94_v50  ;;  %v96_v0 = vld [vmem:[%s7773_s0 + $0x58] sm:$0xff] }
  0xaf   :  { %v663_v8 = vmul.f32 0.0, %v631_v7  ;;  %v650_v9 = vsub.f32 1.0, %v649_v3  ;;  %4479 = vmatmul.msk.f32.gmra.mxu0 %vm115_vm1, %v94_v50  ;;  %908 = vmatpush.msra.mxu1 %v786_v57  ;;  %v5126_v1 = vld [vmem:[#allocation9 + $0x1b8] sm:$0xff]  ;;  %v5190_v57 = vld [vmem:[#allocation9 + $0x2e0] sm:$0xff] }
  0xb0   :  { %887 = vmatpush.msrb.mxu0 %v773_v62  ;;  %v767_v3 = vld [vmem:[#allocation9 + $0x198] sm:$0xff]  ;;  %v5203_v62 = vld [vmem:[#allocation9 + $0x2b0] sm:$0xff] }
  0xb1   :  { %697 = vmatmul.f32.vlgmr.msra.gmra.mxu3 %v663_v8  ;;  %v651_v12 = vmul.f32 %v4647_v63, %v650_v9  ;;  %909 = vmatpush.msra.mxu1 %v780_v59  ;;  %v98_v7 = vld [vmem:[%s7773_s0 + $0x68] sm:$0xff]  ;;  %v5132_v8 = vld [vmem:[#allocation9 + $0x188] sm:$0xff]  ;;  %v5198_v59 = vld [vmem:[%s7774_s1 + $0x10] sm:$0xff] }
  0xb2   :  { %835 = vmatpush.msra.mxu3 %v807_v44  ;;  %888 = vmatpush.msrb.mxu0 %v767_v3  ;;  %v727_v9 = vld [vmem:[#allocation9 + $0x58] sm:$0xff]  ;;  %v321_v3 = vpop.f32.mrf.mxu2 }
  0xb3   :  { %v652_v14 = vadd.f32 %v4647_v63, %v651_v12  ;;  %941 = vmatpush.msrb.mxu2 %v727_v9  ;;  %v99_v12 = vld [vmem:[%s7773_s0 + $0x70] sm:$0xff]  ;;  %v719_v50 = vld [vmem:[#allocation9 + $0x18] sm:$0xff] }
  0xb4   :  { %836 = vmatpush.msra.mxu3 %v5083_v47  ;;  %889 = vmatpush.msrb.mxu0 %v761_v10 }
  0xb5   :  { %v656_v20 = vsel %vm655_vm8, %v4647_v63, %v652_v14  ;;  %v774_v63 = vld [vmem:[#allocation9 + $0x1d0] sm:$0xff]  ;;  %v5145_v14 = vperm.slane %v5018_v24, 0  ;;  %942 = vmatpush.msrb.mxu2 %v721_v49  ;;  %v5258_v49 = vld [vmem:[#allocation9 + $0x160] sm:$0xff] }
  0xb6   :  { %v661_v22 = vsel %vm658_vm9, %v660_v19, %v656_v20  ;;  %837 = vmatpush.msra.mxu3 %v5088_v51  ;;  %4497 = vmatmul.msk.f32.gmra.mxu1 %vm115_vm1, %v95_v61  ;;  %v194_v19 = vpop.f32.mrf.mxu0 }
  0xb7   :  { %v664_v23 = vmul.f32 0.0, %v661_v22  ;;  %4514 = vmatmul.msk.f32.gmra.mxu2 %vm115_vm1, %v95_v61  ;;  %4480 = vmatmul.msk.f32.gmra.mxu0 %vm115_vm1, %v95_v61  ;;  %7955 = vst [vmem:[#allocation14_spill] sm:$0xff] %v5145_v14  ;;  %v192_v15 = vadd.f32 %v191_v13, %v5145_v14  ;;  %v195_v21 = vadd.f32 %v194_v19, %v5145_v14  ;;  %v425_v22 = vld [vmem:[%s7782_s9 + $0x18] sm:$0xff]  ;;  %v424_v19 = vld [vmem:[%s7782_s9 + $0x10] sm:$0xff] }
  0xb8   :  { %838 = vmatpush.msra.mxu3 %v5097_v54  ;;  %910 = vmatpush.msra.mxu1 %v774_v63  ;;  %v978_v61 = vsub.f32 %v5198_v59, %v450_v58  ;;  %v4527_v13 = vld [vmem:[%s7774_s1 + $0x18] sm:$0xff]  ;;  %v754_v58 = vld [vmem:[#allocation9 + $0x130] sm:$0xff] }
  0xb9   :  { %700 = vmatmul.f32.gmra.mxu3 %v664_v23  ;;  %v577_v17 = vadd.f32 %v422_v16, %v192_v15  ;;  %v580_v23 = vadd.f32 %v425_v22, %v195_v21  ;;  %890 = vmatpush.msrb.mxu0 %v755_v27  ;;  %v5225_v15 = vld [vmem:[#allocation9 + $0x220] sm:$0xff]  ;;  %v5235_v22 = vld [vmem:[#allocation9 + $0x1f0] sm:$0xff] }
  0xba   :  { %839 = vmatpush.msra.mxu3 %v5099_v4  ;;  %911 = vmatpush.msra.mxu1 %v768_v5  ;;  %v5212_v5 = vperm.slane %v5018_v24, 2 }
  0xbb   :  { %v4522_v20 = vmul.f32 -1.442695, %v577_v17  ;;  %891 = vmatpush.msrb.mxu0 %v749_v31  ;;  %1363 = vmatpush.msra.mxu2 %v5190_v57 }
  0xbc   :  { %840 = vmatpush.msra.mxu3 %v5102_v60  ;;  %912 = vmatpush.msra.mxu1 %v762_v11  ;;  %v322_v16 = vadd.f32 %v321_v3, %v5212_v5  ;;  %v748_v3 = vld [vmem:[#allocation9 + $0x100] sm:$0xff] }
  0xbd   :  { %4648 = vpow2.f32 %v4522_v20  ;;  %892 = vmatpush.msrb.mxu0 %v743_v34  ;;  %1364 = vmatpush.msra.mxu2 %v5203_v62 }
  0xbe   :  { %4498 = vmatmul.msk.f32.gmra.mxu1 %vm115_vm1, %v96_v0  ;;  %841 = vmatpush.msra.mxu3 %v5126_v1  ;;  %v579_v27 = vadd.f32 %v424_v19, %v322_v16 }
  0xbf   :  { %4515 = vmatmul.msk.f32.gmra.mxu2 %vm115_vm1, %v96_v0  ;;  %4481 = vmatmul.msk.f32.gmra.mxu0 %vm115_vm1, %v96_v0  ;;  %v980_v0 = vand.u32 2147483647, %v978_v61 }
  0xc0   :  { %842 = vmatpush.msra.mxu3 %v5132_v8  ;;  %913 = vmatpush.msra.mxu1 %v756_v28 }
  0xc1   :  { %893 = vmatpush.msrb.mxu0 %v737_v38  ;;  %vm982_vm10 = vcmp.lt.f32.partialorder %v980_v0, 1e-12 }
  0xc2   :  { %843 = vmatpush.msra.mxu3 %v5159_v26  ;;  %914 = vmatpush.msra.mxu1 %v750_v32  ;;  %v984_v9 = vsel %vm982_vm10, 1.0, %v978_v61 }
  0xc3   :  { %v4649_v30 = vpop.eup %4648  ;;  %894 = vmatpush.msrb.mxu0 %v731_v41  ;;  %v5254_v41 = vld [vmem:[#allocation9 + $0x190] sm:$0xff] }
  0xc4   :  { %844 = vmatpush.msra.mxu3 %v5162_v29  ;;  %v5168_v36 = vadd.f32 1.0, %v4649_v30  ;;  %915 = vmatpush.msra.mxu1 %v744_v35  ;;  %v5243_v30 = vld [vmem:[#allocation9 + $0x1c0] sm:$0xff]  ;;  %v324_v35 = vpop.f32.mrf.mxu2 }
  0xc5   :  { %895 = vmatpush.msrb.mxu0 %v725_v45 }
  0xc6   :  { %4499 = vmatmul.msk.f32.gmra.mxu1 %vm115_vm1, %v97_v6  ;;  %845 = vmatpush.msra.mxu3 %v5165_v33  ;;  %vm608_vm11 = vweird.f32 %v5168_v36  ;;  %v614_v28 = vand.u32 2147483648, %v5168_v36  ;;  %v612_v34 = vand.u32 2147483647, %v5168_v36 }
  0xc7   :  { %4516 = vmatmul.msk.f32.gmra.mxu2 %vm115_vm1, %v97_v6  ;;  %4482 = vmatmul.msk.f32.gmra.mxu0 %vm115_vm1, %v97_v6  ;;  %v5208_v6 = vld [vmem:[#allocation9 + $0x280] sm:$0xff] }
  0xc8   :  { %846 = vmatpush.msra.mxu3 %v5170_v37  ;;  %916 = vmatpush.msra.mxu1 %v738_v39  ;;  %vm613_vm15 = vcmp.eq.f32.partialorder %v612_v34, 8.507059e+37 }
  0xc9   :  { %896 = vmatpush.msrb.mxu0 %v719_v50  ;;  %1365 = vmatpush.msra.mxu2 %v5208_v6  ;;  %v427_v50 = vld [vmem:[%s7782_s9 + $0x28] sm:$0xff] }
  0xca   :  { %847 = vmatpush.msra.mxu3 %v5173_v40  ;;  %917 = vmatpush.msra.mxu1 %v732_v42 }
  0xcc   :  { %848 = vmatpush.msra.mxu3 %v5177_v43  ;;  %918 = vmatpush.msra.mxu1 %v726_v46  ;;  %v325_v46 = vadd.f32 %v324_v35, %v5212_v5  ;;  %v724_v35 = vld [vmem:[#allocation9 + $0x40] sm:$0xff] }
  0xce   :  { %4500 = vmatmul.msk.f32.gmra.mxu1 %vm115_vm1, %v98_v7  ;;  %849 = vmatpush.msra.mxu3 %v5180_v48  ;;  %v582_v0 = vadd.f32 %v427_v50, %v325_v46 }
  0xcf   :  { %4517 = vmatmul.msk.f32.gmra.mxu2 %vm115_vm1, %v98_v7  ;;  %4483 = vmatmul.msk.f32.gmra.mxu0 %vm115_vm1, %v98_v7  ;;  %v5214_v7 = vld [vmem:[#allocation9 + $0x250] sm:$0xff] }
  0xd0   :  { %919 = vmatpush.msra.mxu1 %v720_v52  ;;  %850 = vmatpush.msra.mxu3 %v5185_v55 }
  0xd1   :  { %1366 = vmatpush.msra.mxu2 %v5214_v7 }
  0xd3   :  { %1367 = vmatpush.msra.mxu2 %v5225_v15 }
  0xd5   :  { %1368 = vmatpush.msra.mxu2 %v5235_v22 }
  0xd6   :  { %4501 = vmatmul.msk.f32.gmra.mxu1 %vm115_vm1, %v99_v12 }
  0xd7   :  { %4518 = vmatmul.msk.f32.gmra.mxu2 %vm115_vm1, %v99_v12  ;;  %4484 = vmatmul.msk.f32.gmra.mxu0 %vm115_vm1, %v99_v12  ;;  %v451_v12 = vld [vmem:[%s7774_s1 + $0x8] sm:$0xff] }
  0xd8   :  { %v979_v24 = vsub.f32 %v4527_v13, %v451_v12  ;;  %1369 = vmatpush.msra.mxu2 %v5243_v30  ;;  %v5273_v12 = vpop.f32.mrf.mxu2 }
  0xda   :  { %v981_v21 = vand.u32 2147483647, %v979_v24  ;;  %1370 = vmatpush.msra.mxu2 %v5254_v41 }
  0xdc   :  { %vm983_vm13 = vcmp.lt.f32.partialorder %v981_v21, 1e-12  ;;  %1371 = vmatpush.msra.mxu2 %v5258_v49 }
  0xdd   :  { %v985_v38 = vsel %vm983_vm13, 1.0, %v979_v24  ;;  %v742_v24 = vld [vmem:[#allocation9 + $0xd0] sm:$0xff] }
  0xde   :  { %4502 = vmatmul.msk.f32.gmra.mxu1 %vm115_vm1, %v4934_v2  ;;  %1372 = vmatpush.msra.mxu2 %v754_v58 }
  0xdf   :  { %4519 = vmatmul.msk.f32.gmra.mxu2 %vm115_vm1, %v4934_v2  ;;  %v4524_v2 = vmul.f32 -1.442695, %v580_v23  ;;  %v7786_v23 = vmov 0  }
  0xe0   :  { %4608 = vset.pattern.permute.xlu1 %v7786_v23  ;;  %4609 = vset.pattern.permute.xlu2 %v7786_v23 }
  0xe1   :  { %4650 = vpow2.f32 %v4524_v2  ;;  %1373 = vmatpush.msra.mxu2 %v748_v3 }
  0xe2   :  { %4652 = vrcp.f32 %v5168_v36 }
  0xe3   :  { %1374 = vmatpush.msra.mxu2 %v742_v24 }
  0xe7   :  { %v4651_v44 = vpop.eup %4650 }
  0xe8   :  { %v5183_v53 = vadd.f32 1.0, %v4651_v44  ;;  %v5188_v56 = vpop.eup %4652  ;;  %v615_v44 = vor.u32 1.1754944e-38, %v614_v28 }
  0xe9   :  { %v604_v63 = vmul.f32 %v5188_v56, %v5168_v36  ;;  %vm609_vm12 = vweird.f32 %v5188_v56 }
  0xea   :  { %4654 = vrcp.f32 %v5183_v53  ;;  %vm5250_vm14 = vmor %vm608_vm11, %vm609_vm12  ;;  %vm638_vm0 = vweird.f32 %v5183_v53 }
  0xeb   :  { %v605_v10 = vsub.f32 1.0, %v604_v63  ;;  %4656 = vrcp.f32 %v984_v9 }
  0xec   :  { %4658 = vrcp.f32 %v985_v38 }
  0xed   :  { %v606_v20 = vmul.f32 %v5188_v56, %v605_v10  ;;  %v642_v10 = vand.u32 2147483647, %v5183_v53 }
  0xef   :  { %v607_v32 = vadd.f32 %v5188_v56, %v606_v20  ;;  %vm643_vm3 = vcmp.eq.f32.partialorder %v642_v10, 8.507059e+37 }
  0xf0   :  { %v5217_v11 = vpop.eup %4654 }
  0xf1   :  { %v634_v17 = vmul.f32 %v5217_v11, %v5183_v53  ;;  %v4657_v2 = vpop.eup %4656  ;;  %v611_v36 = vsel %vm5250_vm14, %v5188_v56, %v607_v32  ;;  %vm639_vm1 = vweird.f32 %v5217_v11  ;;  %v644_v56 = vand.u32 2147483648, %v5183_v53 }
  0xf2   :  { %992 = vperm.xlu1 %4608, %v4657_v2   ;;  %v4659_v61 = vpop.eup %4658  ;;  %v616_v63 = vsel %vm613_vm15, %v615_v44, %v611_v36  ;;  %vm5275_vm2 = vmor %vm638_vm0, %vm639_vm1  ;;  %v736_v2 = vld [vmem:[#allocation9 + $0xa0] sm:$0xff]  ;;  %v78_v36 = vpop.permute.xlu0 %77 }
  0xf3   :  { %v635_v31 = vsub.f32 1.0, %v634_v17  ;;  %v710_v16 = vsub.f32 1.0, %v616_v63  ;;  %v645_v20 = vor.u32 1.1754944e-38, %v644_v56  ;;  %1375 = vmatpush.msra.mxu2 %v736_v2  ;;  %83 = vst.msk [vmem:[#allocation7] sm:$0xff] %vm67_vm4, %v78_v36  ;;  %v4639_v56 = vld [vmem:[%s7781_s8] ss:$0 sm:$0xff] }
  0xf5   :  { %v636_v52 = vmul.f32 %v5217_v11, %v635_v31  ;;  %v730_v31 = vld [vmem:[#allocation9 + $0x70] sm:$0xff] }
  0xf6   :  { %1376 = vmatpush.msra.mxu2 %v730_v31 }
  0xf7   :  { %v637_v9 = vadd.f32 %v5217_v11, %v636_v52 }
  0xf8   :  { %1377 = vmatpush.msra.mxu2 %v724_v35 }
  0xf9   :  { %v641_v53 = vsel %vm5275_vm2, %v5217_v11, %v637_v9  ;;  %v5289_v11 = vpop.f32.mrf.mxu2 }
  0xfa   :  { %997 = vperm.xlu1 %4608, %v4659_v61   ;;  %v646_v34 = vsel %vm643_vm3, %v645_v20, %v641_v53  ;;  %v80_v52 = vpop.permute.xlu0 %79  ;;  %v444_v9 = vld [vmem:[#allocation7] sm:$0xff] }
  0xfb   :  { %v711_v38 = vsub.f32 1.0, %v646_v34  ;;  %v709_v44 = vmul.f32 0.0, %v646_v34  ;;  %84 = vst.msk [vmem:[#allocation7 + $0x8] sm:$0xff] %vm67_vm4, %v80_v52 }
 0x134   :  { %v698_v42 = vpop.f32.mrf.mxu3 }
 0x135   :  { %v704_v45 = vadd.f32 %v698_v42, %v579_v27  ;;  %v708_v27 = vmul.f32 0.0, %v616_v63  ;;  %v718_v42 = vld [vmem:[#allocation9 + $0x10] sm:$0xff] }
 0x136   :  { %1378 = vmatpush.msra.mxu2 %v718_v42 }
 0x137   :  { %4660 = vtanh.f32 %v704_v45 }
 0x13c   :  { %v701_v17 = vpop.f32.mrf.mxu3 }
 0x13d   :  { %v4661_v19 = vpop.eup %4660  ;;  %v705_v21 = vadd.f32 %v701_v17, %v582_v0  ;;  %v5336_v0 = vpop.f32.mrf.mxu0 }
 0x13e   :  { %v712_v28 = vmul.f32 %v4661_v19, %v710_v16  ;;  %v5354_v19 = vld [vmem:[%s7774_s1 + $0x20] sm:$0xff] }
 0x13f   :  { %4662 = vtanh.f32 %v705_v21  ;;  %7973 = vst [vmem:[#allocation28_spill] sm:$0xff] %v5354_v19  ;;  %v445_v21 = vld [vmem:[#allocation7 + $0x8] sm:$0xff] }
 0x140   :  { %v5282_v32 = vadd.f32 %v712_v28, %v708_v27 }
 0x142   :  { %828 = vmatmul.f32.vlgmr.msrb.gmra.mxu3 %v5282_v32  ;;  %897 = vmatmul.f32.vlgmr.msrb.gmra.mxu0 %v5282_v32 }
 0x143   :  { %920 = vmatmul.f32.vlgmr.msra.gmra.mxu1 %v5282_v32  ;;  %943 = vmatmul.f32.vlgmr.msrb.gmra.mxu2 %v5282_v32 }
 0x144   :  { %858 = vmatpush.msrb.mxu3 %v5190_v57  ;;  %v5302_v57 = vpop.f32.mrf.mxu2 }
 0x145   :  { %v4663_v39 = vpop.eup %4662  ;;  %7960 = vst [vmem:[#allocation15_spill] sm:$0xff] %v5302_v57  ;;  %v5341_v10 = vpop.f32.mrf.mxu0  ;;  %v5512_v57 = vld [vmem:[#allocation9 + $0x2d8] sm:$0xff] }
 0x146   :  { %v713_v45 = vmul.f32 %v4663_v39, %v711_v38  ;;  %859 = vmatpush.msrb.mxu3 %v5203_v62  ;;  %v7788_v38 = vmov 1   ;;  %1340 = vmatpush.msrb.mxu1 %v5512_v57 }
 0x148   :  { %v5292_v46 = vadd.f32 %v713_v45, %v709_v44  ;;  %860 = vmatpush.msrb.mxu3 %v5208_v6  ;;  %1341 = vmatpush.msrb.mxu1 %v5083_v47  ;;  %v5538_v47 = vld [vmem:[#allocation9 + $0x258] sm:$0xff] }
 0x14a   :  { %861 = vmatpush.msrb.mxu3 %v5214_v7  ;;  %900 = vmatmul.f32.gmra.mxu0 %v5292_v46 }
 0x14b   :  { %831 = vmatmul.f32.gmra.mxu3 %v5292_v46  ;;  %923 = vmatmul.f32.gmra.mxu1 %v5292_v46 }
 0x14c   :  { %946 = vmatmul.f32.gmra.mxu2 %v5292_v46  ;;  %862 = vmatpush.msrb.mxu3 %v5225_v15  ;;  %v5308_v62 = vpop.f32.mrf.mxu2 }
 0x14d   :  { %7961 = vst [vmem:[#allocation16_spill] sm:$0xff] %v5308_v62  ;;  %v5360_v28 = vpop.f32.mrf.mxu0  ;;  %v5510_v62 = vld [vmem:[#allocation9 + $0x2d0] sm:$0xff]  ;;  %1342 = vmatpush.msrb.mxu1 %v5088_v51 }
 0x14e   :  { %863 = vmatpush.msrb.mxu3 %v5235_v22  ;;  %7975 = vst [vmem:[#allocation30_spill] sm:$0xff] %v5360_v28  ;;  %1317 = vmatpush.msra.mxu0 %v5510_v62 }
 0x14f   :  { %1343 = vmatpush.msrb.mxu1 %v5097_v54  ;;  %v5547_v54 = vld [vmem:[#allocation9 + $0x1b0] sm:$0xff] }
 0x150   :  { %864 = vmatpush.msrb.mxu3 %v5243_v30 }
 0x151   :  { %1344 = vmatpush.msrb.mxu1 %v5099_v4  ;;  %v5558_v4 = vld [vmem:[#allocation9 + $0x1f8] sm:$0xff] }
 0x152   :  { %865 = vmatpush.msrb.mxu3 %v5254_v41 }
 0x153   :  { %851 = vmatmul.f32.vlgmr.msra.gmra.mxu3 %v5282_v32  ;;  %1345 = vmatpush.msrb.mxu1 %v5102_v60  ;;  %v5566_v60 = vld [vmem:[#allocation9 + $0x1c8] sm:$0xff] }
 0x154   :  { %866 = vmatpush.msrb.mxu3 %v5258_v49  ;;  %v5311_v6 = vpop.f32.mrf.mxu2 }
 0x155   :  { %7962 = vst [vmem:[#allocation17_spill] sm:$0xff] %v5311_v6  ;;  %v5370_v39 = vpop.f32.mrf.mxu0  ;;  %1346 = vmatpush.msrb.mxu1 %v5126_v1  ;;  %v5573_v1 = vld [vmem:[#allocation9 + $0x198] sm:$0xff] }
 0x156   :  { %867 = vmatpush.msrb.mxu3 %v754_v58  ;;  %v7784_v58 = vmov 2   ;;  %7976 = vst [vmem:[#allocation31_spill] sm:$0xff] %v5370_v39 }
 0x157   :  { %4611 = vset.pattern.permute.xlu0 %v7784_v58  ;;  %1347 = vmatpush.msrb.mxu1 %v5132_v8  ;;  %v5580_v8 = vld [vmem:[#allocation9 + $0x168] sm:$0xff] }
 0x158   :  { %868 = vmatpush.msrb.mxu3 %v748_v3 }
 0x159   :  { %1348 = vmatpush.msrb.mxu1 %v5159_v26 }
 0x15a   :  { %869 = vmatpush.msrb.mxu3 %v742_v24 }
 0x15b   :  { %854 = vmatmul.f32.gmra.mxu3 %v5292_v46  ;;  %1349 = vmatpush.msrb.mxu1 %v5162_v29 }
 0x15c   :  { %870 = vmatpush.msrb.mxu3 %v736_v2  ;;  %v5315_v7 = vpop.f32.mrf.mxu2  ;;  %v1473_v2 = vsub.f32 %v5354_v19, %v5198_v59  ;;  %v5721_v19 = vld [vmem:[#allocation9 + $0x208] sm:$0xff] }
 0x15d   :  { %7963 = vst [vmem:[#allocation18_spill] sm:$0xff] %v5315_v7  ;;  %v5373_v44 = vpop.f32.mrf.mxu0  ;;  %1350 = vmatpush.msrb.mxu1 %v5165_v33 }
 0x15e   :  { %871 = vmatpush.msrb.mxu3 %v730_v31  ;;  %v1475_v34 = vand.u32 2147483647, %v1473_v2  ;;  %7977 = vst [vmem:[#allocation32_spill] sm:$0xff] %v5373_v44 }
 0x15f   :  { %1351 = vmatpush.msrb.mxu1 %v5170_v37  ;;  %8015 = vst [vmem:[#allocation70_spill] sm:$0xff] %v5721_v19 }
 0x160   :  { %872 = vmatpush.msrb.mxu3 %v724_v35  ;;  %vm1477_vm5 = vcmp.lt.f32.partialorder %v1475_v34, 1e-12 }
 0x161   :  { %v1479_v59 = vsel %vm1477_vm5, 1.0, %v1473_v2  ;;  %v1184_v2 = vld [vmem:[%s7777_s4 + $0x70] sm:$0xff]  ;;  %1352 = vmatpush.msrb.mxu1 %v5173_v40 }
 0x162   :  { %873 = vmatpush.msrb.mxu3 %v718_v42  ;;  %4664 = vrcp.f32 %v1479_v59  ;;  %v1183_v59 = vld [vmem:[%s7777_s4 + $0x68] sm:$0xff] }
 0x163   :  { %874 = vmatmul.f32.vlgmr.msrb.gmra.mxu3 %v5282_v32  ;;  %1353 = vmatpush.msrb.mxu1 %v5177_v43 }
 0x164   :  { %v5317_v15 = vpop.f32.mrf.mxu2  ;;  %v993_v24 = vpop.permute.xlu1 %992 }
 0x165   :  { %7964 = vst [vmem:[#allocation19_spill] sm:$0xff] %v5317_v15  ;;  %v5377_v45 = vpop.f32.mrf.mxu0  ;;  %1354 = vmatpush.msrb.mxu1 %v5180_v48 }
 0x166   :  { %7978 = vst [vmem:[#allocation33_spill] sm:$0xff] %v5377_v45 }
 0x167   :  { %1355 = vmatpush.msrb.mxu1 %v5185_v55 }
 0x168   :  { %v4665_v42 = vpop.eup %4664 }
 0x16b   :  { %877 = vmatmul.f32.gmra.mxu3 %v5292_v46 }
 0x16c   :  { %v5319_v22 = vpop.f32.mrf.mxu2  ;;  %v998_v31 = vpop.permute.xlu1 %997 }
 0x16d   :  { %7965 = vst [vmem:[#allocation20_spill] sm:$0xff] %v5319_v22  ;;  %v5380_v36 = vpop.f32.mrf.mxu0 }
 0x16e   :  { %7979 = vst [vmem:[#allocation34_spill] sm:$0xff] %v5380_v36 }
 0x174   :  { %v5321_v30 = vpop.f32.mrf.mxu2 }
 0x175   :  { %7966 = vst [vmem:[#allocation21_spill] sm:$0xff] %v5321_v30  ;;  %v5382_v52 = vpop.f32.mrf.mxu0 }
 0x176   :  { %7980 = vst [vmem:[#allocation35_spill] sm:$0xff] %v5382_v52 }
 0x17c   :  { %v5323_v41 = vpop.f32.mrf.mxu2 }
 0x17d   :  { %7967 = vst [vmem:[#allocation22_spill] sm:$0xff] %v5323_v41 }
 0x184   :  { %v5325_v49 = vpop.f32.mrf.mxu2 }
 0x185   :  { %7968 = vst [vmem:[#allocation23_spill] sm:$0xff] %v5325_v49  ;;  %v1179_v49 = vld [vmem:[%s7777_s4 + $0x48] sm:$0xff] }
 0x18c   :  { %v5328_v50 = vpop.f32.mrf.mxu2 }
 0x18d   :  { %7969 = vst [vmem:[#allocation24_spill] sm:$0xff] %v5328_v50 }
 0x194   :  { %v5332_v61 = vpop.f32.mrf.mxu2 }
 0x195   :  { %7970 = vst [vmem:[#allocation25_spill] sm:$0xff] %v5332_v61 }
 0x19c   :  { %v5334_v63 = vpop.f32.mrf.mxu2 }
 0x19d   :  { %7971 = vst [vmem:[#allocation26_spill] sm:$0xff] %v5334_v63  ;;  %v1181_v63 = vld [vmem:[%s7777_s4 + $0x58] sm:$0xff] }
 0x1c6   :  { %v944_v3 = vpop.f32.mrf.mxu2 }
 0x1c7   :  { %v5343_v13 = vadd.f32 %v4639_v56, %v944_v3 }
 0x1c9   :  { %7972 = vst [vmem:[#allocation27_spill] sm:$0xff] %v5343_v13  ;;  %v986_v16 = vsub.f32 %v5343_v13, %v444_v9 }
 0x1ca   :  { %956 = vst.msk [vmem:[%s7783_s10] sm:$0xff] %vm67_vm4, %v5343_v13  ;;  %v5719_v13 = vld [vmem:[#allocation9 + $0x200] sm:$0xff] }
 0x1cb   :  { %v1000_v17 = vmul.f32 %v993_v24, %v986_v16  ;;  %v1185_v16 = vld [vmem:[%s7777_s4 + $0x78] sm:$0xff] }
 0x1cc   :  { %1186 = vmatpush.msra.mxu3 %v1185_v16  ;;  %1681 = vmatpush.msrb.mxu2 %v1185_v16 }
 0x1cd   :  { %1039 = vperm.xlu0 %4611, %v1000_v17   ;;  %1004 = vperm.xlu2 %4609, %v1000_v17  }
 0x1ce   :  { %1187 = vmatpush.msra.mxu3 %v1184_v2  ;;  %1682 = vmatpush.msrb.mxu2 %v1184_v2 }
 0x1cf   :  { %v947_v20 = vpop.f32.mrf.mxu2 }
 0x1d0   :  { %v5358_v27 = vadd.f32 %v4639_v56, %v947_v20  ;;  %v5384_v56 = vpop.f32.mrf.mxu0  ;;  %v4520_v20 = vld [vmem:[%s7778_s5 + $0x1] ss:$4 sm:$0x7]  ;;  %1188 = vmatpush.msra.mxu3 %v1183_v59  ;;  %1683 = vmatpush.msrb.mxu2 %v1183_v59  ;;  %v5425_v59 = vpop.f32.mrf.mxu3 }
 0x1d1   :  { %7981 = vst [vmem:[#allocation36_spill] sm:$0xff] %v5384_v56  ;;  %v5408_v34 = vperm.slane %v4520_v20, 0 }
 0x1d2   :  { %7974 = vst [vmem:[#allocation29_spill] sm:$0xff] %v5358_v27  ;;  %v987_v53 = vsub.f32 %v5358_v27, %v445_v21 }
 0x1d3   :  { %957 = vst.msk [vmem:[%s7783_s10 + $0x8] sm:$0xff] %vm67_vm4, %v5358_v27 }
 0x1d4   :  { %v1001_v35 = vmul.f32 %v998_v31, %v987_v53  ;;  %7986 = vst [vmem:[#allocation41_spill] sm:$0xff] %v5408_v34 }
 0x1d5   :  { %4610 = vset.pattern.permute.xlu2 %v7788_v38  ;;  %4614 = vset.pattern.permute.xlu0 %v7786_v23 }
 0x1d6   :  { %1009 = vperm.xlu1 %4608, %v1001_v35   ;;  %1019 = vperm.xlu2 %4610, %v1000_v17   ;;  %v417_v17 = vld [vmem:[%s7778_s5] ss:$4 sm:$0x7] }
 0x1d7   :  { %v5404_v53 = vperm.slane %v417_v17, 0  ;;  %v5406_v31 = vperm.slane %v417_v17, 2 }
 0x1d8   :  { %v5386_v3 = vpop.f32.mrf.mxu0 }
 0x1d9   :  { %7982 = vst [vmem:[#allocation37_spill] sm:$0xff] %v5386_v3  ;;  %v262_v3 = vpop.f32.mrf.mxu1 }
 0x1da   :  { %7985 = vst [vmem:[#allocation40_spill] sm:$0xff] %v5404_v53 }
 0x1de   :  { %4612 = vset.pattern.permute.xlu1 %v7784_v58  ;;  %1023 = vperm.xlu2 %4610, %v1001_v35  }
 0x1df   :  { %1043 = vperm.xlu1 %4612, %v1001_v35   ;;  %v5410_v35 = vperm.slane %v4520_v20, 2 }
 0x1e0   :  { %v5388_v9 = vpop.f32.mrf.mxu0 }
 0x1e1   :  { %7983 = vst [vmem:[#allocation38_spill] sm:$0xff] %v5388_v9  ;;  %v265_v52 = vpop.f32.mrf.mxu1 }
 0x1e2   :  { %7987 = vst [vmem:[#allocation42_spill] sm:$0xff] %v5410_v35 }
 0x1e6   :  { %4613 = vset.pattern.permute.xlu2 %v7786_v23 }
 0x1e7   :  { %1487 = vperm.xlu2 %4613, %v4665_v42   ;;  %4615 = vset.pattern.permute.xlu1 %v7786_v23  ;;  %v1182_v42 = vld [vmem:[%s7777_s4 + $0x60] sm:$0xff] }
 0x1e8   :  { %v5399_v21 = vpop.f32.mrf.mxu0  ;;  %1189 = vmatpush.msra.mxu3 %v1182_v42  ;;  %1684 = vmatpush.msrb.mxu2 %v1182_v42  ;;  %v1180_v42 = vld [vmem:[%s7777_s4 + $0x50] sm:$0xff] }
 0x1e9   :  { %7984 = vst [vmem:[#allocation39_spill] sm:$0xff] %v5399_v21 }
 0x1ea   :  { %1190 = vmatpush.msra.mxu3 %v1181_v63  ;;  %1685 = vmatpush.msrb.mxu2 %v1181_v63  ;;  %v5447_v63 = vld [vmem:[%s7778_s5 + $0x2] ss:$4 sm:$0x7] }
 0x1eb   :  { %v5608_v43 = vperm.slane %v5447_v63, 0 }
 0x1ec   :  { %1191 = vmatpush.msra.mxu3 %v1180_v42  ;;  %1686 = vmatpush.msrb.mxu2 %v1180_v42  ;;  %v5461_v42 = vperm.slane %v5447_v63, 1 }
 0x1ed   :  { %8000 = vst [vmem:[#allocation55_spill] sm:$0xff] %v5608_v43 }
 0x1ee   :  { %1192 = vmatpush.msra.mxu3 %v1179_v49  ;;  %1687 = vmatpush.msrb.mxu2 %v1179_v49  ;;  %v5457_v49 = vld [vmem:[%s7780_s7] sm:$0x7]  ;;  %7991 = vst [vmem:[#allocation46_spill] sm:$0xff] %v5461_v42 }
 0x1ef   :  { %4616 = vset.pattern.permute.xlu2 %v7788_v38  ;;  %v5615_v55 = vperm.slane %v5457_v49, 0 }
 0x1f0   :  { %v5434_v50 = vpop.f32.mrf.mxu0 }
 0x1f1   :  { %7988 = vst [vmem:[#allocation43_spill] sm:$0xff] %v5434_v50  ;;  %v5469_v50 = vperm.slane %v5457_v49, 1 }
 0x1f2   :  { %8002 = vst [vmem:[#allocation57_spill] sm:$0xff] %v5615_v55 }
 0x1f3   :  { %7992 = vst [vmem:[#allocation47_spill] sm:$0xff] %v5469_v50 }
 0x227   :  { %v1005_v24 = vpop.permute.xlu2 %1004 }
 0x228   :  { %v1012_v2 = vmul.f32 %v1005_v24, %v5404_v53  ;;  %v1014_v58 = vmul.f32 %v1005_v24, %v5406_v31 }
 0x230   :  { %v1020_v16 = vpop.permute.xlu2 %1019 }
 0x231   :  { %v1026_v23 = vmul.f32 %v1020_v16, %v5408_v34  ;;  %v1028_v38 = vmul.f32 %v1020_v16, %v5410_v35 }
 0x233   :  { %v5427_v61 = vadd.f32 %v1026_v23, %v1012_v2  ;;  %v5429_v18 = vadd.f32 %v1028_v38, %v1014_v58  ;;  %v5439_v23 = vperm.slane %v4520_v20, 1  ;;  %v1178_v58 = vld [vmem:[%s7777_s4 + $0x40] sm:$0xff]  ;;  %v5449_v38 = vperm.slane %v417_v17, 1  ;;  %v1177_v2 = vld [vmem:[%s7777_s4 + $0x38] sm:$0xff]  ;;  %v1176_v17 = vld [vmem:[%s7777_s4 + $0x30] sm:$0xff] }
 0x234   :  { %1193 = vmatpush.msra.mxu3 %v1178_v58  ;;  %1688 = vmatpush.msrb.mxu2 %v1178_v58  ;;  %v5466_v58 = vpop.f32.mrf.mxu3 }
 0x235   :  { %7989 = vst [vmem:[#allocation44_spill] sm:$0xff] %v5439_v23  ;;  %v1027_v20 = vmul.f32 %v1020_v16, %v5439_v23  ;;  %v1013_v21 = vmul.f32 %v1005_v24, %v5449_v38  ;;  %v1175_v16 = vld [vmem:[%s7777_s4 + $0x28] sm:$0xff]  ;;  %v263_v24 = vadd.f32 %v262_v3, %v5023_v25 }
 0x236   :  { %7990 = vst [vmem:[#allocation45_spill] sm:$0xff] %v5449_v38  ;;  %1194 = vmatpush.msra.mxu3 %v1177_v2  ;;  %1689 = vmatpush.msrb.mxu2 %v1177_v2  ;;  %v898_v2 = vpop.f32.mrf.mxu0  ;;  %v1171_v3 = vld [vmem:[%s7777_s4 + $0x8] sm:$0xff] }
 0x237   :  { %v1033_v41 = vadd.f32 %v1027_v20, %v1013_v21  ;;  %v968_v56 = vadd.f32 %v5469_v50, %v898_v2  ;;  %v1172_v20 = vld [vmem:[%s7777_s4 + $0x10] sm:$0xff] }
 0x238   :  { %1195 = vmatpush.msra.mxu3 %v1176_v17  ;;  %1690 = vmatpush.msrb.mxu2 %v1176_v17  ;;  %v1174_v17 = vld [vmem:[%s7777_s4 + $0x20] sm:$0xff] }
 0x23a   :  { %1196 = vmatpush.msra.mxu3 %v1175_v16  ;;  %1691 = vmatpush.msrb.mxu2 %v1175_v16  ;;  %v1173_v16 = vld [vmem:[%s7777_s4 + $0x18] sm:$0xff] }
 0x23c   :  { %1197 = vmatpush.msra.mxu3 %v1174_v17  ;;  %1692 = vmatpush.msrb.mxu2 %v1174_v17  ;;  %v852_v2 = vpop.f32.mrf.mxu3  ;;  %v5498_v17 = vpop.permute.xlu2 %1023 }
 0x23e   :  { %1198 = vmatpush.msra.mxu3 %v1173_v16  ;;  %1693 = vmatpush.msrb.mxu2 %v1173_v16  ;;  %v1030_v16 = vmul.f32 %v5498_v17, %v5439_v23 }
 0x23f   :  { %v5475_v9 = vpop.permute.xlu0 %1039 }
 0x240   :  { %v1047_v30 = vmul.f32 %v5475_v9, %v5461_v42  ;;  %1199 = vmatpush.msra.mxu3 %v1172_v20  ;;  %1694 = vmatpush.msrb.mxu2 %v1172_v20  ;;  %v1046_v48 = vmul.f32 %v5475_v9, %v5608_v43 }
 0x242   :  { %v1053_v22 = vadd.f32 %v1047_v30, %v1033_v41  ;;  %1200 = vmatpush.msra.mxu3 %v1171_v3  ;;  %1695 = vmatpush.msrb.mxu2 %v1171_v3 }
 0x244   :  { %v1059_v21 = vadd.f32 %v1053_v22, %v968_v56  ;;  %v1170_v22 = vld [vmem:[%s7777_s4] sm:$0xff]  ;;  %v855_v45 = vpop.f32.mrf.mxu3 }
 0x245   :  { %1201 = vmatpush.msra.mxu3 %v1170_v22  ;;  %1696 = vmatpush.msrb.mxu2 %v1170_v22 }
 0x246   :  { %v1083_v15 = vadd.f32 %v1059_v21, %v263_v24  ;;  %v901_v21 = vpop.f32.mrf.mxu0 }
 0x247   :  { %v971_v22 = vadd.f32 %v5469_v50, %v901_v21  ;;  %v5518_v21 = vld [vmem:[#allocation9 + $0x270] sm:$0xff] }
 0x248   :  { %v1089_v30 = vadd.f32 %v1083_v15, %v852_v2  ;;  %v5493_v41 = vpop.permute.xlu1 %1009 }
 0x249   :  { %v1016_v24 = vmul.f32 %v5493_v41, %v5449_v38 }
 0x24a   :  { %v4529_v56 = vmul.f32 -1.442695, %v1089_v30  ;;  %v266_v30 = vadd.f32 %v265_v52, %v5023_v25  ;;  %v5553_v25 = vld [vmem:[#allocation9 + $0x180] sm:$0xff] }
 0x24b   :  { %v1036_v20 = vadd.f32 %v1030_v16, %v1016_v24  ;;  %v5514_v24 = vld [vmem:[#allocation9 + $0x2a0] sm:$0xff] }
 0x24c   :  { %4666 = vpow2.f32 %v4529_v56  ;;  %1318 = vmatpush.msra.mxu0 %v5514_v24 }
 0x24e   :  { %1319 = vmatpush.msra.mxu0 %v5518_v21 }
 0x251   :  { %v5504_v15 = vpop.permute.xlu1 %1043 }
 0x252   :  { %v1050_v3 = vmul.f32 %v5504_v15, %v5461_v42  ;;  %v4667_v2 = vpop.eup %4666 }
 0x253   :  { %v1105_v56 = vadd.f32 1.0, %v4667_v2 }
 0x254   :  { %v1056_v36 = vadd.f32 %v1050_v3, %v1036_v20  ;;  %v5520_v20 = vld [vmem:[#allocation9 + $0x2e8] sm:$0xff] }
 0x255   :  { %4668 = vrcp.f32 %v1105_v56  ;;  %1386 = vmatpush.msrb.mxu3 %v5520_v20  ;;  %v1132_v2 = vand.u32 2147483647, %v1105_v56  ;;  %vm1128_vm7 = vweird.f32 %v1105_v56 }
 0x256   :  { %v1062_v7 = vadd.f32 %v1056_v36, %v971_v22  ;;  %v5531_v36 = vld [vmem:[#allocation9 + $0x288] sm:$0xff]  ;;  %v5540_v22 = vld [vmem:[#allocation9 + $0x1e0] sm:$0xff] }
 0x257   :  { %vm1133_vm9 = vcmp.eq.f32.partialorder %v1132_v2, 8.507059e+37  ;;  %v5569_v2 = vld [vmem:[#allocation9 + $0x120] sm:$0xff] }
 0x258   :  { %v1086_v6 = vadd.f32 %v1062_v7, %v266_v30  ;;  %v5533_v30 = vld [vmem:[#allocation9 + $0x210] sm:$0xff] }
 0x25a   :  { %v1091_v44 = vadd.f32 %v1086_v6, %v855_v45  ;;  %v5524_v6 = vld [vmem:[#allocation9 + $0x2b8] sm:$0xff]  ;;  %v5526_v45 = vld [vmem:[#allocation9 + $0x240] sm:$0xff] }
 0x25b   :  { %v4669_v16 = vpop.eup %4668  ;;  %1387 = vmatpush.msrb.mxu3 %v5524_v6  ;;  %1320 = vmatpush.msra.mxu0 %v5526_v45 }
 0x25c   :  { %v4531_v39 = vmul.f32 -1.442695, %v1091_v44  ;;  %v1124_v52 = vmul.f32 %v4669_v16, %v1105_v56  ;;  %v1134_v44 = vand.u32 2147483648, %v1105_v56  ;;  %vm1129_vm6 = vweird.f32 %v4669_v16 }
 0x25d   :  { %1388 = vmatpush.msrb.mxu3 %v5531_v36  ;;  %vm1130_vm8 = vmor %vm1128_vm7, %vm1129_vm6  ;;  %1321 = vmatpush.msra.mxu0 %v5533_v30 }
 0x25e   :  { %4670 = vpow2.f32 %v4531_v39  ;;  %v1125_v7 = vsub.f32 1.0, %v1124_v52  ;;  %v1135_v51 = vor.u32 1.1754944e-38, %v1134_v44  ;;  %v5545_v52 = vld [vmem:[#allocation9 + $0x228] sm:$0xff] }
 0x25f   :  { %1389 = vmatpush.msrb.mxu3 %v5538_v47  ;;  %1322 = vmatpush.msra.mxu0 %v5540_v22 }
 0x260   :  { %v1126_v3 = vmul.f32 %v4669_v16, %v1125_v7 }
 0x261   :  { %1390 = vmatpush.msrb.mxu3 %v5545_v52  ;;  %1323 = vmatpush.msra.mxu0 %v5547_v54 }
 0x262   :  { %v1127_v39 = vadd.f32 %v4669_v16, %v1126_v3 }
 0x263   :  { %1324 = vmatpush.msra.mxu0 %v5553_v25  ;;  %1391 = vmatpush.msrb.mxu3 %v5558_v4 }
 0x264   :  { %v4671_v7 = vpop.eup %4670  ;;  %v1131_v28 = vsel %vm1130_vm8, %v4669_v16, %v1127_v39  ;;  %v5560_v16 = vld [vmem:[#allocation9 + $0x150] sm:$0xff] }
 0x265   :  { %v1107_v56 = vadd.f32 1.0, %v4671_v7  ;;  %v1136_v3 = vsel %vm1133_vm9, %v1135_v51, %v1131_v28  ;;  %v5562_v28 = vpop.f32.mrf.mxu1  ;;  %1325 = vmatpush.msra.mxu0 %v5560_v16  ;;  %1392 = vmatpush.msrb.mxu3 %v5566_v60  ;;  %v5576_v39 = vld [vmem:[#allocation9 + $0xf0] sm:$0xff] }
 0x266   :  { %v1168_v44 = vmul.f32 %v1136_v3, %v5282_v32  ;;  %7993 = vst [vmem:[#allocation48_spill] sm:$0xff] %v5562_v28  ;;  %v5583_v3 = vld [vmem:[#allocation9 + $0xc0] sm:$0xff] }
 0x267   :  { %4672 = vrcp.f32 %v1107_v56  ;;  %1326 = vmatpush.msra.mxu0 %v5569_v2  ;;  %1393 = vmatpush.msrb.mxu3 %v5573_v1  ;;  %v1162_v28 = vand.u32 2147483647, %v1107_v56  ;;  %vm1158_vm11 = vweird.f32 %v1107_v56 }
 0x268   :  { %1202 = vmatmul.f32.vlgmr.msra.gmra.mxu3 %v1168_v44  ;;  %v1164_v44 = vand.u32 2147483648, %v1107_v56 }
 0x269   :  { %1327 = vmatpush.msra.mxu0 %v5576_v39  ;;  %1394 = vmatpush.msrb.mxu3 %v5580_v8  ;;  %vm1163_vm13 = vcmp.eq.f32.partialorder %v1162_v28, 8.507059e+37  ;;  %v1052_v28 = vadd.f32 %v1046_v48, %v5427_v61  ;;  %v1049_v61 = vmul.f32 %v5504_v15, %v5608_v43  ;;  %v5705_v43 = vld [vmem:[#allocation9 + $0x230] sm:$0xff] }
 0x26a   :  { %v1165_v23 = vor.u32 1.1754944e-38, %v1164_v44 }
 0x26b   :  { %1328 = vmatpush.msra.mxu0 %v5583_v3 }
 0x26d   :  { %v4673_v51 = vpop.eup %4672  ;;  %v5590_v50 = vpop.f32.mrf.mxu1 }
 0x26e   :  { %v1154_v7 = vmul.f32 %v4673_v51, %v1107_v56  ;;  %vm1159_vm10 = vweird.f32 %v4673_v51  ;;  %7994 = vst [vmem:[#allocation49_spill] sm:$0xff] %v5590_v50 }
 0x26f   :  { %vm1160_vm12 = vmor %vm1158_vm11, %vm1159_vm10 }
 0x270   :  { %v1155_v26 = vsub.f32 1.0, %v1154_v7 }
 0x272   :  { %v1156_v29 = vmul.f32 %v4673_v51, %v1155_v26 }
 0x274   :  { %v1157_v42 = vadd.f32 %v4673_v51, %v1156_v29 }
 0x275   :  { %v5597_v26 = vpop.f32.mrf.mxu1 }
 0x276   :  { %v1161_v33 = vsel %vm1160_vm12, %v4673_v51, %v1157_v42  ;;  %7995 = vst [vmem:[#allocation50_spill] sm:$0xff] %v5597_v26  ;;  %v875_v42 = vpop.f32.mrf.mxu3  ;;  %v5639_v26 = vld [vmem:[#allocation9 + $0x90] sm:$0xff] }
 0x277   :  { %v1166_v7 = vsel %vm1163_vm13, %v1165_v23, %v1161_v33  ;;  %v967_v51 = vadd.f32 %v5615_v55, %v875_v42  ;;  %v198_v33 = vadd.f32 %v5336_v0, %v5145_v14  ;;  %1329 = vmatpush.msra.mxu0 %v5639_v26 }
 0x278   :  { %v1169_v37 = vmul.f32 %v1166_v7, %v5292_v46 }
 0x279   :  { %v1058_v29 = vadd.f32 %v1052_v28, %v967_v51 }
 0x27a   :  { %1205 = vmatmul.f32.gmra.mxu3 %v1169_v37 }
 0x27b   :  { %v1082_v37 = vadd.f32 %v1058_v29, %v198_v33 }
 0x27d   :  { %v5599_v50 = vpop.f32.mrf.mxu1 }
 0x27e   :  { %7996 = vst [vmem:[#allocation51_spill] sm:$0xff] %v5599_v50  ;;  %v878_v51 = vpop.f32.mrf.mxu3 }
 0x285   :  { %v5601_v40 = vpop.f32.mrf.mxu1 }
 0x286   :  { %7997 = vst [vmem:[#allocation52_spill] sm:$0xff] %v5601_v40 }
 0x28d   :  { %v5603_v56 = vpop.f32.mrf.mxu1 }
 0x28e   :  { %7998 = vst [vmem:[#allocation53_spill] sm:$0xff] %v5603_v56  ;;  %v1029_v56 = vmul.f32 %v5498_v17, %v5408_v34 }
 0x295   :  { %v5605_v44 = vpop.f32.mrf.mxu1 }
 0x296   :  { %7999 = vst [vmem:[#allocation54_spill] sm:$0xff] %v5605_v44  ;;  %v1015_v44 = vmul.f32 %v5493_v41, %v5404_v53 }
 0x298   :  { %v1035_v28 = vadd.f32 %v1029_v56, %v1015_v44  ;;  %v5646_v44 = vld [vmem:[#allocation9 + $0x60] sm:$0xff] }
 0x299   :  { %1330 = vmatpush.msra.mxu0 %v5646_v44 }
 0x29a   :  { %v1055_v0 = vadd.f32 %v1049_v61, %v1035_v28  ;;  %v5667_v28 = vld [vmem:[#allocation9 + $0x2f0] sm:$0xff] }
 0x29d   :  { %v5610_v23 = vpop.f32.mrf.mxu1 }
 0x29e   :  { %8001 = vst [vmem:[#allocation56_spill] sm:$0xff] %v5610_v23  ;;  %v1088_v23 = vadd.f32 %v1082_v37, %v5425_v59  ;;  %v201_v59 = vadd.f32 %v5341_v10, %v5145_v14  ;;  %v5653_v10 = vld [vmem:[#allocation9 + $0x30] sm:$0xff]  ;;  %v5689_v14 = vperm.slane %v5447_v63, 2 }
 0x29f   :  { %1331 = vmatpush.msra.mxu0 %v5653_v10 }
 0x2a0   :  { %v4528_v42 = vmul.f32 -1.442695, %v1088_v23  ;;  %v5648_v23 = vld [vmem:[#allocation9 + $0x108] sm:$0xff]  ;;  %8011 = vst [vmem:[#allocation66_spill] sm:$0xff] %v5689_v14  ;;  %v1048_v38 = vmul.f32 %v5475_v9, %v5689_v14 }
 0x2a2   :  { %4674 = vpow2.f32 %v4528_v42  ;;  %v1054_v9 = vadd.f32 %v1048_v38, %v5429_v18  ;;  %v5740_v38 = vld [vmem:[#allocation9 + $0x1a8] sm:$0xff] }
 0x2a3   :  { %8017 = vst [vmem:[#allocation72_spill] sm:$0xff] %v5740_v38 }
 0x2a5   :  { %v5621_v7 = vpop.f32.mrf.mxu1 }
 0x2a6   :  { %8003 = vst [vmem:[#allocation58_spill] sm:$0xff] %v5621_v7  ;;  %v970_v7 = vadd.f32 %v5615_v55, %v878_v51  ;;  %v5669_v51 = vld [vmem:[#allocation9 + $0x2f8] sm:$0xff] }
 0x2a7   :  { %8007 = vst [vmem:[#allocation62_spill] sm:$0xff] %v5669_v51  ;;  %1432 = vmatpush.msra.mxu1 %v5669_v51  ;;  %v5693_v55 = vld [vmem:[#allocation9 + $0x18] sm:$0xff]  ;;  %v5698_v51 = vld [vmem:[#allocation9 + $0x268] sm:$0xff] }
 0x2a8   :  { %v1061_v29 = vadd.f32 %v1055_v0, %v970_v7  ;;  %v4675_v33 = vpop.eup %4674  ;;  %v5655_v7 = vld [vmem:[#allocation9 + $0xd8] sm:$0xff]  ;;  %8012 = vst [vmem:[#allocation67_spill] sm:$0xff] %v5693_v55 }
 0x2a9   :  { %v5637_v50 = vadd.f32 1.0, %v4675_v33  ;;  %v5671_v0 = vld [vmem:[#allocation9 + $0x78] sm:$0xff]  ;;  %v5679_v33 = vld [vmem:[#allocation9 + $0x48] sm:$0xff]  ;;  %8013 = vst [vmem:[#allocation68_spill] sm:$0xff] %v5698_v51 }
 0x2aa   :  { %v1085_v40 = vadd.f32 %v1061_v29, %v201_v59  ;;  %v5675_v29 = vld [vmem:[#allocation9 + $0x2c0] sm:$0xff]  ;;  %v5677_v59 = vld [vmem:[#allocation9 + $0x2c8] sm:$0xff]  ;;  %8009 = vst [vmem:[#allocation64_spill] sm:$0xff] %v5679_v33 }
 0x2ab   :  { %4676 = vrcp.f32 %v5637_v50  ;;  %8008 = vst [vmem:[#allocation63_spill] sm:$0xff] %v5677_v59  ;;  %1433 = vmatpush.msra.mxu1 %v5677_v59  ;;  %v5707_v59 = vld [vmem:[#allocation9 + $0x238] sm:$0xff]  ;;  %vm1113_vm15 = vweird.f32 %v5637_v50 }
 0x2ac   :  { %v1090_v56 = vadd.f32 %v1085_v40, %v5466_v58  ;;  %v5659_v58 = vld [vmem:[#allocation9] sm:$0xff]  ;;  %v5661_v40 = vld [vmem:[#allocation9 + $0xa8] sm:$0xff]  ;;  %8014 = vst [vmem:[#allocation69_spill] sm:$0xff] %v5707_v59 }
 0x2ad   :  { %v5630_v48 = vpop.f32.mrf.mxu1  ;;  %1332 = vmatpush.msra.mxu0 %v5659_v58 }
 0x2ae   :  { %8004 = vst [vmem:[#allocation59_spill] sm:$0xff] %v5630_v48  ;;  %v5641_v48 = vld [vmem:[#allocation9 + $0x138] sm:$0xff]  ;;  %v4530_v61 = vmul.f32 -1.442695, %v1090_v56  ;;  %v5682_v56 = vld [vmem:[#allocation9 + $0x290] sm:$0xff] }
 0x2af   :  { %1395 = vmatpush.msrb.mxu3 %v5641_v48  ;;  %1409 = vmatpush.msrb.mxu0 %v5667_v28 }
 0x2b0   :  { %4678 = vpow2.f32 %v4530_v61  ;;  %v5696_v61 = vld [vmem:[#allocation9 + $0x260] sm:$0xff] }
 0x2b1   :  { %1396 = vmatpush.msrb.mxu3 %v5648_v23  ;;  %1410 = vmatpush.msrb.mxu0 %v5675_v29 }
 0x2b3   :  { %1397 = vmatpush.msrb.mxu3 %v5655_v7  ;;  %1411 = vmatpush.msrb.mxu0 %v5682_v56 }
 0x2b5   :  { %v5635_v37 = vpop.f32.mrf.mxu1  ;;  %1398 = vmatpush.msrb.mxu3 %v5661_v40  ;;  %1412 = vmatpush.msrb.mxu0 %v5696_v61 }
 0x2b6   :  { %8005 = vst [vmem:[#allocation60_spill] sm:$0xff] %v5635_v37  ;;  %v5686_v37 = vpop.eup %4676 }
 0x2b7   :  { %1399 = vmatpush.msrb.mxu3 %v5671_v0  ;;  %v1109_v63 = vmul.f32 %v5686_v37, %v5637_v50  ;;  %v4679_v53 = vpop.eup %4678  ;;  %1413 = vmatpush.msrb.mxu0 %v5705_v43  ;;  %vm1114_vm14 = vweird.f32 %v5686_v37 }
 0x2b8   :  { %vm5780_vm0 = vmor %vm1113_vm15, %vm1114_vm14 }
 0x2b9   :  { %1400 = vmatpush.msrb.mxu3 %v5679_v33  ;;  %v1110_v27 = vsub.f32 1.0, %v1109_v63  ;;  %1414 = vmatpush.msrb.mxu0 %v5719_v13 }
 0x2bb   :  { %1401 = vmatpush.msrb.mxu3 %v5693_v55  ;;  %v1111_v18 = vmul.f32 %v5686_v37, %v1110_v27  ;;  %v328_v27 = vadd.f32 %v5273_v12, %v5212_v5  ;;  %v5767_v12 = vld [vmem:[#allocation9 + $0x118] sm:$0xff]  ;;  %v1017_v55 = vmul.f32 %v5493_v41, %v5406_v31  ;;  %v1051_v41 = vmul.f32 %v5504_v15, %v5689_v14  ;;  %v5818_v15 = vld [vmem:[#allocation9 + $0x20] sm:$0xff] }
 0x2bd   :  { %v5663_v42 = vpop.f32.mrf.mxu1  ;;  %1812 = vmatpush.msra.mxu3 %v5510_v62  ;;  %v5729_v62 = vld [vmem:[#allocation9 + $0x1d0] sm:$0xff] }
 0x2be   :  { %8006 = vst [vmem:[#allocation61_spill] sm:$0xff] %v5663_v42  ;;  %v5684_v42 = vld [vmem:[#allocation9 + $0x298] sm:$0xff]  ;;  %1415 = vmatpush.msrb.mxu0 %v5729_v62 }
 0x2bf   :  { %8010 = vst [vmem:[#allocation65_spill] sm:$0xff] %v5684_v42  ;;  %1434 = vmatpush.msra.mxu1 %v5684_v42  ;;  %v5715_v42 = vperm.slane %v5457_v49, 2  ;;  %1813 = vmatpush.msra.mxu3 %v5514_v24  ;;  %v5731_v49 = vld [vmem:[#allocation9 + $0x1d8] sm:$0xff] }
 0x2c0   :  { %8016 = vst [vmem:[#allocation71_spill] sm:$0xff] %v5731_v49 }
 0x2c1   :  { %1435 = vmatpush.msra.mxu1 %v5698_v51  ;;  %v5725_v51 = vadd.f32 1.0, %v4679_v53  ;;  %1814 = vmatpush.msra.mxu3 %v5518_v21  ;;  %v5738_v53 = vld [vmem:[#allocation9 + $0x1a0] sm:$0xff]  ;;  %v5748_v21 = vld [vmem:[#allocation9 + $0x178] sm:$0xff] }
 0x2c2   :  { %1416 = vmatpush.msrb.mxu0 %v5738_v53  ;;  %8018 = vst [vmem:[#allocation73_spill] sm:$0xff] %v5748_v21 }
 0x2c3   :  { %1436 = vmatpush.msra.mxu1 %v5707_v59  ;;  %1815 = vmatpush.msra.mxu3 %v5526_v45  ;;  %4680 = vrcp.f32 %v5725_v51  ;;  %v1112_v45 = vadd.f32 %v5686_v37, %v1111_v18  ;;  %v1117_v18 = vand.u32 2147483647, %v5637_v50  ;;  %v5773_v59 = vld [vmem:[#allocation9 + $0xe8] sm:$0xff]  ;;  %vm1143_vm3 = vweird.f32 %v5725_v51 }
 0x2c5   :  { %v921_v34 = vpop.f32.mrf.mxu1  ;;  %1437 = vmatpush.msra.mxu1 %v5721_v19  ;;  %1816 = vmatpush.msra.mxu3 %v5533_v30  ;;  %v5771_v19 = vld [vmem:[#allocation9 + $0xe0] sm:$0xff]  ;;  %vm1118_vm1 = vcmp.eq.f32.partialorder %v1117_v18, 8.507059e+37  ;;  %v5813_v18 = vld [vmem:[#allocation9 + $0x58] sm:$0xff] }
 0x2c6   :  { %v969_v63 = vadd.f32 %v5715_v42, %v921_v34  ;;  %v5746_v34 = vld [vmem:[#allocation9 + $0x170] sm:$0xff] }
 0x2c7   :  { %1438 = vmatpush.msra.mxu1 %v5731_v49  ;;  %1417 = vmatpush.msrb.mxu0 %v5746_v34  ;;  %v1119_v49 = vand.u32 2147483648, %v5637_v50  ;;  %v1116_v50 = vsel %vm5780_vm0, %v5686_v37, %v1112_v45  ;;  %v5800_v37 = vld [vmem:[#allocation9 + $0x80] sm:$0xff]  ;;  %v5802_v45 = vld [vmem:[#allocation9 + $0x88] sm:$0xff] }
 0x2c8   :  { %v1060_v24 = vadd.f32 %v1054_v9, %v969_v63  ;;  %v5757_v9 = vld [vmem:[#allocation9 + $0x140] sm:$0xff]  ;;  %v5759_v63 = vld [vmem:[#allocation9 + $0x148] sm:$0xff]  ;;  %1817 = vmatpush.msra.mxu3 %v5540_v22 }
 0x2c9   :  { %1439 = vmatpush.msra.mxu1 %v5740_v38  ;;  %8019 = vst [vmem:[#allocation74_spill] sm:$0xff] %v5759_v63  ;;  %v5761_v38 = vld [vmem:[#allocation9 + $0x110] sm:$0xff]  ;;  %1418 = vmatpush.msrb.mxu0 %v5757_v9  ;;  %v5776_v22 = vpop.eup %4680  ;;  %v1120_v33 = vor.u32 1.1754944e-38, %v1119_v49 }
 0x2ca   :  { %v1084_v30 = vadd.f32 %v1060_v24, %v328_v27  ;;  %1818 = vmatpush.msra.mxu3 %v5547_v54  ;;  %v5791_v54 = vld [vmem:[#allocation9 + $0xb8] sm:$0xff]  ;;  %vm1144_vm2 = vweird.f32 %v5776_v22 }
 0x2cb   :  { %1440 = vmatpush.msra.mxu1 %v5748_v21  ;;  %1419 = vmatpush.msrb.mxu0 %v5761_v38  ;;  %8022 = vst [vmem:[#allocation75_spill] sm:$0xff] %v5791_v54  ;;  %v1121_v49 = vsel %vm1118_vm1, %v1120_v33, %v1116_v50  ;;  %v5820_v33 = vld [vmem:[#allocation9 + $0x28] sm:$0xff]  ;;  %vm1145_vm5 = vmor %vm1143_vm3, %vm1144_vm2 }
 0x2cc   :  { %1819 = vmatpush.msra.mxu3 %v5553_v25  ;;  %v1031_v25 = vmul.f32 %v5498_v17, %v5410_v35 }
 0x2cd   :  { %1441 = vmatpush.msra.mxu1 %v5759_v63  ;;  %v5789_v63 = vld [vmem:[#allocation9 + $0xb0] sm:$0xff]  ;;  %1420 = vmatpush.msrb.mxu0 %v5771_v19  ;;  %v924_v17 = vpop.f32.mrf.mxu1 }
 0x2ce   :  { %1820 = vmatpush.msra.mxu3 %v5560_v16  ;;  %v1037_v24 = vadd.f32 %v1031_v25, %v1017_v55  ;;  %v1215_v16 = vsub.f32 1.0, %v1121_v49  ;;  %v972_v25 = vadd.f32 %v5715_v42, %v924_v17  ;;  %v1147_v17 = vand.u32 2147483647, %v5725_v51 }
 0x2cf   :  { %1442 = vmatpush.msra.mxu1 %v5767_v12  ;;  %1421 = vmatpush.msrb.mxu0 %v5789_v63 }
 0x2d0   :  { %1821 = vmatpush.msra.mxu3 %v5569_v2  ;;  %v1213_v2 = vmul.f32 %v1121_v49, %v5282_v32  ;;  %v331_v32 = vadd.f32 %v5289_v11, %v5212_v5  ;;  %v1149_v11 = vand.u32 2147483648, %v5725_v51  ;;  %v4828_v49 = vld [vmem:[%s7774_s1 + $0x18] sm:$0xff]  ;;  %vm1148_vm7 = vcmp.eq.f32.partialorder %v1147_v17, 8.507059e+37 }
 0x2d1   :  { %1443 = vmatpush.msra.mxu1 %v5773_v59  ;;  %1422 = vmatpush.msrb.mxu0 %v5800_v37 }
 0x2d2   :  { %1822 = vmatpush.msra.mxu3 %v5576_v39 }
 0x2d3   :  { %1444 = vmatpush.msra.mxu1 %v5791_v54  ;;  %v1057_v54 = vadd.f32 %v1051_v41, %v1037_v24 }
 0x2d4   :  { %1823 = vmatpush.msra.mxu3 %v5583_v3 }
 0x2d5   :  { %1445 = vmatpush.msra.mxu1 %v5802_v45  ;;  %v1063_v41 = vadd.f32 %v1057_v54, %v972_v25 }
 0x2d6   :  { %1824 = vmatpush.msra.mxu3 %v5639_v26  ;;  %v5845_v26 = vld [vmem:[%s7774_s1 + $0x28] sm:$0xff] }
 0x2d7   :  { %1446 = vmatpush.msra.mxu1 %v5813_v18  ;;  %v1087_v54 = vadd.f32 %v1063_v41, %v331_v32  ;;  %v1474_v24 = vsub.f32 %v5845_v26, %v4828_v49  ;;  %v8032_v41 = vld [vmem:[#allocation40_spill] sm:$0xff]  ;;  %v8033_v49 = vld [vmem:[#allocation45_spill] sm:$0xff] }
 0x2d8   :  { %1825 = vmatpush.msra.mxu3 %v5646_v44 }
 0x2d9   :  { %1447 = vmatpush.msra.mxu1 %v5820_v33 }
 0x2da   :  { %1826 = vmatpush.msra.mxu3 %v5653_v10 }
 0x2dc   :  { %1827 = vmatpush.msra.mxu3 %v5659_v58 }
 0x2eb   :  { %v1203_v21 = vpop.f32.mrf.mxu3 }
 0x2ec   :  { %v1209_v27 = vadd.f32 %v1203_v21, %v1084_v30  ;;  %v1139_v21 = vmul.f32 %v5776_v22, %v5725_v51  ;;  %v5811_v30 = vld [vmem:[#allocation9 + $0x50] sm:$0xff] }
 0x2ed   :  { %1423 = vmatpush.msrb.mxu0 %v5811_v30 }
 0x2ee   :  { %4682 = vtanh.f32 %v1209_v27  ;;  %v1140_v27 = vsub.f32 1.0, %v1139_v21 }
 0x2ef   :  { %1424 = vmatpush.msrb.mxu0 %v5818_v15 }
 0x2f0   :  { %v1141_v39 = vmul.f32 %v5776_v22, %v1140_v27 }
 0x2f2   :  { %v1142_v3 = vadd.f32 %v5776_v22, %v1141_v39 }
 0x2f4   :  { %v4683_v50 = vpop.eup %4682  ;;  %v1146_v27 = vsel %vm1145_vm5, %v5776_v22, %v1142_v3  ;;  %v8029_v22 = vmov 0  }
 0x2f5   :  { %v1217_v55 = vmul.f32 %v4683_v50, %v1215_v16  ;;  %v1150_v50 = vor.u32 1.1754944e-38, %v1149_v11 }
 0x2f7   :  { %v5830_v21 = vadd.f32 %v1217_v55, %v1213_v2  ;;  %v8031_v55 = vld [vmem:[#allocation41_spill] sm:$0xff] }
 0x2f9   :  { %1333 = vmatmul.f32.vlgmr.msra.gmra.mxu0 %v5830_v21  ;;  %1356 = vmatmul.f32.vlgmr.msrb.gmra.mxu1 %v5830_v21 }
 0x2fa   :  { %1379 = vmatmul.f32.vlgmr.msra.gmra.mxu2 %v5830_v21  ;;  %1402 = vmatmul.f32.vlgmr.msrb.gmra.mxu3 %v5830_v21 }
 0x2fb   :  { %1835 = vmatpush.msra.mxu0 %v5512_v57  ;;  %1881 = vmatpush.msra.mxu2 %v5520_v20  ;;  %v1476_v20 = vand.u32 2147483647, %v1474_v24 }
 0x2fc   :  { %1904 = vmatpush.msrb.mxu3 %v5667_v28 }
 0x2fd   :  { %v1206_v16 = vpop.f32.mrf.mxu3  ;;  %1882 = vmatpush.msra.mxu2 %v5524_v6  ;;  %vm1478_vm6 = vcmp.lt.f32.partialorder %v1476_v20, 1e-12  ;;  %v1151_v6 = vsel %vm1148_vm7, %v1150_v50, %v1146_v27  ;;  %v8035_v27 = vld [vmem:[#allocation55_spill] sm:$0xff] }
 0x2fe   :  { %v1210_v57 = vadd.f32 %v1206_v16, %v1087_v54  ;;  %v1480_v44 = vsel %vm1478_vm6, 1.0, %v1474_v24  ;;  %1905 = vmatpush.msrb.mxu3 %v5675_v29  ;;  %v1216_v10 = vsub.f32 1.0, %v1151_v6  ;;  %v1214_v58 = vmul.f32 %v1151_v6, %v5292_v46  ;;  %v8034_v16 = vld [vmem:[#allocation44_spill] sm:$0xff] }
 0x2ff   :  { %1883 = vmatpush.msra.mxu2 %v5531_v36  ;;  %v8023_v46 = vmov 1  }
 0x300   :  { %4684 = vtanh.f32 %v1210_v57  ;;  %1906 = vmatpush.msrb.mxu3 %v5682_v56 }
 0x301   :  { %1884 = vmatpush.msra.mxu2 %v5538_v47  ;;  %4686 = vrcp.f32 %v1480_v44 }
 0x302   :  { %1907 = vmatpush.msrb.mxu3 %v5696_v61 }
 0x303   :  { %1885 = vmatpush.msra.mxu2 %v5545_v52  ;;  %v8025_v52 = vld [vmem:[#allocation67_spill] sm:$0xff] }
 0x304   :  { %1908 = vmatpush.msrb.mxu3 %v5705_v43 }
 0x305   :  { %1886 = vmatpush.msra.mxu2 %v5558_v4 }
 0x306   :  { %v4685_v36 = vpop.eup %4684  ;;  %1909 = vmatpush.msrb.mxu3 %v5719_v13  ;;  %v8024_v13 = vld [vmem:[#allocation64_spill] sm:$0xff] }
 0x307   :  { %v1218_v51 = vmul.f32 %v4685_v36, %v1216_v10  ;;  %1887 = vmatpush.msra.mxu2 %v5566_v60  ;;  %v4687_v47 = vpop.eup %4686  ;;  %v8036_v10 = vld [vmem:[#allocation46_spill] sm:$0xff] }
 0x308   :  { %1492 = vperm.xlu0 %4614, %v4687_v47   ;;  %1910 = vmatpush.msrb.mxu3 %v5729_v62  ;;  %v8037_v47 = vld [vmem:[#allocation47_spill] sm:$0xff] }
 0x309   :  { %v5871_v28 = vadd.f32 %v1218_v51, %v1214_v58  ;;  %1888 = vmatpush.msra.mxu2 %v5573_v1 }
 0x30a   :  { %1911 = vmatpush.msrb.mxu3 %v5738_v53 }
 0x30b   :  { %1336 = vmatmul.f32.gmra.mxu0 %v5871_v28  ;;  %1359 = vmatmul.f32.gmra.mxu1 %v5871_v28 }
 0x30c   :  { %1382 = vmatmul.f32.gmra.mxu2 %v5871_v28  ;;  %1405 = vmatmul.f32.gmra.mxu3 %v5871_v28 }
 0x30d   :  { %1889 = vmatpush.msra.mxu2 %v5580_v8  ;;  %1912 = vmatpush.msrb.mxu3 %v5746_v34  ;;  %v5915_v8 = vld [vmem:[%s7781_s8] ss:$0 sm:$0xff] }
 0x30f   :  { %1890 = vmatpush.msra.mxu2 %v5641_v48  ;;  %1913 = vmatpush.msrb.mxu3 %v5757_v9  ;;  %v8026_v48 = vld [vmem:[#allocation28_spill] sm:$0xff] }
 0x310   :  { %4619 = vset.pattern.permute.xlu0 %v8023_v46 }
 0x311   :  { %1891 = vmatpush.msra.mxu2 %v5648_v23  ;;  %1914 = vmatpush.msrb.mxu3 %v5761_v38  ;;  %v8028_v38 = vld [vmem:[#allocation29_spill] sm:$0xff] }
 0x313   :  { %1425 = vmatmul.f32.vlgmr.msrb.gmra.mxu0 %v5830_v21  ;;  %1448 = vmatmul.f32.vlgmr.msra.gmra.mxu1 %v5830_v21 }
 0x314   :  { %1892 = vmatpush.msra.mxu2 %v5655_v7  ;;  %1915 = vmatpush.msrb.mxu3 %v5771_v19  ;;  %v5910_v19 = vld [vmem:[%s7774_s1 + $0x30] sm:$0xff]  ;;  %v1488_v7 = vpop.permute.xlu2 %1487 }
 0x315   :  { %v1968_v23 = vsub.f32 %v5910_v19, %v8026_v48 }
 0x316   :  { %1893 = vmatpush.msra.mxu2 %v5661_v40  ;;  %1916 = vmatpush.msrb.mxu3 %v5789_v63  ;;  %v8027_v40 = vld [vmem:[#allocation27_spill] sm:$0xff] }
 0x317   :  { %v1970_v56 = vand.u32 2147483647, %v1968_v23 }
 0x318   :  { %1894 = vmatpush.msra.mxu2 %v5671_v0  ;;  %1917 = vmatpush.msrb.mxu3 %v5800_v37  ;;  %v8030_v37 = vmov 2  }
 0x319   :  { %vm1972_vm8 = vcmp.lt.f32.partialorder %v1970_v56, 1e-12 }
 0x31a   :  { %1895 = vmatpush.msra.mxu2 %v8024_v13  ;;  %1918 = vmatpush.msrb.mxu3 %v5811_v30  ;;  %v1974_v9 = vsel %vm1972_vm8, 1.0, %v1968_v23 }
 0x31b   :  { %1428 = vmatmul.f32.gmra.mxu0 %v5871_v28  ;;  %1451 = vmatmul.f32.gmra.mxu1 %v5871_v28  ;;  %4688 = vrcp.f32 %v1974_v9 }
 0x31c   :  { %1896 = vmatpush.msra.mxu2 %v8025_v52  ;;  %1919 = vmatpush.msrb.mxu3 %v5818_v15 }
 0x321   :  { %v4689_v30 = vpop.eup %4688 }
 0x376   :  { %v5903_v4 = vpop.f32.mrf.mxu1 }
 0x37a   :  { %v1493_v53 = vpop.permute.xlu0 %1492 }
 0x37d   :  { %v1403_v17 = vpop.f32.mrf.mxu3 }
 0x37e   :  { %v1463_v13 = vadd.f32 %v1403_v17, %v8037_v47  ;;  %v5975_v17 = vld [vmem:[#allocation9 + $0x2a8] sm:$0xff] }
 0x37f   :  { %8041 = vst [vmem:[#allocation64_spill] sm:$0xff] %v5975_v17  ;;  %1836 = vmatpush.msra.mxu0 %v5975_v17 }
 0x388   :  { %v5905_v60 = vpop.f32.mrf.mxu1 }
 0x390   :  { %v1449_v1 = vpop.f32.mrf.mxu1 }
 0x391   :  { %v5918_v43 = vadd.f32 %v5915_v8, %v1449_v1 }
 0x393   :  { %4532 = vst.msk [vmem:[%s7783_s10 + $0x10] sm:$0xff] %vm67_vm4, %v5918_v43  ;;  %v1481_v0 = vsub.f32 %v5918_v43, %v8027_v40  ;;  %v8039_v40 = vld [vmem:[#allocation48_spill] sm:$0xff] }
 0x395   :  { %v1495_v29 = vmul.f32 %v1488_v7, %v1481_v0  ;;  %v8038_v7 = vld [vmem:[#allocation13_spill] sm:$0xff] }
 0x396   :  { %v269_v0 = vadd.f32 %v8039_v40, %v8038_v7 }
 0x397   :  { %1514 = vperm.xlu2 %4616, %v1495_v29   ;;  %1499 = vperm.xlu1 %4615, %v1495_v29  }
 0x398   :  { %v1452_v61 = vpop.f32.mrf.mxu1 }
 0x399   :  { %v5930_v62 = vadd.f32 %v5915_v8, %v1452_v61  ;;  %v1406_v61 = vpop.f32.mrf.mxu3 }
 0x39b   :  { %4533 = vst.msk [vmem:[%s7783_s10 + $0x18] sm:$0xff] %vm67_vm4, %v5930_v62  ;;  %v1482_v34 = vsub.f32 %v5930_v62, %v8028_v38 }
 0x39d   :  { %v1496_v63 = vmul.f32 %v1493_v53, %v1482_v34 }
 0x39f   :  { %4618 = vset.pattern.permute.xlu2 %v8029_v22  ;;  %4617 = vset.pattern.permute.xlu1 %v8030_v37 }
 0x3a0   :  { %1518 = vperm.xlu0 %4619, %v1496_v63   ;;  %1534 = vperm.xlu1 %4617, %v1495_v29  }
 0x3a1   :  { %1504 = vperm.xlu2 %4618, %v1496_v63  }
 0x3a8   :  { %1538 = vperm.xlu1 %4617, %v1496_v63  }
 0x3a9   :  { %1982 = vperm.xlu2 %4618, %v4689_v30   ;;  %v1466_v30 = vadd.f32 %v1406_v61, %v8037_v47  ;;  %v6008_v61 = vld [vmem:[#allocation9 + $0x1f0] sm:$0xff] }
 0x3b0   :  { %4620 = vset.pattern.permute.xlu1 %v8029_v22 }
 0x3f1   :  { %v1515_v15 = vpop.permute.xlu2 %1514 }
 0x3f2   :  { %v1521_v25 = vmul.f32 %v1515_v15, %v8031_v55  ;;  %v1523_v39 = vmul.f32 %v1515_v15, %v5410_v35  ;;  %v1522_v57 = vmul.f32 %v1515_v15, %v8034_v16 }
 0x3fb   :  { %v5956_v52 = vpop.permute.xlu2 %1504 }
 0x3fc   :  { %v1511_v56 = vmul.f32 %v5956_v52, %v8033_v49 }
 0x409   :  { %v1500_v2 = vpop.permute.xlu1 %1499 }
 0x40a   :  { %v1507_v32 = vmul.f32 %v1500_v2, %v8032_v41  ;;  %v1509_v3 = vmul.f32 %v1500_v2, %v5406_v31  ;;  %v1508_v24 = vmul.f32 %v1500_v2, %v8033_v49 }
 0x40c   :  { %v1527_v54 = vadd.f32 %v1521_v25, %v1507_v32  ;;  %v1529_v11 = vadd.f32 %v1523_v39, %v1509_v3  ;;  %v1528_v44 = vadd.f32 %v1522_v57, %v1508_v24  ;;  %v8040_v25 = vld [vmem:[#allocation49_spill] sm:$0xff]  ;;  %v5977_v57 = vld [vmem:[#allocation9 + $0x278] sm:$0xff] }
 0x40d   :  { %v272_v39 = vadd.f32 %v8040_v25, %v8038_v7  ;;  %8042 = vst [vmem:[#allocation67_spill] sm:$0xff] %v5977_v57  ;;  %1837 = vmatpush.msra.mxu0 %v5977_v57  ;;  %v6018_v25 = vld [vmem:[#allocation9 + $0x128] sm:$0xff] }
 0x40e   :  { %8049 = vst [vmem:[#allocation77_spill] sm:$0xff] %v6018_v25 }
 0x412   :  { %v1535_v20 = vpop.permute.xlu1 %1534  ;;  %v5949_v6 = vpop.permute.xlu0 %1518 }
 0x413   :  { %v1541_v50 = vmul.f32 %v1535_v20, %v8035_v27  ;;  %v1542_v36 = vmul.f32 %v1535_v20, %v8036_v10  ;;  %v1543_v58 = vmul.f32 %v1535_v20, %v5689_v14  ;;  %v1525_v23 = vmul.f32 %v5949_v6, %v8034_v16 }
 0x415   :  { %v5953_v51 = vadd.f32 %v1541_v50, %v1527_v54  ;;  %v1548_v1 = vadd.f32 %v1542_v36, %v1528_v44  ;;  %v5958_v48 = vadd.f32 %v1543_v58, %v1529_v11  ;;  %v1531_v34 = vadd.f32 %v1525_v23, %v1511_v56  ;;  %v5982_v50 = vld [vmem:[#allocation9 + $0x2e0] sm:$0xff]  ;;  %v5986_v44 = vld [vmem:[#allocation9 + $0x2b0] sm:$0xff]  ;;  %v5994_v58 = vld [vmem:[#allocation9 + $0x1e8] sm:$0xff] }
 0x416   :  { %1858 = vmatpush.msrb.mxu1 %v5982_v50  ;;  %v5990_v36 = vld [vmem:[#allocation9 + $0x280] sm:$0xff]  ;;  %8045 = vst [vmem:[#allocation29_spill] sm:$0xff] %v5994_v58  ;;  %v6006_v56 = vld [vmem:[#allocation9 + $0x188] sm:$0xff] }
 0x417   :  { %v1554_v29 = vadd.f32 %v1548_v1, %v1463_v13  ;;  %v5996_v13 = vld [vmem:[#allocation9 + $0x250] sm:$0xff]  ;;  %v6000_v1 = vld [vmem:[#allocation9 + $0x1b8] sm:$0xff]  ;;  %v6002_v23 = vld [vmem:[#allocation9 + $0x220] sm:$0xff]  ;;  %8047 = vst [vmem:[#allocation49_spill] sm:$0xff] %v6006_v56 }
 0x418   :  { %1859 = vmatpush.msrb.mxu1 %v5986_v44  ;;  %8046 = vst [vmem:[#allocation48_spill] sm:$0xff] %v6000_v1 }
 0x419   :  { %v1578_v53 = vadd.f32 %v1554_v29, %v269_v0 }
 0x41a   :  { %v5966_v38 = vpop.permute.xlu1 %1538  ;;  %1860 = vmatpush.msrb.mxu1 %v5990_v36 }
 0x41b   :  { %v1545_v9 = vmul.f32 %v5966_v38, %v8036_v10  ;;  %v1584_v63 = vadd.f32 %v1578_v53, %v5903_v4  ;;  %v5980_v4 = vld [vmem:[#allocation9 + $0x248] sm:$0xff] }
 0x41c   :  { %8043 = vst [vmem:[#allocation28_spill] sm:$0xff] %v5980_v4  ;;  %1838 = vmatpush.msra.mxu0 %v5980_v4  ;;  %1861 = vmatpush.msrb.mxu1 %v5996_v13 }
 0x41d   :  { %v1551_v15 = vadd.f32 %v1545_v9, %v1531_v34  ;;  %v4537_v2 = vmul.f32 -1.442695, %v1584_v63  ;;  %v6012_v9 = vld [vmem:[#allocation9 + $0x158] sm:$0xff]  ;;  %v6014_v63 = vld [vmem:[#allocation9 + $0x1c0] sm:$0xff] }
 0x41e   :  { %1862 = vmatpush.msrb.mxu1 %v6002_v23  ;;  %8048 = vst [vmem:[#allocation76_spill] sm:$0xff] %v6012_v9 }
 0x41f   :  { %v1557_v32 = vadd.f32 %v1551_v15, %v1466_v30  ;;  %4690 = vpow2.f32 %v4537_v2 }
 0x420   :  { %1863 = vmatpush.msrb.mxu1 %v6008_v61 }
 0x421   :  { %v1581_v3 = vadd.f32 %v1557_v32, %v272_v39  ;;  %v6020_v39 = vld [vmem:[#allocation9 + $0x190] sm:$0xff] }
 0x422   :  { %1864 = vmatpush.msrb.mxu1 %v6014_v63 }
 0x423   :  { %v1586_v54 = vadd.f32 %v1581_v3, %v5905_v60  ;;  %v5988_v60 = vld [vmem:[#allocation9 + $0x218] sm:$0xff] }
 0x424   :  { %8044 = vst [vmem:[#allocation27_spill] sm:$0xff] %v5988_v60  ;;  %1839 = vmatpush.msra.mxu0 %v5988_v60  ;;  %v6024_v3 = vld [vmem:[#allocation9 + $0xf8] sm:$0xff]  ;;  %1865 = vmatpush.msrb.mxu1 %v6020_v39 }
 0x425   :  { %v4691_v11 = vpop.eup %4690  ;;  %v4539_v24 = vmul.f32 -1.442695, %v1586_v54  ;;  %8050 = vst [vmem:[#allocation78_spill] sm:$0xff] %v6024_v3  ;;  %v6026_v54 = vld [vmem:[#allocation9 + $0x160] sm:$0xff] }
 0x426   :  { %v1600_v20 = vadd.f32 1.0, %v4691_v11  ;;  %1840 = vmatpush.msra.mxu0 %v5994_v58  ;;  %1866 = vmatpush.msrb.mxu1 %v6026_v54  ;;  %v6078_v58 = vld [vmem:[#allocation9 + $0x130] sm:$0xff] }
 0x428   :  { %4692 = vrcp.f32 %v1600_v20  ;;  %1841 = vmatpush.msra.mxu0 %v6000_v1  ;;  %v1629_v30 = vand.u32 2147483648, %v1600_v20  ;;  %v1627_v2 = vand.u32 2147483647, %v1600_v20  ;;  %vm1623_vm10 = vweird.f32 %v1600_v20  ;;  %1867 = vmatpush.msrb.mxu1 %v6078_v58 }
 0x429   :  { %4694 = vpow2.f32 %v4539_v24 }
 0x42a   :  { %1842 = vmatpush.msra.mxu0 %v6006_v56  ;;  %v1630_v11 = vor.u32 1.1754944e-38, %v1629_v30  ;;  %vm1628_vm12 = vcmp.eq.f32.partialorder %v1627_v2, 8.507059e+37 }
 0x42c   :  { %1843 = vmatpush.msra.mxu0 %v6012_v9  ;;  %v6035_v9 = vld [vmem:[#allocation9 + $0x98] sm:$0xff] }
 0x42d   :  { %8052 = vst [vmem:[#allocation80_spill] sm:$0xff] %v6035_v9 }
 0x42e   :  { %v4693_v40 = vpop.eup %4692  ;;  %1844 = vmatpush.msra.mxu0 %v6018_v25  ;;  %v6038_v25 = vld [vmem:[#allocation9 + $0x68] sm:$0xff] }
 0x42f   :  { %v4695_v0 = vpop.eup %4694  ;;  %v1619_v29 = vmul.f32 %v4693_v40, %v1600_v20  ;;  %vm1624_vm9 = vweird.f32 %v4693_v40  ;;  %8053 = vst [vmem:[#allocation81_spill] sm:$0xff] %v6038_v25 }
 0x430   :  { %v1602_v53 = vadd.f32 1.0, %v4695_v0  ;;  %vm1625_vm11 = vmor %vm1623_vm10, %vm1624_vm9  ;;  %v6030_v0 = vld [vmem:[#allocation9 + $0xc8] sm:$0xff]  ;;  %1845 = vmatpush.msra.mxu0 %v6024_v3  ;;  %v8057_v3 = vld [vmem:[#allocation63_spill] sm:$0xff] }
 0x431   :  { %v1620_v34 = vsub.f32 1.0, %v1619_v29  ;;  %8051 = vst [vmem:[#allocation79_spill] sm:$0xff] %v6030_v0 }
 0x432   :  { %4696 = vrcp.f32 %v1602_v53  ;;  %1846 = vmatpush.msra.mxu0 %v6030_v0  ;;  %vm1653_vm14 = vweird.f32 %v1602_v53 }
 0x433   :  { %v1621_v15 = vmul.f32 %v4693_v40, %v1620_v34 }
 0x434   :  { %1847 = vmatpush.msra.mxu0 %v6035_v9  ;;  %v8056_v9 = vld [vmem:[#allocation62_spill] sm:$0xff] }
 0x435   :  { %v1622_v32 = vadd.f32 %v4693_v40, %v1621_v15 }
 0x436   :  { %1848 = vmatpush.msra.mxu0 %v6038_v25  ;;  %v8060_v25 = vld [vmem:[#allocation69_spill] sm:$0xff] }
 0x437   :  { %v1626_v24 = vsel %vm1625_vm11, %v4693_v40, %v1622_v32  ;;  %v1659_v40 = vand.u32 2147483648, %v1602_v53  ;;  %v1657_v32 = vand.u32 2147483647, %v1602_v53 }
 0x438   :  { %v4697_v29 = vpop.eup %4696  ;;  %v1631_v34 = vsel %vm1628_vm12, %v1630_v11, %v1626_v24  ;;  %v6041_v11 = vld [vmem:[#allocation9 + $0x38] sm:$0xff] }
 0x439   :  { %v1663_v20 = vmul.f32 %v1631_v34, %v5830_v21  ;;  %v1649_v15 = vmul.f32 %v4697_v29, %v1602_v53  ;;  %vm1654_vm13 = vweird.f32 %v4697_v29  ;;  %8054 = vst [vmem:[#allocation82_spill] sm:$0xff] %v6041_v11  ;;  %v6044_v34 = vld [vmem:[#allocation9 + $0x8] sm:$0xff]  ;;  %v1660_v0 = vor.u32 1.1754944e-38, %v1659_v40  ;;  %1849 = vmatpush.msra.mxu0 %v6041_v11  ;;  %v8059_v53 = vld [vmem:[#allocation68_spill] sm:$0xff]  ;;  %v8061_v40 = vld [vmem:[#allocation70_spill] sm:$0xff] }
 0x43a   :  { %8055 = vst [vmem:[#allocation83_spill] sm:$0xff] %v6044_v34  ;;  %vm1655_vm15 = vmor %vm1653_vm14, %vm1654_vm13  ;;  %vm1658_vm0 = vcmp.eq.f32.partialorder %v1657_v32, 8.507059e+37  ;;  %v8064_v32 = vld [vmem:[#allocation73_spill] sm:$0xff] }
 0x43b   :  { %1697 = vmatmul.f32.vlgmr.msrb.gmra.mxu2 %v1663_v20  ;;  %v1650_v30 = vsub.f32 1.0, %v1649_v15  ;;  %1850 = vmatpush.msra.mxu0 %v6044_v34 }
 0x43d   :  { %v1651_v2 = vmul.f32 %v4697_v29, %v1650_v30  ;;  %1927 = vmatpush.msrb.mxu0 %v8056_v9  ;;  %v8066_v9 = vld [vmem:[#allocation75_spill] sm:$0xff] }
 0x43f   :  { %v1652_v24 = vadd.f32 %v4697_v29, %v1651_v2  ;;  %1928 = vmatpush.msrb.mxu0 %v8057_v3  ;;  %v8058_v2 = vld [vmem:[#allocation65_spill] sm:$0xff] }
 0x440   :  { %v8067_v3 = vld [vmem:[#allocation57_spill] sm:$0xff] }
 0x441   :  { %v1656_v20 = vsel %vm1655_vm15, %v4697_v29, %v1652_v24  ;;  %1929 = vmatpush.msrb.mxu0 %v8058_v2  ;;  %v8062_v29 = vld [vmem:[#allocation71_spill] sm:$0xff]  ;;  %v8065_v24 = vld [vmem:[#allocation74_spill] sm:$0xff] }
 0x442   :  { %v1661_v15 = vsel %vm1658_vm0, %v1660_v0, %v1656_v20  ;;  %v8063_v0 = vld [vmem:[#allocation72_spill] sm:$0xff]  ;;  %v8068_v2 = vld [vmem:[#allocation14_spill] sm:$0xff] }
 0x443   :  { %v1664_v30 = vmul.f32 %v1661_v15, %v5871_v28  ;;  %1930 = vmatpush.msrb.mxu0 %v8059_v53  ;;  %v1524_v15 = vmul.f32 %v5949_v6, %v8031_v55 }
 0x445   :  { %1700 = vmatmul.f32.gmra.mxu2 %v1664_v30  ;;  %1931 = vmatpush.msrb.mxu0 %v8060_v25  ;;  %v1380_v25 = vpop.f32.mrf.mxu2 }
 0x446   :  { %v1462_v20 = vadd.f32 %v1380_v25, %v8067_v3 }
 0x447   :  { %1932 = vmatpush.msrb.mxu0 %v8061_v40 }
 0x448   :  { %v1553_v30 = vadd.f32 %v5953_v51, %v1462_v20  ;;  %v8070_v51 = vld [vmem:[#allocation31_spill] sm:$0xff] }
 0x449   :  { %1933 = vmatpush.msrb.mxu0 %v8062_v29  ;;  %v207_v25 = vadd.f32 %v8070_v51, %v8068_v2 }
 0x44b   :  { %1934 = vmatpush.msrb.mxu0 %v8063_v0  ;;  %v1334_v0 = vpop.f32.mrf.mxu0 }
 0x44d   :  { %1935 = vmatpush.msrb.mxu0 %v8064_v32 }
 0x44f   :  { %1936 = vmatpush.msrb.mxu0 %v8065_v24 }
 0x451   :  { %1937 = vmatpush.msrb.mxu0 %v5767_v12  ;;  %v8069_v12 = vld [vmem:[#allocation30_spill] sm:$0xff] }
 0x452   :  { %v204_v53 = vadd.f32 %v8069_v12, %v8068_v2  ;;  %v1546_v2 = vmul.f32 %v5966_v38, %v5689_v14 }
 0x453   :  { %1938 = vmatpush.msrb.mxu0 %v5773_v59  ;;  %v1510_v59 = vmul.f32 %v5956_v52, %v8032_v41  ;;  %v1337_v34 = vpop.f32.mrf.mxu0 }
 0x454   :  { %v1577_v40 = vadd.f32 %v1553_v30, %v204_v53  ;;  %v6081_v30 = vld [vmem:[#allocation9 + $0x100] sm:$0xff]  ;;  %v6084_v53 = vld [vmem:[#allocation9 + $0xd0] sm:$0xff] }
 0x455   :  { %1939 = vmatpush.msrb.mxu0 %v8066_v9  ;;  %1868 = vmatpush.msrb.mxu1 %v6081_v30 }
 0x456   :  { %v1583_v24 = vadd.f32 %v1577_v40, %v1334_v0 }
 0x457   :  { %1940 = vmatpush.msrb.mxu0 %v5802_v45  ;;  %v1544_v45 = vmul.f32 %v5966_v38, %v8035_v27  ;;  %1869 = vmatpush.msrb.mxu1 %v6084_v53 }
 0x458   :  { %v4536_v20 = vmul.f32 -1.442695, %v1583_v24 }
 0x459   :  { %1941 = vmatpush.msrb.mxu0 %v5813_v18  ;;  %v1530_v18 = vadd.f32 %v1524_v15, %v1510_v59  ;;  %v6087_v59 = vld [vmem:[#allocation9 + $0xa0] sm:$0xff] }
 0x45a   :  { %4698 = vpow2.f32 %v4536_v20  ;;  %1870 = vmatpush.msrb.mxu1 %v6087_v59  ;;  %v8071_v20 = vld [vmem:[#allocation15_spill] sm:$0xff] }
 0x45b   :  { %1942 = vmatpush.msrb.mxu0 %v5820_v33  ;;  %v1383_v33 = vpop.f32.mrf.mxu2  ;;  %v1550_v29 = vadd.f32 %v1544_v45, %v1530_v18  ;;  %v6096_v18 = vld [vmem:[#allocation9 + $0x10] sm:$0xff] }
 0x45c   :  { %v1465_v32 = vadd.f32 %v1383_v33, %v8067_v3  ;;  %v1426_v33 = vpop.f32.mrf.mxu0 }
 0x45e   :  { %v1556_v9 = vadd.f32 %v1550_v29, %v1465_v32  ;;  %v1464_v32 = vadd.f32 %v1426_v33, %v5715_v42 }
 0x460   :  { %v1580_v12 = vadd.f32 %v1556_v9, %v207_v25  ;;  %v4699_v56 = vpop.eup %4698  ;;  %v1526_v9 = vmul.f32 %v5949_v6, %v5410_v35  ;;  %v1555_v51 = vadd.f32 %v5958_v48, %v1464_v32 }
 0x461   :  { %v1599_v15 = vadd.f32 1.0, %v4699_v56  ;;  %v6093_v56 = vld [vmem:[#allocation9 + $0x40] sm:$0xff] }
 0x462   :  { %v1585_v11 = vadd.f32 %v1580_v12, %v1337_v34  ;;  %v334_v12 = vadd.f32 %v8071_v20, %v5212_v5 }
 0x463   :  { %vm1608_vm2 = vweird.f32 %v1599_v15  ;;  %v1612_v6 = vand.u32 2147483647, %v1599_v15 }
 0x464   :  { %v4538_v1 = vmul.f32 -1.442695, %v1585_v11  ;;  %v6090_v11 = vld [vmem:[#allocation9 + $0x70] sm:$0xff]  ;;  %v1579_v33 = vadd.f32 %v1555_v51, %v334_v12  ;;  %v1429_v60 = vpop.f32.mrf.mxu0 }
 0x465   :  { %1871 = vmatpush.msrb.mxu1 %v6090_v11  ;;  %v1467_v17 = vadd.f32 %v1429_v60, %v5715_v42  ;;  %vm1613_vm5 = vcmp.eq.f32.partialorder %v1612_v6, 8.507059e+37 }
 0x466   :  { %4700 = vpow2.f32 %v4538_v1 }
 0x467   :  { %4702 = vrcp.f32 %v1599_v15  ;;  %1872 = vmatpush.msrb.mxu1 %v6093_v56 }
 0x469   :  { %1873 = vmatpush.msrb.mxu1 %v6096_v18 }
 0x46c   :  { %v4701_v34 = vpop.eup %4700 }
 0x46d   :  { %v4703_v1 = vpop.eup %4702  ;;  %v1601_v45 = vadd.f32 1.0, %v4701_v34  ;;  %v1512_v34 = vmul.f32 %v5956_v52, %v5406_v31 }
 0x46e   :  { %v1604_v40 = vmul.f32 %v4703_v1, %v1599_v15  ;;  %vm1609_vm1 = vweird.f32 %v4703_v1 }
 0x46f   :  { %4704 = vrcp.f32 %v1601_v45  ;;  %v1532_v3 = vadd.f32 %v1526_v9, %v1512_v34  ;;  %vm1610_vm3 = vmor %vm1608_vm2, %vm1609_vm1  ;;  %v8072_v9 = vld [vmem:[#allocation16_spill] sm:$0xff]  ;;  %v1644_v60 = vand.u32 2147483648, %v1601_v45  ;;  %vm1638_vm7 = vweird.f32 %v1601_v45 }
 0x470   :  { %v1605_v29 = vsub.f32 1.0, %v1604_v40  ;;  %v337_v51 = vadd.f32 %v8072_v9, %v5212_v5  ;;  %v2169_v9 = vld [vmem:[%s7777_s4 + $0x48] sm:$0xff] }
 0x471   :  { %v1552_v32 = vadd.f32 %v1546_v2, %v1532_v3  ;;  %v6115_v3 = vld [vmem:[%s7774_s1 + $0x38] sm:$0xff] }
 0x472   :  { %v1606_v24 = vmul.f32 %v4703_v1, %v1605_v29  ;;  %v1614_v29 = vand.u32 2147483648, %v1599_v15 }
 0x473   :  { %v1558_v7 = vadd.f32 %v1552_v32, %v1467_v17 }
 0x474   :  { %v1607_v40 = vadd.f32 %v4703_v1, %v1606_v24  ;;  %v1615_v52 = vor.u32 1.1754944e-38, %v1614_v29 }
 0x475   :  { %v4705_v0 = vpop.eup %4704  ;;  %v1582_v2 = vadd.f32 %v1558_v7, %v337_v51 }
 0x476   :  { %v1634_v25 = vmul.f32 %v4705_v0, %v1601_v45  ;;  %v1611_v20 = vsel %vm1610_vm3, %v4703_v1, %v1607_v40  ;;  %vm1639_vm6 = vweird.f32 %v4705_v0  ;;  %v1642_v1 = vand.u32 2147483647, %v1601_v45 }
 0x477   :  { %v1616_v24 = vsel %vm1613_vm5, %v1615_v52, %v1611_v20  ;;  %vm1640_vm8 = vmor %vm1638_vm7, %vm1639_vm6 }
 0x478   :  { %v1635_v48 = vsub.f32 1.0, %v1634_v25  ;;  %v1710_v12 = vsub.f32 1.0, %v1616_v24  ;;  %v1708_v15 = vmul.f32 %v1616_v24, %v5830_v21  ;;  %vm1643_vm10 = vcmp.eq.f32.partialorder %v1642_v1, 8.507059e+37  ;;  %v2170_v24 = vld [vmem:[%s7777_s4 + $0x50] sm:$0xff] }
 0x479   :  { %v2166_v1 = vld [vmem:[%s7777_s4 + $0x30] sm:$0xff] }
 0x47a   :  { %v1636_v38 = vmul.f32 %v4705_v0, %v1635_v48  ;;  %v1645_v48 = vor.u32 1.1754944e-38, %v1644_v60 }
 0x47c   :  { %v1637_v34 = vadd.f32 %v4705_v0, %v1636_v38  ;;  %v2171_v38 = vld [vmem:[%s7777_s4 + $0x58] sm:$0xff] }
 0x47e   :  { %v1641_v6 = vsel %vm1640_vm8, %v4705_v0, %v1637_v34  ;;  %v2167_v34 = vld [vmem:[%s7777_s4 + $0x38] sm:$0xff] }
 0x47f   :  { %v1646_v21 = vsel %vm1643_vm10, %v1645_v48, %v1641_v6 }
 0x480   :  { %v1711_v7 = vsub.f32 1.0, %v1646_v21  ;;  %v1709_v0 = vmul.f32 %v1646_v21, %v5871_v28  ;;  %v2165_v21 = vld [vmem:[%s7777_s4 + $0x28] sm:$0xff] }
 0x4be   :  { %v1698_v4 = vpop.f32.mrf.mxu2 }
 0x4bf   :  { %v1704_v57 = vadd.f32 %v1698_v4, %v1579_v33 }
 0x4c1   :  { %4706 = vtanh.f32 %v1704_v57  ;;  %v1969_v57 = vsub.f32 %v6115_v3, %v5845_v26 }
 0x4c3   :  { %v1971_v33 = vand.u32 2147483647, %v1969_v57 }
 0x4c5   :  { %vm1973_vm9 = vcmp.lt.f32.partialorder %v1971_v33, 1e-12 }
 0x4c6   :  { %v1975_v26 = vsel %vm1973_vm9, 1.0, %v1969_v57 }
 0x4c7   :  { %v4707_v4 = vpop.eup %4706 }
 0x4c8   :  { %v1712_v17 = vmul.f32 %v4707_v4, %v1710_v12  ;;  %v1701_v25 = vpop.f32.mrf.mxu2  ;;  %v2168_v12 = vld [vmem:[%s7777_s4 + $0x40] sm:$0xff] }
 0x4c9   :  { %v1705_v40 = vadd.f32 %v1701_v25, %v1582_v2 }
 0x4ca   :  { %v6120_v29 = vadd.f32 %v1712_v17, %v1708_v15 }
 0x4cb   :  { %4708 = vtanh.f32 %v1705_v40 }
 0x4cc   :  { %1828 = vmatmul.f32.vlgmr.msra.gmra.mxu3 %v6120_v29  ;;  %1851 = vmatmul.f32.vlgmr.msra.gmra.mxu0 %v6120_v29  ;;  %4710 = vrcp.f32 %v1975_v26 }
 0x4cd   :  { %1874 = vmatmul.f32.vlgmr.msrb.gmra.mxu1 %v6120_v29  ;;  %1897 = vmatmul.f32.vlgmr.msra.gmra.mxu2 %v6120_v29 }
 0x4ce   :  { %2353 = vmatpush.msra.mxu0 %v5982_v50 }
 0x4d0   :  { %2354 = vmatpush.msra.mxu0 %v5986_v44  ;;  %v6161_v44 = vld [vmem:[%s7774_s1 + $0x40] sm:$0xff] }
 0x4d1   :  { %v4709_v45 = vpop.eup %4708  ;;  %8073 = vst [vmem:[#allocation62_spill] sm:$0xff] %v6161_v44 }
 0x4d2   :  { %v1713_v32 = vmul.f32 %v4709_v45, %v1711_v7  ;;  %2355 = vmatpush.msra.mxu0 %v5990_v36  ;;  %v4711_v20 = vpop.eup %4710 }
 0x4d3   :  { %1987 = vperm.xlu1 %4620, %v4711_v20  }
 0x4d4   :  { %v6130_v52 = vadd.f32 %v1713_v32, %v1709_v0  ;;  %2356 = vmatpush.msra.mxu0 %v5996_v13  ;;  %v2164_v32 = vld [vmem:[%s7777_s4 + $0x20] sm:$0xff] }
 0x4d6   :  { %1831 = vmatmul.f32.gmra.mxu3 %v6130_v52  ;;  %1854 = vmatmul.f32.gmra.mxu0 %v6130_v52 }
 0x4d7   :  { %1877 = vmatmul.f32.gmra.mxu1 %v6130_v52  ;;  %1900 = vmatmul.f32.gmra.mxu2 %v6130_v52 }
 0x4d8   :  { %2357 = vmatpush.msra.mxu0 %v6002_v23 }
 0x4da   :  { %2358 = vmatpush.msra.mxu0 %v6008_v61  ;;  %v1983_v61 = vpop.permute.xlu2 %1982 }
 0x4db   :  { %4621 = vset.pattern.permute.xlu1 %v8030_v37 }
 0x4dc   :  { %2359 = vmatpush.msra.mxu0 %v6014_v63 }
 0x4de   :  { %1920 = vmatmul.f32.vlgmr.msrb.gmra.mxu3 %v6120_v29  ;;  %1943 = vmatmul.f32.vlgmr.msrb.gmra.mxu0 %v6120_v29 }
 0x4df   :  { %2360 = vmatpush.msra.mxu0 %v6020_v39 }
 0x4e1   :  { %2361 = vmatpush.msra.mxu0 %v6026_v54 }
 0x4e3   :  { %2362 = vmatpush.msra.mxu0 %v6078_v58  ;;  %v2463_v58 = vsub.f32 %v6161_v44, %v5910_v19 }
 0x4e5   :  { %2363 = vmatpush.msra.mxu0 %v6081_v30  ;;  %v2465_v63 = vand.u32 2147483647, %v2463_v58 }
 0x4e6   :  { %1923 = vmatmul.f32.gmra.mxu3 %v6130_v52  ;;  %1946 = vmatmul.f32.gmra.mxu0 %v6130_v52 }
 0x4e7   :  { %2364 = vmatpush.msra.mxu0 %v6084_v53  ;;  %vm2467_vm11 = vcmp.lt.f32.partialorder %v2465_v63, 1e-12 }
 0x4e8   :  { %v2469_v53 = vsel %vm2467_vm11, 1.0, %v2463_v58 }
 0x4e9   :  { %2365 = vmatpush.msra.mxu0 %v6087_v59  ;;  %4712 = vrcp.f32 %v2469_v53 }
 0x4eb   :  { %2366 = vmatpush.msra.mxu0 %v6090_v11 }
 0x4ed   :  { %2367 = vmatpush.msra.mxu0 %v6093_v56  ;;  %v2173_v56 = vld [vmem:[%s7777_s4 + $0x68] sm:$0xff] }
 0x4ef   :  { %2368 = vmatpush.msra.mxu0 %v6096_v18  ;;  %v4713_v11 = vpop.eup %4712  ;;  %v2172_v18 = vld [vmem:[%s7777_s4 + $0x60] sm:$0xff] }
 0x545   :  { %v1988_v30 = vpop.permute.xlu1 %1987 }
 0x549   :  { %v6154_v28 = vpop.f32.mrf.mxu0 }
 0x550   :  { %v1898_v60 = vpop.f32.mrf.mxu2 }
 0x551   :  { %v1958_v58 = vadd.f32 %v1898_v60, %v8037_v47  ;;  %v8078_v60 = vld [vmem:[#allocation51_spill] sm:$0xff] }
 0x553   :  { %v6156_v50 = vpop.f32.mrf.mxu0 }
 0x55b   :  { %v1944_v36 = vpop.f32.mrf.mxu0 }
 0x55c   :  { %v6166_v13 = vadd.f32 %v5915_v8, %v1944_v36  ;;  %v2163_v36 = vld [vmem:[%s7777_s4 + $0x18] sm:$0xff] }
 0x55e   :  { %8074 = vst [vmem:[#allocation63_spill] sm:$0xff] %v6166_v13  ;;  %v1976_v23 = vsub.f32 %v6166_v13, %v5918_v43 }
 0x55f   :  { %4540 = vst.msk [vmem:[%s7783_s10 + $0x20] sm:$0xff] %vm67_vm4, %v6166_v13  ;;  %v6472_v13 = vld [vmem:[#allocation9 + $0x148] sm:$0xff] }
 0x560   :  { %v1990_v39 = vmul.f32 %v1983_v61, %v1976_v23 }
 0x562   :  { %2029 = vperm.xlu1 %4621, %v1990_v39   ;;  %2009 = vperm.xlu0 %4619, %v1990_v39  }
 0x563   :  { %1994 = vperm.xlu2 %4618, %v1990_v39   ;;  %v1947_v54 = vpop.f32.mrf.mxu0  ;;  %v2162_v39 = vld [vmem:[%s7777_s4 + $0x10] sm:$0xff] }
 0x564   :  { %v6176_v19 = vadd.f32 %v5915_v8, %v1947_v54  ;;  %v2175_v8 = vld [vmem:[%s7777_s4 + $0x78] sm:$0xff] }
 0x565   :  { %2176 = vmatpush.msra.mxu1 %v2175_v8  ;;  %2671 = vmatpush.msrb.mxu0 %v2175_v8  ;;  %v8076_v54 = vld [vmem:[#allocation13_spill] sm:$0xff]  ;;  %v2161_v8 = vld [vmem:[%s7777_s4 + $0x8] sm:$0xff] }
 0x566   :  { %8075 = vst [vmem:[#allocation65_spill] sm:$0xff] %v6176_v19  ;;  %v1977_v43 = vsub.f32 %v6176_v19, %v5930_v62  ;;  %v2174_v62 = vld [vmem:[%s7777_s4 + $0x70] sm:$0xff] }
 0x567   :  { %4541 = vst.msk [vmem:[%s7783_s10 + $0x28] sm:$0xff] %vm67_vm4, %v6176_v19  ;;  %2177 = vmatpush.msra.mxu1 %v2174_v62  ;;  %2672 = vmatpush.msrb.mxu0 %v2174_v62 }
 0x568   :  { %v1991_v59 = vmul.f32 %v1988_v30, %v1977_v43  ;;  %v8077_v30 = vld [vmem:[#allocation50_spill] sm:$0xff] }
 0x569   :  { %2178 = vmatpush.msra.mxu1 %v2173_v56  ;;  %2673 = vmatpush.msrb.mxu0 %v2173_v56  ;;  %v275_v43 = vadd.f32 %v8077_v30, %v8076_v54  ;;  %v6299_v30 = vld [vmem:[#allocation9 + $0x1e0] sm:$0xff]  ;;  %8110 = vst [vmem:[#allocation50_spill] sm:$0xff] %v6472_v13 }
 0x56a   :  { %2033 = vperm.xlu1 %4621, %v1991_v59   ;;  %2013 = vperm.xlu0 %4619, %v1991_v59  }
 0x56b   :  { %1999 = vperm.xlu2 %4618, %v1991_v59   ;;  %2179 = vmatpush.msra.mxu1 %v2172_v18 }
 0x56c   :  { %2674 = vmatpush.msrb.mxu0 %v2172_v18 }
 0x56d   :  { %2180 = vmatpush.msra.mxu1 %v2171_v38 }
 0x56e   :  { %2675 = vmatpush.msrb.mxu0 %v2171_v38  ;;  %v1901_v38 = vpop.f32.mrf.mxu2 }
 0x56f   :  { %2181 = vmatpush.msra.mxu1 %v2170_v24 }
 0x570   :  { %2676 = vmatpush.msrb.mxu0 %v2170_v24  ;;  %v2160_v24 = vld [vmem:[%s7777_s4] sm:$0xff] }
 0x571   :  { %2182 = vmatpush.msra.mxu1 %v2169_v9 }
 0x572   :  { %4622 = vset.pattern.permute.xlu0 %v8029_v22  ;;  %4623 = vset.pattern.permute.xlu1 %v8029_v22 }
 0x573   :  { %2477 = vperm.xlu2 %4618, %v4713_v11   ;;  %2677 = vmatpush.msrb.mxu0 %v2169_v9 }
 0x574   :  { %2183 = vmatpush.msra.mxu1 %v2168_v12 }
 0x575   :  { %2678 = vmatpush.msrb.mxu0 %v2168_v12 }
 0x576   :  { %2184 = vmatpush.msra.mxu1 %v2167_v34 }
 0x577   :  { %2679 = vmatpush.msrb.mxu0 %v2167_v34  ;;  %v1961_v34 = vadd.f32 %v1901_v38, %v8037_v47 }
 0x578   :  { %2185 = vmatpush.msra.mxu1 %v2166_v1 }
 0x579   :  { %2680 = vmatpush.msrb.mxu0 %v2166_v1 }
 0x57a   :  { %2186 = vmatpush.msra.mxu1 %v2165_v21 }
 0x57b   :  { %4624 = vset.pattern.permute.xlu2 %v8023_v46  ;;  %2681 = vmatpush.msrb.mxu0 %v2165_v21  ;;  %v8079_v21 = vld [vmem:[#allocation64_spill] sm:$0xff] }
 0x57c   :  { %2187 = vmatpush.msra.mxu1 %v2164_v32 }
 0x57d   :  { %2682 = vmatpush.msrb.mxu0 %v2164_v32  ;;  %v6290_v32 = vld [vmem:[#allocation9 + $0x288] sm:$0xff] }
 0x57e   :  { %2188 = vmatpush.msra.mxu1 %v2163_v36 }
 0x57f   :  { %2683 = vmatpush.msrb.mxu0 %v2163_v36  ;;  %v6292_v36 = vld [vmem:[#allocation9 + $0x210] sm:$0xff] }
 0x580   :  { %2189 = vmatpush.msra.mxu1 %v2162_v39 }
 0x581   :  { %2684 = vmatpush.msrb.mxu0 %v2162_v39 }
 0x582   :  { %2190 = vmatpush.msra.mxu1 %v2161_v8 }
 0x583   :  { %2685 = vmatpush.msrb.mxu0 %v2161_v8  ;;  %v6304_v8 = vld [vmem:[#allocation9 + $0x228] sm:$0xff] }
 0x584   :  { %2191 = vmatpush.msra.mxu1 %v2160_v24 }
 0x585   :  { %2686 = vmatpush.msrb.mxu0 %v2160_v24  ;;  %v8083_v24 = vld [vmem:[#allocation29_spill] sm:$0xff] }
 0x5bd   :  { %v1995_v51 = vpop.permute.xlu2 %1994 }
 0x5be   :  { %v2002_v57 = vmul.f32 %v1995_v51, %v8032_v41  ;;  %v2003_v15 = vmul.f32 %v1995_v51, %v8033_v49  ;;  %v2004_v25 = vmul.f32 %v1995_v51, %v5406_v31 }
 0x5c5   :  { %v6241_v63 = vpop.permute.xlu2 %1999 }
 0x5c6   :  { %v2006_v62 = vmul.f32 %v6241_v63, %v8033_v49 }
 0x5d4   :  { %v2030_v4 = vpop.permute.xlu1 %2029  ;;  %v2010_v2 = vpop.permute.xlu0 %2009 }
 0x5d5   :  { %v2016_v17 = vmul.f32 %v2010_v2, %v8031_v55  ;;  %v2017_v40 = vmul.f32 %v2010_v2, %v8034_v16  ;;  %v2018_v33 = vmul.f32 %v2010_v2, %v5410_v35  ;;  %v2036_v6 = vmul.f32 %v2030_v4, %v8035_v27 }
 0x5d6   :  { %v2037_v48 = vmul.f32 %v2030_v4, %v8036_v10  ;;  %v2038_v7 = vmul.f32 %v2030_v4, %v5689_v14 }
 0x5d7   :  { %v2022_v26 = vadd.f32 %v2016_v17, %v2002_v57  ;;  %v2023_v45 = vadd.f32 %v2017_v40, %v2003_v15  ;;  %v2024_v0 = vadd.f32 %v2018_v33, %v2004_v25  ;;  %v278_v57 = vadd.f32 %v8078_v60, %v8076_v54  ;;  %v6269_v33 = vld [vmem:[#allocation9 + $0x2d0] sm:$0xff]  ;;  %v6321_v60 = vld [vmem:[#allocation9 + $0x1c8] sm:$0xff]  ;;  %v6371_v54 = vld [vmem:[#allocation9 + $0x2f8] sm:$0xff] }
 0x5d8   :  { %2307 = vmatpush.msrb.mxu2 %v6269_v33  ;;  %8093 = vst [vmem:[#allocation68_spill] sm:$0xff] %v6371_v54 }
 0x5d9   :  { %v6233_v20 = vadd.f32 %v2036_v6, %v2022_v26  ;;  %v2043_v23 = vadd.f32 %v2037_v48, %v2023_v45  ;;  %v6239_v61 = vadd.f32 %v2038_v7, %v2024_v0  ;;  %v6271_v6 = vld [vmem:[#allocation9 + $0x2d8] sm:$0xff]  ;;  %v6273_v48 = vld [vmem:[#allocation9 + $0x2a0] sm:$0xff]  ;;  %v6277_v26 = vld [vmem:[#allocation9 + $0x270] sm:$0xff] }
 0x5da   :  { %2330 = vmatpush.msra.mxu3 %v6271_v6  ;;  %2308 = vmatpush.msrb.mxu2 %v6273_v48  ;;  %v6283_v7 = vld [vmem:[#allocation9 + $0x2b8] sm:$0xff]  ;;  %v6285_v45 = vld [vmem:[#allocation9 + $0x240] sm:$0xff] }
 0x5db   :  { %v2049_v53 = vadd.f32 %v2043_v23, %v1958_v58  ;;  %v8080_v0 = vld [vmem:[#allocation67_spill] sm:$0xff]  ;;  %v8081_v58 = vld [vmem:[#allocation28_spill] sm:$0xff] }
 0x5dc   :  { %v6248_v59 = vpop.permute.xlu0 %2013  ;;  %v6250_v11 = vpop.permute.xlu1 %2033  ;;  %2331 = vmatpush.msra.mxu3 %v8079_v21  ;;  %2309 = vmatpush.msrb.mxu2 %v6277_v26  ;;  %v6297_v23 = vld [vmem:[#allocation9 + $0x258] sm:$0xff] }
 0x5dd   :  { %v2073_v56 = vadd.f32 %v2049_v53, %v275_v43  ;;  %v2020_v18 = vmul.f32 %v6248_v59, %v8034_v16  ;;  %v2040_v51 = vmul.f32 %v6250_v11, %v8036_v10  ;;  %v8082_v53 = vld [vmem:[#allocation27_spill] sm:$0xff]  ;;  %v2039_v10 = vmul.f32 %v6250_v11, %v8035_v27  ;;  %v1829_v16 = vpop.f32.mrf.mxu3  ;;  %v6394_v27 = vld [vmem:[#allocation9 + $0x2c8] sm:$0xff] }
 0x5de   :  { %2332 = vmatpush.msra.mxu3 %v8080_v0  ;;  %2310 = vmatpush.msrb.mxu2 %v6285_v45  ;;  %v8086_v0 = vld [vmem:[#allocation76_spill] sm:$0xff]  ;;  %8099 = vst [vmem:[#allocation69_spill] sm:$0xff] %v6394_v27 }
 0x5df   :  { %v2079_v9 = vadd.f32 %v2073_v56, %v6154_v28  ;;  %v2026_v12 = vadd.f32 %v2020_v18, %v2006_v62  ;;  %v6306_v56 = vld [vmem:[#allocation9 + $0x1b0] sm:$0xff] }
 0x5e0   :  { %2333 = vmatpush.msra.mxu3 %v8081_v58  ;;  %2311 = vmatpush.msrb.mxu2 %v6292_v36  ;;  %v6335_v58 = vld [vmem:[#allocation9 + $0x168] sm:$0xff] }
 0x5e1   :  { %v4545_v4 = vmul.f32 -1.442695, %v2079_v9  ;;  %v2046_v2 = vadd.f32 %v2040_v51, %v2026_v12  ;;  %v6313_v9 = vld [vmem:[#allocation9 + $0x1f8] sm:$0xff]  ;;  %v6315_v12 = vld [vmem:[#allocation9 + $0x180] sm:$0xff] }
 0x5e2   :  { %2334 = vmatpush.msra.mxu3 %v8082_v53  ;;  %2312 = vmatpush.msrb.mxu2 %v6299_v30 }
 0x5e3   :  { %4714 = vpow2.f32 %v4545_v4  ;;  %v2052_v15 = vadd.f32 %v2046_v2, %v1961_v34  ;;  %v8084_v2 = vld [vmem:[#allocation48_spill] sm:$0xff] }
 0x5e4   :  { %2335 = vmatpush.msra.mxu3 %v8083_v24  ;;  %2313 = vmatpush.msrb.mxu2 %v6306_v56  ;;  %v6344_v24 = vld [vmem:[#allocation9 + $0xc0] sm:$0xff] }
 0x5e5   :  { %v2076_v17 = vadd.f32 %v2052_v15, %v278_v57  ;;  %v6323_v57 = vld [vmem:[#allocation9 + $0x150] sm:$0xff]  ;;  %v1832_v19 = vpop.f32.mrf.mxu3 }
 0x5e6   :  { %2336 = vmatpush.msra.mxu3 %v8084_v2  ;;  %2314 = vmatpush.msrb.mxu2 %v6315_v12 }
 0x5e7   :  { %v2081_v28 = vadd.f32 %v2076_v17, %v6156_v50  ;;  %v6281_v50 = vld [vmem:[#allocation9 + $0x2e8] sm:$0xff] }
 0x5e8   :  { %2376 = vmatpush.msrb.mxu1 %v6281_v50  ;;  %v8085_v17 = vld [vmem:[#allocation49_spill] sm:$0xff]  ;;  %2315 = vmatpush.msrb.mxu2 %v6323_v57 }
 0x5e9   :  { %v4715_v1 = vpop.eup %4714  ;;  %v4547_v40 = vmul.f32 -1.442695, %v2081_v28  ;;  %2337 = vmatpush.msra.mxu3 %v8085_v17  ;;  %v6328_v28 = vld [vmem:[#allocation9 + $0x198] sm:$0xff] }
 0x5ea   :  { %v2095_v25 = vadd.f32 1.0, %v4715_v1  ;;  %2377 = vmatpush.msrb.mxu1 %v6283_v7 }
 0x5eb   :  { %2338 = vmatpush.msra.mxu3 %v8086_v0 }
 0x5ec   :  { %4716 = vrcp.f32 %v2095_v25  ;;  %2378 = vmatpush.msrb.mxu1 %v6290_v32  ;;  %v2124_v51 = vand.u32 2147483648, %v2095_v25  ;;  %v2122_v4 = vand.u32 2147483647, %v2095_v25  ;;  %vm2118_vm13 = vweird.f32 %v2095_v25 }
 0x5ed   :  { %4718 = vpow2.f32 %v4547_v40  ;;  %v6330_v40 = vld [vmem:[#allocation9 + $0x120] sm:$0xff] }
 0x5ee   :  { %2379 = vmatpush.msrb.mxu1 %v6297_v23  ;;  %v2125_v1 = vor.u32 1.1754944e-38, %v2124_v51  ;;  %vm2123_vm15 = vcmp.eq.f32.partialorder %v2122_v4, 8.507059e+37  ;;  %2316 = vmatpush.msrb.mxu2 %v6330_v40  ;;  %v6349_v4 = vld [vmem:[#allocation9 + $0x90] sm:$0xff] }
 0x5f0   :  { %2380 = vmatpush.msrb.mxu1 %v6304_v8 }
 0x5f2   :  { %v4717_v39 = vpop.eup %4716  ;;  %2381 = vmatpush.msrb.mxu1 %v6313_v9 }
 0x5f3   :  { %v2114_v43 = vmul.f32 %v4717_v39, %v2095_v25  ;;  %v4719_v62 = vpop.eup %4718  ;;  %vm2119_vm12 = vweird.f32 %v4717_v39 }
 0x5f4   :  { %v6309_v18 = vadd.f32 1.0, %v4719_v62  ;;  %vm2120_vm14 = vmor %vm2118_vm13, %vm2119_vm12  ;;  %2382 = vmatpush.msrb.mxu1 %v6321_v60 }
 0x5f5   :  { %v2115_v38 = vsub.f32 1.0, %v2114_v43  ;;  %v6337_v43 = vld [vmem:[#allocation9 + $0xf0] sm:$0xff] }
 0x5f6   :  { %4720 = vrcp.f32 %v6309_v18  ;;  %2383 = vmatpush.msrb.mxu1 %v6328_v28  ;;  %2317 = vmatpush.msrb.mxu2 %v6337_v43  ;;  %v2154_v2 = vand.u32 2147483648, %v6309_v18  ;;  %v2152_v17 = vand.u32 2147483647, %v6309_v18  ;;  %vm2148_vm1 = vweird.f32 %v6309_v18 }
 0x5f7   :  { %v2116_v34 = vmul.f32 %v4717_v39, %v2115_v38  ;;  %v8087_v38 = vld [vmem:[#allocation77_spill] sm:$0xff] }
 0x5f8   :  { %2339 = vmatpush.msra.mxu3 %v8087_v38  ;;  %2384 = vmatpush.msrb.mxu1 %v6335_v58  ;;  %v2155_v38 = vor.u32 1.1754944e-38, %v2154_v2  ;;  %vm2153_vm3 = vcmp.eq.f32.partialorder %v2152_v17, 8.507059e+37  ;;  %v1875_v2 = vpop.f32.mrf.mxu1  ;;  %v8095_v17 = vld [vmem:[#allocation57_spill] sm:$0xff] }
 0x5f9   :  { %v2117_v15 = vadd.f32 %v4717_v39, %v2116_v34  ;;  %v8088_v34 = vld [vmem:[#allocation78_spill] sm:$0xff]  ;;  %2318 = vmatpush.msrb.mxu2 %v6344_v24 }
 0x5fa   :  { %2340 = vmatpush.msra.mxu3 %v8088_v34  ;;  %v6364_v34 = vld [vmem:[#allocation9] sm:$0xff] }
 0x5fb   :  { %v2121_v21 = vsel %vm2120_vm14, %v4717_v39, %v2117_v15  ;;  %2319 = vmatpush.msrb.mxu2 %v6349_v4 }
 0x5fc   :  { %v2126_v25 = vsel %vm2123_vm15, %v2125_v1, %v2121_v21  ;;  %v4721_v53 = vpop.eup %4720  ;;  %v8089_v1 = vld [vmem:[#allocation79_spill] sm:$0xff]  ;;  %v6355_v21 = vld [vmem:[#allocation9 + $0x60] sm:$0xff] }
 0x5fd   :  { %v2158_v62 = vmul.f32 %v2126_v25, %v6120_v29  ;;  %v2144_v39 = vmul.f32 %v4721_v53, %v6309_v18  ;;  %vm2149_vm0 = vweird.f32 %v4721_v53  ;;  %2341 = vmatpush.msra.mxu3 %v8089_v1  ;;  %v8090_v25 = vld [vmem:[#allocation80_spill] sm:$0xff]  ;;  %2320 = vmatpush.msrb.mxu2 %v6355_v21  ;;  %v8092_v18 = vld [vmem:[#allocation82_spill] sm:$0xff] }
 0x5fe   :  { %vm2150_vm2 = vmor %vm2148_vm1, %vm2149_vm0 }
 0x5ff   :  { %2192 = vmatmul.f32.vlgmr.msra.gmra.mxu1 %v2158_v62  ;;  %v2145_v51 = vsub.f32 1.0, %v2144_v39  ;;  %2342 = vmatpush.msra.mxu3 %v8090_v25  ;;  %v6360_v62 = vld [vmem:[#allocation9 + $0x30] sm:$0xff] }
 0x600   :  { %2321 = vmatpush.msrb.mxu2 %v6360_v62  ;;  %v6369_v25 = vld [vmem:[#allocation9 + $0x2f0] sm:$0xff] }
 0x601   :  { %v2146_v15 = vmul.f32 %v4721_v53, %v2145_v51  ;;  %v8091_v51 = vld [vmem:[#allocation81_spill] sm:$0xff] }
 0x602   :  { %2343 = vmatpush.msra.mxu3 %v8091_v51  ;;  %2322 = vmatpush.msrb.mxu2 %v6364_v34  ;;  %v2005_v51 = vmul.f32 %v6241_v63, %v8032_v41 }
 0x603   :  { %v2147_v0 = vadd.f32 %v4721_v53, %v2146_v15 }
 0x604   :  { %2344 = vmatpush.msra.mxu3 %v8092_v18  ;;  %2399 = vmatpush.msra.mxu2 %v6369_v25  ;;  %v8097_v18 = vld [vmem:[#allocation32_spill] sm:$0xff] }
 0x605   :  { %v2151_v39 = vsel %vm2150_vm2, %v4721_v53, %v2147_v0  ;;  %v8094_v53 = vld [vmem:[#allocation83_spill] sm:$0xff]  ;;  %v1957_v0 = vadd.f32 %v1875_v2, %v8095_v17 }
 0x606   :  { %v2156_v1 = vsel %vm2153_vm3, %v2155_v38, %v2151_v39  ;;  %2345 = vmatpush.msra.mxu3 %v8094_v53  ;;  %v2019_v38 = vmul.f32 %v6248_v59, %v8031_v55 }
 0x607   :  { %v2159_v15 = vmul.f32 %v2156_v1, %v6130_v52  ;;  %v2048_v39 = vadd.f32 %v6233_v20, %v1957_v0  ;;  %v8096_v1 = vld [vmem:[#allocation14_spill] sm:$0xff]  ;;  %v8098_v20 = vld [vmem:[#allocation33_spill] sm:$0xff] }
 0x608   :  { %2422 = vmatpush.msrb.mxu3 %v6371_v54  ;;  %v2025_v47 = vadd.f32 %v2019_v38, %v2005_v51  ;;  %v1878_v54 = vpop.f32.mrf.mxu1  ;;  %v213_v0 = vadd.f32 %v8098_v20, %v8096_v1  ;;  %v6390_v51 = vld [vmem:[#allocation9 + $0x138] sm:$0xff]  ;;  %v6433_v20 = vld [vmem:[#allocation9 + $0x208] sm:$0xff] }
 0x609   :  { %2195 = vmatmul.f32.gmra.mxu1 %v2159_v15  ;;  %v210_v15 = vadd.f32 %v8097_v18, %v8096_v1  ;;  %v1960_v37 = vadd.f32 %v1878_v54, %v8095_v17  ;;  %v6424_v54 = vld [vmem:[#allocation9 + $0x238] sm:$0xff]  ;;  %8104 = vst [vmem:[#allocation74_spill] sm:$0xff] %v6433_v20 }
 0x60a   :  { %v2045_v49 = vadd.f32 %v2039_v10, %v2025_v47  ;;  %2385 = vmatpush.msrb.mxu1 %v6390_v51  ;;  %2423 = vmatpush.msrb.mxu3 %v6394_v27  ;;  %v6414_v10 = vld [vmem:[#allocation9 + $0x268] sm:$0xff]  ;;  %8102 = vst [vmem:[#allocation72_spill] sm:$0xff] %v6424_v54  ;;  %v6462_v27 = vld [vmem:[#allocation9 + $0x170] sm:$0xff] }
 0x60b   :  { %v2072_v53 = vadd.f32 %v2048_v39, %v210_v15  ;;  %v6392_v15 = vld [vmem:[#allocation9 + $0x2c0] sm:$0xff]  ;;  %8101 = vst [vmem:[#allocation71_spill] sm:$0xff] %v6414_v10  ;;  %v6420_v47 = vld [vmem:[#allocation9 + $0xa8] sm:$0xff] }
 0x60c   :  { %v2051_v55 = vadd.f32 %v2045_v49, %v1960_v37  ;;  %2400 = vmatpush.msra.mxu2 %v6392_v15  ;;  %v6401_v37 = vld [vmem:[#allocation9 + $0x108] sm:$0xff]  ;;  %v6412_v49 = vld [vmem:[#allocation9 + $0x260] sm:$0xff] }
 0x60d   :  { %v2078_v2 = vadd.f32 %v2072_v53, %v1829_v16  ;;  %2386 = vmatpush.msrb.mxu1 %v6401_v37  ;;  %v6429_v53 = vld [vmem:[#allocation9 + $0x78] sm:$0xff] }
 0x60e   :  { %v2075_v41 = vadd.f32 %v2051_v55, %v213_v0  ;;  %v6405_v55 = vld [vmem:[#allocation9 + $0x298] sm:$0xff]  ;;  %8103 = vst [vmem:[#allocation73_spill] sm:$0xff] %v6429_v53 }
 0x60f   :  { %v4544_v22 = vmul.f32 -1.442695, %v2078_v2  ;;  %8100 = vst [vmem:[#allocation70_spill] sm:$0xff] %v6405_v55  ;;  %2424 = vmatpush.msrb.mxu3 %v6405_v55  ;;  %v6431_v2 = vld [vmem:[#allocation9 + $0x200] sm:$0xff] }
 0x610   :  { %v2080_v18 = vadd.f32 %v2075_v41, %v1832_v19  ;;  %v6410_v41 = vld [vmem:[#allocation9 + $0xd8] sm:$0xff]  ;;  %v6422_v19 = vld [vmem:[#allocation9 + $0x230] sm:$0xff] }
 0x611   :  { %4722 = vpow2.f32 %v4544_v22  ;;  %v6403_v22 = vld [vmem:[#allocation9 + $0x290] sm:$0xff]  ;;  %2387 = vmatpush.msrb.mxu1 %v6410_v41  ;;  %2425 = vmatpush.msrb.mxu3 %v6414_v10  ;;  %v6453_v10 = vld [vmem:[#allocation9 + $0x1a0] sm:$0xff] }
 0x612   :  { %v4546_v39 = vmul.f32 -1.442695, %v2080_v18  ;;  %2401 = vmatpush.msra.mxu2 %v6403_v22  ;;  %v6438_v18 = vld [vmem:[#allocation9 + $0x48] sm:$0xff] }
 0x613   :  { %2388 = vmatpush.msrb.mxu1 %v6420_v47  ;;  %2426 = vmatpush.msrb.mxu3 %v6424_v54  ;;  %8105 = vst [vmem:[#allocation75_spill] sm:$0xff] %v6438_v18  ;;  %v6451_v54 = vld [vmem:[#allocation9 + $0x18] sm:$0xff] }
 0x614   :  { %4724 = vpow2.f32 %v4546_v39  ;;  %2402 = vmatpush.msra.mxu2 %v6412_v49  ;;  %v6442_v39 = vld [vmem:[#allocation9 + $0x1d8] sm:$0xff]  ;;  %8107 = vst [vmem:[#allocation31_spill] sm:$0xff] %v6451_v54 }
 0x615   :  { %2389 = vmatpush.msrb.mxu1 %v6429_v53  ;;  %2427 = vmatpush.msrb.mxu3 %v6433_v20  ;;  %8106 = vst [vmem:[#allocation30_spill] sm:$0xff] %v6442_v39  ;;  %v6455_v20 = vld [vmem:[#allocation9 + $0x1a8] sm:$0xff]  ;;  %v6497_v53 = vld [vmem:[#allocation9 + $0xb0] sm:$0xff] }
 0x616   :  { %2403 = vmatpush.msra.mxu2 %v6422_v19  ;;  %8108 = vst [vmem:[#allocation15_spill] sm:$0xff] %v6455_v20 }
 0x617   :  { %v4723_v38 = vpop.eup %4722  ;;  %2390 = vmatpush.msrb.mxu1 %v6438_v18  ;;  %2428 = vmatpush.msrb.mxu3 %v6442_v39  ;;  %v6470_v39 = vld [vmem:[#allocation9 + $0x140] sm:$0xff]  ;;  %v6485_v18 = vld [vmem:[#allocation9 + $0xe8] sm:$0xff] }
 0x618   :  { %v6396_v16 = vadd.f32 1.0, %v4723_v38  ;;  %2404 = vmatpush.msra.mxu2 %v6431_v2  ;;  %v6440_v38 = vld [vmem:[#allocation9 + $0x1d0] sm:$0xff]  ;;  %8114 = vst [vmem:[#allocation28_spill] sm:$0xff] %v6485_v18 }
 0x619   :  { %2391 = vmatpush.msrb.mxu1 %v6451_v54  ;;  %2429 = vmatpush.msrb.mxu3 %v6455_v20  ;;  %v1921_v20 = vpop.f32.mrf.mxu3  ;;  %v6477_v54 = vld [vmem:[#allocation9 + $0x110] sm:$0xff] }
 0x61a   :  { %4726 = vrcp.f32 %v6396_v16  ;;  %v4725_v0 = vpop.eup %4724  ;;  %2405 = vmatpush.msra.mxu2 %v6440_v38  ;;  %8111 = vst [vmem:[#allocation51_spill] sm:$0xff] %v6477_v54  ;;  %vm2103_vm6 = vweird.f32 %v6396_v16 }
 0x61b   :  { %v6448_v17 = vadd.f32 1.0, %v4725_v0  ;;  %v6464_v0 = vld [vmem:[#allocation9 + $0x178] sm:$0xff]  ;;  %2802 = vmatpush.msra.mxu1 %v6269_v33 }
 0x61c   :  { %2406 = vmatpush.msra.mxu2 %v6453_v10  ;;  %8109 = vst [vmem:[#allocation16_spill] sm:$0xff] %v6464_v0  ;;  %2430 = vmatpush.msrb.mxu3 %v6464_v0  ;;  %v6479_v33 = vld [vmem:[#allocation9 + $0x118] sm:$0xff]  ;;  %v6483_v0 = vld [vmem:[#allocation9 + $0xe0] sm:$0xff] }
 0x61d   :  { %4728 = vrcp.f32 %v6448_v17  ;;  %2803 = vmatpush.msra.mxu1 %v6273_v48  ;;  %8112 = vst [vmem:[#allocation64_spill] sm:$0xff] %v6479_v33  ;;  %v1959_v48 = vadd.f32 %v1921_v20, %v5715_v42  ;;  %v6508_v20 = vld [vmem:[#allocation9 + $0x88] sm:$0xff]  ;;  %vm2133_vm10 = vweird.f32 %v6448_v17 }
 0x61e   :  { %2407 = vmatpush.msra.mxu2 %v6462_v27  ;;  %2431 = vmatpush.msrb.mxu3 %v6472_v13  ;;  %8113 = vst [vmem:[#allocation67_spill] sm:$0xff] %v6483_v0 }
 0x61f   :  { %2804 = vmatpush.msra.mxu1 %v6277_v26  ;;  %8116 = vst [vmem:[#allocation29_spill] sm:$0xff] %v6508_v20 }
 0x620   :  { %v6444_v1 = vpop.eup %4726  ;;  %2408 = vmatpush.msra.mxu2 %v6470_v39  ;;  %2432 = vmatpush.msrb.mxu3 %v6479_v33  ;;  %v6501_v33 = vld [vmem:[#allocation9 + $0x80] sm:$0xff] }
 0x621   :  { %v2099_v55 = vmul.f32 %v6444_v1, %v6396_v16  ;;  %2805 = vmatpush.msra.mxu1 %v6285_v45  ;;  %v2007_v45 = vmul.f32 %v6241_v63, %v5406_v31  ;;  %vm2104_vm5 = vweird.f32 %v6444_v1 }
 0x622   :  { %2409 = vmatpush.msra.mxu2 %v6477_v54  ;;  %2433 = vmatpush.msrb.mxu3 %v6485_v18  ;;  %v6499_v54 = vld [vmem:[#allocation9 + $0xb8] sm:$0xff]  ;;  %v8117_v18 = vld [vmem:[#allocation17_spill] sm:$0xff]  ;;  %vm2105_vm7 = vmor %vm2103_vm6, %vm2104_vm5 }
 0x623   :  { %v2100_v44 = vsub.f32 1.0, %v2099_v55  ;;  %v2021_v55 = vmul.f32 %v6248_v59, %v5410_v35  ;;  %v6493_v13 = vpop.eup %4728  ;;  %8115 = vst [vmem:[#allocation27_spill] sm:$0xff] %v6499_v54  ;;  %2806 = vmatpush.msra.mxu1 %v6292_v36  ;;  %v2050_v59 = vadd.f32 %v6239_v61, %v1959_v48  ;;  %v340_v35 = vadd.f32 %v8117_v18, %v5212_v5  ;;  %v6519_v61 = vld [vmem:[#allocation9 + $0x58] sm:$0xff]  ;;  %v6524_v48 = vld [vmem:[#allocation9 + $0x20] sm:$0xff] }
 0x624   :  { %2410 = vmatpush.msra.mxu2 %v6483_v0  ;;  %2434 = vmatpush.msrb.mxu3 %v6499_v54  ;;  %v2129_v36 = vmul.f32 %v6493_v13, %v6448_v17  ;;  %8118 = vst [vmem:[#allocation48_spill] sm:$0xff] %v6519_v61  ;;  %v1924_v54 = vpop.f32.mrf.mxu3  ;;  %vm2134_vm9 = vweird.f32 %v6493_v13 }
 0x625   :  { %v2101_v26 = vmul.f32 %v6444_v1, %v2100_v44  ;;  %v6511_v44 = vld [vmem:[#allocation9 + $0x50] sm:$0xff]  ;;  %2807 = vmatpush.msra.mxu1 %v6299_v30  ;;  %v2027_v0 = vadd.f32 %v2021_v55, %v2007_v45  ;;  %v2041_v30 = vmul.f32 %v6250_v11, %v5689_v14  ;;  %v2074_v18 = vadd.f32 %v2050_v59, %v340_v35  ;;  %v6531_v45 = vld [vmem:[#allocation9 + $0x28] sm:$0xff]  ;;  %vm2135_vm11 = vmor %vm2133_vm10, %vm2134_vm9 }
 0x626   :  { %2411 = vmatpush.msra.mxu2 %v6497_v53  ;;  %2435 = vmatpush.msrb.mxu3 %v6508_v20  ;;  %v2109_v55 = vand.u32 2147483648, %v6396_v16 }
 0x627   :  { %v2102_v63 = vadd.f32 %v6444_v1, %v2101_v26  ;;  %2808 = vmatpush.msra.mxu1 %v6306_v56  ;;  %v2107_v26 = vand.u32 2147483647, %v6396_v16  ;;  %v2047_v11 = vadd.f32 %v2041_v30, %v2027_v0  ;;  %v2130_v56 = vsub.f32 1.0, %v2129_v36 }
 0x628   :  { %2412 = vmatpush.msra.mxu2 %v6501_v33  ;;  %2436 = vmatpush.msrb.mxu3 %v6519_v61  ;;  %v1962_v16 = vadd.f32 %v1924_v54, %v5715_v42  ;;  %v2110_v14 = vor.u32 1.1754944e-38, %v2109_v55  ;;  %v2139_v30 = vand.u32 2147483648, %v6448_v17 }
 0x629   :  { %2809 = vmatpush.msra.mxu1 %v6315_v12  ;;  %v2106_v59 = vsel %vm2105_vm7, %v6444_v1, %v2102_v63  ;;  %vm2108_vm8 = vcmp.eq.f32.partialorder %v2107_v26, 8.507059e+37  ;;  %v2131_v0 = vmul.f32 %v6493_v13, %v2130_v56 }
 0x62a   :  { %2413 = vmatpush.msra.mxu2 %v6511_v44  ;;  %2437 = vmatpush.msrb.mxu3 %v6531_v45  ;;  %v2111_v12 = vsel %vm2108_vm8, %v2110_v14, %v2106_v59  ;;  %v2053_v61 = vadd.f32 %v2047_v11, %v1962_v16  ;;  %v6555_v14 = vld [vmem:[%s7774_s1 + $0x48] sm:$0xff]  ;;  %v2140_v11 = vor.u32 1.1754944e-38, %v2139_v30  ;;  %v8130_v16 = vld [vmem:[#allocation41_spill] sm:$0xff] }
 0x62b   :  { %2810 = vmatpush.msra.mxu1 %v6323_v57  ;;  %v2205_v36 = vsub.f32 1.0, %v2111_v12  ;;  %v2132_v54 = vadd.f32 %v6493_v13, %v2131_v0  ;;  %v8131_v0 = vld [vmem:[#allocation42_spill] sm:$0xff] }
 0x62c   :  { %2414 = vmatpush.msra.mxu2 %v6524_v48 }
 0x62d   :  { %2811 = vmatpush.msra.mxu1 %v6330_v40  ;;  %v2203_v40 = vmul.f32 %v2111_v12, %v6120_v29  ;;  %v2136_v29 = vsel %vm2135_vm11, %v6493_v13, %v2132_v54 }
 0x62f   :  { %2812 = vmatpush.msra.mxu1 %v6337_v43 }
 0x631   :  { %2813 = vmatpush.msra.mxu1 %v6344_v24  ;;  %v2137_v24 = vand.u32 2147483647, %v6448_v17 }
 0x633   :  { %2814 = vmatpush.msra.mxu1 %v6349_v4  ;;  %vm2138_vm13 = vcmp.eq.f32.partialorder %v2137_v24, 8.507059e+37 }
 0x634   :  { %v2141_v4 = vsel %vm2138_vm13, %v2140_v11, %v2136_v29 }
 0x635   :  { %2815 = vmatpush.msra.mxu1 %v6355_v21  ;;  %v2206_v13 = vsub.f32 1.0, %v2141_v4  ;;  %v2204_v17 = vmul.f32 %v2141_v4, %v6130_v52  ;;  %v8120_v52 = vld [vmem:[#allocation51_spill] sm:$0xff] }
 0x637   :  { %2816 = vmatpush.msra.mxu1 %v6360_v62  ;;  %v6633_v62 = vld [vmem:[%s7781_s8] ss:$0 sm:$0xff] }
 0x639   :  { %2817 = vmatpush.msra.mxu1 %v6364_v34 }
 0x67c   :  { %v2193_v20 = vpop.f32.mrf.mxu1 }
 0x67d   :  { %v2199_v35 = vadd.f32 %v2193_v20, %v2074_v18  ;;  %v8119_v20 = vld [vmem:[#allocation18_spill] sm:$0xff]  ;;  %v2464_v18 = vsub.f32 %v6555_v14, %v6115_v3 }
 0x67e   :  { %v343_v1 = vadd.f32 %v8119_v20, %v5212_v5 }
 0x67f   :  { %4730 = vtanh.f32 %v2199_v35  ;;  %v2466_v35 = vand.u32 2147483647, %v2464_v18 }
 0x680   :  { %v2077_v63 = vadd.f32 %v2053_v61, %v343_v1  ;;  %v8132_v1 = vld [vmem:[#allocation40_spill] sm:$0xff] }
 0x681   :  { %vm2468_vm12 = vcmp.lt.f32.partialorder %v2466_v35, 1e-12 }
 0x682   :  { %v2470_v3 = vsel %vm2468_vm12, 1.0, %v2464_v18  ;;  %v8134_v18 = vld [vmem:[#allocation44_spill] sm:$0xff] }
 0x685   :  { %v4731_v57 = vpop.eup %4730 }
 0x686   :  { %v2207_v43 = vmul.f32 %v4731_v57, %v2205_v36  ;;  %v2196_v61 = vpop.f32.mrf.mxu1 }
 0x687   :  { %v2200_v26 = vadd.f32 %v2196_v61, %v2077_v63 }
 0x688   :  { %v6564_v55 = vadd.f32 %v2207_v43, %v2203_v40  ;;  %v8133_v43 = vld [vmem:[#allocation45_spill] sm:$0xff] }
 0x689   :  { %4732 = vtanh.f32 %v2200_v26  ;;  %v8135_v26 = vld [vmem:[#allocation55_spill] sm:$0xff] }
 0x68a   :  { %2323 = vmatmul.f32.vlgmr.msrb.gmra.mxu2 %v6564_v55  ;;  %2346 = vmatmul.f32.vlgmr.msra.gmra.mxu3 %v6564_v55  ;;  %4734 = vrcp.f32 %v2470_v3  ;;  %v8136_v3 = vld [vmem:[#allocation46_spill] sm:$0xff] }
 0x68b   :  { %2369 = vmatmul.f32.vlgmr.msra.gmra.mxu0 %v6564_v55  ;;  %2392 = vmatmul.f32.vlgmr.msrb.gmra.mxu1 %v6564_v55 }
 0x68c   :  { %2825 = vmatpush.msrb.mxu2 %v6271_v6  ;;  %2871 = vmatpush.msra.mxu0 %v6281_v50  ;;  %v8121_v50 = vld [vmem:[#allocation73_spill] sm:$0xff] }
 0x68d   :  { %2894 = vmatpush.msrb.mxu1 %v6369_v25  ;;  %v8126_v25 = vld [vmem:[#allocation63_spill] sm:$0xff] }
 0x68e   :  { %2872 = vmatpush.msra.mxu0 %v6283_v7  ;;  %v8122_v7 = vld [vmem:[#allocation67_spill] sm:$0xff] }
 0x68f   :  { %v4733_v21 = vpop.eup %4732  ;;  %2895 = vmatpush.msrb.mxu1 %v6392_v15  ;;  %v2478_v15 = vpop.permute.xlu2 %2477 }
 0x690   :  { %2873 = vmatpush.msra.mxu0 %v6290_v32  ;;  %v2208_v56 = vmul.f32 %v4733_v21, %v2206_v13  ;;  %v4735_v59 = vpop.eup %4734  ;;  %v8123_v32 = vld [vmem:[#allocation75_spill] sm:$0xff]  ;;  %v8137_v13 = vld [vmem:[#allocation66_spill] sm:$0xff] }
 0x691   :  { %2482 = vperm.xlu0 %4622, %v4735_v59   ;;  %2896 = vmatpush.msrb.mxu1 %v6403_v22 }
 0x692   :  { %2874 = vmatpush.msra.mxu0 %v6297_v23  ;;  %v6582_v6 = vadd.f32 %v2208_v56, %v2204_v17  ;;  %v8138_v56 = vld [vmem:[#allocation47_spill] sm:$0xff] }
 0x693   :  { %2897 = vmatpush.msrb.mxu1 %v6412_v49 }
 0x694   :  { %2875 = vmatpush.msra.mxu0 %v6304_v8  ;;  %2326 = vmatmul.f32.gmra.mxu2 %v6582_v6 }
 0x695   :  { %2349 = vmatmul.f32.gmra.mxu3 %v6582_v6  ;;  %2372 = vmatmul.f32.gmra.mxu0 %v6582_v6 }
 0x696   :  { %2395 = vmatmul.f32.gmra.mxu1 %v6582_v6  ;;  %2876 = vmatpush.msra.mxu0 %v6313_v9  ;;  %v6626_v9 = vld [vmem:[%s7774_s1 + $0x50] sm:$0xff] }
 0x697   :  { %2898 = vmatpush.msrb.mxu1 %v6422_v19 }
 0x698   :  { %2877 = vmatpush.msra.mxu0 %v6321_v60 }
 0x699   :  { %4627 = vset.pattern.permute.xlu0 %v8023_v46  ;;  %2899 = vmatpush.msrb.mxu1 %v6431_v2 }
 0x69a   :  { %2878 = vmatpush.msra.mxu0 %v6328_v28  ;;  %v8125_v28 = vld [vmem:[#allocation62_spill] sm:$0xff] }
 0x69b   :  { %2900 = vmatpush.msrb.mxu1 %v6440_v38  ;;  %v8128_v38 = vmov 0  }
 0x69c   :  { %2415 = vmatmul.f32.vlgmr.msra.gmra.mxu2 %v6564_v55  ;;  %2879 = vmatpush.msra.mxu0 %v6335_v58  ;;  %v2958_v58 = vsub.f32 %v6626_v9, %v8125_v28 }
 0x69d   :  { %2438 = vmatmul.f32.vlgmr.msrb.gmra.mxu3 %v6564_v55  ;;  %2901 = vmatpush.msrb.mxu1 %v6453_v10 }
 0x69e   :  { %2880 = vmatpush.msra.mxu0 %v6390_v51  ;;  %v2960_v22 = vand.u32 2147483647, %v2958_v58 }
 0x69f   :  { %2902 = vmatpush.msrb.mxu1 %v6462_v27  ;;  %v8124_v27 = vld [vmem:[#allocation31_spill] sm:$0xff] }
 0x6a0   :  { %2881 = vmatpush.msra.mxu0 %v6401_v37  ;;  %vm2962_vm14 = vcmp.lt.f32.partialorder %v2960_v22, 1e-12 }
 0x6a1   :  { %2903 = vmatpush.msrb.mxu1 %v6470_v39  ;;  %v8129_v39 = vmov 2  }
 0x6a2   :  { %2882 = vmatpush.msra.mxu0 %v6410_v41 }
 0x6a3   :  { %2904 = vmatpush.msrb.mxu1 %v8120_v52 }
 0x6a4   :  { %2418 = vmatmul.f32.gmra.mxu2 %v6582_v6  ;;  %2883 = vmatpush.msra.mxu0 %v6420_v47  ;;  %v8127_v47 = vld [vmem:[#allocation65_spill] sm:$0xff] }
 0x6a5   :  { %2441 = vmatmul.f32.gmra.mxu3 %v6582_v6  ;;  %2905 = vmatpush.msrb.mxu1 %v8122_v7 }
 0x6a6   :  { %2884 = vmatpush.msra.mxu0 %v8121_v50 }
 0x6a7   :  { %2906 = vmatpush.msrb.mxu1 %v6497_v53  ;;  %v2964_v53 = vsel %vm2962_vm14, 1.0, %v2958_v58 }
 0x6a8   :  { %2885 = vmatpush.msra.mxu0 %v8123_v32  ;;  %4736 = vrcp.f32 %v2964_v53 }
 0x6a9   :  { %2907 = vmatpush.msrb.mxu1 %v6501_v33 }
 0x6aa   :  { %2886 = vmatpush.msra.mxu0 %v8124_v27  ;;  %v8139_v27 = vld [vmem:[#allocation13_spill] sm:$0xff] }
 0x6ab   :  { %2908 = vmatpush.msrb.mxu1 %v6511_v44 }
 0x6ad   :  { %2909 = vmatpush.msrb.mxu1 %v6524_v48 }
 0x6ae   :  { %v4737_v33 = vpop.eup %4736 }
 0x703   :  { %v2483_v10 = vpop.permute.xlu0 %2482 }
 0x708   :  { %v2393_v40 = vpop.f32.mrf.mxu1 }
 0x709   :  { %v2453_v59 = vadd.f32 %v2393_v40, %v8138_v56  ;;  %v6698_v40 = vld [vmem:[#allocation9 + $0x2e0] sm:$0xff] }
 0x70a   :  { %2848 = vmatpush.msra.mxu3 %v6698_v40 }
 0x70d   :  { %v6619_v23 = vpop.f32.mrf.mxu3 }
 0x718   :  { %v6621_v8 = vpop.f32.mrf.mxu3 }
 0x720   :  { %v2439_v60 = vpop.f32.mrf.mxu3 }
 0x721   :  { %v6636_v34 = vadd.f32 %v6633_v62, %v2439_v60  ;;  %v8140_v60 = vld [vmem:[#allocation52_spill] sm:$0xff] }
 0x722   :  { %v281_v28 = vadd.f32 %v8140_v60, %v8139_v27  ;;  %v6724_v60 = vld [vmem:[#allocation9 + $0x1f0] sm:$0xff] }
 0x723   :  { %4548 = vst.msk [vmem:[%s7783_s10 + $0x30] sm:$0xff] %vm67_vm4, %v6636_v34  ;;  %v2471_v51 = vsub.f32 %v6636_v34, %v8126_v25 }
 0x725   :  { %v2485_v37 = vmul.f32 %v2478_v15, %v2471_v51  ;;  %v2396_v51 = vpop.f32.mrf.mxu1 }
 0x727   :  { %2504 = vperm.xlu2 %4624, %v2485_v37   ;;  %2489 = vperm.xlu1 %4623, %v2485_v37  }
 0x728   :  { %v2442_v41 = vpop.f32.mrf.mxu3 }
 0x729   :  { %v6646_v49 = vadd.f32 %v6633_v62, %v2442_v41 }
 0x72b   :  { %4549 = vst.msk [vmem:[%s7783_s10 + $0x38] sm:$0xff] %vm67_vm4, %v6646_v49  ;;  %v2472_v19 = vsub.f32 %v6646_v49, %v8127_v47  ;;  %v2456_v47 = vadd.f32 %v2396_v51, %v8138_v56  ;;  %v6730_v51 = vld [vmem:[#allocation9 + $0x1c0] sm:$0xff] }
 0x72d   :  { %v2486_v2 = vmul.f32 %v2483_v10, %v2472_v19 }
 0x72f   :  { %2508 = vperm.xlu0 %4627, %v2486_v2   ;;  %4626 = vset.pattern.permute.xlu2 %v8128_v38 }
 0x730   :  { %4625 = vset.pattern.permute.xlu1 %v8129_v39  ;;  %2494 = vperm.xlu2 %4626, %v2486_v2  }
 0x731   :  { %2524 = vperm.xlu1 %4625, %v2485_v37  }
 0x738   :  { %2972 = vperm.xlu2 %4626, %v4737_v33  }
 0x739   :  { %2528 = vperm.xlu1 %4625, %v2486_v2   ;;  %v8141_v2 = vld [vmem:[#allocation53_spill] sm:$0xff] }
 0x73a   :  { %v284_v33 = vadd.f32 %v8141_v2, %v8139_v27  ;;  %v6742_v2 = vld [vmem:[#allocation9 + $0x160] sm:$0xff] }
 0x741   :  { %4628 = vset.pattern.permute.xlu1 %v8128_v38 }
 0x781   :  { %v2505_v44 = vpop.permute.xlu2 %2504 }
 0x782   :  { %v2511_v12 = vmul.f32 %v2505_v44, %v8130_v16  ;;  %v2513_v20 = vmul.f32 %v2505_v44, %v8131_v0  ;;  %v2512_v24 = vmul.f32 %v2505_v44, %v8134_v18 }
 0x78a   :  { %v6672_v52 = vpop.permute.xlu2 %2494 }
 0x78b   :  { %v2501_v25 = vmul.f32 %v6672_v52, %v8133_v43 }
 0x799   :  { %v2490_v48 = vpop.permute.xlu1 %2489 }
 0x79a   :  { %v2497_v36 = vmul.f32 %v2490_v48, %v8132_v1  ;;  %v2499_v57 = vmul.f32 %v2490_v48, %v5406_v31  ;;  %v2498_v30 = vmul.f32 %v2490_v48, %v8133_v43 }
 0x79c   :  { %v2517_v63 = vadd.f32 %v2511_v12, %v2497_v36  ;;  %v2519_v54 = vadd.f32 %v2513_v20, %v2499_v57  ;;  %v2518_v29 = vadd.f32 %v2512_v24, %v2498_v30  ;;  %v6691_v57 = vld [vmem:[#allocation9 + $0x2a8] sm:$0xff]  ;;  %v6702_v30 = vld [vmem:[#allocation9 + $0x2b0] sm:$0xff]  ;;  %v6706_v24 = vld [vmem:[#allocation9 + $0x280] sm:$0xff] }
 0x79d   :  { %8142 = vst [vmem:[#allocation49_spill] sm:$0xff] %v6691_v57  ;;  %2826 = vmatpush.msrb.mxu2 %v6691_v57  ;;  %2849 = vmatpush.msra.mxu3 %v6702_v30 }
 0x79f   :  { %2850 = vmatpush.msra.mxu3 %v6706_v24 }
 0x7a1   :  { %v6665_v11 = vpop.permute.xlu0 %2508 }
 0x7a2   :  { %v2515_v32 = vmul.f32 %v6665_v11, %v8134_v18 }
 0x7a3   :  { %v2525_v61 = vpop.permute.xlu1 %2524 }
 0x7a4   :  { %v2531_v35 = vmul.f32 %v2525_v61, %v8135_v26  ;;  %v2532_v4 = vmul.f32 %v2525_v61, %v8136_v3  ;;  %v2533_v21 = vmul.f32 %v2525_v61, %v8137_v13  ;;  %v2521_v22 = vadd.f32 %v2515_v32, %v2501_v25  ;;  %v6710_v61 = vld [vmem:[#allocation9 + $0x1e8] sm:$0xff]  ;;  %v6728_v25 = vld [vmem:[#allocation9 + $0x158] sm:$0xff] }
 0x7a5   :  { %8146 = vst [vmem:[#allocation79_spill] sm:$0xff] %v6710_v61  ;;  %v6722_v32 = vld [vmem:[#allocation9 + $0x188] sm:$0xff] }
 0x7a6   :  { %v6669_v17 = vadd.f32 %v2531_v35, %v2517_v63  ;;  %v2538_v50 = vadd.f32 %v2532_v4, %v2518_v29  ;;  %v6674_v7 = vadd.f32 %v2533_v21, %v2519_v54  ;;  %v6693_v63 = vld [vmem:[#allocation9 + $0x278] sm:$0xff]  ;;  %v6712_v35 = vld [vmem:[#allocation9 + $0x250] sm:$0xff]  ;;  %v6718_v4 = vld [vmem:[#allocation9 + $0x220] sm:$0xff]  ;;  %8148 = vst [vmem:[#allocation81_spill] sm:$0xff] %v6722_v32 }
 0x7a7   :  { %8143 = vst [vmem:[#allocation76_spill] sm:$0xff] %v6693_v63  ;;  %2827 = vmatpush.msrb.mxu2 %v6693_v63  ;;  %v6716_v29 = vld [vmem:[#allocation9 + $0x1b8] sm:$0xff]  ;;  %2851 = vmatpush.msra.mxu3 %v6712_v35 }
 0x7a8   :  { %v2544_v58 = vadd.f32 %v2538_v50, %v2453_v59  ;;  %8147 = vst [vmem:[#allocation80_spill] sm:$0xff] %v6716_v29 }
 0x7a9   :  { %2852 = vmatpush.msra.mxu3 %v6718_v4  ;;  %8149 = vst [vmem:[#allocation82_spill] sm:$0xff] %v6728_v25 }
 0x7aa   :  { %v2568_v15 = vadd.f32 %v2544_v58, %v281_v28 }
 0x7ab   :  { %v6682_v37 = vpop.permute.xlu1 %2528  ;;  %2853 = vmatpush.msra.mxu3 %v6724_v60 }
 0x7ac   :  { %v2535_v41 = vmul.f32 %v6682_v37, %v8136_v3  ;;  %v2574_v10 = vadd.f32 %v2568_v15, %v6619_v23  ;;  %v6696_v23 = vld [vmem:[#allocation9 + $0x248] sm:$0xff] }
 0x7ad   :  { %8144 = vst [vmem:[#allocation77_spill] sm:$0xff] %v6696_v23  ;;  %2828 = vmatpush.msrb.mxu2 %v6696_v23  ;;  %2854 = vmatpush.msra.mxu3 %v6730_v51 }
 0x7ae   :  { %v2541_v19 = vadd.f32 %v2535_v41, %v2521_v22  ;;  %v4553_v53 = vmul.f32 -1.442695, %v2574_v10  ;;  %v6734_v10 = vld [vmem:[#allocation9 + $0x128] sm:$0xff] }
 0x7af   :  { %8150 = vst [vmem:[#allocation83_spill] sm:$0xff] %v6734_v10 }
 0x7b0   :  { %v2547_v44 = vadd.f32 %v2541_v19, %v2456_v47  ;;  %4738 = vpow2.f32 %v4553_v53  ;;  %v6736_v47 = vld [vmem:[#allocation9 + $0x190] sm:$0xff]  ;;  %v6740_v53 = vld [vmem:[#allocation9 + $0xf8] sm:$0xff] }
 0x7b1   :  { %8151 = vst [vmem:[#allocation32_spill] sm:$0xff] %v6740_v53  ;;  %2855 = vmatpush.msra.mxu3 %v6736_v47 }
 0x7b2   :  { %v2571_v48 = vadd.f32 %v2547_v44, %v284_v33 }
 0x7b3   :  { %2856 = vmatpush.msra.mxu3 %v6742_v2 }
 0x7b4   :  { %v2576_v12 = vadd.f32 %v2571_v48, %v6621_v8  ;;  %v6704_v8 = vld [vmem:[#allocation9 + $0x218] sm:$0xff]  ;;  %v6746_v48 = vld [vmem:[#allocation9 + $0xc8] sm:$0xff] }
 0x7b5   :  { %8145 = vst [vmem:[#allocation78_spill] sm:$0xff] %v6704_v8  ;;  %2829 = vmatpush.msrb.mxu2 %v6704_v8 }
 0x7b6   :  { %v4739_v20 = vpop.eup %4738  ;;  %v4555_v36 = vmul.f32 -1.442695, %v2576_v12  ;;  %8152 = vst [vmem:[#allocation33_spill] sm:$0xff] %v6746_v48 }
 0x7b7   :  { %v2590_v54 = vadd.f32 1.0, %v4739_v20  ;;  %2830 = vmatpush.msrb.mxu2 %v6710_v61  ;;  %v6794_v61 = vld [vmem:[#allocation9 + $0x130] sm:$0xff] }
 0x7b8   :  { %2857 = vmatpush.msra.mxu3 %v6794_v61 }
 0x7b9   :  { %4740 = vrcp.f32 %v2590_v54  ;;  %2831 = vmatpush.msrb.mxu2 %v6716_v29  ;;  %v2619_v15 = vand.u32 2147483648, %v2590_v54  ;;  %v2617_v41 = vand.u32 2147483647, %v2590_v54  ;;  %vm2613_vm0 = vweird.f32 %v2590_v54 }
 0x7ba   :  { %4742 = vpow2.f32 %v4555_v36 }
 0x7bb   :  { %2832 = vmatpush.msrb.mxu2 %v6722_v32  ;;  %v2620_v33 = vor.u32 1.1754944e-38, %v2619_v15  ;;  %vm2618_vm2 = vcmp.eq.f32.partialorder %v2617_v41, 8.507059e+37  ;;  %v6757_v41 = vld [vmem:[#allocation9 + $0x38] sm:$0xff] }
 0x7bc   :  { %8155 = vst [vmem:[#allocation51_spill] sm:$0xff] %v6757_v41 }
 0x7bd   :  { %2833 = vmatpush.msrb.mxu2 %v6728_v25 }
 0x7bf   :  { %v4741_v21 = vpop.eup %4740  ;;  %2834 = vmatpush.msrb.mxu2 %v6734_v10 }
 0x7c0   :  { %v4743_v59 = vpop.eup %4742  ;;  %v2609_v50 = vmul.f32 %v4741_v21, %v2590_v54  ;;  %vm2614_vm15 = vweird.f32 %v4741_v21 }
 0x7c1   :  { %v2592_v28 = vadd.f32 1.0, %v4743_v59  ;;  %vm2615_vm1 = vmor %vm2613_vm0, %vm2614_vm15  ;;  %2835 = vmatpush.msrb.mxu2 %v6740_v53  ;;  %v6751_v59 = vld [vmem:[#allocation9 + $0x98] sm:$0xff] }
 0x7c2   :  { %v2610_v58 = vsub.f32 1.0, %v2609_v50  ;;  %8153 = vst [vmem:[#allocation17_spill] sm:$0xff] %v6751_v59 }
 0x7c3   :  { %4744 = vrcp.f32 %v2592_v28  ;;  %2836 = vmatpush.msrb.mxu2 %v6746_v48  ;;  %vm2643_vm5 = vweird.f32 %v2592_v28 }
 0x7c4   :  { %v2611_v22 = vmul.f32 %v4741_v21, %v2610_v58  ;;  %v6754_v58 = vld [vmem:[#allocation9 + $0x68] sm:$0xff] }
 0x7c5   :  { %8154 = vst [vmem:[#allocation18_spill] sm:$0xff] %v6754_v58  ;;  %2837 = vmatpush.msrb.mxu2 %v6751_v59  ;;  %v8158_v59 = vld [vmem:[#allocation69_spill] sm:$0xff] }
 0x7c6   :  { %v2612_v19 = vadd.f32 %v4741_v21, %v2611_v22  ;;  %v2647_v22 = vand.u32 2147483647, %v2592_v28 }
 0x7c7   :  { %2838 = vmatpush.msrb.mxu2 %v6754_v58  ;;  %v8161_v58 = vld [vmem:[#allocation72_spill] sm:$0xff] }
 0x7c8   :  { %v2616_v44 = vsel %vm2615_vm1, %v4741_v21, %v2612_v19  ;;  %v2649_v21 = vand.u32 2147483648, %v2592_v28  ;;  %vm2648_vm7 = vcmp.eq.f32.partialorder %v2647_v22, 8.507059e+37  ;;  %v8164_v22 = vld [vmem:[#allocation15_spill] sm:$0xff] }
 0x7c9   :  { %v4745_v12 = vpop.eup %4744  ;;  %v2621_v20 = vsel %vm2618_vm2, %v2620_v33, %v2616_v44  ;;  %v6760_v33 = vld [vmem:[#allocation9 + $0x8] sm:$0xff]  ;;  %2839 = vmatpush.msrb.mxu2 %v6757_v41 }
 0x7ca   :  { %v2653_v36 = vmul.f32 %v2621_v20, %v6564_v55  ;;  %v2639_v54 = vmul.f32 %v4745_v12, %v2592_v28  ;;  %vm2644_vm3 = vweird.f32 %v4745_v12  ;;  %8156 = vst [vmem:[#allocation73_spill] sm:$0xff] %v6760_v33  ;;  %v2650_v44 = vor.u32 1.1754944e-38, %v2649_v21  ;;  %v8160_v28 = vld [vmem:[#allocation71_spill] sm:$0xff]  ;;  %v8162_v21 = vld [vmem:[#allocation74_spill] sm:$0xff] }
 0x7cb   :  { %vm2645_vm6 = vmor %vm2643_vm5, %vm2644_vm3  ;;  %2840 = vmatpush.msrb.mxu2 %v6760_v33  ;;  %v2324_v33 = vpop.f32.mrf.mxu2 }
 0x7cc   :  { %2687 = vmatmul.f32.vlgmr.msrb.gmra.mxu0 %v2653_v36  ;;  %v2640_v50 = vsub.f32 1.0, %v2639_v54 }
 0x7ce   :  { %v2641_v15 = vmul.f32 %v4745_v12, %v2640_v50  ;;  %v8157_v50 = vld [vmem:[#allocation68_spill] sm:$0xff] }
 0x7cf   :  { %2917 = vmatpush.msra.mxu2 %v8157_v50  ;;  %v8171_v50 = vld [vmem:[#allocation48_spill] sm:$0xff] }
 0x7d0   :  { %v2642_v19 = vadd.f32 %v4745_v12, %v2641_v15  ;;  %v8159_v15 = vld [vmem:[#allocation70_spill] sm:$0xff] }
 0x7d1   :  { %2918 = vmatpush.msra.mxu2 %v8158_v59  ;;  %v8169_v59 = vld [vmem:[#allocation27_spill] sm:$0xff] }
 0x7d2   :  { %v2646_v20 = vsel %vm2645_vm6, %v4745_v12, %v2642_v19  ;;  %v8163_v12 = vld [vmem:[#allocation30_spill] sm:$0xff]  ;;  %v8165_v19 = vld [vmem:[#allocation16_spill] sm:$0xff] }
 0x7d3   :  { %v2651_v36 = vsel %vm2648_vm7, %v2650_v44, %v2646_v20  ;;  %2919 = vmatpush.msra.mxu2 %v8159_v15  ;;  %v8166_v44 = vld [vmem:[#allocation50_spill] sm:$0xff]  ;;  %v8167_v20 = vld [vmem:[#allocation64_spill] sm:$0xff]  ;;  %v8172_v15 = vld [vmem:[#allocation57_spill] sm:$0xff]  ;;  %v2327_v10 = vpop.f32.mrf.mxu2 }
 0x7d4   :  { %v2654_v54 = vmul.f32 %v2651_v36, %v6582_v6  ;;  %v8168_v36 = vld [vmem:[#allocation28_spill] sm:$0xff] }
 0x7d5   :  { %2920 = vmatpush.msra.mxu2 %v8160_v28 }
 0x7d6   :  { %2690 = vmatmul.f32.gmra.mxu0 %v2654_v54  ;;  %v8170_v54 = vld [vmem:[#allocation29_spill] sm:$0xff] }
 0x7d7   :  { %2921 = vmatpush.msra.mxu2 %v8161_v58  ;;  %v2370_v58 = vpop.f32.mrf.mxu0 }
 0x7d8   :  { %v2452_v28 = vadd.f32 %v2370_v58, %v8172_v15 }
 0x7d9   :  { %2922 = vmatpush.msra.mxu2 %v8162_v21  ;;  %v2514_v21 = vmul.f32 %v6665_v11, %v8130_v16 }
 0x7db   :  { %2923 = vmatpush.msra.mxu2 %v8163_v12  ;;  %v2543_v12 = vadd.f32 %v6669_v17, %v2452_v28  ;;  %v8175_v17 = vld [vmem:[#allocation35_spill] sm:$0xff] }
 0x7dd   :  { %2924 = vmatpush.msra.mxu2 %v8164_v22  ;;  %v8173_v22 = vld [vmem:[#allocation14_spill] sm:$0xff] }
 0x7de   :  { %v219_v28 = vadd.f32 %v8175_v17, %v8173_v22 }
 0x7df   :  { %2925 = vmatpush.msra.mxu2 %v8165_v19  ;;  %v8174_v19 = vld [vmem:[#allocation34_spill] sm:$0xff] }
 0x7e1   :  { %2926 = vmatpush.msra.mxu2 %v8166_v44  ;;  %v216_v44 = vadd.f32 %v8174_v19, %v8173_v22  ;;  %v2536_v22 = vmul.f32 %v6682_v37, %v8137_v13 }
 0x7e3   :  { %2927 = vmatpush.msra.mxu2 %v8167_v20  ;;  %v2500_v20 = vmul.f32 %v6672_v52, %v8132_v1 }
 0x7e5   :  { %2928 = vmatpush.msra.mxu2 %v8168_v36  ;;  %v2534_v36 = vmul.f32 %v6682_v37, %v8135_v26 }
 0x7e7   :  { %2929 = vmatpush.msra.mxu2 %v8169_v59  ;;  %v2520_v59 = vadd.f32 %v2514_v21, %v2500_v20  ;;  %v6797_v21 = vld [vmem:[#allocation9 + $0x100] sm:$0xff]  ;;  %v2416_v20 = vpop.f32.mrf.mxu2 }
 0x7e8   :  { %2858 = vmatpush.msra.mxu3 %v6797_v21 }
 0x7e9   :  { %2930 = vmatpush.msra.mxu2 %v8170_v54  ;;  %v2567_v54 = vadd.f32 %v2543_v12, %v216_v44 }
 0x7eb   :  { %2931 = vmatpush.msra.mxu2 %v8171_v50  ;;  %v2540_v50 = vadd.f32 %v2534_v36, %v2520_v59  ;;  %v2573_v41 = vadd.f32 %v2567_v54, %v2324_v33  ;;  %v6800_v33 = vld [vmem:[#allocation9 + $0xd0] sm:$0xff]  ;;  %v2454_v54 = vadd.f32 %v2416_v20, %v5715_v42 }
 0x7ec   :  { %2859 = vmatpush.msra.mxu3 %v6800_v33 }
 0x7ed   :  { %2932 = vmatpush.msra.mxu2 %v6531_v45  ;;  %v2373_v45 = vpop.f32.mrf.mxu0  ;;  %v4552_v53 = vmul.f32 -1.442695, %v2573_v41 }
 0x7ee   :  { %v2455_v58 = vadd.f32 %v2373_v45, %v8172_v15 }
 0x7ef   :  { %4746 = vpow2.f32 %v4552_v53  ;;  %v6809_v53 = vld [vmem:[#allocation9 + $0x40] sm:$0xff]  ;;  %v2419_v8 = vpop.f32.mrf.mxu2 }
 0x7f0   :  { %v2546_v48 = vadd.f32 %v2540_v50, %v2455_v58  ;;  %v2516_v50 = vmul.f32 %v6665_v11, %v8131_v0  ;;  %v2545_v58 = vadd.f32 %v6674_v7, %v2454_v54  ;;  %v2457_v57 = vadd.f32 %v2419_v8, %v5715_v42 }
 0x7f2   :  { %v2570_v19 = vadd.f32 %v2546_v48, %v219_v28  ;;  %v6803_v48 = vld [vmem:[#allocation9 + $0xa0] sm:$0xff]  ;;  %v8176_v28 = vld [vmem:[#allocation19_spill] sm:$0xff] }
 0x7f3   :  { %2860 = vmatpush.msra.mxu3 %v6803_v48 }
 0x7f4   :  { %v2575_v25 = vadd.f32 %v2570_v19, %v2327_v10  ;;  %v346_v19 = vadd.f32 %v8176_v28, %v5212_v5 }
 0x7f5   :  { %v4747_v32 = vpop.eup %4746 }
 0x7f6   :  { %v4554_v29 = vmul.f32 -1.442695, %v2575_v25  ;;  %v2589_v12 = vadd.f32 1.0, %v4747_v32  ;;  %v6806_v25 = vld [vmem:[#allocation9 + $0x70] sm:$0xff]  ;;  %v2569_v20 = vadd.f32 %v2545_v58, %v346_v19 }
 0x7f7   :  { %2861 = vmatpush.msra.mxu3 %v6806_v25  ;;  %v6812_v32 = vld [vmem:[#allocation9 + $0x10] sm:$0xff] }
 0x7f8   :  { %4748 = vpow2.f32 %v4554_v29  ;;  %vm2598_vm9 = vweird.f32 %v2589_v12  ;;  %v2602_v11 = vand.u32 2147483647, %v2589_v12 }
 0x7f9   :  { %4750 = vrcp.f32 %v2589_v12  ;;  %2862 = vmatpush.msra.mxu3 %v6809_v53 }
 0x7fa   :  { %vm2603_vm11 = vcmp.eq.f32.partialorder %v2602_v11, 8.507059e+37 }
 0x7fb   :  { %2863 = vmatpush.msra.mxu3 %v6812_v32 }
 0x7fe   :  { %v4749_v10 = vpop.eup %4748 }
 0x7ff   :  { %v4751_v29 = vpop.eup %4750  ;;  %v2591_v41 = vadd.f32 1.0, %v4749_v10  ;;  %v2502_v10 = vmul.f32 %v6672_v52, %v5406_v31 }
 0x800   :  { %v2594_v44 = vmul.f32 %v4751_v29, %v2589_v12  ;;  %vm2599_vm8 = vweird.f32 %v4751_v29 }
 0x801   :  { %4752 = vrcp.f32 %v2591_v41  ;;  %v2522_v15 = vadd.f32 %v2516_v50, %v2502_v10  ;;  %vm2600_vm10 = vmor %vm2598_vm9, %vm2599_vm8  ;;  %v8177_v50 = vld [vmem:[#allocation20_spill] sm:$0xff]  ;;  %v2634_v8 = vand.u32 2147483648, %v2591_v41  ;;  %vm2628_vm13 = vweird.f32 %v2591_v41 }
 0x802   :  { %v2595_v36 = vsub.f32 1.0, %v2594_v44  ;;  %v349_v58 = vadd.f32 %v8177_v50, %v5212_v5  ;;  %v3159_v50 = vld [vmem:[%s7777_s4 + $0x48] sm:$0xff] }
 0x803   :  { %v2542_v54 = vadd.f32 %v2536_v22, %v2522_v15  ;;  %v6831_v15 = vld [vmem:[%s7774_s1 + $0x58] sm:$0xff] }
 0x804   :  { %v2596_v45 = vmul.f32 %v4751_v29, %v2595_v36  ;;  %v2604_v36 = vand.u32 2147483648, %v2589_v12 }
 0x805   :  { %v2548_v27 = vadd.f32 %v2542_v54, %v2457_v57 }
 0x806   :  { %v2597_v44 = vadd.f32 %v4751_v29, %v2596_v45  ;;  %v2605_v52 = vor.u32 1.1754944e-38, %v2604_v36 }
 0x807   :  { %v4753_v59 = vpop.eup %4752  ;;  %v2572_v22 = vadd.f32 %v2548_v27, %v349_v58 }
 0x808   :  { %v2624_v17 = vmul.f32 %v4753_v59, %v2591_v41  ;;  %v2601_v28 = vsel %vm2600_vm10, %v4751_v29, %v2597_v44  ;;  %vm2629_vm12 = vweird.f32 %v4753_v59  ;;  %v2632_v29 = vand.u32 2147483647, %v2591_v41 }
 0x809   :  { %v2606_v45 = vsel %vm2603_vm11, %v2605_v52, %v2601_v28  ;;  %vm2630_vm14 = vmor %vm2628_vm13, %vm2629_vm12 }
 0x80a   :  { %v2625_v7 = vsub.f32 1.0, %v2624_v17  ;;  %v2700_v19 = vsub.f32 1.0, %v2606_v45  ;;  %v2698_v12 = vmul.f32 %v2606_v45, %v6564_v55  ;;  %vm2633_vm0 = vcmp.eq.f32.partialorder %v2632_v29, 8.507059e+37  ;;  %v3160_v45 = vld [vmem:[%s7777_s4 + $0x50] sm:$0xff] }
 0x80c   :  { %v2626_v37 = vmul.f32 %v4753_v59, %v2625_v7  ;;  %v2635_v7 = vor.u32 1.1754944e-38, %v2634_v8 }
 0x80e   :  { %v2627_v10 = vadd.f32 %v4753_v59, %v2626_v37  ;;  %v3161_v37 = vld [vmem:[%s7777_s4 + $0x58] sm:$0xff] }
 0x810   :  { %v2631_v11 = vsel %vm2630_vm14, %v4753_v59, %v2627_v10  ;;  %v3157_v10 = vld [vmem:[%s7777_s4 + $0x38] sm:$0xff] }
 0x811   :  { %v2636_v55 = vsel %vm2633_vm0, %v2635_v7, %v2631_v11 }
 0x812   :  { %v2701_v27 = vsub.f32 1.0, %v2636_v55  ;;  %v2699_v59 = vmul.f32 %v2636_v55, %v6582_v6 }
 0x849   :  { %v2688_v23 = vpop.f32.mrf.mxu0 }
 0x84a   :  { %v2694_v63 = vadd.f32 %v2688_v23, %v2569_v20 }
 0x84c   :  { %4754 = vtanh.f32 %v2694_v63  ;;  %v2959_v63 = vsub.f32 %v6831_v15, %v6555_v14 }
 0x84e   :  { %v2961_v20 = vand.u32 2147483647, %v2959_v63 }
 0x850   :  { %vm2963_vm15 = vcmp.lt.f32.partialorder %v2961_v20, 1e-12 }
 0x851   :  { %v2965_v14 = vsel %vm2963_vm15, 1.0, %v2959_v63 }
 0x852   :  { %v4755_v23 = vpop.eup %4754 }
 0x853   :  { %v2702_v57 = vmul.f32 %v4755_v23, %v2700_v19  ;;  %v2691_v17 = vpop.f32.mrf.mxu0  ;;  %v3158_v19 = vld [vmem:[%s7777_s4 + $0x40] sm:$0xff] }
 0x854   :  { %v2695_v44 = vadd.f32 %v2691_v17, %v2572_v22 }
 0x855   :  { %v6836_v36 = vadd.f32 %v2702_v57, %v2698_v12  ;;  %v3156_v57 = vld [vmem:[%s7777_s4 + $0x30] sm:$0xff] }
 0x856   :  { %4756 = vtanh.f32 %v2695_v44 }
 0x857   :  { %2818 = vmatmul.f32.vlgmr.msra.gmra.mxu1 %v6836_v36  ;;  %2841 = vmatmul.f32.vlgmr.msrb.gmra.mxu2 %v6836_v36  ;;  %4758 = vrcp.f32 %v2965_v14  ;;  %v3155_v14 = vld [vmem:[%s7777_s4 + $0x28] sm:$0xff] }
 0x858   :  { %2864 = vmatmul.f32.vlgmr.msra.gmra.mxu3 %v6836_v36  ;;  %2887 = vmatmul.f32.vlgmr.msra.gmra.mxu0 %v6836_v36 }
 0x859   :  { %3343 = vmatpush.msrb.mxu2 %v6698_v40 }
 0x85b   :  { %3344 = vmatpush.msrb.mxu2 %v6702_v30  ;;  %v6877_v30 = vld [vmem:[%s7774_s1 + $0x60] sm:$0xff] }
 0x85c   :  { %v4757_v41 = vpop.eup %4756  ;;  %8178 = vst [vmem:[#allocation67_spill] sm:$0xff] %v6877_v30 }
 0x85d   :  { %v2703_v54 = vmul.f32 %v4757_v41, %v2701_v27  ;;  %3345 = vmatpush.msrb.mxu2 %v6706_v24  ;;  %v4759_v28 = vpop.eup %4758 }
 0x85e   :  { %2977 = vperm.xlu1 %4628, %v4759_v28   ;;  %v3153_v28 = vld [vmem:[%s7777_s4 + $0x18] sm:$0xff] }
 0x85f   :  { %v6846_v52 = vadd.f32 %v2703_v54, %v2699_v59  ;;  %3346 = vmatpush.msrb.mxu2 %v6712_v35  ;;  %v3453_v35 = vsub.f32 %v6877_v30, %v6626_v9  ;;  %v3154_v54 = vld [vmem:[%s7777_s4 + $0x20] sm:$0xff] }
 0x861   :  { %2821 = vmatmul.f32.gmra.mxu1 %v6846_v52  ;;  %2844 = vmatmul.f32.gmra.mxu2 %v6846_v52 }
 0x862   :  { %2867 = vmatmul.f32.gmra.mxu3 %v6846_v52  ;;  %2890 = vmatmul.f32.gmra.mxu0 %v6846_v52 }
 0x863   :  { %3347 = vmatpush.msrb.mxu2 %v6718_v4 }
 0x865   :  { %3348 = vmatpush.msrb.mxu2 %v6724_v60  ;;  %v2973_v60 = vpop.permute.xlu2 %2972 }
 0x866   :  { %4629 = vset.pattern.permute.xlu1 %v8129_v39 }
 0x867   :  { %3349 = vmatpush.msrb.mxu2 %v6730_v51 }
 0x869   :  { %2910 = vmatmul.f32.vlgmr.msrb.gmra.mxu1 %v6836_v36  ;;  %2933 = vmatmul.f32.vlgmr.msra.gmra.mxu2 %v6836_v36 }
 0x86a   :  { %3350 = vmatpush.msrb.mxu2 %v6736_v47  ;;  %v3455_v47 = vand.u32 2147483647, %v3453_v35 }
 0x86c   :  { %3351 = vmatpush.msrb.mxu2 %v6742_v2  ;;  %vm3457_vm1 = vcmp.lt.f32.partialorder %v3455_v47, 1e-12  ;;  %v3152_v47 = vld [vmem:[%s7777_s4 + $0x10] sm:$0xff] }
 0x86e   :  { %3352 = vmatpush.msrb.mxu2 %v6794_v61 }
 0x870   :  { %3353 = vmatpush.msrb.mxu2 %v6797_v21 }
 0x871   :  { %2913 = vmatmul.f32.gmra.mxu1 %v6846_v52  ;;  %2936 = vmatmul.f32.gmra.mxu2 %v6846_v52 }
 0x872   :  { %3354 = vmatpush.msrb.mxu2 %v6800_v33  ;;  %v3459_v33 = vsel %vm3457_vm1, 1.0, %v3453_v35 }
 0x873   :  { %4760 = vrcp.f32 %v3459_v33 }
 0x874   :  { %3355 = vmatpush.msrb.mxu2 %v6803_v48 }
 0x876   :  { %3356 = vmatpush.msrb.mxu2 %v6806_v25 }
 0x878   :  { %3357 = vmatpush.msrb.mxu2 %v6809_v53  ;;  %v3163_v53 = vld [vmem:[%s7777_s4 + $0x68] sm:$0xff] }
 0x879   :  { %v4761_v25 = vpop.eup %4760 }
 0x87a   :  { %3358 = vmatpush.msrb.mxu2 %v6812_v32  ;;  %v3162_v32 = vld [vmem:[%s7777_s4 + $0x60] sm:$0xff] }
 0x8d0   :  { %v2978_v9 = vpop.permute.xlu1 %2977 }
 0x8d5   :  { %v2888_v23 = vpop.f32.mrf.mxu0 }
 0x8da   :  { %v6870_v6 = vpop.f32.mrf.mxu2 }
 0x8e4   :  { %v6872_v40 = vpop.f32.mrf.mxu2 }
 0x8ec   :  { %v2934_v24 = vpop.f32.mrf.mxu2 }
 0x8ed   :  { %v6880_v61 = vadd.f32 %v6633_v62, %v2934_v24  ;;  %v2948_v24 = vadd.f32 %v2888_v23, %v8138_v56 }
 0x8ef   :  { %8179 = vst [vmem:[#allocation75_spill] sm:$0xff] %v6880_v61  ;;  %v2966_v4 = vsub.f32 %v6880_v61, %v6636_v34 }
 0x8f0   :  { %4556 = vst.msk [vmem:[%s7783_s10 + $0x40] sm:$0xff] %vm67_vm4, %v6880_v61  ;;  %v7187_v61 = vld [vmem:[#allocation9 + $0x148] sm:$0xff] }
 0x8f1   :  { %v2980_v51 = vmul.f32 %v2973_v60, %v2966_v4  ;;  %8215 = vst [vmem:[#allocation30_spill] sm:$0xff] %v7187_v61 }
 0x8f3   :  { %3019 = vperm.xlu1 %4629, %v2980_v51   ;;  %2999 = vperm.xlu0 %4627, %v2980_v51  }
 0x8f4   :  { %2984 = vperm.xlu2 %4626, %v2980_v51   ;;  %v2937_v2 = vpop.f32.mrf.mxu2 }
 0x8f5   :  { %v6892_v21 = vadd.f32 %v6633_v62, %v2937_v2  ;;  %v3165_v62 = vld [vmem:[%s7777_s4 + $0x78] sm:$0xff] }
 0x8f6   :  { %3166 = vmatpush.msrb.mxu3 %v3165_v62  ;;  %3661 = vmatpush.msra.mxu2 %v3165_v62  ;;  %v8181_v2 = vld [vmem:[#allocation13_spill] sm:$0xff]  ;;  %v3151_v62 = vld [vmem:[%s7777_s4 + $0x8] sm:$0xff] }
 0x8f7   :  { %8180 = vst [vmem:[#allocation31_spill] sm:$0xff] %v6892_v21  ;;  %v2967_v34 = vsub.f32 %v6892_v21, %v6646_v49  ;;  %v3164_v49 = vld [vmem:[%s7777_s4 + $0x70] sm:$0xff] }
 0x8f8   :  { %4557 = vst.msk [vmem:[%s7783_s10 + $0x48] sm:$0xff] %vm67_vm4, %v6892_v21  ;;  %3167 = vmatpush.msrb.mxu3 %v3164_v49  ;;  %3662 = vmatpush.msra.mxu2 %v3164_v49 }
 0x8f9   :  { %v2981_v48 = vmul.f32 %v2978_v9, %v2967_v34  ;;  %v8182_v9 = vld [vmem:[#allocation54_spill] sm:$0xff] }
 0x8fa   :  { %3168 = vmatpush.msrb.mxu3 %v3163_v53  ;;  %3663 = vmatpush.msra.mxu2 %v3163_v53  ;;  %v287_v34 = vadd.f32 %v8182_v9, %v8181_v2 }
 0x8fb   :  { %3023 = vperm.xlu1 %4629, %v2981_v48   ;;  %3003 = vperm.xlu0 %4627, %v2981_v48  }
 0x8fc   :  { %2989 = vperm.xlu2 %4626, %v2981_v48   ;;  %3169 = vmatpush.msrb.mxu3 %v3162_v32 }
 0x8fd   :  { %3664 = vmatpush.msra.mxu2 %v3162_v32 }
 0x8fe   :  { %3170 = vmatpush.msrb.mxu3 %v3161_v37 }
 0x8ff   :  { %3665 = vmatpush.msra.mxu2 %v3161_v37  ;;  %v2891_v37 = vpop.f32.mrf.mxu0 }
 0x900   :  { %3171 = vmatpush.msrb.mxu3 %v3160_v45 }
 0x901   :  { %3666 = vmatpush.msra.mxu2 %v3160_v45  ;;  %v3150_v45 = vld [vmem:[%s7777_s4] sm:$0xff] }
 0x902   :  { %3172 = vmatpush.msrb.mxu3 %v3159_v50 }
 0x903   :  { %4630 = vset.pattern.permute.xlu0 %v8128_v38  ;;  %4631 = vset.pattern.permute.xlu1 %v8128_v38  ;;  %v8203_v38 = vld [vmem:[#allocation37_spill] sm:$0xff] }
 0x904   :  { %3467 = vperm.xlu2 %4626, %v4761_v25   ;;  %3667 = vmatpush.msra.mxu2 %v3159_v50 }
 0x905   :  { %3173 = vmatpush.msrb.mxu3 %v3158_v19 }
 0x906   :  { %3668 = vmatpush.msra.mxu2 %v3158_v19 }
 0x907   :  { %3174 = vmatpush.msrb.mxu3 %v3157_v10 }
 0x908   :  { %3669 = vmatpush.msra.mxu2 %v3157_v10  ;;  %v2951_v10 = vadd.f32 %v2891_v37, %v8138_v56  ;;  %v8188_v37 = vld [vmem:[#allocation79_spill] sm:$0xff] }
 0x909   :  { %3175 = vmatpush.msrb.mxu3 %v3156_v57 }
 0x90a   :  { %3670 = vmatpush.msra.mxu2 %v3156_v57 }
 0x90b   :  { %3176 = vmatpush.msrb.mxu3 %v3155_v14 }
 0x90c   :  { %4632 = vset.pattern.permute.xlu2 %v8023_v46  ;;  %3671 = vmatpush.msra.mxu2 %v3155_v14  ;;  %v6993_v14 = vld [vmem:[#allocation9 + $0x270] sm:$0xff] }
 0x90d   :  { %3177 = vmatpush.msrb.mxu3 %v3154_v54 }
 0x90e   :  { %3672 = vmatpush.msra.mxu2 %v3154_v54  ;;  %v7006_v54 = vld [vmem:[#allocation9 + $0x288] sm:$0xff] }
 0x90f   :  { %3178 = vmatpush.msrb.mxu3 %v3153_v28 }
 0x910   :  { %3673 = vmatpush.msra.mxu2 %v3153_v28  ;;  %v7008_v28 = vld [vmem:[#allocation9 + $0x210] sm:$0xff] }
 0x911   :  { %3179 = vmatpush.msrb.mxu3 %v3152_v47 }
 0x912   :  { %3674 = vmatpush.msra.mxu2 %v3152_v47  ;;  %v7015_v47 = vld [vmem:[#allocation9 + $0x1e0] sm:$0xff] }
 0x913   :  { %3180 = vmatpush.msrb.mxu3 %v3151_v62 }
 0x914   :  { %3675 = vmatpush.msra.mxu2 %v3151_v62 }
 0x915   :  { %3181 = vmatpush.msrb.mxu3 %v3150_v45 }
 0x916   :  { %3676 = vmatpush.msra.mxu2 %v3150_v45  ;;  %v7029_v45 = vld [vmem:[#allocation9 + $0x1f8] sm:$0xff] }
 0x94e   :  { %v2985_v58 = vpop.permute.xlu2 %2984 }
 0x94f   :  { %v2992_v22 = vmul.f32 %v2985_v58, %v8132_v1  ;;  %v2993_v8 = vmul.f32 %v2985_v58, %v8133_v43  ;;  %v2994_v29 = vmul.f32 %v2985_v58, %v5406_v31 }
 0x956   :  { %v6957_v51 = vpop.permute.xlu2 %2989 }
 0x957   :  { %v2996_v49 = vmul.f32 %v6957_v51, %v8133_v43  ;;  %v2819_v43 = vpop.f32.mrf.mxu1 }
 0x965   :  { %v3000_v63 = vpop.permute.xlu0 %2999  ;;  %v3020_v12 = vpop.permute.xlu1 %3019 }
 0x966   :  { %v3006_v17 = vmul.f32 %v3000_v63, %v8130_v16  ;;  %v3007_v44 = vmul.f32 %v3000_v63, %v8134_v18  ;;  %v3008_v20 = vmul.f32 %v3000_v63, %v8131_v0  ;;  %v3026_v11 = vmul.f32 %v3020_v12, %v8135_v26 }
 0x967   :  { %v3027_v7 = vmul.f32 %v3020_v12, %v8136_v3  ;;  %v3028_v59 = vmul.f32 %v3020_v12, %v8137_v13 }
 0x968   :  { %v3012_v55 = vadd.f32 %v3006_v17, %v2992_v22  ;;  %v3013_v27 = vadd.f32 %v3007_v44, %v2993_v8  ;;  %v3014_v41 = vadd.f32 %v3008_v20, %v2994_v29  ;;  %v8183_v8 = vld [vmem:[#allocation56_spill] sm:$0xff]  ;;  %v6985_v44 = vld [vmem:[#allocation9 + $0x2d0] sm:$0xff]  ;;  %v6987_v20 = vld [vmem:[#allocation9 + $0x2d8] sm:$0xff] }
 0x969   :  { %v290_v63 = vadd.f32 %v8183_v8, %v8181_v2  ;;  %3297 = vmatpush.msrb.mxu0 %v6985_v44  ;;  %3320 = vmatpush.msra.mxu1 %v6987_v20  ;;  %v8197_v2 = vld [vmem:[#allocation51_spill] sm:$0xff] }
 0x96a   :  { %v6953_v35 = vadd.f32 %v3026_v11, %v3012_v55  ;;  %v3033_v4 = vadd.f32 %v3027_v7, %v3013_v27  ;;  %v6955_v60 = vadd.f32 %v3028_v59, %v3014_v41  ;;  %v6989_v11 = vld [vmem:[#allocation9 + $0x2a0] sm:$0xff]  ;;  %v8184_v55 = vld [vmem:[#allocation49_spill] sm:$0xff]  ;;  %v6999_v27 = vld [vmem:[#allocation9 + $0x2b8] sm:$0xff] }
 0x96b   :  { %3298 = vmatpush.msrb.mxu0 %v6989_v11  ;;  %3321 = vmatpush.msra.mxu1 %v8184_v55  ;;  %v7001_v41 = vld [vmem:[#allocation9 + $0x240] sm:$0xff]  ;;  %v8191_v55 = vld [vmem:[#allocation82_spill] sm:$0xff] }
 0x96c   :  { %v3039_v33 = vadd.f32 %v3033_v4, %v2948_v24  ;;  %v8185_v59 = vld [vmem:[#allocation76_spill] sm:$0xff]  ;;  %v8186_v24 = vld [vmem:[#allocation77_spill] sm:$0xff]  ;;  %v7013_v4 = vld [vmem:[#allocation9 + $0x258] sm:$0xff] }
 0x96d   :  { %v6964_v48 = vpop.permute.xlu0 %3003  ;;  %v6966_v25 = vpop.permute.xlu1 %3023  ;;  %3299 = vmatpush.msrb.mxu0 %v6993_v14  ;;  %3322 = vmatpush.msra.mxu1 %v8185_v59  ;;  %v7051_v59 = vld [vmem:[#allocation9 + $0x168] sm:$0xff] }
 0x96e   :  { %v3063_v53 = vadd.f32 %v3039_v33, %v287_v34  ;;  %v3010_v32 = vmul.f32 %v6964_v48, %v8134_v18  ;;  %v3030_v19 = vmul.f32 %v6966_v25, %v8136_v3  ;;  %v8187_v34 = vld [vmem:[#allocation78_spill] sm:$0xff]  ;;  %v7020_v33 = vld [vmem:[#allocation9 + $0x228] sm:$0xff]  ;;  %v3029_v3 = vmul.f32 %v6966_v25, %v8135_v26  ;;  %v7178_v26 = vld [vmem:[#allocation9 + $0x178] sm:$0xff] }
 0x96f   :  { %3300 = vmatpush.msrb.mxu0 %v7001_v41  ;;  %3323 = vmatpush.msra.mxu1 %v8186_v24  ;;  %8214 = vst [vmem:[#allocation74_spill] sm:$0xff] %v7178_v26 }
 0x970   :  { %v3069_v50 = vadd.f32 %v3063_v53, %v6870_v6  ;;  %v3016_v58 = vadd.f32 %v3010_v32, %v2996_v49  ;;  %v7022_v53 = vld [vmem:[#allocation9 + $0x1b0] sm:$0xff] }
 0x971   :  { %3301 = vmatpush.msrb.mxu0 %v7008_v28  ;;  %3324 = vmatpush.msra.mxu1 %v8187_v34  ;;  %v7053_v34 = vld [vmem:[#allocation9 + $0xf0] sm:$0xff] }
 0x972   :  { %v4561_v23 = vmul.f32 -1.442695, %v3069_v50  ;;  %v3036_v22 = vadd.f32 %v3030_v19, %v3016_v58  ;;  %v7031_v58 = vld [vmem:[#allocation9 + $0x180] sm:$0xff] }
 0x973   :  { %3302 = vmatpush.msrb.mxu0 %v7015_v47  ;;  %3325 = vmatpush.msra.mxu1 %v8188_v37 }
 0x974   :  { %v3042_v12 = vadd.f32 %v3036_v22, %v2951_v10  ;;  %4762 = vpow2.f32 %v4561_v23  ;;  %v8189_v10 = vld [vmem:[#allocation80_spill] sm:$0xff]  ;;  %v7037_v23 = vld [vmem:[#allocation9 + $0x1c8] sm:$0xff] }
 0x975   :  { %3303 = vmatpush.msrb.mxu0 %v7022_v53  ;;  %3326 = vmatpush.msra.mxu1 %v8189_v10 }
 0x976   :  { %v3066_v57 = vadd.f32 %v3042_v12, %v290_v63  ;;  %v7039_v63 = vld [vmem:[#allocation9 + $0x150] sm:$0xff]  ;;  %v8190_v12 = vld [vmem:[#allocation81_spill] sm:$0xff] }
 0x977   :  { %3304 = vmatpush.msrb.mxu0 %v7031_v58  ;;  %3327 = vmatpush.msra.mxu1 %v8190_v12  ;;  %v8194_v12 = vld [vmem:[#allocation33_spill] sm:$0xff] }
 0x978   :  { %v3071_v6 = vadd.f32 %v3066_v57, %v6872_v40  ;;  %v6997_v40 = vld [vmem:[#allocation9 + $0x2e8] sm:$0xff]  ;;  %v7044_v57 = vld [vmem:[#allocation9 + $0x198] sm:$0xff] }
 0x979   :  { %3366 = vmatpush.msra.mxu3 %v6997_v40  ;;  %3305 = vmatpush.msrb.mxu0 %v7039_v63 }
 0x97a   :  { %v4763_v29 = vpop.eup %4762  ;;  %v4563_v17 = vmul.f32 -1.442695, %v3071_v6  ;;  %3328 = vmatpush.msra.mxu1 %v8191_v55  ;;  %v7071_v55 = vld [vmem:[#allocation9 + $0x60] sm:$0xff] }
 0x97b   :  { %v3085_v7 = vadd.f32 1.0, %v4763_v29  ;;  %3367 = vmatpush.msra.mxu3 %v6999_v27  ;;  %v7046_v29 = vld [vmem:[#allocation9 + $0x120] sm:$0xff] }
 0x97c   :  { %3306 = vmatpush.msrb.mxu0 %v7046_v29 }
 0x97d   :  { %4764 = vrcp.f32 %v3085_v7  ;;  %3368 = vmatpush.msra.mxu3 %v7006_v54  ;;  %v3114_v19 = vand.u32 2147483648, %v3085_v7  ;;  %v3112_v8 = vand.u32 2147483647, %v3085_v7  ;;  %vm3108_vm3 = vweird.f32 %v3085_v7 }
 0x97e   :  { %4766 = vpow2.f32 %v4563_v17  ;;  %3307 = vmatpush.msrb.mxu0 %v7053_v34 }
 0x97f   :  { %3369 = vmatpush.msra.mxu3 %v7013_v4  ;;  %v3115_v17 = vor.u32 1.1754944e-38, %v3114_v19  ;;  %vm3113_vm6 = vcmp.eq.f32.partialorder %v3112_v8, 8.507059e+37  ;;  %v7060_v19 = vld [vmem:[#allocation9 + $0xc0] sm:$0xff] }
 0x980   :  { %3308 = vmatpush.msrb.mxu0 %v7060_v19 }
 0x981   :  { %3370 = vmatpush.msra.mxu3 %v7020_v33 }
 0x983   :  { %v4765_v9 = vpop.eup %4764  ;;  %3371 = vmatpush.msra.mxu3 %v7029_v45 }
 0x984   :  { %v4767_v62 = vpop.eup %4766  ;;  %v3104_v49 = vmul.f32 %v4765_v9, %v3085_v7  ;;  %vm3109_vm2 = vweird.f32 %v4765_v9 }
 0x985   :  { %v7025_v32 = vadd.f32 1.0, %v4767_v62  ;;  %3372 = vmatpush.msra.mxu3 %v7037_v23  ;;  %vm3110_vm5 = vmor %vm3108_vm3, %vm3109_vm2 }
 0x986   :  { %v3105_v50 = vsub.f32 1.0, %v3104_v49  ;;  %v8192_v49 = vld [vmem:[#allocation83_spill] sm:$0xff] }
 0x987   :  { %4768 = vrcp.f32 %v7025_v32  ;;  %3373 = vmatpush.msra.mxu3 %v7044_v57  ;;  %3329 = vmatpush.msra.mxu1 %v8192_v49  ;;  %v3144_v8 = vand.u32 2147483648, %v7025_v32  ;;  %vm3138_vm8 = vweird.f32 %v7025_v32  ;;  %v7076_v49 = vld [vmem:[#allocation9 + $0x30] sm:$0xff] }
 0x988   :  { %v3106_v22 = vmul.f32 %v4765_v9, %v3105_v50 }
 0x989   :  { %3374 = vmatpush.msra.mxu3 %v7051_v59 }
 0x98a   :  { %v3107_v6 = vadd.f32 %v4765_v9, %v3106_v22  ;;  %v7065_v22 = vld [vmem:[#allocation9 + $0x90] sm:$0xff] }
 0x98b   :  { %3309 = vmatpush.msrb.mxu0 %v7065_v22 }
 0x98c   :  { %v3111_v24 = vsel %vm3110_vm5, %v4765_v9, %v3107_v6  ;;  %v8193_v9 = vld [vmem:[#allocation32_spill] sm:$0xff] }
 0x98d   :  { %v4769_v62 = vpop.eup %4768  ;;  %v3116_v7 = vsel %vm3113_vm6, %v3115_v17, %v3111_v24  ;;  %3330 = vmatpush.msra.mxu1 %v8193_v9  ;;  %v3142_v17 = vand.u32 2147483647, %v7025_v32  ;;  %v8195_v24 = vld [vmem:[#allocation17_spill] sm:$0xff]  ;;  %3310 = vmatpush.msrb.mxu0 %v7071_v55 }
 0x98e   :  { %v3148_v37 = vmul.f32 %v3116_v7, %v6836_v36  ;;  %v3134_v50 = vmul.f32 %v4769_v62, %v7025_v32  ;;  %vm3139_vm7 = vweird.f32 %v4769_v62 }
 0x98f   :  { %3331 = vmatpush.msra.mxu1 %v8194_v12  ;;  %vm3140_vm9 = vmor %vm3138_vm8, %vm3139_vm7  ;;  %vm3143_vm10 = vcmp.eq.f32.partialorder %v3142_v17, 8.507059e+37  ;;  %3311 = vmatpush.msrb.mxu0 %v7076_v49  ;;  %v8200_v17 = vld [vmem:[#allocation57_spill] sm:$0xff] }
 0x990   :  { %3182 = vmatmul.f32.vlgmr.msrb.gmra.mxu3 %v3148_v37  ;;  %v3135_v10 = vsub.f32 1.0, %v3134_v50  ;;  %v3145_v37 = vor.u32 1.1754944e-38, %v3144_v8  ;;  %v8196_v50 = vld [vmem:[#allocation18_spill] sm:$0xff]  ;;  %v8199_v8 = vld [vmem:[#allocation73_spill] sm:$0xff] }
 0x991   :  { %3332 = vmatpush.msra.mxu1 %v8195_v24  ;;  %v7087_v24 = vld [vmem:[#allocation9 + $0x2f8] sm:$0xff] }
 0x992   :  { %v3136_v6 = vmul.f32 %v4769_v62, %v3135_v10  ;;  %v7080_v10 = vld [vmem:[#allocation9] sm:$0xff]  ;;  %8198 = vst [vmem:[#allocation62_spill] sm:$0xff] %v7087_v24 }
 0x993   :  { %3333 = vmatpush.msra.mxu1 %v8196_v50  ;;  %3312 = vmatpush.msrb.mxu0 %v7080_v10 }
 0x994   :  { %v3137_v7 = vadd.f32 %v4769_v62, %v3136_v6  ;;  %v7084_v6 = vld [vmem:[#allocation9 + $0x2f0] sm:$0xff] }
 0x995   :  { %3334 = vmatpush.msra.mxu1 %v8197_v2  ;;  %3389 = vmatpush.msra.mxu0 %v7084_v6  ;;  %v3009_v2 = vmul.f32 %v6964_v48, %v8130_v16 }
 0x996   :  { %v3141_v9 = vsel %vm3140_vm9, %v4769_v62, %v3137_v7  ;;  %v2865_v62 = vpop.f32.mrf.mxu3 }
 0x997   :  { %v3146_v12 = vsel %vm3143_vm10, %v3145_v37, %v3141_v9  ;;  %3335 = vmatpush.msra.mxu1 %v8199_v8  ;;  %v2947_v7 = vadd.f32 %v2865_v62, %v8200_v17  ;;  %v2995_v37 = vmul.f32 %v6957_v51, %v8132_v1  ;;  %v8201_v9 = vld [vmem:[#allocation14_spill] sm:$0xff] }
 0x998   :  { %v3149_v32 = vmul.f32 %v3146_v12, %v6846_v52  ;;  %v8202_v12 = vld [vmem:[#allocation36_spill] sm:$0xff]  ;;  %v225_v1 = vadd.f32 %v8203_v38, %v8201_v9  ;;  %v7115_v38 = vld [vmem:[#allocation9 + $0x108] sm:$0xff] }
 0x999   :  { %3412 = vmatpush.msrb.mxu1 %v7087_v24  ;;  %v3038_v50 = vadd.f32 %v6953_v35, %v2947_v7  ;;  %v222_v56 = vadd.f32 %v8202_v12, %v8201_v9  ;;  %v3015_v8 = vadd.f32 %v3009_v2, %v2995_v37  ;;  %v2822_v7 = vpop.f32.mrf.mxu1  ;;  %v7106_v37 = vld [vmem:[#allocation9 + $0x138] sm:$0xff] }
 0x99a   :  { %3185 = vmatmul.f32.gmra.mxu3 %v3149_v32  ;;  %v7158_v9 = vld [vmem:[#allocation9 + $0x1d8] sm:$0xff] }
 0x99b   :  { %v3062_v32 = vadd.f32 %v3038_v50, %v222_v56  ;;  %v3035_v18 = vadd.f32 %v3029_v3, %v3015_v8  ;;  %v7108_v50 = vld [vmem:[#allocation9 + $0x2c0] sm:$0xff]  ;;  %v7110_v3 = vld [vmem:[#allocation9 + $0x2c8] sm:$0xff]  ;;  %3375 = vmatpush.msra.mxu3 %v7106_v37  ;;  %v7137_v8 = vld [vmem:[#allocation9 + $0x230] sm:$0xff]  ;;  %8211 = vst [vmem:[#allocation70_spill] sm:$0xff] %v7158_v9 }
 0x99c   :  { %8204 = vst [vmem:[#allocation63_spill] sm:$0xff] %v7110_v3  ;;  %3390 = vmatpush.msra.mxu0 %v7108_v50  ;;  %3413 = vmatpush.msrb.mxu1 %v7110_v3  ;;  %v7176_v3 = vld [vmem:[#allocation9 + $0x170] sm:$0xff] }
 0x99d   :  { %v3068_v39 = vadd.f32 %v3062_v32, %v2819_v43  ;;  %3376 = vmatpush.msra.mxu3 %v7115_v38  ;;  %v7126_v43 = vld [vmem:[#allocation9 + $0xd8] sm:$0xff] }
 0x99e   :  { %v2868_v24 = vpop.f32.mrf.mxu3  ;;  %v7139_v32 = vld [vmem:[#allocation9 + $0x238] sm:$0xff] }
 0x99f   :  { %v2950_v62 = vadd.f32 %v2868_v24, %v8200_v17  ;;  %v4560_v21 = vmul.f32 -1.442695, %v3068_v39  ;;  %v7117_v39 = vld [vmem:[#allocation9 + $0x290] sm:$0xff]  ;;  %3377 = vmatpush.msra.mxu3 %v7126_v43  ;;  %v7135_v24 = vld [vmem:[#allocation9 + $0xa8] sm:$0xff]  ;;  %8207 = vst [vmem:[#allocation52_spill] sm:$0xff] %v7139_v32  ;;  %v7163_v17 = vld [vmem:[#allocation9 + $0x18] sm:$0xff] }
 0x9a0   :  { %3391 = vmatpush.msra.mxu0 %v7117_v39  ;;  %8212 = vst [vmem:[#allocation71_spill] sm:$0xff] %v7163_v17 }
 0x9a1   :  { %v3041_v16 = vadd.f32 %v3035_v18, %v2950_v62  ;;  %4770 = vpow2.f32 %v4560_v21  ;;  %v7128_v18 = vld [vmem:[#allocation9 + $0x260] sm:$0xff]  ;;  %v7130_v21 = vld [vmem:[#allocation9 + $0x268] sm:$0xff]  ;;  %3378 = vmatpush.msra.mxu3 %v7135_v24  ;;  %v7145_v62 = vld [vmem:[#allocation9 + $0x78] sm:$0xff] }
 0x9a2   :  { %8206 = vst [vmem:[#allocation66_spill] sm:$0xff] %v7130_v21  ;;  %3392 = vmatpush.msra.mxu0 %v7128_v18 }
 0x9a3   :  { %v3065_v35 = vadd.f32 %v3041_v16, %v225_v1  ;;  %v7119_v16 = vld [vmem:[#allocation9 + $0x298] sm:$0xff]  ;;  %8208 = vst [vmem:[#allocation53_spill] sm:$0xff] %v7145_v62  ;;  %3379 = vmatpush.msra.mxu3 %v7145_v62  ;;  %v7217_v62 = vld [vmem:[#allocation9 + $0x80] sm:$0xff] }
 0x9a4   :  { %8205 = vst [vmem:[#allocation65_spill] sm:$0xff] %v7119_v16  ;;  %3414 = vmatpush.msrb.mxu1 %v7119_v16  ;;  %3393 = vmatpush.msra.mxu0 %v7137_v8 }
 0x9a5   :  { %v3070_v12 = vadd.f32 %v3065_v35, %v2822_v7  ;;  %v7147_v35 = vld [vmem:[#allocation9 + $0x200] sm:$0xff]  ;;  %v7149_v7 = vld [vmem:[#allocation9 + $0x208] sm:$0xff] }
 0x9a6   :  { %3415 = vmatpush.msrb.mxu1 %v7130_v21  ;;  %8209 = vst [vmem:[#allocation68_spill] sm:$0xff] %v7149_v7  ;;  %3394 = vmatpush.msra.mxu0 %v7147_v35  ;;  %v7167_v21 = vld [vmem:[#allocation9 + $0x1a8] sm:$0xff] }
 0x9a7   :  { %v4771_v2 = vpop.eup %4770  ;;  %v4562_v56 = vmul.f32 -1.442695, %v3070_v12  ;;  %8213 = vst [vmem:[#allocation72_spill] sm:$0xff] %v7167_v21 }
 0x9a8   :  { %v7121_v1 = vadd.f32 1.0, %v4771_v2  ;;  %3416 = vmatpush.msrb.mxu1 %v7139_v32  ;;  %v7154_v2 = vld [vmem:[#allocation9 + $0x48] sm:$0xff]  ;;  %v7165_v32 = vld [vmem:[#allocation9 + $0x1a0] sm:$0xff] }
 0x9a9   :  { %4772 = vpow2.f32 %v4562_v56  ;;  %8210 = vst [vmem:[#allocation69_spill] sm:$0xff] %v7154_v2  ;;  %v7156_v56 = vld [vmem:[#allocation9 + $0x1d0] sm:$0xff]  ;;  %3380 = vmatpush.msra.mxu3 %v7154_v2  ;;  %v7215_v2 = vld [vmem:[#allocation9 + $0xb8] sm:$0xff] }
 0x9aa   :  { %4774 = vrcp.f32 %v7121_v1  ;;  %3417 = vmatpush.msrb.mxu1 %v7149_v7  ;;  %3395 = vmatpush.msra.mxu0 %v7156_v56  ;;  %8220 = vst [vmem:[#allocation28_spill] sm:$0xff] %v7215_v2  ;;  %vm3093_vm12 = vweird.f32 %v7121_v1 }
 0x9ab   :  { %3381 = vmatpush.msra.mxu3 %v7163_v17  ;;  %v7200_v17 = vld [vmem:[#allocation9 + $0xe0] sm:$0xff] }
 0x9ac   :  { %3418 = vmatpush.msrb.mxu1 %v7158_v9  ;;  %3396 = vmatpush.msra.mxu0 %v7165_v32  ;;  %8217 = vst [vmem:[#allocation16_spill] sm:$0xff] %v7200_v17 }
 0x9ad   :  { %3792 = vmatpush.msrb.mxu3 %v6985_v44  ;;  %v7193_v44 = vld [vmem:[#allocation9 + $0x110] sm:$0xff] }
 0x9ae   :  { %3419 = vmatpush.msrb.mxu1 %v7167_v21  ;;  %3397 = vmatpush.msra.mxu0 %v7176_v3  ;;  %v7195_v21 = vld [vmem:[#allocation9 + $0x118] sm:$0xff] }
 0x9af   :  { %v4773_v12 = vpop.eup %4772  ;;  %3793 = vmatpush.msrb.mxu3 %v6989_v11  ;;  %8216 = vst [vmem:[#allocation15_spill] sm:$0xff] %v7195_v21  ;;  %v7202_v11 = vld [vmem:[#allocation9 + $0xe8] sm:$0xff] }
 0x9b0   :  { %v7169_v16 = vpop.eup %4774  ;;  %v7171_v7 = vadd.f32 1.0, %v4773_v12  ;;  %3420 = vmatpush.msrb.mxu1 %v7178_v26  ;;  %v7185_v12 = vld [vmem:[#allocation9 + $0x140] sm:$0xff]  ;;  %v2911_v26 = vpop.f32.mrf.mxu1  ;;  %8218 = vst [vmem:[#allocation50_spill] sm:$0xff] %v7202_v11 }
 0x9b1   :  { %v3089_v9 = vmul.f32 %v7169_v16, %v7121_v1  ;;  %3398 = vmatpush.msra.mxu0 %v7185_v12  ;;  %3794 = vmatpush.msrb.mxu3 %v6993_v14  ;;  %v2949_v14 = vadd.f32 %v2911_v26, %v5715_v42  ;;  %v2997_v26 = vmul.f32 %v6957_v51, %v5406_v31  ;;  %v7238_v51 = vld [vmem:[#allocation9 + $0x20] sm:$0xff]  ;;  %vm3094_vm11 = vweird.f32 %v7169_v16 }
 0x9b2   :  { %4776 = vrcp.f32 %v7171_v7  ;;  %3421 = vmatpush.msrb.mxu1 %v7187_v61  ;;  %vm3095_vm13 = vmor %vm3093_vm12, %vm3094_vm11  ;;  %vm3123_vm0 = vweird.f32 %v7171_v7 }
 0x9b3   :  { %3399 = vmatpush.msra.mxu0 %v7193_v44  ;;  %v3090_v30 = vsub.f32 1.0, %v3089_v9  ;;  %3795 = vmatpush.msrb.mxu3 %v7001_v41  ;;  %v3011_v9 = vmul.f32 %v6964_v48, %v8131_v0  ;;  %v7227_v48 = vld [vmem:[#allocation9 + $0x50] sm:$0xff]  ;;  %v7229_v0 = vld [vmem:[#allocation9 + $0x58] sm:$0xff] }
 0x9b4   :  { %3422 = vmatpush.msrb.mxu1 %v7195_v21  ;;  %v7213_v21 = vld [vmem:[#allocation9 + $0xb0] sm:$0xff]  ;;  %8222 = vst [vmem:[#allocation29_spill] sm:$0xff] %v7229_v0 }
 0x9b5   :  { %3400 = vmatpush.msra.mxu0 %v7200_v17  ;;  %3796 = vmatpush.msrb.mxu3 %v7008_v28  ;;  %8219 = vst [vmem:[#allocation64_spill] sm:$0xff] %v7213_v21  ;;  %v3091_v41 = vmul.f32 %v7169_v16, %v3090_v30  ;;  %v7222_v28 = vld [vmem:[#allocation9 + $0x88] sm:$0xff]  ;;  %v3017_v17 = vadd.f32 %v3011_v9, %v2997_v26 }
 0x9b6   :  { %3423 = vmatpush.msrb.mxu1 %v7202_v11  ;;  %8221 = vst [vmem:[#allocation27_spill] sm:$0xff] %v7222_v28  ;;  %v3040_v11 = vadd.f32 %v6955_v60, %v2949_v14  ;;  %v7240_v60 = vld [vmem:[#allocation9 + $0x28] sm:$0xff] }
 0x9b7   :  { %3401 = vmatpush.msra.mxu0 %v7213_v21  ;;  %3797 = vmatpush.msrb.mxu3 %v7015_v47  ;;  %8224 = vst [vmem:[#allocation48_spill] sm:$0xff] %v7240_v60  ;;  %v3092_v14 = vadd.f32 %v7169_v16, %v3091_v41  ;;  %v3031_v47 = vmul.f32 %v6966_v25, %v8137_v13 }
 0x9b8   :  { %v7208_v61 = vpop.eup %4776  ;;  %3424 = vmatpush.msrb.mxu1 %v7215_v2  ;;  %v8223_v2 = vld [vmem:[#allocation21_spill] sm:$0xff]  ;;  %v2914_v9 = vpop.f32.mrf.mxu1 }
 0x9b9   :  { %v3119_v30 = vmul.f32 %v7208_v61, %v7171_v7  ;;  %3402 = vmatpush.msra.mxu0 %v7217_v62  ;;  %v352_v21 = vadd.f32 %v8223_v2, %v5212_v5  ;;  %3798 = vmatpush.msrb.mxu3 %v7022_v53  ;;  %v3099_v2 = vand.u32 2147483648, %v7121_v1  ;;  %v3097_v53 = vand.u32 2147483647, %v7121_v1 }
 0x9ba   :  { %3425 = vmatpush.msrb.mxu1 %v7222_v28  ;;  %vm3124_vm15 = vweird.f32 %v7208_v61 }
 0x9bb   :  { %3403 = vmatpush.msra.mxu0 %v7227_v48  ;;  %v3064_v28 = vadd.f32 %v3040_v11, %v352_v21  ;;  %3799 = vmatpush.msrb.mxu3 %v7031_v58  ;;  %v3120_v26 = vsub.f32 1.0, %v3119_v30  ;;  %v3096_v58 = vsel %vm3095_vm13, %v7169_v16, %v3092_v14  ;;  %v2952_v21 = vadd.f32 %v2914_v9, %v5715_v42  ;;  %vm3125_vm1 = vmor %vm3123_vm0, %vm3124_vm15 }
 0x9bc   :  { %3426 = vmatpush.msrb.mxu1 %v7229_v0  ;;  %v3037_v0 = vadd.f32 %v3031_v47, %v3017_v17  ;;  %v3100_v11 = vor.u32 1.1754944e-38, %v3099_v2  ;;  %vm3098_vm14 = vcmp.eq.f32.partialorder %v3097_v53, 8.507059e+37  ;;  %v8225_v17 = vld [vmem:[#allocation22_spill] sm:$0xff]  ;;  %v3127_v9 = vand.u32 2147483647, %v7171_v7 }
 0x9bd   :  { %3404 = vmatpush.msra.mxu0 %v7238_v51  ;;  %3800 = vmatpush.msrb.mxu3 %v7039_v63  ;;  %v3121_v1 = vmul.f32 %v7208_v61, %v3120_v26 }
 0x9be   :  { %3427 = vmatpush.msrb.mxu1 %v7240_v60  ;;  %v3101_v30 = vsel %vm3098_vm14, %v3100_v11, %v3096_v58  ;;  %v3043_v60 = vadd.f32 %v3037_v0, %v2952_v21  ;;  %v3129_v0 = vand.u32 2147483648, %v7171_v7  ;;  %vm3128_vm3 = vcmp.eq.f32.partialorder %v3127_v9, 8.507059e+37 }
 0x9bf   :  { %3801 = vmatpush.msrb.mxu3 %v7046_v29  ;;  %v3195_v63 = vsub.f32 1.0, %v3101_v30  ;;  %v3122_v16 = vadd.f32 %v7208_v61, %v3121_v1  ;;  %v7271_v29 = vld [vmem:[%s7774_s1 + $0x68] sm:$0xff]  ;;  %v8237_v1 = vld [vmem:[#allocation42_spill] sm:$0xff] }
 0x9c1   :  { %3802 = vmatpush.msrb.mxu3 %v7053_v34  ;;  %v3454_v34 = vsub.f32 %v7271_v29, %v6831_v15  ;;  %v3130_v15 = vor.u32 1.1754944e-38, %v3129_v0  ;;  %v8239_v0 = vld [vmem:[#allocation45_spill] sm:$0xff] }
 0x9c3   :  { %3803 = vmatpush.msrb.mxu3 %v7060_v19  ;;  %v3193_v19 = vmul.f32 %v3101_v30, %v6836_v36  ;;  %v3456_v26 = vand.u32 2147483647, %v3454_v34 }
 0x9c5   :  { %3804 = vmatpush.msrb.mxu3 %v7065_v22  ;;  %vm3458_vm2 = vcmp.lt.f32.partialorder %v3456_v26, 1e-12 }
 0x9c6   :  { %v3460_v36 = vsel %vm3458_vm2, 1.0, %v3454_v34 }
 0x9c7   :  { %3805 = vmatpush.msrb.mxu3 %v7071_v55 }
 0x9c9   :  { %3806 = vmatpush.msrb.mxu3 %v7076_v49 }
 0x9cb   :  { %3807 = vmatpush.msrb.mxu3 %v7080_v10 }
 0xa13   :  { %v3183_v41 = vpop.f32.mrf.mxu3 }
 0xa14   :  { %v3189_v25 = vadd.f32 %v3183_v41, %v3064_v28  ;;  %v355_v28 = vadd.f32 %v8225_v17, %v5212_v5  ;;  %v8238_v17 = vld [vmem:[#allocation40_spill] sm:$0xff] }
 0xa16   :  { %4778 = vtanh.f32 %v3189_v25  ;;  %v3067_v47 = vadd.f32 %v3043_v60, %v355_v28  ;;  %v3126_v25 = vsel %vm3125_vm1, %v7208_v61, %v3122_v16 }
 0xa17   :  { %v3131_v22 = vsel %vm3128_vm3, %v3130_v15, %v3126_v25  ;;  %v8242_v15 = vld [vmem:[#allocation46_spill] sm:$0xff] }
 0xa18   :  { %v3196_v61 = vsub.f32 1.0, %v3131_v22  ;;  %v3194_v49 = vmul.f32 %v3131_v22, %v6846_v52  ;;  %v8227_v52 = vld [vmem:[#allocation53_spill] sm:$0xff] }
 0xa1c   :  { %v4779_v14 = vpop.eup %4778 }
 0xa1d   :  { %v3197_v2 = vmul.f32 %v4779_v14, %v3195_v63  ;;  %v3186_v53 = vpop.f32.mrf.mxu3 }
 0xa1e   :  { %v3190_v41 = vadd.f32 %v3186_v53, %v3067_v47  ;;  %v8241_v53 = vld [vmem:[#allocation55_spill] sm:$0xff] }
 0xa1f   :  { %v7281_v60 = vadd.f32 %v3197_v2, %v3193_v19  ;;  %v8240_v19 = vld [vmem:[#allocation44_spill] sm:$0xff] }
 0xa20   :  { %4780 = vtanh.f32 %v3190_v41 }
 0xa21   :  { %3313 = vmatmul.f32.vlgmr.msrb.gmra.mxu0 %v7281_v60  ;;  %3336 = vmatmul.f32.vlgmr.msra.gmra.mxu1 %v7281_v60  ;;  %4782 = vrcp.f32 %v3460_v36 }
 0xa22   :  { %3359 = vmatmul.f32.vlgmr.msrb.gmra.mxu2 %v7281_v60  ;;  %3382 = vmatmul.f32.vlgmr.msra.gmra.mxu3 %v7281_v60 }
 0xa23   :  { %3815 = vmatpush.msrb.mxu0 %v6987_v20  ;;  %3861 = vmatpush.msrb.mxu2 %v6997_v40  ;;  %v8228_v20 = vld [vmem:[#allocation64_spill] sm:$0xff]  ;;  %v8229_v40 = vld [vmem:[#allocation69_spill] sm:$0xff] }
 0xa24   :  { %3884 = vmatpush.msra.mxu3 %v7084_v6  ;;  %v8232_v6 = vld [vmem:[#allocation75_spill] sm:$0xff] }
 0xa25   :  { %3862 = vmatpush.msrb.mxu2 %v6999_v27  ;;  %v8230_v27 = vld [vmem:[#allocation71_spill] sm:$0xff] }
 0xa26   :  { %v4781_v55 = vpop.eup %4780  ;;  %3885 = vmatpush.msra.mxu3 %v7108_v50  ;;  %v3468_v50 = vpop.permute.xlu2 %3467 }
 0xa27   :  { %v3198_v7 = vmul.f32 %v4781_v55, %v3196_v61  ;;  %3863 = vmatpush.msrb.mxu2 %v7006_v54  ;;  %v4783_v58 = vpop.eup %4782  ;;  %v8243_v55 = vld [vmem:[#allocation47_spill] sm:$0xff] }
 0xa28   :  { %3472 = vperm.xlu0 %4630, %v4783_v58   ;;  %3886 = vmatpush.msra.mxu3 %v7117_v39 }
 0xa29   :  { %v7297_v21 = vadd.f32 %v3198_v7, %v3194_v49  ;;  %3864 = vmatpush.msrb.mxu2 %v7013_v4 }
 0xa2a   :  { %3887 = vmatpush.msra.mxu3 %v7128_v18 }
 0xa2b   :  { %3316 = vmatmul.f32.gmra.mxu0 %v7297_v21  ;;  %3339 = vmatmul.f32.gmra.mxu1 %v7297_v21 }
 0xa2c   :  { %3362 = vmatmul.f32.gmra.mxu2 %v7297_v21  ;;  %3385 = vmatmul.f32.gmra.mxu3 %v7297_v21 }
 0xa2d   :  { %3865 = vmatpush.msrb.mxu2 %v7020_v33  ;;  %3888 = vmatpush.msra.mxu3 %v7137_v8  ;;  %v4574_v33 = vld [vmem:[%s7774_s1 + $0x70] sm:$0xff] }
 0xa2f   :  { %3866 = vmatpush.msrb.mxu2 %v7029_v45  ;;  %3889 = vmatpush.msra.mxu3 %v7147_v35  ;;  %v8234_v35 = vmov 0  }
 0xa30   :  { %4635 = vset.pattern.permute.xlu0 %v8023_v46  ;;  %v8226_v46 = vld [vmem:[#allocation16_spill] sm:$0xff] }
 0xa31   :  { %3867 = vmatpush.msrb.mxu2 %v7037_v23  ;;  %3890 = vmatpush.msra.mxu3 %v7156_v56  ;;  %v7345_v23 = vld [vmem:[%s7781_s8] ss:$0 sm:$0xff]  ;;  %v8235_v56 = vmov 2  }
 0xa33   :  { %3405 = vmatmul.f32.vlgmr.msra.gmra.mxu0 %v7281_v60  ;;  %3428 = vmatmul.f32.vlgmr.msrb.gmra.mxu1 %v7281_v60 }
 0xa34   :  { %3868 = vmatpush.msrb.mxu2 %v7044_v57  ;;  %3891 = vmatpush.msra.mxu3 %v7165_v32 }
 0xa36   :  { %3869 = vmatpush.msrb.mxu2 %v7051_v59  ;;  %3892 = vmatpush.msra.mxu3 %v7176_v3  ;;  %v8231_v59 = vld [vmem:[#allocation67_spill] sm:$0xff] }
 0xa37   :  { %v3948_v10 = vsub.f32 %v4574_v33, %v8231_v59 }
 0xa38   :  { %3870 = vmatpush.msrb.mxu2 %v7106_v37  ;;  %3893 = vmatpush.msra.mxu3 %v7185_v12 }
 0xa3a   :  { %3871 = vmatpush.msrb.mxu2 %v7115_v38  ;;  %3894 = vmatpush.msra.mxu3 %v7193_v44  ;;  %v3950_v38 = vand.u32 2147483647, %v3948_v10 }
 0xa3b   :  { %3408 = vmatmul.f32.gmra.mxu0 %v7297_v21  ;;  %3431 = vmatmul.f32.gmra.mxu1 %v7297_v21 }
 0xa3c   :  { %3872 = vmatpush.msrb.mxu2 %v7126_v43  ;;  %3895 = vmatpush.msra.mxu3 %v8226_v46  ;;  %vm3952_vm5 = vcmp.lt.f32.partialorder %v3950_v38, 1e-12 }
 0xa3e   :  { %3873 = vmatpush.msrb.mxu2 %v7135_v24  ;;  %3896 = vmatpush.msra.mxu3 %v8228_v20  ;;  %v8233_v24 = vld [vmem:[#allocation31_spill] sm:$0xff]  ;;  %v8244_v20 = vld [vmem:[#allocation13_spill] sm:$0xff] }
 0xa40   :  { %3874 = vmatpush.msrb.mxu2 %v8227_v52  ;;  %3897 = vmatpush.msra.mxu3 %v7217_v62  ;;  %v3954_v62 = vsel %vm3952_vm5, 1.0, %v3948_v10 }
 0xa41   :  { %4784 = vrcp.f32 %v3954_v62 }
 0xa42   :  { %3875 = vmatpush.msrb.mxu2 %v8229_v40  ;;  %3898 = vmatpush.msra.mxu3 %v7227_v48  ;;  %v8245_v40 = vld [vmem:[#allocation58_spill] sm:$0xff] }
 0xa44   :  { %3876 = vmatpush.msrb.mxu2 %v8230_v27  ;;  %3899 = vmatpush.msra.mxu3 %v7238_v51  ;;  %v8236_v51 = vld [vmem:[#allocation41_spill] sm:$0xff]  ;;  %v293_v27 = vadd.f32 %v8245_v40, %v8244_v20  ;;  %v7443_v40 = vld [vmem:[#allocation9 + $0x1c0] sm:$0xff] }
 0xa47   :  { %v4785_v12 = vpop.eup %4784 }
 0xa9a   :  { %v3473_v18 = vpop.permute.xlu0 %3472 }
 0xa9e   :  { %v7335_v54 = vpop.f32.mrf.mxu1 }
 0xaa5   :  { %v3383_v47 = vpop.f32.mrf.mxu3 }
 0xaa6   :  { %v3443_v49 = vadd.f32 %v3383_v47, %v8243_v55  ;;  %v7425_v47 = vld [vmem:[#allocation9 + $0x250] sm:$0xff] }
 0xaa8   :  { %v7337_v4 = vpop.f32.mrf.mxu1 }
 0xaaf   :  { %v3386_v59 = vpop.f32.mrf.mxu3 }
 0xab0   :  { %v3429_v45 = vpop.f32.mrf.mxu1  ;;  %v3446_v38 = vadd.f32 %v3386_v59, %v8243_v55  ;;  %v7447_v59 = vld [vmem:[#allocation9 + $0x128] sm:$0xff] }
 0xab1   :  { %v7348_v57 = vadd.f32 %v7345_v23, %v3429_v45  ;;  %8253 = vst [vmem:[#allocation49_spill] sm:$0xff] %v7447_v59 }
 0xab3   :  { %4564 = vst.msk [vmem:[%s7783_s10 + $0x50] sm:$0xff] %vm67_vm4, %v7348_v57  ;;  %v3461_v37 = vsub.f32 %v7348_v57, %v8232_v6 }
 0xab5   :  { %v3475_v3 = vmul.f32 %v3468_v50, %v3461_v37 }
 0xab7   :  { %3494 = vperm.xlu2 %4632, %v3475_v3   ;;  %3479 = vperm.xlu1 %4631, %v3475_v3  }
 0xab8   :  { %v3432_v39 = vpop.f32.mrf.mxu1 }
 0xab9   :  { %v7359_v43 = vadd.f32 %v7345_v23, %v3432_v39 }
 0xabb   :  { %4565 = vst.msk [vmem:[%s7783_s10 + $0x58] sm:$0xff] %vm67_vm4, %v7359_v43  ;;  %v3462_v8 = vsub.f32 %v7359_v43, %v8233_v24  ;;  %v8246_v24 = vld [vmem:[#allocation59_spill] sm:$0xff] }
 0xabd   :  { %v3476_v32 = vmul.f32 %v3473_v18, %v3462_v8  ;;  %v296_v8 = vadd.f32 %v8246_v24, %v8244_v20 }
 0xabf   :  { %4634 = vset.pattern.permute.xlu2 %v8234_v35  ;;  %4633 = vset.pattern.permute.xlu1 %v8235_v56 }
 0xac0   :  { %3498 = vperm.xlu0 %4635, %v3476_v32   ;;  %3514 = vperm.xlu1 %4633, %v3475_v3  }
 0xac1   :  { %3484 = vperm.xlu2 %4634, %v3476_v32  }
 0xac8   :  { %3518 = vperm.xlu1 %4633, %v3476_v32  }
 0xac9   :  { %3962 = vperm.xlu2 %4634, %v4785_v12  }
 0xad0   :  { %4636 = vset.pattern.permute.xlu1 %v8234_v35 }
 0xb11   :  { %v3495_v44 = vpop.permute.xlu2 %3494 }
 0xb12   :  { %v3501_v11 = vmul.f32 %v3495_v44, %v8236_v51  ;;  %v3503_v30 = vmul.f32 %v3495_v44, %v8237_v1  ;;  %v3502_v2 = vmul.f32 %v3495_v44, %v8240_v19 }
 0xb1b   :  { %v7385_v7 = vpop.permute.xlu2 %3484 }
 0xb1c   :  { %v3491_v45 = vmul.f32 %v7385_v7, %v8239_v0 }
 0xb29   :  { %v3480_v48 = vpop.permute.xlu1 %3479 }
 0xb2a   :  { %v3487_v28 = vmul.f32 %v3480_v48, %v8238_v17  ;;  %v3489_v63 = vmul.f32 %v3480_v48, %v5406_v31  ;;  %v3488_v34 = vmul.f32 %v3480_v48, %v8239_v0  ;;  %v7404_v48 = vld [vmem:[#allocation9 + $0x2a8] sm:$0xff] }
 0xb2b   :  { %3816 = vmatpush.msrb.mxu0 %v7404_v48 }
 0xb2c   :  { %v3507_v16 = vadd.f32 %v3501_v11, %v3487_v28  ;;  %v3509_v14 = vadd.f32 %v3503_v30, %v3489_v63  ;;  %v3508_v26 = vadd.f32 %v3502_v2, %v3488_v34  ;;  %v7406_v11 = vld [vmem:[#allocation9 + $0x278] sm:$0xff]  ;;  %v7411_v28 = vld [vmem:[#allocation9 + $0x2e0] sm:$0xff]  ;;  %v7415_v63 = vld [vmem:[#allocation9 + $0x2b0] sm:$0xff] }
 0xb2d   :  { %3817 = vmatpush.msrb.mxu0 %v7406_v11  ;;  %3838 = vmatpush.msra.mxu1 %v7411_v28  ;;  %v7429_v34 = vld [vmem:[#allocation9 + $0x1b8] sm:$0xff]  ;;  %v7431_v2 = vld [vmem:[#allocation9 + $0x220] sm:$0xff] }
 0xb2e   :  { %8250 = vst [vmem:[#allocation20_spill] sm:$0xff] %v7429_v34 }
 0xb2f   :  { %3839 = vmatpush.msra.mxu1 %v7415_v63 }
 0xb32   :  { %v3515_v9 = vpop.permute.xlu1 %3514  ;;  %v7378_v25 = vpop.permute.xlu0 %3498 }
 0xb33   :  { %v3521_v41 = vmul.f32 %v3515_v9, %v8241_v53  ;;  %v3522_v36 = vmul.f32 %v3515_v9, %v8242_v15  ;;  %v3523_v22 = vmul.f32 %v3515_v9, %v8137_v13  ;;  %v3505_v52 = vmul.f32 %v7378_v25, %v8240_v19 }
 0xb35   :  { %v7382_v61 = vadd.f32 %v3521_v41, %v3507_v16  ;;  %v3528_v58 = vadd.f32 %v3522_v36, %v3508_v26  ;;  %v7387_v46 = vadd.f32 %v3523_v22, %v3509_v14  ;;  %v3511_v37 = vadd.f32 %v3505_v52, %v3491_v45  ;;  %v7419_v16 = vld [vmem:[#allocation9 + $0x280] sm:$0xff]  ;;  %v7423_v14 = vld [vmem:[#allocation9 + $0x1e8] sm:$0xff]  ;;  %v7437_v22 = vld [vmem:[#allocation9 + $0x1f0] sm:$0xff] }
 0xb36   :  { %8249 = vst [vmem:[#allocation19_spill] sm:$0xff] %v7423_v14  ;;  %3840 = vmatpush.msra.mxu1 %v7419_v16  ;;  %v7435_v36 = vld [vmem:[#allocation9 + $0x188] sm:$0xff]  ;;  %v7441_v52 = vld [vmem:[#allocation9 + $0x158] sm:$0xff] }
 0xb37   :  { %v3534_v33 = vadd.f32 %v3528_v58, %v3443_v49  ;;  %8251 = vst [vmem:[#allocation54_spill] sm:$0xff] %v7435_v36 }
 0xb38   :  { %3841 = vmatpush.msra.mxu1 %v7425_v47  ;;  %8252 = vst [vmem:[#allocation56_spill] sm:$0xff] %v7441_v52 }
 0xb39   :  { %v3558_v10 = vadd.f32 %v3534_v33, %v293_v27 }
 0xb3a   :  { %v7395_v6 = vpop.permute.xlu1 %3518  ;;  %3842 = vmatpush.msra.mxu1 %v7431_v2 }
 0xb3b   :  { %v3525_v50 = vmul.f32 %v7395_v6, %v8242_v15  ;;  %v3564_v3 = vadd.f32 %v3558_v10, %v7335_v54  ;;  %v7409_v54 = vld [vmem:[#allocation9 + $0x248] sm:$0xff]  ;;  %v7449_v10 = vld [vmem:[#allocation9 + $0x190] sm:$0xff] }
 0xb3c   :  { %8247 = vst [vmem:[#allocation34_spill] sm:$0xff] %v7409_v54  ;;  %3818 = vmatpush.msrb.mxu0 %v7409_v54  ;;  %3843 = vmatpush.msra.mxu1 %v7437_v22 }
 0xb3d   :  { %v3531_v39 = vadd.f32 %v3525_v50, %v3511_v37  ;;  %v4569_v18 = vmul.f32 -1.442695, %v3564_v3  ;;  %v7453_v50 = vld [vmem:[#allocation9 + $0xf8] sm:$0xff]  ;;  %v7455_v3 = vld [vmem:[#allocation9 + $0x160] sm:$0xff] }
 0xb3e   :  { %3844 = vmatpush.msra.mxu1 %v7443_v40  ;;  %8254 = vst [vmem:[#allocation76_spill] sm:$0xff] %v7453_v50 }
 0xb3f   :  { %v3537_v32 = vadd.f32 %v3531_v39, %v3446_v38  ;;  %4786 = vpow2.f32 %v4569_v18  ;;  %v7459_v18 = vld [vmem:[#allocation9 + $0xc8] sm:$0xff] }
 0xb40   :  { %3845 = vmatpush.msra.mxu1 %v7449_v10  ;;  %8255 = vst [vmem:[#allocation77_spill] sm:$0xff] %v7459_v18 }
 0xb41   :  { %v3561_v62 = vadd.f32 %v3537_v32, %v296_v8 }
 0xb42   :  { %3846 = vmatpush.msra.mxu1 %v7455_v3 }
 0xb43   :  { %v3566_v35 = vadd.f32 %v3561_v62, %v7337_v4  ;;  %v7417_v4 = vld [vmem:[#allocation9 + $0x218] sm:$0xff] }
 0xb44   :  { %8248 = vst [vmem:[#allocation35_spill] sm:$0xff] %v7417_v4  ;;  %3819 = vmatpush.msrb.mxu0 %v7417_v4 }
 0xb45   :  { %v4787_v12 = vpop.eup %4786  ;;  %v4571_v44 = vmul.f32 -1.442695, %v3566_v35  ;;  %v7464_v35 = vld [vmem:[#allocation9 + $0x98] sm:$0xff] }
 0xb46   :  { %v3580_v30 = vadd.f32 1.0, %v4787_v12  ;;  %3820 = vmatpush.msrb.mxu0 %v7423_v14  ;;  %8256 = vst [vmem:[#allocation78_spill] sm:$0xff] %v7464_v35 }
 0xb48   :  { %4788 = vrcp.f32 %v3580_v30  ;;  %3821 = vmatpush.msrb.mxu0 %v7429_v34  ;;  %v3609_v27 = vand.u32 2147483648, %v3580_v30  ;;  %v3607_v45 = vand.u32 2147483647, %v3580_v30  ;;  %vm3603_vm7 = vweird.f32 %v3580_v30 }
 0xb49   :  { %4790 = vpow2.f32 %v4571_v44  ;;  %v7467_v44 = vld [vmem:[#allocation9 + $0x68] sm:$0xff] }
 0xb4a   :  { %3822 = vmatpush.msrb.mxu0 %v7435_v36  ;;  %v3610_v38 = vor.u32 1.1754944e-38, %v3609_v27  ;;  %vm3608_vm9 = vcmp.eq.f32.partialorder %v3607_v45, 8.507059e+37  ;;  %8257 = vst [vmem:[#allocation79_spill] sm:$0xff] %v7467_v44  ;;  %v7473_v27 = vld [vmem:[#allocation9 + $0x8] sm:$0xff] }
 0xb4b   :  { %8259 = vst [vmem:[#allocation81_spill] sm:$0xff] %v7473_v27 }
 0xb4c   :  { %3823 = vmatpush.msrb.mxu0 %v7441_v52  ;;  %v7507_v52 = vld [vmem:[#allocation9 + $0x130] sm:$0xff] }
 0xb4d   :  { %3847 = vmatpush.msra.mxu1 %v7507_v52 }
 0xb4e   :  { %v4789_v9 = vpop.eup %4788  ;;  %3824 = vmatpush.msrb.mxu0 %v7447_v59 }
 0xb4f   :  { %v4791_v41 = vpop.eup %4790  ;;  %v3599_v26 = vmul.f32 %v4789_v9, %v3580_v30  ;;  %vm3604_vm6 = vweird.f32 %v4789_v9 }
 0xb50   :  { %v3582_v49 = vadd.f32 1.0, %v4791_v41  ;;  %vm3605_vm8 = vmor %vm3603_vm7, %vm3604_vm6  ;;  %3825 = vmatpush.msrb.mxu0 %v7453_v50 }
 0xb51   :  { %v3600_v58 = vsub.f32 1.0, %v3599_v26  ;;  %v7470_v26 = vld [vmem:[#allocation9 + $0x38] sm:$0xff] }
 0xb52   :  { %4792 = vrcp.f32 %v3582_v49  ;;  %3826 = vmatpush.msrb.mxu0 %v7459_v18  ;;  %v3639_v30 = vand.u32 2147483648, %v3582_v49  ;;  %v3637_v41 = vand.u32 2147483647, %v3582_v49  ;;  %8258 = vst [vmem:[#allocation80_spill] sm:$0xff] %v7470_v26  ;;  %vm3633_vm11 = vweird.f32 %v3582_v49 }
 0xb53   :  { %v3601_v33 = vmul.f32 %v4789_v9, %v3600_v58 }
 0xb54   :  { %3827 = vmatpush.msrb.mxu0 %v7464_v35  ;;  %vm3638_vm13 = vcmp.eq.f32.partialorder %v3637_v41, 8.507059e+37  ;;  %v8269_v41 = vld [vmem:[#allocation30_spill] sm:$0xff] }
 0xb55   :  { %v3602_v37 = vadd.f32 %v4789_v9, %v3601_v33  ;;  %v3640_v33 = vor.u32 1.1754944e-38, %v3639_v30  ;;  %v8267_v30 = vld [vmem:[#allocation72_spill] sm:$0xff] }
 0xb56   :  { %3828 = vmatpush.msrb.mxu0 %v7467_v44 }
 0xb57   :  { %v3606_v39 = vsel %vm3605_vm8, %v4789_v9, %v3602_v37 }
 0xb58   :  { %v4793_v24 = vpop.eup %4792  ;;  %v3611_v8 = vsel %vm3608_vm9, %v3610_v38, %v3606_v39  ;;  %3829 = vmatpush.msrb.mxu0 %v7470_v26  ;;  %v8260_v39 = vld [vmem:[#allocation62_spill] sm:$0xff] }
 0xb59   :  { %v3643_v32 = vmul.f32 %v3611_v8, %v7281_v60  ;;  %v3629_v62 = vmul.f32 %v4793_v24, %v3582_v49  ;;  %vm3634_vm10 = vweird.f32 %v4793_v24  ;;  %v8261_v8 = vld [vmem:[#allocation63_spill] sm:$0xff]  ;;  %v8263_v49 = vld [vmem:[#allocation66_spill] sm:$0xff] }
 0xb5a   :  { %vm3635_vm12 = vmor %vm3633_vm11, %vm3634_vm10  ;;  %3830 = vmatpush.msrb.mxu0 %v7473_v27 }
 0xb5b   :  { %3677 = vmatmul.f32.vlgmr.msra.gmra.mxu2 %v3643_v32  ;;  %v3630_v12 = vsub.f32 1.0, %v3629_v62  ;;  %v8262_v32 = vld [vmem:[#allocation65_spill] sm:$0xff]  ;;  %v8264_v62 = vld [vmem:[#allocation52_spill] sm:$0xff] }
 0xb5c   :  { %3907 = vmatpush.msra.mxu0 %v8260_v39  ;;  %v8275_v39 = vld [vmem:[#allocation48_spill] sm:$0xff] }
 0xb5d   :  { %v3631_v9 = vmul.f32 %v4793_v24, %v3630_v12  ;;  %v8265_v12 = vld [vmem:[#allocation68_spill] sm:$0xff] }
 0xb5e   :  { %3908 = vmatpush.msra.mxu0 %v8261_v8  ;;  %v3360_v8 = vpop.f32.mrf.mxu2 }
 0xb5f   :  { %v3632_v58 = vadd.f32 %v4793_v24, %v3631_v9  ;;  %v8268_v9 = vld [vmem:[#allocation74_spill] sm:$0xff] }
 0xb60   :  { %3909 = vmatpush.msra.mxu0 %v8262_v32  ;;  %v8276_v32 = vld [vmem:[#allocation57_spill] sm:$0xff] }
 0xb61   :  { %v3636_v45 = vsel %vm3635_vm12, %v4793_v24, %v3632_v58  ;;  %v8266_v24 = vld [vmem:[#allocation70_spill] sm:$0xff]  ;;  %v8270_v58 = vld [vmem:[#allocation15_spill] sm:$0xff] }
 0xb62   :  { %v3641_v37 = vsel %vm3638_vm13, %v3640_v33, %v3636_v45  ;;  %3910 = vmatpush.msra.mxu0 %v8263_v49  ;;  %v8271_v33 = vld [vmem:[#allocation50_spill] sm:$0xff]  ;;  %v8272_v45 = vld [vmem:[#allocation28_spill] sm:$0xff]  ;;  %v3442_v49 = vadd.f32 %v3360_v8, %v8276_v32 }
 0xb63   :  { %v3644_v38 = vmul.f32 %v3641_v37, %v7297_v21  ;;  %v8273_v37 = vld [vmem:[#allocation27_spill] sm:$0xff] }
 0xb64   :  { %3911 = vmatpush.msra.mxu0 %v8264_v62  ;;  %v3504_v62 = vmul.f32 %v7378_v25, %v8236_v51 }
 0xb65   :  { %3680 = vmatmul.f32.gmra.mxu2 %v3644_v38  ;;  %v8274_v38 = vld [vmem:[#allocation29_spill] sm:$0xff] }
 0xb66   :  { %3912 = vmatpush.msra.mxu0 %v8265_v12  ;;  %v3533_v12 = vadd.f32 %v7382_v61, %v3442_v49  ;;  %v8279_v61 = vld [vmem:[#allocation39_spill] sm:$0xff] }
 0xb68   :  { %3913 = vmatpush.msra.mxu0 %v8266_v24  ;;  %v8277_v24 = vld [vmem:[#allocation14_spill] sm:$0xff] }
 0xb69   :  { %v231_v49 = vadd.f32 %v8279_v61, %v8277_v24 }
 0xb6a   :  { %3914 = vmatpush.msra.mxu0 %v8267_v30  ;;  %v8278_v30 = vld [vmem:[#allocation38_spill] sm:$0xff] }
 0xb6c   :  { %3915 = vmatpush.msra.mxu0 %v8268_v9  ;;  %v228_v9 = vadd.f32 %v8278_v30, %v8277_v24  ;;  %v3526_v24 = vmul.f32 %v7395_v6, %v8137_v13 }
 0xb6e   :  { %3916 = vmatpush.msra.mxu0 %v8269_v41  ;;  %v3490_v41 = vmul.f32 %v7385_v7, %v8238_v17 }
 0xb70   :  { %3917 = vmatpush.msra.mxu0 %v8270_v58  ;;  %v3524_v58 = vmul.f32 %v7395_v6, %v8241_v53 }
 0xb72   :  { %3918 = vmatpush.msra.mxu0 %v8271_v33  ;;  %v3510_v33 = vadd.f32 %v3504_v62, %v3490_v41  ;;  %v7510_v62 = vld [vmem:[#allocation9 + $0x100] sm:$0xff] }
 0xb73   :  { %3848 = vmatpush.msra.mxu1 %v7510_v62 }
 0xb74   :  { %3919 = vmatpush.msra.mxu0 %v8272_v45  ;;  %v3557_v45 = vadd.f32 %v3533_v12, %v228_v9  ;;  %v7513_v9 = vld [vmem:[#allocation9 + $0xd0] sm:$0xff] }
 0xb75   :  { %3849 = vmatpush.msra.mxu1 %v7513_v9 }
 0xb76   :  { %3920 = vmatpush.msra.mxu0 %v8273_v37  ;;  %v3363_v37 = vpop.f32.mrf.mxu2 }
 0xb77   :  { %v3445_v8 = vadd.f32 %v3363_v37, %v8276_v32 }
 0xb78   :  { %3921 = vmatpush.msra.mxu0 %v8274_v38  ;;  %v3530_v38 = vadd.f32 %v3524_v58, %v3510_v33 }
 0xb7a   :  { %3922 = vmatpush.msra.mxu0 %v8275_v39  ;;  %v3314_v39 = vpop.f32.mrf.mxu0  ;;  %v3536_v26 = vadd.f32 %v3530_v38, %v3445_v8 }
 0xb7b   :  { %v3563_v27 = vadd.f32 %v3557_v45, %v3314_v39  ;;  %v3506_v39 = vmul.f32 %v7378_v25, %v8237_v1 }
 0xb7c   :  { %v3560_v30 = vadd.f32 %v3536_v26, %v231_v49  ;;  %v7516_v26 = vld [vmem:[#allocation9 + $0xa0] sm:$0xff]  ;;  %v8280_v49 = vld [vmem:[#allocation23_spill] sm:$0xff] }
 0xb7d   :  { %v4568_v44 = vmul.f32 -1.442695, %v3563_v27  ;;  %3850 = vmatpush.msra.mxu1 %v7516_v26 }
 0xb7f   :  { %4794 = vpow2.f32 %v4568_v44  ;;  %v7522_v44 = vld [vmem:[#allocation9 + $0x40] sm:$0xff] }
 0xb82   :  { %v3317_v35 = vpop.f32.mrf.mxu0 }
 0xb83   :  { %v3565_v18 = vadd.f32 %v3560_v30, %v3317_v35  ;;  %v358_v30 = vadd.f32 %v8280_v49, %v5212_v5 }
 0xb85   :  { %v4795_v50 = vpop.eup %4794  ;;  %v4570_v59 = vmul.f32 -1.442695, %v3565_v18  ;;  %v7519_v18 = vld [vmem:[#allocation9 + $0x70] sm:$0xff] }
 0xb86   :  { %v3579_v12 = vadd.f32 1.0, %v4795_v50  ;;  %3851 = vmatpush.msra.mxu1 %v7519_v18  ;;  %v7525_v50 = vld [vmem:[#allocation9 + $0x10] sm:$0xff] }
 0xb87   :  { %4796 = vpow2.f32 %v4570_v59 }
 0xb88   :  { %4798 = vrcp.f32 %v3579_v12  ;;  %3852 = vmatpush.msra.mxu1 %v7522_v44  ;;  %vm3588_vm15 = vweird.f32 %v3579_v12  ;;  %v3592_v25 = vand.u32 2147483647, %v3579_v12 }
 0xb8a   :  { %3853 = vmatpush.msra.mxu1 %v7525_v50  ;;  %v3406_v58 = vpop.f32.mrf.mxu0  ;;  %vm3593_vm1 = vcmp.eq.f32.partialorder %v3592_v25, 8.507059e+37 }
 0xb8b   :  { %v3444_v37 = vadd.f32 %v3406_v58, %v5715_v42 }
 0xb8d   :  { %v4797_v35 = vpop.eup %4796  ;;  %v3535_v8 = vadd.f32 %v7387_v46, %v3444_v37 }
 0xb8e   :  { %v4799_v59 = vpop.eup %4798  ;;  %v3581_v27 = vadd.f32 1.0, %v4797_v35  ;;  %v3492_v35 = vmul.f32 %v7385_v7, %v5406_v31 }
 0xb8f   :  { %v3584_v41 = vmul.f32 %v4799_v59, %v3579_v12  ;;  %vm3589_vm14 = vweird.f32 %v4799_v59  ;;  %v3559_v58 = vadd.f32 %v3535_v8, %v358_v30 }
 0xb90   :  { %4800 = vrcp.f32 %v3581_v27  ;;  %v3512_v32 = vadd.f32 %v3506_v39, %v3492_v35  ;;  %vm3590_vm0 = vmor %vm3588_vm15, %vm3589_vm14  ;;  %v8281_v39 = vld [vmem:[#allocation24_spill] sm:$0xff]  ;;  %vm3618_vm3 = vweird.f32 %v3581_v27 }
 0xb91   :  { %v3585_v33 = vsub.f32 1.0, %v3584_v41  ;;  %v361_v8 = vadd.f32 %v8281_v39, %v5212_v5 }
 0xb92   :  { %v3409_v36 = vpop.f32.mrf.mxu0  ;;  %v3532_v37 = vadd.f32 %v3526_v24, %v3512_v32  ;;  %v4575_v32 = vld [vmem:[%s7774_s1 + $0x78] sm:$0xff] }
 0xb93   :  { %v3586_v38 = vmul.f32 %v4799_v59, %v3585_v33  ;;  %v3594_v33 = vand.u32 2147483648, %v3579_v12  ;;  %v3447_v4 = vadd.f32 %v3409_v36, %v5715_v42  ;;  %v3624_v12 = vand.u32 2147483648, %v3581_v27 }
 0xb94   :  { %v3949_v36 = vsub.f32 %v4575_v32, %v7271_v29  ;;  %v4146_v32 = vld [vmem:[%s7777_s4 + $0x30] sm:$0xff] }
 0xb95   :  { %v3587_v41 = vadd.f32 %v4799_v59, %v3586_v38  ;;  %v3595_v7 = vor.u32 1.1754944e-38, %v3594_v33  ;;  %v3538_v54 = vadd.f32 %v3532_v37, %v3447_v4  ;;  %v3622_v4 = vand.u32 2147483647, %v3581_v27 }
 0xb96   :  { %v4801_v45 = vpop.eup %4800 }
 0xb97   :  { %v3614_v61 = vmul.f32 %v4801_v45, %v3581_v27  ;;  %v3591_v49 = vsel %vm3590_vm0, %v4799_v59, %v3587_v41  ;;  %vm3619_vm2 = vweird.f32 %v4801_v45  ;;  %v3562_v24 = vadd.f32 %v3538_v54, %v361_v8 }
 0xb98   :  { %v3596_v38 = vsel %vm3593_vm1, %v3595_v7, %v3591_v49  ;;  %vm3620_vm5 = vmor %vm3618_vm3, %vm3619_vm2  ;;  %vm3623_vm7 = vcmp.eq.f32.partialorder %v3622_v4, 8.507059e+37  ;;  %v4145_v4 = vld [vmem:[%s7777_s4 + $0x28] sm:$0xff] }
 0xb99   :  { %v3615_v46 = vsub.f32 1.0, %v3614_v61  ;;  %v3690_v30 = vsub.f32 1.0, %v3596_v38 }
 0xb9b   :  { %v3616_v6 = vmul.f32 %v4801_v45, %v3615_v46  ;;  %v3625_v46 = vor.u32 1.1754944e-38, %v3624_v12 }
 0xb9d   :  { %v3617_v35 = vadd.f32 %v4801_v45, %v3616_v6 }
 0xb9f   :  { %v3621_v25 = vsel %vm3620_vm5, %v4801_v45, %v3617_v35 }
 0xbde   :  { %v3678_v34 = vpop.f32.mrf.mxu2 }
 0xbdf   :  { %v3684_v14 = vadd.f32 %v3678_v34, %v3559_v58  ;;  %v3951_v58 = vand.u32 2147483647, %v3949_v36 }
 0xbe1   :  { %4802 = vtanh.f32 %v3684_v14  ;;  %v3688_v14 = vmul.f32 %v3596_v38, %v7281_v60  ;;  %vm3953_vm6 = vcmp.lt.f32.partialorder %v3951_v58, 1e-12  ;;  %v3626_v60 = vsel %vm3623_vm7, %v3625_v46, %v3621_v25  ;;  %v4147_v38 = vld [vmem:[%s7777_s4 + $0x38] sm:$0xff]  ;;  %v4144_v46 = vld [vmem:[%s7777_s4 + $0x20] sm:$0xff] }
 0xbe2   :  { %v3955_v29 = vsel %vm3953_vm6, 1.0, %v3949_v36  ;;  %v3691_v54 = vsub.f32 1.0, %v3626_v60  ;;  %v3689_v45 = vmul.f32 %v3626_v60, %v7297_v21  ;;  %v4143_v60 = vld [vmem:[%s7777_s4 + $0x18] sm:$0xff] }
 0xbe7   :  { %v4803_v34 = vpop.eup %4802 }
 0xbe8   :  { %v3692_v59 = vmul.f32 %v4803_v34, %v3690_v30  ;;  %v3681_v61 = vpop.f32.mrf.mxu2 }
 0xbe9   :  { %v3685_v41 = vadd.f32 %v3681_v61, %v3562_v24 }
 0xbea   :  { %v7546_v33 = vadd.f32 %v3692_v59, %v3688_v14 }
 0xbeb   :  { %4804 = vtanh.f32 %v3685_v41 }
 0xbec   :  { %3808 = vmatmul.f32.vlgmr.msrb.gmra.mxu3 %v7546_v33  ;;  %3831 = vmatmul.f32.vlgmr.msrb.gmra.mxu0 %v7546_v33  ;;  %4806 = vrcp.f32 %v3955_v29 }
 0xbed   :  { %3854 = vmatmul.f32.vlgmr.msra.gmra.mxu1 %v7546_v33  ;;  %3877 = vmatmul.f32.vlgmr.msrb.gmra.mxu2 %v7546_v33 }
 0xbee   :  { %4333 = vmatpush.msrb.mxu0 %v7411_v28 }
 0xbf0   :  { %4334 = vmatpush.msrb.mxu0 %v7415_v63 }
 0xbf1   :  { %v4805_v27 = vpop.eup %4804 }
 0xbf2   :  { %v3693_v37 = vmul.f32 %v4805_v27, %v3691_v54  ;;  %4335 = vmatpush.msrb.mxu0 %v7419_v16  ;;  %v4807_v49 = vpop.eup %4806 }
 0xbf3   :  { %3967 = vperm.xlu1 %4636, %v4807_v49   ;;  %v4142_v49 = vld [vmem:[%s7777_s4 + $0x10] sm:$0xff] }
 0xbf4   :  { %v7556_v7 = vadd.f32 %v3693_v37, %v3689_v45  ;;  %4336 = vmatpush.msrb.mxu0 %v7425_v47 }
 0xbf6   :  { %3811 = vmatmul.f32.gmra.mxu3 %v7556_v7  ;;  %3834 = vmatmul.f32.gmra.mxu0 %v7556_v7 }
 0xbf7   :  { %3857 = vmatmul.f32.gmra.mxu1 %v7556_v7  ;;  %3880 = vmatmul.f32.gmra.mxu2 %v7556_v7 }
 0xbf8   :  { %4337 = vmatpush.msrb.mxu0 %v7431_v2  ;;  %v3963_v2 = vpop.permute.xlu2 %3962 }
 0xbfa   :  { %4338 = vmatpush.msrb.mxu0 %v7437_v22 }
 0xbfb   :  { %4637 = vset.pattern.permute.xlu1 %v8235_v56 }
 0xbfc   :  { %4339 = vmatpush.msrb.mxu0 %v7443_v40 }
 0xbfe   :  { %3900 = vmatmul.f32.vlgmr.msra.gmra.mxu3 %v7546_v33  ;;  %3923 = vmatmul.f32.vlgmr.msra.gmra.mxu0 %v7546_v33 }
 0xbff   :  { %4340 = vmatpush.msrb.mxu0 %v7449_v10 }
 0xc01   :  { %4341 = vmatpush.msrb.mxu0 %v7455_v3 }
 0xc03   :  { %4342 = vmatpush.msrb.mxu0 %v7507_v52 }
 0xc05   :  { %4343 = vmatpush.msrb.mxu0 %v7510_v62  ;;  %v4154_v62 = vld [vmem:[%s7777_s4 + $0x70] sm:$0xff] }
 0xc06   :  { %3903 = vmatmul.f32.gmra.mxu3 %v7556_v7  ;;  %3926 = vmatmul.f32.gmra.mxu0 %v7556_v7 }
 0xc07   :  { %4344 = vmatpush.msrb.mxu0 %v7513_v9  ;;  %v4152_v9 = vld [vmem:[%s7777_s4 + $0x60] sm:$0xff] }
 0xc09   :  { %4345 = vmatpush.msrb.mxu0 %v7516_v26  ;;  %v4150_v26 = vld [vmem:[%s7777_s4 + $0x50] sm:$0xff] }
 0xc0b   :  { %4346 = vmatpush.msrb.mxu0 %v7519_v18  ;;  %v4149_v18 = vld [vmem:[%s7777_s4 + $0x48] sm:$0xff] }
 0xc0d   :  { %4347 = vmatpush.msrb.mxu0 %v7522_v44 }
 0xc0f   :  { %4348 = vmatpush.msrb.mxu0 %v7525_v50  ;;  %v4148_v50 = vld [vmem:[%s7777_s4 + $0x40] sm:$0xff] }
 0xc65   :  { %v3968_v10 = vpop.permute.xlu1 %3967 }
 0xc69   :  { %v7580_v21 = vpop.f32.mrf.mxu0 }
 0xc70   :  { %v3878_v6 = vpop.f32.mrf.mxu2 }
 0xc71   :  { %v3938_v54 = vadd.f32 %v3878_v6, %v8243_v55 }
 0xc73   :  { %v7582_v28 = vpop.f32.mrf.mxu0 }
 0xc7b   :  { %v3924_v63 = vpop.f32.mrf.mxu0 }
 0xc7c   :  { %v3930_v16 = vadd.f32 %v7345_v23, %v3924_v63  ;;  %v8282_v63 = vld [vmem:[#allocation60_spill] sm:$0xff] }
 0xc7e   :  { %4572 = vst.msk [vmem:[%s7783_s10 + $0x60] sm:$0xff] %vm67_vm4, %v3930_v16  ;;  %v3956_v47 = vsub.f32 %v3930_v16, %v7348_v57 }
 0xc7f   :  { %4452 = vst.msk [vmem:[#allocation7] sm:$0xff] %vm67_vm4, %v3930_v16  ;;  %v299_v16 = vadd.f32 %v8282_v63, %v8244_v20 }
 0xc80   :  { %v3970_v22 = vmul.f32 %v3963_v2, %v3956_v47 }
 0xc82   :  { %4009 = vperm.xlu1 %4637, %v3970_v22   ;;  %3989 = vperm.xlu0 %4635, %v3970_v22  }
 0xc83   :  { %3974 = vperm.xlu2 %4634, %v3970_v22   ;;  %v3927_v52 = vpop.f32.mrf.mxu0 }
 0xc84   :  { %v3931_v40 = vadd.f32 %v7345_v23, %v3927_v52  ;;  %v4155_v23 = vld [vmem:[%s7777_s4 + $0x78] sm:$0xff] }
 0xc85   :  { %4156 = vmatpush.msrb.mxu1 %v4155_v23 }
 0xc86   :  { %4573 = vst.msk [vmem:[%s7783_s10 + $0x68] sm:$0xff] %vm67_vm4, %v3931_v40  ;;  %v3957_v3 = vsub.f32 %v3931_v40, %v7359_v43  ;;  %v4153_v43 = vld [vmem:[%s7777_s4 + $0x68] sm:$0xff] }
 0xc87   :  { %4453 = vst.msk [vmem:[#allocation7 + $0x8] sm:$0xff] %vm67_vm4, %v3931_v40  ;;  %4157 = vmatpush.msrb.mxu1 %v4154_v62 }
 0xc88   :  { %v3971_v57 = vmul.f32 %v3968_v10, %v3957_v3  ;;  %v4141_v3 = vld [vmem:[%s7777_s4 + $0x8] sm:$0xff] }
 0xc89   :  { %4158 = vmatpush.msrb.mxu1 %v4153_v43 }
 0xc8a   :  { %4013 = vperm.xlu1 %4637, %v3971_v57   ;;  %3993 = vperm.xlu0 %4635, %v3971_v57  }
 0xc8b   :  { %3979 = vperm.xlu2 %4634, %v3971_v57   ;;  %4159 = vmatpush.msrb.mxu1 %v4152_v9  ;;  %v3881_v57 = vpop.f32.mrf.mxu2 }
 0xc92   :  { %4638 = vset.pattern.permute.xlu0 %v8235_v56  ;;  %v4151_v56 = vld [vmem:[%s7777_s4 + $0x58] sm:$0xff] }
 0xc93   :  { %4160 = vmatpush.msrb.mxu1 %v4151_v56 }
 0xc95   :  { %4161 = vmatpush.msrb.mxu1 %v4150_v26 }
 0xc97   :  { %4162 = vmatpush.msrb.mxu1 %v4149_v18 }
 0xc99   :  { %4163 = vmatpush.msrb.mxu1 %v4148_v50 }
 0xc9b   :  { %4164 = vmatpush.msrb.mxu1 %v4147_v38 }
 0xc9d   :  { %4165 = vmatpush.msrb.mxu1 %v4146_v32  ;;  %v4282_v32 = vld [vmem:[#allocation9 + $0x2d8] sm:$0xff] }
 0xc9e   :  { %4310 = vmatpush.msrb.mxu3 %v4282_v32 }
 0xc9f   :  { %4166 = vmatpush.msrb.mxu1 %v4145_v4  ;;  %v4266_v4 = vld [vmem:[#allocation9 + $0x258] sm:$0xff] }
 0xca0   :  { %4311 = vmatpush.msrb.mxu3 %v7404_v48 }
 0xca1   :  { %4167 = vmatpush.msrb.mxu1 %v4144_v46  ;;  %v7689_v46 = vld [vmem:[#allocation9 + $0x2f8] sm:$0xff] }
 0xca2   :  { %4312 = vmatpush.msrb.mxu3 %v7406_v11  ;;  %v4245_v11 = vld [vmem:[#allocation9 + $0x1b0] sm:$0xff]  ;;  %4402 = vmatpush.msra.mxu0 %v7689_v46 }
 0xca3   :  { %4168 = vmatpush.msrb.mxu1 %v4143_v60 }
 0xca5   :  { %4169 = vmatpush.msrb.mxu1 %v4142_v49  ;;  %v4254_v49 = vld [vmem:[#allocation9 + $0x1f8] sm:$0xff] }
 0xca7   :  { %4170 = vmatpush.msrb.mxu1 %v4141_v3  ;;  %v8288_v3 = vld [vmem:[#allocation54_spill] sm:$0xff] }
 0xcdd   :  { %v3975_v44 = vpop.permute.xlu2 %3974 }
 0xcde   :  { %v3982_v30 = vmul.f32 %v3975_v44, %v8238_v17  ;;  %v3983_v34 = vmul.f32 %v3975_v44, %v8239_v0  ;;  %v3984_v24 = vmul.f32 %v3975_v44, %v5406_v31 }
 0xce5   :  { %v3980_v27 = vpop.permute.xlu2 %3979 }
 0xce6   :  { %v3985_v52 = vmul.f32 %v3980_v27, %v8238_v17  ;;  %v3986_v40 = vmul.f32 %v3980_v27, %v8239_v0  ;;  %v3987_v10 = vmul.f32 %v3980_v27, %v5406_v31  ;;  %v4140_v31 = vld [vmem:[%s7777_s4] sm:$0xff] }
 0xce7   :  { %4171 = vmatpush.msrb.mxu1 %v4140_v31 }
 0xcf4   :  { %v4010_v39 = vpop.permute.xlu1 %4009  ;;  %v3990_v8 = vpop.permute.xlu0 %3989 }
 0xcf5   :  { %v3996_v35 = vmul.f32 %v3990_v8, %v8236_v51  ;;  %v3997_v12 = vmul.f32 %v3990_v8, %v8240_v19  ;;  %v3998_v36 = vmul.f32 %v3990_v8, %v8237_v1  ;;  %v4016_v14 = vmul.f32 %v4010_v39, %v8241_v53 }
 0xcf6   :  { %v4017_v61 = vmul.f32 %v4010_v39, %v8242_v15  ;;  %v4018_v41 = vmul.f32 %v4010_v39, %v8137_v13 }
 0xcf7   :  { %v4002_v59 = vadd.f32 %v3996_v35, %v3982_v30  ;;  %v4003_v58 = vadd.f32 %v3997_v12, %v3983_v34  ;;  %v4004_v25 = vadd.f32 %v3998_v36, %v3984_v24  ;;  %v4275_v34 = vld [vmem:[#allocation9 + $0x2a0] sm:$0xff]  ;;  %v4269_v24 = vld [vmem:[#allocation9 + $0x270] sm:$0xff]  ;;  %v4278_v12 = vld [vmem:[#allocation9 + $0x2b8] sm:$0xff] }
 0xcf8   :  { %v4263_v36 = vld [vmem:[#allocation9 + $0x240] sm:$0xff] }
 0xcf9   :  { %v7644_v29 = vadd.f32 %v4016_v14, %v4002_v59  ;;  %v4023_v45 = vadd.f32 %v4017_v61, %v4003_v58  ;;  %v7650_v37 = vadd.f32 %v4018_v41, %v4004_v25  ;;  %v4257_v14 = vld [vmem:[#allocation9 + $0x210] sm:$0xff]  ;;  %v4251_v41 = vld [vmem:[#allocation9 + $0x1e0] sm:$0xff]  ;;  %v8285_v58 = vld [vmem:[#allocation35_spill] sm:$0xff] }
 0xcfa   :  { %v8284_v59 = vld [vmem:[#allocation34_spill] sm:$0xff]  ;;  %v4260_v25 = vld [vmem:[#allocation9 + $0x228] sm:$0xff] }
 0xcfb   :  { %v4029_v47 = vadd.f32 %v4023_v45, %v3938_v54  ;;  %4313 = vmatpush.msrb.mxu3 %v8284_v59  ;;  %v8286_v45 = vld [vmem:[#allocation19_spill] sm:$0xff]  ;;  %v3855_v59 = vpop.f32.mrf.mxu1 }
 0xcfc   :  { %v4014_v2 = vpop.permute.xlu1 %4013  ;;  %v3994_v22 = vpop.permute.xlu0 %3993 }
 0xcfd   :  { %v4053_v23 = vadd.f32 %v4029_v47, %v299_v16  ;;  %v3999_v62 = vmul.f32 %v3994_v22, %v8236_v51  ;;  %v4000_v43 = vmul.f32 %v3994_v22, %v8240_v19  ;;  %v4001_v9 = vmul.f32 %v3994_v22, %v8237_v1  ;;  %4314 = vmatpush.msrb.mxu3 %v8285_v58  ;;  %v4239_v16 = vld [vmem:[#allocation9 + $0x180] sm:$0xff]  ;;  %v8299_v58 = vld [vmem:[#allocation43_spill] sm:$0xff] }
 0xcfe   :  { %v4019_v56 = vmul.f32 %v4014_v2, %v8241_v53  ;;  %v4020_v17 = vmul.f32 %v4014_v2, %v8242_v15  ;;  %v4021_v0 = vmul.f32 %v4014_v2, %v8137_v13  ;;  %v3941_v19 = vadd.f32 %v3881_v57, %v8243_v55  ;;  %v8283_v13 = vld [vmem:[#allocation61_spill] sm:$0xff]  ;;  %v4281_v55 = vld [vmem:[#allocation9 + $0x2d0] sm:$0xff]  ;;  %v8287_v22 = vld [vmem:[#allocation20_spill] sm:$0xff] }
 0xcff   :  { %v4059_v26 = vadd.f32 %v4053_v23, %v7580_v21  ;;  %v4005_v18 = vadd.f32 %v3999_v62, %v3985_v52  ;;  %v4006_v44 = vadd.f32 %v4000_v43, %v3986_v40  ;;  %v4007_v51 = vadd.f32 %v4001_v9, %v3987_v10  ;;  %4287 = vmatpush.msra.mxu2 %v4281_v55  ;;  %v4248_v52 = vld [vmem:[#allocation9 + $0x1c8] sm:$0xff]  ;;  %v4233_v40 = vld [vmem:[#allocation9 + $0x150] sm:$0xff]  ;;  %v4242_v57 = vld [vmem:[#allocation9 + $0x198] sm:$0xff] }
 0xd00   :  { %v302_v15 = vadd.f32 %v8283_v13, %v8244_v20  ;;  %v4284_v20 = vld [vmem:[#allocation9 + $0x2e8] sm:$0xff]  ;;  %4315 = vmatpush.msrb.mxu3 %v8286_v45  ;;  %v4227_v62 = vld [vmem:[#allocation9 + $0x120] sm:$0xff] }
 0xd01   :  { %v4577_v1 = vmul.f32 -1.442695, %v4059_v26  ;;  %v7674_v50 = vadd.f32 %v4019_v56, %v4005_v18  ;;  %v4026_v53 = vadd.f32 %v4020_v17, %v4006_v44  ;;  %v7676_v6 = vadd.f32 %v4021_v0, %v4007_v51  ;;  %4288 = vmatpush.msra.mxu2 %v4275_v34  ;;  %4356 = vmatpush.msra.mxu1 %v4284_v20  ;;  %v8289_v9 = vld [vmem:[#allocation56_spill] sm:$0xff]  ;;  %v4236_v56 = vld [vmem:[#allocation9 + $0x168] sm:$0xff]  ;;  %v4221_v0 = vld [vmem:[#allocation9 + $0xf0] sm:$0xff] }
 0xd02   :  { %4316 = vmatpush.msrb.mxu3 %v8287_v22  ;;  %v8290_v18 = vld [vmem:[#allocation49_spill] sm:$0xff]  ;;  %v4215_v51 = vld [vmem:[#allocation9 + $0xc0] sm:$0xff]  ;;  %v8294_v34 = vld [vmem:[#allocation79_spill] sm:$0xff] }
 0xd03   :  { %4808 = vpow2.f32 %v4577_v1  ;;  %v4032_v38 = vadd.f32 %v4026_v53, %v3941_v19  ;;  %4289 = vmatpush.msra.mxu2 %v4269_v24  ;;  %4357 = vmatpush.msra.mxu1 %v4278_v12  ;;  %v8291_v1 = vld [vmem:[#allocation76_spill] sm:$0xff]  ;;  %v4209_v53 = vld [vmem:[#allocation9 + $0x90] sm:$0xff] }
 0xd04   :  { %4317 = vmatpush.msrb.mxu3 %v8288_v3  ;;  %v4191_v24 = vld [vmem:[#allocation9] sm:$0xff]  ;;  %v4280_v3 = vld [vmem:[#allocation9 + $0x2c8] sm:$0xff] }
 0xd05   :  { %v4056_v39 = vadd.f32 %v4032_v38, %v302_v15  ;;  %4290 = vmatpush.msra.mxu2 %v4263_v36  ;;  %v8295_v36 = vld [vmem:[#allocation80_spill] sm:$0xff]  ;;  %4403 = vmatpush.msra.mxu0 %v4280_v3 }
 0xd06   :  { %4318 = vmatpush.msrb.mxu3 %v8289_v9  ;;  %v4267_v9 = vld [vmem:[#allocation9 + $0x260] sm:$0xff] }
 0xd07   :  { %v4061_v21 = vadd.f32 %v4056_v39, %v7582_v28  ;;  %v4272_v28 = vld [vmem:[#allocation9 + $0x288] sm:$0xff]  ;;  %4291 = vmatpush.msra.mxu2 %v4257_v14 }
 0xd08   :  { %4358 = vmatpush.msra.mxu1 %v4272_v28  ;;  %4319 = vmatpush.msrb.mxu3 %v8290_v18  ;;  %v8292_v39 = vld [vmem:[#allocation77_spill] sm:$0xff]  ;;  %v4285_v28 = vld [vmem:[#allocation9 + $0x2f0] sm:$0xff]  ;;  %v4255_v18 = vld [vmem:[#allocation9 + $0x200] sm:$0xff] }
 0xd09   :  { %v4809_v8 = vpop.eup %4808  ;;  %v4579_v35 = vmul.f32 -1.442695, %v4061_v21  ;;  %4292 = vmatpush.msra.mxu2 %v4251_v41  ;;  %v4203_v21 = vld [vmem:[#allocation9 + $0x60] sm:$0xff]  ;;  %v8296_v14 = vld [vmem:[#allocation81_spill] sm:$0xff] }
 0xd0a   :  { %v7681_v30 = vadd.f32 1.0, %v4809_v8  ;;  %4359 = vmatpush.msra.mxu1 %v4266_v4  ;;  %4320 = vmatpush.msrb.mxu3 %v8291_v1  ;;  %v8297_v4 = vld [vmem:[#allocation57_spill] sm:$0xff]  ;;  %v4249_v1 = vld [vmem:[#allocation9 + $0x1d0] sm:$0xff] }
 0xd0b   :  { %4293 = vmatpush.msra.mxu2 %v4245_v11  ;;  %v3858_v11 = vpop.f32.mrf.mxu1 }
 0xd0c   :  { %4810 = vrcp.f32 %v7681_v30  ;;  %v4104_v63 = vand.u32 2147483648, %v7681_v30  ;;  %4360 = vmatpush.msra.mxu1 %v4260_v25  ;;  %v4102_v2 = vand.u32 2147483647, %v7681_v30  ;;  %vm4098_vm9 = vweird.f32 %v7681_v30  ;;  %4321 = vmatpush.msrb.mxu3 %v8292_v39  ;;  %v4243_v39 = vld [vmem:[#allocation9 + $0x1a0] sm:$0xff] }
 0xd0d   :  { %4812 = vpow2.f32 %v4579_v35  ;;  %4294 = vmatpush.msra.mxu2 %v4239_v16  ;;  %v4197_v35 = vld [vmem:[#allocation9 + $0x30] sm:$0xff]  ;;  %v3940_v45 = vadd.f32 %v3858_v11, %v8297_v4  ;;  %v8300_v16 = vld [vmem:[#allocation12_spill] sm:$0xff]  ;;  %v8301_v11 = vld [vmem:[#allocation25_spill] sm:$0xff] }
 0xd0e   :  { %4361 = vmatpush.msra.mxu1 %v4254_v49  ;;  %v4105_v23 = vor.u32 1.1754944e-38, %v4104_v63  ;;  %vm4103_vm11 = vcmp.eq.f32.partialorder %v4102_v2, 8.507059e+37 }
 0xd0f   :  { %4295 = vmatpush.msra.mxu2 %v4233_v40  ;;  %v4031_v49 = vadd.f32 %v7674_v50, %v3940_v45  ;;  %v4230_v40 = vld [vmem:[#allocation9 + $0x138] sm:$0xff]  ;;  %v4224_v50 = vld [vmem:[#allocation9 + $0x108] sm:$0xff] }
 0xd10   :  { %4362 = vmatpush.msra.mxu1 %v4248_v52  ;;  %v4202_v45 = vld [vmem:[#allocation9 + $0x58] sm:$0xff] }
 0xd11   :  { %4296 = vmatpush.msra.mxu2 %v4227_v62  ;;  %v4274_v62 = vld [vmem:[#allocation9 + $0x298] sm:$0xff] }
 0xd12   :  { %v4811_v61 = vpop.eup %4810  ;;  %4363 = vmatpush.msra.mxu1 %v4242_v57  ;;  %4404 = vmatpush.msra.mxu0 %v4274_v62 }
 0xd13   :  { %v4094_v48 = vmul.f32 %v4811_v61, %v7681_v30  ;;  %v4813_v60 = vpop.eup %4812  ;;  %vm4099_vm8 = vweird.f32 %v4811_v61  ;;  %4297 = vmatpush.msra.mxu2 %v4221_v0  ;;  %v8293_v30 = vld [vmem:[#allocation78_spill] sm:$0xff] }
 0xd14   :  { %v7692_v54 = vadd.f32 1.0, %v4813_v60  ;;  %vm4100_vm10 = vmor %vm4098_vm9, %vm4099_vm8  ;;  %4364 = vmatpush.msra.mxu1 %v4236_v56  ;;  %4322 = vmatpush.msrb.mxu3 %v8293_v30  ;;  %v4268_v56 = vld [vmem:[#allocation9 + $0x268] sm:$0xff]  ;;  %v4261_v0 = vld [vmem:[#allocation9 + $0x230] sm:$0xff] }
 0xd15   :  { %v4095_v27 = vsub.f32 1.0, %v4094_v48  ;;  %4298 = vmatpush.msra.mxu2 %v4215_v51  ;;  %v8298_v48 = vld [vmem:[#allocation14_spill] sm:$0xff]  ;;  %4405 = vmatpush.msra.mxu0 %v4268_v56 }
 0xd16   :  { %4814 = vrcp.f32 %v7692_v54  ;;  %v4134_v13 = vand.u32 2147483648, %v7692_v54  ;;  %v4132_v38 = vand.u32 2147483647, %v7692_v54  ;;  %vm4128_vm13 = vweird.f32 %v7692_v54  ;;  %4323 = vmatpush.msrb.mxu3 %v8294_v34  ;;  %4365 = vmatpush.msra.mxu1 %v4230_v40  ;;  %v4237_v30 = vld [vmem:[#allocation9 + $0x170] sm:$0xff] }
 0xd17   :  { %v4096_v47 = vmul.f32 %v4811_v61, %v4095_v27  ;;  %4299 = vmatpush.msra.mxu2 %v4209_v53  ;;  %v234_v25 = vadd.f32 %v8299_v58, %v8298_v48  ;;  %v4250_v53 = vld [vmem:[#allocation9 + $0x1d8] sm:$0xff] }
 0xd18   :  { %v4135_v55 = vor.u32 1.1754944e-38, %v4134_v13  ;;  %vm4133_vm15 = vcmp.eq.f32.partialorder %v4132_v38, 8.507059e+37  ;;  %4324 = vmatpush.msrb.mxu3 %v8295_v36  ;;  %4366 = vmatpush.msra.mxu1 %v4224_v50  ;;  %v4194_v38 = vld [vmem:[#allocation9 + $0x18] sm:$0xff]  ;;  %v4219_v36 = vld [vmem:[#allocation9 + $0xe0] sm:$0xff] }
 0xd19   :  { %v4097_v10 = vadd.f32 %v4811_v61, %v4096_v47  ;;  %4300 = vmatpush.msra.mxu2 %v4203_v21  ;;  %v4244_v21 = vld [vmem:[#allocation9 + $0x1a8] sm:$0xff] }
 0xd1a   :  { %4325 = vmatpush.msrb.mxu3 %v8296_v14 }
 0xd1b   :  { %v4101_v43 = vsel %vm4100_vm10, %v4811_v61, %v4097_v10  ;;  %4301 = vmatpush.msra.mxu2 %v4197_v35  ;;  %v3937_v61 = vadd.f32 %v3855_v59, %v8297_v4  ;;  %v4279_v10 = vld [vmem:[#allocation9 + $0x2c0] sm:$0xff]  ;;  %v4238_v35 = vld [vmem:[#allocation9 + $0x178] sm:$0xff] }
 0xd1c   :  { %v4106_v17 = vsel %vm4103_vm11, %v4105_v23, %v4101_v43  ;;  %v4815_v31 = vpop.eup %4814  ;;  %4584 = vmatpush.msra.mxu3 %v7689_v46  ;;  %v237_v46 = vadd.f32 %v8300_v16, %v8298_v48  ;;  %v4273_v23 = vld [vmem:[#allocation9 + $0x290] sm:$0xff]  ;;  %v4218_v43 = vld [vmem:[#allocation9 + $0xd8] sm:$0xff]  ;;  %v4207_v48 = vld [vmem:[#allocation9 + $0x80] sm:$0xff] }
 0xd1d   :  { %v4138_v26 = vmul.f32 %v4106_v17, %v7546_v33  ;;  %v4124_v44 = vmul.f32 %v4815_v31, %v7692_v54  ;;  %vm4129_vm12 = vweird.f32 %v4815_v31  ;;  %4302 = vmatpush.msra.mxu2 %v4191_v24  ;;  %v4028_v41 = vadd.f32 %v7644_v29, %v3937_v61  ;;  %v3809_v54 = vpop.f32.mrf.mxu3  ;;  %4367 = vmatpush.msra.mxu1 %v4218_v43  ;;  %v4212_v17 = vld [vmem:[#allocation9 + $0xa8] sm:$0xff]  ;;  %v4213_v61 = vld [vmem:[#allocation9 + $0xb0] sm:$0xff] }
 0xd1e   :  { %vm4130_vm14 = vmor %vm4128_vm13, %vm4129_vm12  ;;  %v4055_v47 = vadd.f32 %v4031_v49, %v237_v46  ;;  %4585 = vmatpush.msra.mxu3 %v4280_v3  ;;  %v4196_v46 = vld [vmem:[#allocation9 + $0x28] sm:$0xff] }
 0xd1f   :  { %4172 = vmatmul.f32.vlgmr.msrb.gmra.mxu1 %v4138_v26  ;;  %v4125_v19 = vsub.f32 1.0, %v4124_v44  ;;  %4379 = vmatpush.msrb.mxu2 %v4285_v28  ;;  %v4052_v60 = vadd.f32 %v4028_v41, %v234_v25  ;;  %v4206_v26 = vld [vmem:[#allocation9 + $0x78] sm:$0xff]  ;;  %v4256_v44 = vld [vmem:[#allocation9 + $0x208] sm:$0xff] }
 0xd20   :  { %4586 = vmatpush.msra.mxu3 %v4274_v62  ;;  %4368 = vmatpush.msra.mxu1 %v4212_v17  ;;  %v4220_v28 = vld [vmem:[#allocation9 + $0xe8] sm:$0xff]  ;;  %v4214_v41 = vld [vmem:[#allocation9 + $0xb8] sm:$0xff]  ;;  %v8302_v62 = vld [vmem:[#allocation26_spill] sm:$0xff] }
 0xd21   :  { %v4126_v15 = vmul.f32 %v4815_v31, %v4125_v19  ;;  %v4058_v27 = vadd.f32 %v4052_v60, %v3809_v54  ;;  %4380 = vmatpush.msrb.mxu2 %v4279_v10  ;;  %v4200_v19 = vld [vmem:[#allocation9 + $0x48] sm:$0xff]  ;;  %v4201_v60 = vld [vmem:[#allocation9 + $0x50] sm:$0xff]  ;;  %v364_v54 = vadd.f32 %v8301_v11, %v5212_v5  ;;  %v367_v43 = vadd.f32 %v8302_v62, %v5212_v5 }
 0xd22   :  { %4587 = vmatpush.msra.mxu3 %v4268_v56  ;;  %4369 = vmatpush.msra.mxu1 %v4206_v26  ;;  %v4208_v25 = vld [vmem:[#allocation9 + $0x88] sm:$0xff] }
 0xd23   :  { %v4127_v8 = vadd.f32 %v4815_v31, %v4126_v15  ;;  %v4576_v63 = vmul.f32 -1.442695, %v4058_v27  ;;  %4381 = vmatpush.msrb.mxu2 %v4273_v23 }
 0xd24   :  { %4370 = vmatpush.msra.mxu1 %v4200_v19 }
 0xd25   :  { %v4131_v32 = vsel %vm4130_vm14, %v4815_v31, %v4127_v8  ;;  %4816 = vpow2.f32 %v4576_v63  ;;  %v3812_v2 = vpop.f32.mrf.mxu3  ;;  %4382 = vmatpush.msrb.mxu2 %v4267_v9  ;;  %v4262_v31 = vld [vmem:[#allocation9 + $0x238] sm:$0xff] }
 0xd26   :  { %v4136_v20 = vsel %vm4133_vm15, %v4135_v55, %v4131_v32  ;;  %v4060_v22 = vadd.f32 %v4055_v47, %v3812_v2  ;;  %4406 = vmatpush.msra.mxu0 %v4262_v31  ;;  %4588 = vmatpush.msra.mxu3 %v4262_v31  ;;  %v4231_v55 = vld [vmem:[#allocation9 + $0x140] sm:$0xff]  ;;  %v4232_v32 = vld [vmem:[#allocation9 + $0x148] sm:$0xff] }
 0xd27   :  { %v4139_v12 = vmul.f32 %v4136_v20, %v7556_v7  ;;  %4383 = vmatpush.msrb.mxu2 %v4261_v0  ;;  %4371 = vmatpush.msra.mxu1 %v4194_v38  ;;  %v4225_v20 = vld [vmem:[#allocation9 + $0x110] sm:$0xff] }
 0xd28   :  { %v4578_v52 = vmul.f32 -1.442695, %v4060_v22  ;;  %4407 = vmatpush.msra.mxu0 %v4256_v44  ;;  %4589 = vmatpush.msra.mxu3 %v4256_v44 }
 0xd29   :  { %4175 = vmatmul.f32.gmra.mxu1 %v4139_v12  ;;  %4384 = vmatpush.msrb.mxu2 %v4255_v18  ;;  %v4226_v12 = vld [vmem:[#allocation9 + $0x118] sm:$0xff] }
 0xd2a   :  { %4818 = vpow2.f32 %v4578_v52  ;;  %4408 = vmatpush.msra.mxu0 %v4250_v53  ;;  %4590 = vmatpush.msra.mxu3 %v4250_v53 }
 0xd2b   :  { %v4817_v29 = vpop.eup %4816  ;;  %4385 = vmatpush.msrb.mxu2 %v4249_v1 }
 0xd2c   :  { %v7724_v57 = vadd.f32 1.0, %v4817_v29  ;;  %4409 = vmatpush.msra.mxu0 %v4244_v21  ;;  %4591 = vmatpush.msra.mxu3 %v4244_v21 }
 0xd2d   :  { %4386 = vmatpush.msrb.mxu2 %v4243_v39  ;;  %v3901_v34 = vpop.f32.mrf.mxu3 }
 0xd2e   :  { %4820 = vrcp.f32 %v7724_v57  ;;  %4410 = vmatpush.msra.mxu0 %v4238_v35  ;;  %4592 = vmatpush.msra.mxu3 %v4238_v35  ;;  %v3939_v14 = vadd.f32 %v3901_v34, %v5715_v42  ;;  %v4089_v16 = vand.u32 2147483648, %v7724_v57  ;;  %vm4083_vm1 = vweird.f32 %v7724_v57 }
 0xd2f   :  { %4387 = vmatpush.msrb.mxu2 %v4237_v30  ;;  %v4087_v47 = vand.u32 2147483647, %v7724_v57 }
 0xd30   :  { %v4819_v51 = vpop.eup %4818  ;;  %4411 = vmatpush.msra.mxu0 %v4232_v32  ;;  %4593 = vmatpush.msra.mxu3 %v4232_v32  ;;  %v4030_v58 = vadd.f32 %v7650_v37, %v3939_v14  ;;  %v4195_v37 = vld [vmem:[#allocation9 + $0x20] sm:$0xff]  ;;  %v4090_v10 = vor.u32 1.1754944e-38, %v4089_v16 }
 0xd31   :  { %v7729_v15 = vadd.f32 1.0, %v4819_v51  ;;  %4388 = vmatpush.msrb.mxu2 %v4231_v55  ;;  %vm4088_vm3 = vcmp.eq.f32.partialorder %v4087_v47, 8.507059e+37 }
 0xd32   :  { %4412 = vmatpush.msra.mxu0 %v4226_v12  ;;  %4594 = vmatpush.msra.mxu3 %v4226_v12  ;;  %v4054_v63 = vadd.f32 %v4030_v58, %v364_v54 }
 0xd33   :  { %4822 = vrcp.f32 %v7729_v15  ;;  %4389 = vmatpush.msrb.mxu2 %v4225_v20  ;;  %vm4113_vm6 = vweird.f32 %v7729_v15  ;;  %v4117_v18 = vand.u32 2147483647, %v7729_v15 }
 0xd34   :  { %v7727_v13 = vpop.eup %4820  ;;  %4413 = vmatpush.msra.mxu0 %v4220_v28  ;;  %4595 = vmatpush.msra.mxu3 %v4220_v28 }
 0xd35   :  { %v4079_v8 = vmul.f32 %v7727_v13, %v7724_v57  ;;  %4390 = vmatpush.msrb.mxu2 %v4219_v36  ;;  %vm4084_vm0 = vweird.f32 %v7727_v13  ;;  %v3904_v22 = vpop.f32.mrf.mxu3  ;;  %vm4118_vm8 = vcmp.eq.f32.partialorder %v4117_v18, 8.507059e+37 }
 0xd36   :  { %4414 = vmatpush.msra.mxu0 %v4214_v41  ;;  %4596 = vmatpush.msra.mxu3 %v4214_v41  ;;  %vm4085_vm2 = vmor %vm4083_vm1, %vm4084_vm0  ;;  %v3942_v3 = vadd.f32 %v3904_v22, %v5715_v42  ;;  %v4119_v42 = vand.u32 2147483648, %v7729_v15 }
 0xd37   :  { %v4080_v24 = vsub.f32 1.0, %v4079_v8  ;;  %4391 = vmatpush.msrb.mxu2 %v4213_v61 }
 0xd38   :  { %4415 = vmatpush.msra.mxu0 %v4208_v25  ;;  %4597 = vmatpush.msra.mxu3 %v4208_v25  ;;  %v4033_v23 = vadd.f32 %v7676_v6, %v3942_v3  ;;  %v4120_v19 = vor.u32 1.1754944e-38, %v4119_v42 }
 0xd39   :  { %v7735_v59 = vpop.eup %4822  ;;  %v4081_v4 = vmul.f32 %v7727_v13, %v4080_v24  ;;  %4392 = vmatpush.msrb.mxu2 %v4207_v48 }
 0xd3a   :  { %v4109_v27 = vmul.f32 %v7735_v59, %v7729_v15  ;;  %4416 = vmatpush.msra.mxu0 %v4202_v45  ;;  %4598 = vmatpush.msra.mxu3 %v4202_v45  ;;  %vm4114_vm5 = vweird.f32 %v7735_v59  ;;  %v4057_v26 = vadd.f32 %v4033_v23, %v367_v43 }
 0xd3b   :  { %v4082_v49 = vadd.f32 %v7727_v13, %v4081_v4  ;;  %4393 = vmatpush.msrb.mxu2 %v4201_v60  ;;  %vm4115_vm7 = vmor %vm4113_vm6, %vm4114_vm5 }
 0xd3c   :  { %v4110_v52 = vsub.f32 1.0, %v4109_v27  ;;  %4417 = vmatpush.msra.mxu0 %v4196_v46  ;;  %4599 = vmatpush.msra.mxu3 %v4196_v46 }
 0xd3d   :  { %4394 = vmatpush.msrb.mxu2 %v4195_v37  ;;  %v4086_v40 = vsel %vm4085_vm2, %v7727_v13, %v4082_v49 }
 0xd3e   :  { %v4091_v50 = vsel %vm4088_vm3, %v4090_v10, %v4086_v40  ;;  %v4111_v57 = vmul.f32 %v7735_v59, %v4110_v52 }
 0xd3f   :  { %v4185_v9 = vsub.f32 1.0, %v4091_v50  ;;  %v4183_v0 = vmul.f32 %v4091_v50, %v7546_v33 }
 0xd40   :  { %v4112_v17 = vadd.f32 %v7735_v59, %v4111_v57 }
 0xd42   :  { %v4116_v51 = vsel %vm4115_vm7, %v7735_v59, %v4112_v17 }
 0xd43   :  { %v4121_v33 = vsel %vm4118_vm8, %v4120_v19, %v4116_v51 }
 0xd44   :  { %v4186_v1 = vsub.f32 1.0, %v4121_v33  ;;  %v4184_v13 = vmul.f32 %v4121_v33, %v7556_v7  ;;  %v4832_v7 = vld [vmem:[%s7781_s8] ss:$0 sm:$0xff] }
 0xd9c   :  { %v4173_v2 = vpop.f32.mrf.mxu1 }
 0xd9d   :  { %v4179_v29 = vadd.f32 %v4173_v2, %v4054_v63 }
 0xd9f   :  { %4824 = vtanh.f32 %v4179_v29 }
 0xda5   :  { %v4825_v56 = vpop.eup %4824 }
 0xda6   :  { %v4187_v31 = vmul.f32 %v4825_v56, %v4185_v9  ;;  %v4176_v6 = vpop.f32.mrf.mxu1 }
 0xda7   :  { %v4180_v5 = vadd.f32 %v4176_v6, %v4057_v26 }
 0xda8   :  { %v4189_v44 = vadd.f32 %v4187_v31, %v4183_v0 }
 0xda9   :  { %4826 = vtanh.f32 %v4180_v5 }
 0xdaa   :  { %4303 = vmatmul.f32.vlgmr.msra.gmra.mxu2 %v4189_v44  ;;  %4326 = vmatmul.f32.vlgmr.msrb.gmra.mxu3 %v4189_v44 }
 0xdab   :  { %4349 = vmatmul.f32.vlgmr.msrb.gmra.mxu0 %v4189_v44  ;;  %4372 = vmatmul.f32.vlgmr.msra.gmra.mxu1 %v4189_v44 }
 0xdaf   :  { %v4827_v53 = vpop.eup %4826 }
 0xdb0   :  { %v4188_v38 = vmul.f32 %v4827_v53, %v4186_v1 }
 0xdb2   :  { %v4190_v15 = vadd.f32 %v4188_v38, %v4184_v13 }
 0xdb4   :  { %4306 = vmatmul.f32.gmra.mxu2 %v4190_v15  ;;  %4329 = vmatmul.f32.gmra.mxu3 %v4190_v15 }
 0xdb5   :  { %4352 = vmatmul.f32.gmra.mxu0 %v4190_v15  ;;  %4375 = vmatmul.f32.gmra.mxu1 %v4190_v15 }
 0xdbc   :  { %4395 = vmatmul.f32.vlgmr.msrb.gmra.mxu2 %v4189_v44  ;;  %4421 = vmatmul.f32.vlgmr.msra.gmra.mxu3 %v4190_v15 }
 0xdbd   :  { %4418 = vmatmul.f32.vlgmr.msra.gmra.mxu0 %v4189_v44 }
 0xdc4   :  { %4398 = vmatmul.f32.gmra.mxu2 %v4190_v15 }
 0xe28   :  { %v4350_v39 = vpop.f32.mrf.mxu0  ;;  %v4373_v21 = vpop.f32.mrf.mxu1 }
 0xe2d   :  { %v4304_v8 = vpop.f32.mrf.mxu2  ;;  %v4327_v30 = vpop.f32.mrf.mxu3 }
 0xe32   :  { %v4353_v35 = vpop.f32.mrf.mxu0  ;;  %v4376_v55 = vpop.f32.mrf.mxu1 }
 0xe37   :  { %v4307_v32 = vpop.f32.mrf.mxu2  ;;  %v4330_v34 = vpop.f32.mrf.mxu3 }
 0xe3a   :  { %v4419_v24 = vpop.f32.mrf.mxu0 }
 0xe3b   :  { %v4425_v20 = vadd.f32 %v4832_v7, %v4419_v24 }
 0xe3d   :  { %4580 = vst.msk [vmem:[%s7783_s10 + $0x70] sm:$0xff] %vm67_vm4, %v4425_v20 }
 0xe3f   :  { %v4396_v12 = vpop.f32.mrf.mxu2  ;;  %v4422_v36 = vpop.f32.mrf.mxu3 }
 0xe40   :  { %v4426_v28 = vadd.f32 %v4832_v7, %v4422_v36 }
 0xe42   :  { %4581 = vst.msk [vmem:[%s7783_s10 + $0x78] sm:$0xff] %vm67_vm4, %v4426_v28 }
 0xe47   :  { %v4399_v14 = vpop.f32.mrf.mxu2 }
 0xe48   :  { %4461 = vsyncpa [#allocation10], 1 }

</bundles_post_ra>
